<compile_context>
chip_gen: v6e
topology: v6e:2x2x1
jax: 0.10.0
libtpu: 0.0.40
codegen_flags: <defaults>
</compile_context>

<pallas_src>
import jax
import jax.numpy as jnp
from jax import lax
from jax.experimental import pallas as pl
from jax.experimental.pallas import tpu as pltpu


# -----------------------------------------------------------------------------
# In-kernel helpers (all arrays are [rows, H*W] with spatial flattened on lanes)
# -----------------------------------------------------------------------------
def _shift_flat(a, s):
    """b[:, p] = a[:, p + s], zero-filled outside [0, N).  a: [R, N]."""
    if s == 0:
        return a
    r = a.shape[0]
    z = jnp.zeros((r, abs(s)), a.dtype)
    if s > 0:
        return jnp.concatenate([a[:, s:], z], axis=1)
    return jnp.concatenate([z, a[:, :s]], axis=1)


def _window_sums_nchw(x, H, W):
    """[9*C, 1] per-tap window sums of a zero-padded 3x3 'same' conv input.

    x: [C, H*W] f32 (row-major spatial).  Tap t = ky*3 + kx holds
    sum_{h,w} x_pad[c, h+ky, w+kx], built by inclusion/exclusion so the
    zero-padded halo is handled exactly (no padded copy is materialized).
    """
    HW = H * W
    lane = lax.broadcasted_iota(jnp.int32, (1, HW), 1)
    wpos = lane % W
    T = jnp.sum(x, axis=1, keepdims=True)                                    # [C,1]
    RT = jnp.sum(jnp.where(lane < W, x, 0.0), axis=1, keepdims=True)         # first row
    RB = jnp.sum(jnp.where(lane >= HW - W, x, 0.0), axis=1, keepdims=True)   # last row
    CL = jnp.sum(jnp.where(wpos == 0, x, 0.0), axis=1, keepdims=True)        # first col
    CR = jnp.sum(jnp.where(wpos == W - 1, x, 0.0), axis=1, keepdims=True)    # last col
    c00 = x[:, 0:1]
    c0W = x[:, W - 1:W]
    cH0 = x[:, HW - W:HW - W + 1]
    cHW = x[:, HW - 1:HW]
    taps = [
        T - RB - CR + cHW, T - RB, T - RB - CL + cH0,   # ky = 0
        T - CR,            T,      T - CL,              # ky = 1
        T - RT - CR + c0W, T - RT, T - RT - CL + c00,   # ky = 2
    ]
    return jnp.concatenate(taps, axis=0)                # [9C, 1]


# -----------------------------------------------------------------------------
# Kernel 1: style half of both FilterPredictors -> per-sample means [2*inner, 1]
# -----------------------------------------------------------------------------
def _make_style_kernel(H, W):
    hw_inv = 1.0 / float(H * W)

    def kernel(s_ref, w9t_ref, dbc_ref, out_ref):
        s = s_ref[0].astype(jnp.float32)                       # [C, HW]
        s9 = _window_sums_nchw(s, H, W)                        # [9C, 1]
        m = (jnp.dot(w9t_ref[...], s9, preferred_element_type=jnp.float32)
             * hw_inv + dbc_ref[...])                          # [2*inner, 1]
        out_ref[0] = m.astype(out_ref.dtype)

    return kernel


# -----------------------------------------------------------------------------
# Kernel 2 (main, fully fused): content-branch predictor + FC -> dynamic
# filters, then down-conv + filter1 + LeakyReLU + filter2 + up-conv + residual.
# -----------------------------------------------------------------------------
def _make_main_kernel(H, W, inner):
    HW = H * W
    I = inner
    n = I * I
    hw_inv = 1.0 / float(HW)

    def kernel(x_ref, sm_ref, w9t_ref, dbc_ref, fcw_ref, fcb1_ref, fcb2_ref,
               kfw_ref, kfb_ref, upw_ref, upb_ref, o_ref):
        x = x_ref[0]                                            # [C, HW] f32
        lane = lax.broadcasted_iota(jnp.int32, (1, HW), 1)
        wpos = lane % W
        ok_pos = wpos != (W - 1)   # valid destinations after a dx = +1 shift
        ok_neg = wpos != 0         # valid destinations after a dx = -1 shift

        # ---- predictor (content branch fused): means -> FC -> dynamic filters
        s9 = _window_sums_nchw(x, H, W)                          # [9C, 1]
        cmeans = (jnp.dot(w9t_ref[...], s9, preferred_element_type=jnp.float32)
                  * hw_inv + dbc_ref[...])                       # [2I, 1]
        smeans = sm_ref[0]                                       # [2I, 1]
        pair = jnp.concatenate(
            [cmeans, smeans, jnp.zeros((2 * I, 6), jnp.float32)], axis=1)  # [2I, 8]
        pair_t = pair.T                                          # [8, 2I]
        crow, srow = pair_t[0:1, :], pair_t[1:2, :]
        feat1 = jnp.concatenate([crow[:, :I], srow[:, :I]], axis=1)   # [1, 2I]
        feat2 = jnp.concatenate([crow[:, I:], srow[:, I:]], axis=1)   # [1, 2I]
        feats = jnp.concatenate([feat1, feat2], axis=0)               # [2, 2I]
        fc = jnp.dot(feats, fcw_ref[...], preferred_element_type=jnp.float32)  # [2, 2n]
        # assemble the [I, I] filters row-by-row (lane slices + sublane concat)
        filt1 = jnp.concatenate(
            [fc[0:1, o * I:(o + 1) * I] for o in range(I)], axis=0) + fcb1_ref[...]
        filt2 = jnp.concatenate(
            [fc[1:2, n + o * I:n + (o + 1) * I] for o in range(I)], axis=0) + fcb2_ref[...]

        # ---- down_sample: one [9I, C] @ [C, HW] matmul, shifts on narrow output
        xb = x.astype(jnp.bfloat16)
        z = jnp.dot(kfw_ref[...], xb, preferred_element_type=jnp.float32)   # [9I, HW]
        c0 = jnp.zeros((I, HW), jnp.float32)
        for ky in range(3):
            band = _shift_flat(z[3 * I * ky:3 * I * (ky + 1), :], (ky - 1) * W)
            for kx in range(3):
                piece = _shift_flat(band[I * kx:I * (kx + 1), :], kx - 1)
                if kx == 2:
                    piece = jnp.where(ok_pos, piece, 0.0)
                elif kx == 0:
                    piece = jnp.where(ok_neg, piece, 0.0)
                c0 = c0 + piece
        c0 = c0 + kfb_ref[...]                                   # bias [I, 1]

        # ---- per-sample dynamic 1x1 filters (+ LeakyReLU(0.2)), bf16 operands
        c1 = jnp.dot(filt1.astype(jnp.bfloat16), c0.astype(jnp.bfloat16),
                     preferred_element_type=jnp.float32)         # [I, HW]
        c1 = jnp.where(c1 >= 0, c1, 0.2 * c1)
        c2 = jnp.dot(filt2.astype(jnp.bfloat16), c1.astype(jnp.bfloat16),
                     preferred_element_type=jnp.float32)         # [I, HW]

        # ---- upsample: 3x3 'same' conv, inner -> C, single im2col matmul ----
        c2b = c2.astype(jnp.bfloat16)
        taps = []
        for ky in range(3):
            for kx in range(3):
                t = _shift_flat(c2b, (ky - 1) * W + (kx - 1))
                if kx == 2:
                    t = jnp.where(ok_pos, t, 0.0)
                elif kx == 0:
                    t = jnp.where(ok_neg, t, 0.0)
                taps.append(t)
        patch = jnp.concatenate(taps, axis=0)                    # [9I, HW] bf16
        up = jnp.dot(upw_ref[...], patch, preferred_element_type=jnp.float32)  # [C, HW]
        o_ref[0] = (up + upb_ref[...] + x).astype(o_ref.dtype)   # residual in f32

    return kernel


# -----------------------------------------------------------------------------
# Host-side weight preparation (pure layout plumbing, done once per call)
# -----------------------------------------------------------------------------
def _prepare_params(params):
    I = params["kf_dw"].shape[-1]
    C = params["kf_dw"].shape[2]
    f32 = jnp.float32

    # Predictor down-convs (F1 + F2 fused along Cout), tap-major contraction.
    w9 = jnp.concatenate([params["F1"]["dw"], params["F2"]["dw"]], axis=-1)  # [3,3,C,2I]
    w9t = w9.reshape(9 * C, 2 * I).T.astype(f32)                             # [2I, 9C]
    dbc = jnp.concatenate([params["F1"]["db"], params["F2"]["db"]],
                          axis=-1).reshape(2 * I, 1).astype(f32)
    # FC weights fused along N (raw layout; NCHW application needs no permute).
    fcw = jnp.concatenate([params["F1"]["fcw"], params["F2"]["fcw"]], axis=-1).astype(f32)
    fcb1 = params["F1"]["fcb"].reshape(I, I).astype(f32)
    fcb2 = params["F2"]["fcb"].reshape(I, I).astype(f32)

    # Main down-conv: W_t^T stacked tap-major -> [9I, C] (bf16 operand).
    kfw9 = params["kf_dw"].transpose(0, 1, 3, 2).reshape(9 * I, C).astype(jnp.bfloat16)
    kfb = params["kf_db"].reshape(I, 1).astype(f32)
    # Up-conv as an im2col weight [C, 9I] (bf16 operand).
    upwt = params["up_w"].reshape(9 * I, C).T.astype(jnp.bfloat16)
    upb = params["up_b"].reshape(C, 1).astype(f32)

    return dict(inner=I, C=C, w9t=w9t, dbc=dbc, fcw=fcw, fcb1=fcb1, fcb2=fcb2,
                kfw9=kfw9, kfb=kfb, upwt=upwt, upb=upb)


def _vmem_limit_bytes():
    # v5e/v6e: 128 MiB physical VMEM -> ~96-100 MiB; v7x: 64 MiB -> ~48 MiB.
    try:
        cap = int(pltpu.get_tpu_info().vmem_capacity_bytes)
    except Exception:
        cap = 64 * 1024 * 1024
    return min((cap * 3) // 4, 100 * 1024 * 1024)


# -----------------------------------------------------------------------------
# KernelFilter forward (NCHW in, NCHW out; no transposes, reshapes are free)
# -----------------------------------------------------------------------------
def kernel_filter_forward(params, content_nchw, style_nchw):
    B, C, H, W = content_nchw.shape
    HW = H * W
    p = _prepare_params(params)
    I = p["inner"]
    assert p["C"] == C

    content = content_nchw.reshape(B, C, HW)    # metadata-only
    style = style_nchw.reshape(B, C, HW)

    cparams = pltpu.CompilerParams(dimension_semantics=("parallel",),
                                   vmem_limit_bytes=_vmem_limit_bytes())
    full = lambda b: (0, 0)

    # ---- style half of the predictors: one streaming pass over style ------
    smeans = pl.pallas_call(
        _make_style_kernel(H, W),
        out_shape=jax.ShapeDtypeStruct((B, 2 * I, 1), jnp.float32),
        grid=(B,),
        in_specs=[
            pl.BlockSpec((1, C, HW), lambda b: (b, 0, 0)),
            pl.BlockSpec((2 * I, 9 * C), full),
            pl.BlockSpec((2 * I, 1), full),
        ],
        out_specs=pl.BlockSpec((1, 2 * I, 1), lambda b: (b, 0, 0)),
        compiler_params=cparams,
    )(style, p["w9t"], p["dbc"])

    # ---- fused main kernel: content is read from HBM exactly once ---------
    out = pl.pallas_call(
        _make_main_kernel(H, W, I),
        out_shape=jax.ShapeDtypeStruct((B, C, HW), content_nchw.dtype),
        grid=(B,),
        in_specs=[
            pl.BlockSpec((1, C, HW), lambda b: (b, 0, 0)),
            pl.BlockSpec((1, 2 * I, 1), lambda b: (b, 0, 0)),
            pl.BlockSpec((2 * I, 9 * C), full),
            pl.BlockSpec((2 * I, 1), full),
            pl.BlockSpec((2 * I, 2 * I * I), full),
            pl.BlockSpec((I, I), full),
            pl.BlockSpec((I, I), full),
            pl.BlockSpec((9 * I, C), full),
            pl.BlockSpec((I, 1), full),
            pl.BlockSpec((C, 9 * I), full),
            pl.BlockSpec((C, 1), full),
        ],
        out_specs=pl.BlockSpec((1, C, HW), lambda b: (b, 0, 0)),
        compiler_params=cparams,
    )(content, smeans, p["w9t"], p["dbc"], p["fcw"], p["fcb1"], p["fcb2"],
      p["kfw9"], p["kfb"], p["upwt"], p["upb"])

    return out.reshape(B, C, H, W)


# -----------------------------------------------------------------------------
# Pure-JAX reference (for the built-in correctness check)
# -----------------------------------------------------------------------------
def _ref_conv3x3(x, w, bias):
    y = lax.conv_general_dilated(x, w, (1, 1), "SAME",
                                 dimension_numbers=("NHWC", "HWIO", "NHWC"))
    return y + bias.reshape(1, 1, 1, -1)


def _ref_forward(params, content_nchw, style_nchw):
    content = jnp.transpose(content_nchw, (0, 2, 3, 1))
    style = jnp.transpose(style_nchw, (0, 2, 3, 1))

    def predictor(p):
        inner = p["dw"].shape[-1]
        c = jnp.mean(_ref_conv3x3(content, p["dw"], p["db"]), axis=(1, 2))
        s = jnp.mean(_ref_conv3x3(style, p["dw"], p["db"]), axis=(1, 2))
        f = jnp.concatenate([c, s], axis=1) @ p["fcw"] + p["fcb"]
        return f.reshape(-1, inner, inner)

    c0 = _ref_conv3x3(content, params["kf_dw"], params["kf_db"])
    c1 = jnp.einsum("bhwj,bij->bhwi", c0, predictor(params["F1"]))
    c1 = jnp.where(c1 >= 0, c1, 0.2 * c1)
    c2 = jnp.einsum("bhwj,bij->bhwi", c1, predictor(params["F2"]))
    out = content + _ref_conv3x3(c2, params["up_w"], params["up_b"])
    return jnp.transpose(out, (0, 3, 1, 2))


if __name__ == "__main__":
    # Small shapes consistent with the module (module defaults: vgg=512, inner=32).
    B, VGG, INNER, H, W = 2, 128, 32, 16, 16

    key = jax.random.PRNGKey(0)
    ks = jax.random.split(key, 16)

    def nrm(k, shape, scale=0.05):
        return (scale * jax.random.normal(k, shape)).astype(jnp.float32)

    # Deterministic synthetic parameters (HWIO conv weights; FC stored as [K, N]).
    params = {
        "kf_dw": nrm(ks[0], (3, 3, VGG, INNER)),
        "kf_db": nrm(ks[1], (1, INNER)),
        "up_w": nrm(ks[2], (3, 3, INNER, VGG)),
        "up_b": nrm(ks[3], (1, VGG)),
        "F1": {"dw": nrm(ks[4], (3, 3, VGG, INNER)),
               "db": nrm(ks[5], (1, INNER)),
               "fcw": nrm(ks[6], (2 * INNER, INNER * INNER)),
               "fcb": nrm(ks[7], (1, INNER * INNER))},
        "F2": {"dw": nrm(ks[8], (3, 3, VGG, INNER)),
               "db": nrm(ks[9], (1, INNER)),
               "fcw": nrm(ks[10], (2 * INNER, INNER * INNER)),
               "fcb": nrm(ks[11], (1, INNER * INNER))},
    }

    content = jax.random.normal(ks[12], (B, VGG, H, W), jnp.float32)
    style = jax.random.normal(ks[13], (B, VGG, H, W), jnp.float32)

    out = jax.jit(kernel_filter_forward)(params, content, style)
    out = jax.block_until_ready(out)
    assert out.shape == (B, VGG, H, W)

    ref = _ref_forward(params, content, style)
    max_err = float(jnp.max(jnp.abs(out - ref)))
    # bf16 matmul operands with f32 accumulation across four chained matmuls.
    assert max_err < 2e-2, f"mismatch vs reference: {max_err}"

    print("KERNEL_OK")
</pallas_src>

<mosaic_0001>
module attributes {stable_mosaic.version = 11 : i64} {
  func.func @kernel(%arg0: i32, %arg1: memref<1x128x256xf32, #tpu.memory_space<vmem>>, %arg2: memref<64x1152xf32, #tpu.memory_space<vmem>>, %arg3: memref<64x1xf32, #tpu.memory_space<vmem>>, %arg4: memref<1x64x1xf32, #tpu.memory_space<vmem>>) attributes {dimension_semantics = [#tpu.dimension_semantics<parallel>], iteration_bounds = array<i64: 2>, scalar_prefetch = 0 : i64, scratch_operands = 0 : i64, tpu.core_type = #tpu.core_type<tc>, window_params = [{transform_indices = @transform_0, window_bounds = array<i64: 1, 128, 256>}, {pipeline_mode = #tpu.pipeline_mode<synchronous>, transform_indices = @transform_1, window_bounds = array<i64: 64, 1152>}, {pipeline_mode = #tpu.pipeline_mode<synchronous>, transform_indices = @transform_2, window_bounds = array<i64: 64, 1>}, {transform_indices = @transform_3, window_bounds = array<i64: 1, 64, 1>}]} {
    %c0 = arith.constant 0 : index
    %c0_0 = arith.constant 0 : index
    %c0_1 = arith.constant 0 : index
    %0 = vector.load %arg1[%c0, %c0_0, %c0_1] : memref<1x128x256xf32, #tpu.memory_space<vmem>>, vector<1x128x256xf32>
    %1 = vector.shape_cast %0 : vector<1x128x256xf32> to vector<128x256xf32>
    %2 = tpu.iota {dimensions = array<i32: 1>} : vector<1x256xi32>
    %c16_i32 = arith.constant 16 : i32
    %c0_i32 = arith.constant 0 : i32
    %3 = arith.cmpi eq, %c16_i32, %c0_i32 : i32
    %c1_i32 = arith.constant 1 : i32
    %4 = arith.select %3, %c1_i32, %c16_i32 : i32
    %5 = vector.broadcast %4 : i32 to vector<1x256xi32>
    %6 = arith.remsi %2, %5 : vector<1x256xi32>
    %c0_i32_2 = arith.constant 0 : i32
    %7 = vector.broadcast %c0_i32_2 : i32 to vector<1x256xi32>
    %8 = arith.cmpi ne, %6, %7 : vector<1x256xi32>
    %c0_i32_3 = arith.constant 0 : i32
    %9 = vector.broadcast %c0_i32_3 : i32 to vector<1x256xi32>
    %10 = arith.cmpi slt, %6, %9 : vector<1x256xi32>
    %c0_i32_4 = arith.constant 0 : i32
    %11 = arith.cmpi slt, %4, %c0_i32_4 : i32
    %12 = vector.broadcast %11 : i1 to vector<1x256xi1>
    %13 = vector.broadcast %12 : vector<1x256xi1> to vector<1x256xi1>
    %14 = arith.xori %10, %13 : vector<1x256xi1>
    %15 = arith.andi %14, %8 : vector<1x256xi1>
    %16 = vector.broadcast %4 : i32 to vector<1x256xi32>
    %17 = arith.addi %6, %16 : vector<1x256xi32>
    %18 = arith.select %15, %17, %6 : vector<1x256xi1>, vector<1x256xi32>
    %cst = arith.constant dense<0.000000e+00> : vector<128xf32>
    %19 = vector.multi_reduction <add>, %1, %cst [1] : vector<128x256xf32> to vector<128xf32>
    %20 = vector.shape_cast %19 : vector<128xf32> to vector<128x1xf32>
    %c16_i32_5 = arith.constant 16 : i32
    %21 = vector.broadcast %c16_i32_5 : i32 to vector<1x256xi32>
    %22 = arith.cmpi slt, %2, %21 : vector<1x256xi32>
    %cst_6 = arith.constant 0.000000e+00 : f32
    %23 = vector.shape_cast %22 : vector<1x256xi1> to vector<1x256xi1>
    %24 = vector.broadcast %23 : vector<1x256xi1> to vector<128x256xi1>
    %25 = vector.broadcast %cst_6 : f32 to vector<128x256xf32>
    %26 = arith.select %24, %1, %25 : vector<128x256xi1>, vector<128x256xf32>
    %cst_7 = arith.constant dense<0.000000e+00> : vector<128xf32>
    %27 = vector.multi_reduction <add>, %26, %cst_7 [1] : vector<128x256xf32> to vector<128xf32>
    %28 = vector.shape_cast %27 : vector<128xf32> to vector<128x1xf32>
    %c240_i32 = arith.constant 240 : i32
    %29 = vector.broadcast %c240_i32 : i32 to vector<1x256xi32>
    %30 = arith.cmpi sge, %2, %29 : vector<1x256xi32>
    %cst_8 = arith.constant 0.000000e+00 : f32
    %31 = vector.shape_cast %30 : vector<1x256xi1> to vector<1x256xi1>
    %32 = vector.broadcast %31 : vector<1x256xi1> to vector<128x256xi1>
    %33 = vector.broadcast %cst_8 : f32 to vector<128x256xf32>
    %34 = arith.select %32, %1, %33 : vector<128x256xi1>, vector<128x256xf32>
    %cst_9 = arith.constant dense<0.000000e+00> : vector<128xf32>
    %35 = vector.multi_reduction <add>, %34, %cst_9 [1] : vector<128x256xf32> to vector<128xf32>
    %36 = vector.shape_cast %35 : vector<128xf32> to vector<128x1xf32>
    %c0_i32_10 = arith.constant 0 : i32
    %37 = vector.broadcast %c0_i32_10 : i32 to vector<1x256xi32>
    %38 = arith.cmpi eq, %18, %37 : vector<1x256xi32>
    %cst_11 = arith.constant 0.000000e+00 : f32
    %39 = vector.shape_cast %38 : vector<1x256xi1> to vector<1x256xi1>
    %40 = vector.broadcast %39 : vector<1x256xi1> to vector<128x256xi1>
    %41 = vector.broadcast %cst_11 : f32 to vector<128x256xf32>
    %42 = arith.select %40, %1, %41 : vector<128x256xi1>, vector<128x256xf32>
    %cst_12 = arith.constant dense<0.000000e+00> : vector<128xf32>
    %43 = vector.multi_reduction <add>, %42, %cst_12 [1] : vector<128x256xf32> to vector<128xf32>
    %44 = vector.shape_cast %43 : vector<128xf32> to vector<128x1xf32>
    %c15_i32 = arith.constant 15 : i32
    %45 = vector.broadcast %c15_i32 : i32 to vector<1x256xi32>
    %46 = arith.cmpi eq, %18, %45 : vector<1x256xi32>
    %cst_13 = arith.constant 0.000000e+00 : f32
    %47 = vector.shape_cast %46 : vector<1x256xi1> to vector<1x256xi1>
    %48 = vector.broadcast %47 : vector<1x256xi1> to vector<128x256xi1>
    %49 = vector.broadcast %cst_13 : f32 to vector<128x256xf32>
    %50 = arith.select %48, %1, %49 : vector<128x256xi1>, vector<128x256xf32>
    %cst_14 = arith.constant dense<0.000000e+00> : vector<128xf32>
    %51 = vector.multi_reduction <add>, %50, %cst_14 [1] : vector<128x256xf32> to vector<128xf32>
    %52 = vector.shape_cast %51 : vector<128xf32> to vector<128x1xf32>
    %53 = vector.extract_strided_slice %1 {offsets = [0, 0], sizes = [128, 1], strides = [1, 1]} : vector<128x256xf32> to vector<128x1xf32>
    %54 = vector.extract_strided_slice %1 {offsets = [0, 15], sizes = [128, 1], strides = [1, 1]} : vector<128x256xf32> to vector<128x1xf32>
    %55 = vector.extract_strided_slice %1 {offsets = [0, 240], sizes = [128, 1], strides = [1, 1]} : vector<128x256xf32> to vector<128x1xf32>
    %56 = vector.extract_strided_slice %1 {offsets = [0, 255], sizes = [128, 1], strides = [1, 1]} : vector<128x256xf32> to vector<128x1xf32>
    %57 = arith.subf %20, %36 : vector<128x1xf32>
    %58 = arith.subf %57, %52 : vector<128x1xf32>
    %59 = arith.addf %58, %56 : vector<128x1xf32>
    %60 = arith.subf %20, %36 : vector<128x1xf32>
    %61 = arith.subf %20, %36 : vector<128x1xf32>
    %62 = arith.subf %61, %44 : vector<128x1xf32>
    %63 = arith.addf %62, %55 : vector<128x1xf32>
    %64 = arith.subf %20, %52 : vector<128x1xf32>
    %65 = arith.subf %20, %44 : vector<128x1xf32>
    %66 = arith.subf %20, %28 : vector<128x1xf32>
    %67 = arith.subf %66, %52 : vector<128x1xf32>
    %68 = arith.addf %67, %54 : vector<128x1xf32>
    %69 = arith.subf %20, %28 : vector<128x1xf32>
    %70 = arith.subf %20, %28 : vector<128x1xf32>
    %71 = arith.subf %70, %44 : vector<128x1xf32>
    %72 = arith.addf %71, %53 : vector<128x1xf32>
    %73 = tpu.concatenate %59, %60, %63, %64, %20, %65, %68, %69, %72 in 0 : vector<128x1xf32>, vector<128x1xf32>, vector<128x1xf32>, vector<128x1xf32>, vector<128x1xf32>, vector<128x1xf32>, vector<128x1xf32>, vector<128x1xf32>, vector<128x1xf32> -> vector<1152x1xf32>
    %c0_15 = arith.constant 0 : index
    %c0_16 = arith.constant 0 : index
    %74 = vector.load %arg2[%c0_15, %c0_16] : memref<64x1152xf32, #tpu.memory_space<vmem>>, vector<64x1152xf32>
    %cst_17 = arith.constant dense<0.000000e+00> : vector<64x1xf32>
    %75 = tpu.matmul %74, %73, %cst_17 {dimension_numbers = #tpu.dot_dimension_numbers<[1], [0], [0], [1], [0, 0, 1, 1], [], []>} : vector<64x1152xf32>, vector<1152x1xf32>, vector<64x1xf32> -> vector<64x1xf32>
    %cst_18 = arith.constant 3.906250e-03 : f32
    %76 = vector.broadcast %cst_18 : f32 to vector<64x1xf32>
    %77 = arith.mulf %75, %76 : vector<64x1xf32>
    %c0_19 = arith.constant 0 : index
    %c0_20 = arith.constant 0 : index
    %78 = vector.load %arg3[%c0_19, %c0_20] : memref<64x1xf32, #tpu.memory_space<vmem>>, vector<64x1xf32>
    %79 = arith.addf %77, %78 : vector<64x1xf32>
    %c0_21 = arith.constant 0 : index
    %c0_22 = arith.constant 0 : index
    %c0_23 = arith.constant 0 : index
    %80 = vector.load %arg4[%c0_21, %c0_22, %c0_23] : memref<1x64x1xf32, #tpu.memory_space<vmem>>, vector<1x64x1xf32>
    %81 = vector.shape_cast %80 : vector<1x64x1xf32> to vector<64x1xf32>
    %82 = vector.shape_cast %79 : vector<64x1xf32> to vector<1x64x1xf32>
    tpu.vector_store %arg4[%c0_21, %c0_22, %c0_23], %82 {strides = array<i32>} : memref<1x64x1xf32, #tpu.memory_space<vmem>>, vector<1x64x1xf32>,
    return
  }
  func.func @transform_0(%arg0: i32) -> (i32, i32, i32) {
    %c0_i32 = arith.constant 0 : i32
    %c0_i32_0 = arith.constant 0 : i32
    %c0_i32_1 = arith.constant 0 : i32
    return %arg0, %c0_i32, %c0_i32_0 : i32, i32, i32
  }
  func.func @transform_1(%arg0: i32) -> (i32, i32) {
    %c0_i32 = arith.constant 0 : i32
    %c0_i32_0 = arith.constant 0 : i32
    %c0_i32_1 = arith.constant 0 : i32
    return %c0_i32, %c0_i32_0 : i32, i32
  }
  func.func @transform_2(%arg0: i32) -> (i32, i32) {
    %c0_i32 = arith.constant 0 : i32
    %c0_i32_0 = arith.constant 0 : i32
    %c0_i32_1 = arith.constant 0 : i32
    return %c0_i32, %c0_i32_0 : i32, i32
  }
  func.func @transform_3(%arg0: i32) -> (i32, i32, i32) {
    %c0_i32 = arith.constant 0 : i32
    %c0_i32_0 = arith.constant 0 : i32
    %c0_i32_1 = arith.constant 0 : i32
    return %arg0, %c0_i32, %c0_i32_0 : i32, i32, i32
  }
}

module attributes {stable_mosaic.version = 11 : i64} {
  func.func @kernel(%arg0: i32, %arg1: memref<1x128x256xf32, #tpu.memory_space<vmem>>, %arg2: memref<1x64x1xf32, #tpu.memory_space<vmem>>, %arg3: memref<64x1152xf32, #tpu.memory_space<vmem>>, %arg4: memref<64x1xf32, #tpu.memory_space<vmem>>, %arg5: memref<64x2048xf32, #tpu.memory_space<vmem>>, %arg6: memref<32x32xf32, #tpu.memory_space<vmem>>, %arg7: memref<32x32xf32, #tpu.memory_space<vmem>>, %arg8: memref<288x128xbf16, #tpu.memory_space<vmem>>, %arg9: memref<32x1xf32, #tpu.memory_space<vmem>>, %arg10: memref<128x288xbf16, #tpu.memory_space<vmem>>, %arg11: memref<128x1xf32, #tpu.memory_space<vmem>>, %arg12: memref<1x128x256xf32, #tpu.memory_space<vmem>>) attributes {dimension_semantics = [#tpu.dimension_semantics<parallel>], iteration_bounds = array<i64: 2>, scalar_prefetch = 0 : i64, scratch_operands = 0 : i64, tpu.core_type = #tpu.core_type<tc>, window_params = [{transform_indices = @transform_0, window_bounds = array<i64: 1, 128, 256>}, {transform_indices = @transform_1, window_bounds = array<i64: 1, 64, 1>}, {pipeline_mode = #tpu.pipeline_mode<synchronous>, transform_indices = @transform_2, window_bounds = array<i64: 64, 1152>}, {pipeline_mode = #tpu.pipeline_mode<synchronous>, transform_indices = @transform_3, window_bounds = array<i64: 64, 1>}, {pipeline_mode = #tpu.pipeline_mode<synchronous>, transform_indices = @transform_4, window_bounds = array<i64: 64, 2048>}, {pipeline_mode = #tpu.pipeline_mode<synchronous>, transform_indices = @transform_5, window_bounds = array<i64: 32, 32>}, {pipeline_mode = #tpu.pipeline_mode<synchronous>, transform_indices = @transform_6, window_bounds = array<i64: 32, 32>}, {pipeline_mode = #tpu.pipeline_mode<synchronous>, transform_indices = @transform_7, window_bounds = array<i64: 288, 128>}, {pipeline_mode = #tpu.pipeline_mode<synchronous>, transform_indices = @transform_8, window_bounds = array<i64: 32, 1>}, {pipeline_mode = #tpu.pipeline_mode<synchronous>, transform_indices = @transform_9, window_bounds = array<i64: 128, 288>}, {pipeline_mode = #tpu.pipeline_mode<synchronous>, transform_indices = @transform_10, window_bounds = array<i64: 128, 1>}, {transform_indices = @transform_11, window_bounds = array<i64: 1, 128, 256>}]} {
    %c0 = arith.constant 0 : index
    %c0_0 = arith.constant 0 : index
    %c0_1 = arith.constant 0 : index
    %0 = vector.load %arg1[%c0, %c0_0, %c0_1] : memref<1x128x256xf32, #tpu.memory_space<vmem>>, vector<1x128x256xf32>
    %1 = vector.shape_cast %0 : vector<1x128x256xf32> to vector<128x256xf32>
    %2 = tpu.iota {dimensions = array<i32: 1>} : vector<1x256xi32>
    %c16_i32 = arith.constant 16 : i32
    %c0_i32 = arith.constant 0 : i32
    %3 = arith.cmpi eq, %c16_i32, %c0_i32 : i32
    %c1_i32 = arith.constant 1 : i32
    %4 = arith.select %3, %c1_i32, %c16_i32 : i32
    %5 = vector.broadcast %4 : i32 to vector<1x256xi32>
    %6 = arith.remsi %2, %5 : vector<1x256xi32>
    %c0_i32_2 = arith.constant 0 : i32
    %7 = vector.broadcast %c0_i32_2 : i32 to vector<1x256xi32>
    %8 = arith.cmpi ne, %6, %7 : vector<1x256xi32>
    %c0_i32_3 = arith.constant 0 : i32
    %9 = vector.broadcast %c0_i32_3 : i32 to vector<1x256xi32>
    %10 = arith.cmpi slt, %6, %9 : vector<1x256xi32>
    %c0_i32_4 = arith.constant 0 : i32
    %11 = arith.cmpi slt, %4, %c0_i32_4 : i32
    %12 = vector.broadcast %11 : i1 to vector<1x256xi1>
    %13 = vector.broadcast %12 : vector<1x256xi1> to vector<1x256xi1>
    %14 = arith.xori %10, %13 : vector<1x256xi1>
    %15 = arith.andi %14, %8 : vector<1x256xi1>
    %16 = vector.broadcast %4 : i32 to vector<1x256xi32>
    %17 = arith.addi %6, %16 : vector<1x256xi32>
    %18 = arith.select %15, %17, %6 : vector<1x256xi1>, vector<1x256xi32>
    %c15_i32 = arith.constant 15 : i32
    %19 = vector.broadcast %c15_i32 : i32 to vector<1x256xi32>
    %20 = arith.cmpi ne, %18, %19 : vector<1x256xi32>
    %c0_i32_5 = arith.constant 0 : i32
    %21 = vector.broadcast %c0_i32_5 : i32 to vector<1x256xi32>
    %22 = arith.cmpi ne, %18, %21 : vector<1x256xi32>
    %23 = tpu.iota {dimensions = array<i32: 1>} : vector<1x256xi32>
    %c16_i32_6 = arith.constant 16 : i32
    %c0_i32_7 = arith.constant 0 : i32
    %24 = arith.cmpi eq, %c16_i32_6, %c0_i32_7 : i32
    %c1_i32_8 = arith.constant 1 : i32
    %25 = arith.select %24, %c1_i32_8, %c16_i32_6 : i32
    %26 = vector.broadcast %25 : i32 to vector<1x256xi32>
    %27 = arith.remsi %23, %26 : vector<1x256xi32>
    %c0_i32_9 = arith.constant 0 : i32
    %28 = vector.broadcast %c0_i32_9 : i32 to vector<1x256xi32>
    %29 = arith.cmpi ne, %27, %28 : vector<1x256xi32>
    %c0_i32_10 = arith.constant 0 : i32
    %30 = vector.broadcast %c0_i32_10 : i32 to vector<1x256xi32>
    %31 = arith.cmpi slt, %27, %30 : vector<1x256xi32>
    %c0_i32_11 = arith.constant 0 : i32
    %32 = arith.cmpi slt, %25, %c0_i32_11 : i32
    %33 = vector.broadcast %32 : i1 to vector<1x256xi1>
    %34 = vector.broadcast %33 : vector<1x256xi1> to vector<1x256xi1>
    %35 = arith.xori %31, %34 : vector<1x256xi1>
    %36 = arith.andi %35, %29 : vector<1x256xi1>
    %37 = vector.broadcast %25 : i32 to vector<1x256xi32>
    %38 = arith.addi %27, %37 : vector<1x256xi32>
    %39 = arith.select %36, %38, %27 : vector<1x256xi1>, vector<1x256xi32>
    %cst = arith.constant dense<0.000000e+00> : vector<128xf32>
    %40 = vector.multi_reduction <add>, %1, %cst [1] : vector<128x256xf32> to vector<128xf32>
    %41 = vector.shape_cast %40 : vector<128xf32> to vector<128x1xf32>
    %c16_i32_12 = arith.constant 16 : i32
    %42 = vector.broadcast %c16_i32_12 : i32 to vector<1x256xi32>
    %43 = arith.cmpi slt, %23, %42 : vector<1x256xi32>
    %cst_13 = arith.constant 0.000000e+00 : f32
    %44 = vector.shape_cast %43 : vector<1x256xi1> to vector<1x256xi1>
    %45 = vector.broadcast %44 : vector<1x256xi1> to vector<128x256xi1>
    %46 = vector.broadcast %cst_13 : f32 to vector<128x256xf32>
    %47 = arith.select %45, %1, %46 : vector<128x256xi1>, vector<128x256xf32>
    %cst_14 = arith.constant dense<0.000000e+00> : vector<128xf32>
    %48 = vector.multi_reduction <add>, %47, %cst_14 [1] : vector<128x256xf32> to vector<128xf32>
    %49 = vector.shape_cast %48 : vector<128xf32> to vector<128x1xf32>
    %c240_i32 = arith.constant 240 : i32
    %50 = vector.broadcast %c240_i32 : i32 to vector<1x256xi32>
    %51 = arith.cmpi sge, %23, %50 : vector<1x256xi32>
    %cst_15 = arith.constant 0.000000e+00 : f32
    %52 = vector.shape_cast %51 : vector<1x256xi1> to vector<1x256xi1>
    %53 = vector.broadcast %52 : vector<1x256xi1> to vector<128x256xi1>
    %54 = vector.broadcast %cst_15 : f32 to vector<128x256xf32>
    %55 = arith.select %53, %1, %54 : vector<128x256xi1>, vector<128x256xf32>
    %cst_16 = arith.constant dense<0.000000e+00> : vector<128xf32>
    %56 = vector.multi_reduction <add>, %55, %cst_16 [1] : vector<128x256xf32> to vector<128xf32>
    %57 = vector.shape_cast %56 : vector<128xf32> to vector<128x1xf32>
    %c0_i32_17 = arith.constant 0 : i32
    %58 = vector.broadcast %c0_i32_17 : i32 to vector<1x256xi32>
    %59 = arith.cmpi eq, %39, %58 : vector<1x256xi32>
    %cst_18 = arith.constant 0.000000e+00 : f32
    %60 = vector.shape_cast %59 : vector<1x256xi1> to vector<1x256xi1>
    %61 = vector.broadcast %60 : vector<1x256xi1> to vector<128x256xi1>
    %62 = vector.broadcast %cst_18 : f32 to vector<128x256xf32>
    %63 = arith.select %61, %1, %62 : vector<128x256xi1>, vector<128x256xf32>
    %cst_19 = arith.constant dense<0.000000e+00> : vector<128xf32>
    %64 = vector.multi_reduction <add>, %63, %cst_19 [1] : vector<128x256xf32> to vector<128xf32>
    %65 = vector.shape_cast %64 : vector<128xf32> to vector<128x1xf32>
    %c15_i32_20 = arith.constant 15 : i32
    %66 = vector.broadcast %c15_i32_20 : i32 to vector<1x256xi32>
    %67 = arith.cmpi eq, %39, %66 : vector<1x256xi32>
    %cst_21 = arith.constant 0.000000e+00 : f32
    %68 = vector.shape_cast %67 : vector<1x256xi1> to vector<1x256xi1>
    %69 = vector.broadcast %68 : vector<1x256xi1> to vector<128x256xi1>
    %70 = vector.broadcast %cst_21 : f32 to vector<128x256xf32>
    %71 = arith.select %69, %1, %70 : vector<128x256xi1>, vector<128x256xf32>
    %cst_22 = arith.constant dense<0.000000e+00> : vector<128xf32>
    %72 = vector.multi_reduction <add>, %71, %cst_22 [1] : vector<128x256xf32> to vector<128xf32>
    %73 = vector.shape_cast %72 : vector<128xf32> to vector<128x1xf32>
    %74 = vector.extract_strided_slice %1 {offsets = [0, 0], sizes = [128, 1], strides = [1, 1]} : vector<128x256xf32> to vector<128x1xf32>
    %75 = vector.extract_strided_slice %1 {offsets = [0, 15], sizes = [128, 1], strides = [1, 1]} : vector<128x256xf32> to vector<128x1xf32>
    %76 = vector.extract_strided_slice %1 {offsets = [0, 240], sizes = [128, 1], strides = [1, 1]} : vector<128x256xf32> to vector<128x1xf32>
    %77 = vector.extract_strided_slice %1 {offsets = [0, 255], sizes = [128, 1], strides = [1, 1]} : vector<128x256xf32> to vector<128x1xf32>
    %78 = arith.subf %41, %57 : vector<128x1xf32>
    %79 = arith.subf %78, %73 : vector<128x1xf32>
    %80 = arith.addf %79, %77 : vector<128x1xf32>
    %81 = arith.subf %41, %57 : vector<128x1xf32>
    %82 = arith.subf %41, %57 : vector<128x1xf32>
    %83 = arith.subf %82, %65 : vector<128x1xf32>
    %84 = arith.addf %83, %76 : vector<128x1xf32>
    %85 = arith.subf %41, %73 : vector<128x1xf32>
    %86 = arith.subf %41, %65 : vector<128x1xf32>
    %87 = arith.subf %41, %49 : vector<128x1xf32>
    %88 = arith.subf %87, %73 : vector<128x1xf32>
    %89 = arith.addf %88, %75 : vector<128x1xf32>
    %90 = arith.subf %41, %49 : vector<128x1xf32>
    %91 = arith.subf %41, %49 : vector<128x1xf32>
    %92 = arith.subf %91, %65 : vector<128x1xf32>
    %93 = arith.addf %92, %74 : vector<128x1xf32>
    %94 = tpu.concatenate %80, %81, %84, %85, %41, %86, %89, %90, %93 in 0 : vector<128x1xf32>, vector<128x1xf32>, vector<128x1xf32>, vector<128x1xf32>, vector<128x1xf32>, vector<128x1xf32>, vector<128x1xf32>, vector<128x1xf32>, vector<128x1xf32> -> vector<1152x1xf32>
    %c0_23 = arith.constant 0 : index
    %c0_24 = arith.constant 0 : index
    %95 = vector.load %arg3[%c0_23, %c0_24] : memref<64x1152xf32, #tpu.memory_space<vmem>>, vector<64x1152xf32>
    %cst_25 = arith.constant dense<0.000000e+00> : vector<64x1xf32>
    %96 = tpu.matmul %95, %94, %cst_25 {dimension_numbers = #tpu.dot_dimension_numbers<[1], [0], [0], [1], [0, 0, 1, 1], [], []>} : vector<64x1152xf32>, vector<1152x1xf32>, vector<64x1xf32> -> vector<64x1xf32>
    %cst_26 = arith.constant 3.906250e-03 : f32
    %97 = vector.broadcast %cst_26 : f32 to vector<64x1xf32>
    %98 = arith.mulf %96, %97 : vector<64x1xf32>
    %c0_27 = arith.constant 0 : index
    %c0_28 = arith.constant 0 : index
    %99 = vector.load %arg4[%c0_27, %c0_28] : memref<64x1xf32, #tpu.memory_space<vmem>>, vector<64x1xf32>
    %100 = arith.addf %98, %99 : vector<64x1xf32>
    %c0_29 = arith.constant 0 : index
    %c0_30 = arith.constant 0 : index
    %c0_31 = arith.constant 0 : index
    %101 = vector.load %arg2[%c0_29, %c0_30, %c0_31] : memref<1x64x1xf32, #tpu.memory_space<vmem>>, vector<1x64x1xf32>
    %102 = vector.shape_cast %101 : vector<1x64x1xf32> to vector<64x1xf32>
    %cst_32 = arith.constant 0.000000e+00 : f32
    %103 = vector.broadcast %cst_32 : f32 to vector<64x6xf32>
    %104 = tpu.concatenate %100, %102, %103 in 1 : vector<64x1xf32>, vector<64x1xf32>, vector<64x6xf32> -> vector<64x8xf32>
    %105 = tpu.transpose %104, [1, 0] : vector<64x8xf32> -> vector<8x64xf32>
    %106 = vector.extract_strided_slice %105 {offsets = [0, 0], sizes = [1, 64], strides = [1, 1]} : vector<8x64xf32> to vector<1x64xf32>
    %107 = vector.extract_strided_slice %105 {offsets = [1, 0], sizes = [1, 64], strides = [1, 1]} : vector<8x64xf32> to vector<1x64xf32>
    %108 = vector.extract_strided_slice %106 {offsets = [0, 0], sizes = [1, 32], strides = [1, 1]} : vector<1x64xf32> to vector<1x32xf32>
    %109 = vector.extract_strided_slice %107 {offsets = [0, 0], sizes = [1, 32], strides = [1, 1]} : vector<1x64xf32> to vector<1x32xf32>
    %110 = tpu.concatenate %108, %109 in 1 : vector<1x32xf32>, vector<1x32xf32> -> vector<1x64xf32>
    %111 = vector.extract_strided_slice %106 {offsets = [0, 32], sizes = [1, 32], strides = [1, 1]} : vector<1x64xf32> to vector<1x32xf32>
    %112 = vector.extract_strided_slice %107 {offsets = [0, 32], sizes = [1, 32], strides = [1, 1]} : vector<1x64xf32> to vector<1x32xf32>
    %113 = tpu.concatenate %111, %112 in 1 : vector<1x32xf32>, vector<1x32xf32> -> vector<1x64xf32>
    %114 = tpu.concatenate %110, %113 in 0 : vector<1x64xf32>, vector<1x64xf32> -> vector<2x64xf32>
    %c0_33 = arith.constant 0 : index
    %c0_34 = arith.constant 0 : index
    %115 = vector.load %arg5[%c0_33, %c0_34] : memref<64x2048xf32, #tpu.memory_space<vmem>>, vector<64x2048xf32>
    %cst_35 = arith.constant dense<0.000000e+00> : vector<2x2048xf32>
    %116 = tpu.matmul %114, %115, %cst_35 {dimension_numbers = #tpu.dot_dimension_numbers<[1], [0], [0], [1], [0, 0, 1, 1], [], []>} : vector<2x64xf32>, vector<64x2048xf32>, vector<2x2048xf32> -> vector<2x2048xf32>
    %117 = vector.extract_strided_slice %116 {offsets = [0, 0], sizes = [1, 32], strides = [1, 1]} : vector<2x2048xf32> to vector<1x32xf32>
    %118 = vector.extract_strided_slice %116 {offsets = [0, 32], sizes = [1, 32], strides = [1, 1]} : vector<2x2048xf32> to vector<1x32xf32>
    %119 = vector.extract_strided_slice %116 {offsets = [0, 64], sizes = [1, 32], strides = [1, 1]} : vector<2x2048xf32> to vector<1x32xf32>
    %120 = vector.extract_strided_slice %116 {offsets = [0, 96], sizes = [1, 32], strides = [1, 1]} : vector<2x2048xf32> to vector<1x32xf32>
    %121 = vector.extract_strided_slice %116 {offsets = [0, 128], sizes = [1, 32], strides = [1, 1]} : vector<2x2048xf32> to vector<1x32xf32>
    %122 = vector.extract_strided_slice %116 {offsets = [0, 160], sizes = [1, 32], strides = [1, 1]} : vector<2x2048xf32> to vector<1x32xf32>
    %123 = vector.extract_strided_slice %116 {offsets = [0, 192], sizes = [1, 32], strides = [1, 1]} : vector<2x2048xf32> to vector<1x32xf32>
    %124 = vector.extract_strided_slice %116 {offsets = [0, 224], sizes = [1, 32], strides = [1, 1]} : vector<2x2048xf32> to vector<1x32xf32>
    %125 = vector.extract_strided_slice %116 {offsets = [0, 256], sizes = [1, 32], strides = [1, 1]} : vector<2x2048xf32> to vector<1x32xf32>
    %126 = vector.extract_strided_slice %116 {offsets = [0, 288], sizes = [1, 32], strides = [1, 1]} : vector<2x2048xf32> to vector<1x32xf32>
    %127 = vector.extract_strided_slice %116 {offsets = [0, 320], sizes = [1, 32], strides = [1, 1]} : vector<2x2048xf32> to vector<1x32xf32>
    %128 = vector.extract_strided_slice %116 {offsets = [0, 352], sizes = [1, 32], strides = [1, 1]} : vector<2x2048xf32> to vector<1x32xf32>
    %129 = vector.extract_strided_slice %116 {offsets = [0, 384], sizes = [1, 32], strides = [1, 1]} : vector<2x2048xf32> to vector<1x32xf32>
    %130 = vector.extract_strided_slice %116 {offsets = [0, 416], sizes = [1, 32], strides = [1, 1]} : vector<2x2048xf32> to vector<1x32xf32>
    %131 = vector.extract_strided_slice %116 {offsets = [0, 448], sizes = [1, 32], strides = [1, 1]} : vector<2x2048xf32> to vector<1x32xf32>
    %132 = vector.extract_strided_slice %116 {offsets = [0, 480], sizes = [1, 32], strides = [1, 1]} : vector<2x2048xf32> to vector<1x32xf32>
    %133 = vector.extract_strided_slice %116 {offsets = [0, 512], sizes = [1, 32], strides = [1, 1]} : vector<2x2048xf32> to vector<1x32xf32>
    %134 = vector.extract_strided_slice %116 {offsets = [0, 544], sizes = [1, 32], strides = [1, 1]} : vector<2x2048xf32> to vector<1x32xf32>
    %135 = vector.extract_strided_slice %116 {offsets = [0, 576], sizes = [1, 32], strides = [1, 1]} : vector<2x2048xf32> to vector<1x32xf32>
    %136 = vector.extract_strided_slice %116 {offsets = [0, 608], sizes = [1, 32], strides = [1, 1]} : vector<2x2048xf32> to vector<1x32xf32>
    %137 = vector.extract_strided_slice %116 {offsets = [0, 640], sizes = [1, 32], strides = [1, 1]} : vector<2x2048xf32> to vector<1x32xf32>
    %138 = vector.extract_strided_slice %116 {offsets = [0, 672], sizes = [1, 32], strides = [1, 1]} : vector<2x2048xf32> to vector<1x32xf32>
    %139 = vector.extract_strided_slice %116 {offsets = [0, 704], sizes = [1, 32], strides = [1, 1]} : vector<2x2048xf32> to vector<1x32xf32>
    %140 = vector.extract_strided_slice %116 {offsets = [0, 736], sizes = [1, 32], strides = [1, 1]} : vector<2x2048xf32> to vector<1x32xf32>
    %141 = vector.extract_strided_slice %116 {offsets = [0, 768], sizes = [1, 32], strides = [1, 1]} : vector<2x2048xf32> to vector<1x32xf32>
    %142 = vector.extract_strided_slice %116 {offsets = [0, 800], sizes = [1, 32], strides = [1, 1]} : vector<2x2048xf32> to vector<1x32xf32>
    %143 = vector.extract_strided_slice %116 {offsets = [0, 832], sizes = [1, 32], strides = [1, 1]} : vector<2x2048xf32> to vector<1x32xf32>
    %144 = vector.extract_strided_slice %116 {offsets = [0, 864], sizes = [1, 32], strides = [1, 1]} : vector<2x2048xf32> to vector<1x32xf32>
    %145 = vector.extract_strided_slice %116 {offsets = [0, 896], sizes = [1, 32], strides = [1, 1]} : vector<2x2048xf32> to vector<1x32xf32>
    %146 = vector.extract_strided_slice %116 {offsets = [0, 928], sizes = [1, 32], strides = [1, 1]} : vector<2x2048xf32> to vector<1x32xf32>
    %147 = vector.extract_strided_slice %116 {offsets = [0, 960], sizes = [1, 32], strides = [1, 1]} : vector<2x2048xf32> to vector<1x32xf32>
    %148 = vector.extract_strided_slice %116 {offsets = [0, 992], sizes = [1, 32], strides = [1, 1]} : vector<2x2048xf32> to vector<1x32xf32>
    %149 = tpu.concatenate %117, %118, %119, %120, %121, %122, %123, %124, %125, %126, %127, %128, %129, %130, %131, %132 in 0 : vector<1x32xf32>, vector<1x32xf32>, vector<1x32xf32>, vector<1x32xf32>, vector<1x32xf32>, vector<1x32xf32>, vector<1x32xf32>, vector<1x32xf32>, vector<1x32xf32>, vector<1x32xf32>, vector<1x32xf32>, vector<1x32xf32>, vector<1x32xf32>, vector<1x32xf32>, vector<1x32xf32>, vector<1x32xf32> -> vector<16x32xf32>
    %150 = tpu.concatenate %133, %134, %135, %136, %137, %138, %139, %140, %141, %142, %143, %144, %145, %146, %147, %148 in 0 : vector<1x32xf32>, vector<1x32xf32>, vector<1x32xf32>, vector<1x32xf32>, vector<1x32xf32>, vector<1x32xf32>, vector<1x32xf32>, vector<1x32xf32>, vector<1x32xf32>, vector<1x32xf32>, vector<1x32xf32>, vector<1x32xf32>, vector<1x32xf32>, vector<1x32xf32>, vector<1x32xf32>, vector<1x32xf32> -> vector<16x32xf32>
    %151 = tpu.concatenate %149, %150 in 0 : vector<16x32xf32>, vector<16x32xf32> -> vector<32x32xf32>
    %c0_36 = arith.constant 0 : index
    %c0_37 = arith.constant 0 : index
    %152 = vector.load %arg6[%c0_36, %c0_37] : memref<32x32xf32, #tpu.memory_space<vmem>>, vector<32x32xf32>
    %153 = arith.addf %151, %152 : vector<32x32xf32>
    %154 = vector.extract_strided_slice %116 {offsets = [1, 1024], sizes = [1, 32], strides = [1, 1]} : vector<2x2048xf32> to vector<1x32xf32>
    %155 = vector.extract_strided_slice %116 {offsets = [1, 1056], sizes = [1, 32], strides = [1, 1]} : vector<2x2048xf32> to vector<1x32xf32>
    %156 = vector.extract_strided_slice %116 {offsets = [1, 1088], sizes = [1, 32], strides = [1, 1]} : vector<2x2048xf32> to vector<1x32xf32>
    %157 = vector.extract_strided_slice %116 {offsets = [1, 1120], sizes = [1, 32], strides = [1, 1]} : vector<2x2048xf32> to vector<1x32xf32>
    %158 = vector.extract_strided_slice %116 {offsets = [1, 1152], sizes = [1, 32], strides = [1, 1]} : vector<2x2048xf32> to vector<1x32xf32>
    %159 = vector.extract_strided_slice %116 {offsets = [1, 1184], sizes = [1, 32], strides = [1, 1]} : vector<2x2048xf32> to vector<1x32xf32>
    %160 = vector.extract_strided_slice %116 {offsets = [1, 1216], sizes = [1, 32], strides = [1, 1]} : vector<2x2048xf32> to vector<1x32xf32>
    %161 = vector.extract_strided_slice %116 {offsets = [1, 1248], sizes = [1, 32], strides = [1, 1]} : vector<2x2048xf32> to vector<1x32xf32>
    %162 = vector.extract_strided_slice %116 {offsets = [1, 1280], sizes = [1, 32], strides = [1, 1]} : vector<2x2048xf32> to vector<1x32xf32>
    %163 = vector.extract_strided_slice %116 {offsets = [1, 1312], sizes = [1, 32], strides = [1, 1]} : vector<2x2048xf32> to vector<1x32xf32>
    %164 = vector.extract_strided_slice %116 {offsets = [1, 1344], sizes = [1, 32], strides = [1, 1]} : vector<2x2048xf32> to vector<1x32xf32>
    %165 = vector.extract_strided_slice %116 {offsets = [1, 1376], sizes = [1, 32], strides = [1, 1]} : vector<2x2048xf32> to vector<1x32xf32>
    %166 = vector.extract_strided_slice %116 {offsets = [1, 1408], sizes = [1, 32], strides = [1, 1]} : vector<2x2048xf32> to vector<1x32xf32>
    %167 = vector.extract_strided_slice %116 {offsets = [1, 1440], sizes = [1, 32], strides = [1, 1]} : vector<2x2048xf32> to vector<1x32xf32>
    %168 = vector.extract_strided_slice %116 {offsets = [1, 1472], sizes = [1, 32], strides = [1, 1]} : vector<2x2048xf32> to vector<1x32xf32>
    %169 = vector.extract_strided_slice %116 {offsets = [1, 1504], sizes = [1, 32], strides = [1, 1]} : vector<2x2048xf32> to vector<1x32xf32>
    %170 = vector.extract_strided_slice %116 {offsets = [1, 1536], sizes = [1, 32], strides = [1, 1]} : vector<2x2048xf32> to vector<1x32xf32>
    %171 = vector.extract_strided_slice %116 {offsets = [1, 1568], sizes = [1, 32], strides = [1, 1]} : vector<2x2048xf32> to vector<1x32xf32>
    %172 = vector.extract_strided_slice %116 {offsets = [1, 1600], sizes = [1, 32], strides = [1, 1]} : vector<2x2048xf32> to vector<1x32xf32>
    %173 = vector.extract_strided_slice %116 {offsets = [1, 1632], sizes = [1, 32], strides = [1, 1]} : vector<2x2048xf32> to vector<1x32xf32>
    %174 = vector.extract_strided_slice %116 {offsets = [1, 1664], sizes = [1, 32], strides = [1, 1]} : vector<2x2048xf32> to vector<1x32xf32>
    %175 = vector.extract_strided_slice %116 {offsets = [1, 1696], sizes = [1, 32], strides = [1, 1]} : vector<2x2048xf32> to vector<1x32xf32>
    %176 = vector.extract_strided_slice %116 {offsets = [1, 1728], sizes = [1, 32], strides = [1, 1]} : vector<2x2048xf32> to vector<1x32xf32>
    %177 = vector.extract_strided_slice %116 {offsets = [1, 1760], sizes = [1, 32], strides = [1, 1]} : vector<2x2048xf32> to vector<1x32xf32>
    %178 = vector.extract_strided_slice %116 {offsets = [1, 1792], sizes = [1, 32], strides = [1, 1]} : vector<2x2048xf32> to vector<1x32xf32>
    %179 = vector.extract_strided_slice %116 {offsets = [1, 1824], sizes = [1, 32], strides = [1, 1]} : vector<2x2048xf32> to vector<1x32xf32>
    %180 = vector.extract_strided_slice %116 {offsets = [1, 1856], sizes = [1, 32], strides = [1, 1]} : vector<2x2048xf32> to vector<1x32xf32>
    %181 = vector.extract_strided_slice %116 {offsets = [1, 1888], sizes = [1, 32], strides = [1, 1]} : vector<2x2048xf32> to vector<1x32xf32>
    %182 = vector.extract_strided_slice %116 {offsets = [1, 1920], sizes = [1, 32], strides = [1, 1]} : vector<2x2048xf32> to vector<1x32xf32>
    %183 = vector.extract_strided_slice %116 {offsets = [1, 1952], sizes = [1, 32], strides = [1, 1]} : vector<2x2048xf32> to vector<1x32xf32>
    %184 = vector.extract_strided_slice %116 {offsets = [1, 1984], sizes = [1, 32], strides = [1, 1]} : vector<2x2048xf32> to vector<1x32xf32>
    %185 = vector.extract_strided_slice %116 {offsets = [1, 2016], sizes = [1, 32], strides = [1, 1]} : vector<2x2048xf32> to vector<1x32xf32>
    %186 = tpu.concatenate %154, %155, %156, %157, %158, %159, %160, %161, %162, %163, %164, %165, %166, %167, %168, %169 in 0 : vector<1x32xf32>, vector<1x32xf32>, vector<1x32xf32>, vector<1x32xf32>, vector<1x32xf32>, vector<1x32xf32>, vector<1x32xf32>, vector<1x32xf32>, vector<1x32xf32>, vector<1x32xf32>, vector<1x32xf32>, vector<1x32xf32>, vector<1x32xf32>, vector<1x32xf32>, vector<1x32xf32>, vector<1x32xf32> -> vector<16x32xf32>
    %187 = tpu.concatenate %170, %171, %172, %173, %174, %175, %176, %177, %178, %179, %180, %181, %182, %183, %184, %185 in 0 : vector<1x32xf32>, vector<1x32xf32>, vector<1x32xf32>, vector<1x32xf32>, vector<1x32xf32>, vector<1x32xf32>, vector<1x32xf32>, vector<1x32xf32>, vector<1x32xf32>, vector<1x32xf32>, vector<1x32xf32>, vector<1x32xf32>, vector<1x32xf32>, vector<1x32xf32>, vector<1x32xf32>, vector<1x32xf32> -> vector<16x32xf32>
    %188 = tpu.concatenate %186, %187 in 0 : vector<16x32xf32>, vector<16x32xf32> -> vector<32x32xf32>
    %c0_38 = arith.constant 0 : index
    %c0_39 = arith.constant 0 : index
    %189 = vector.load %arg7[%c0_38, %c0_39] : memref<32x32xf32, #tpu.memory_space<vmem>>, vector<32x32xf32>
    %190 = arith.addf %188, %189 : vector<32x32xf32>
    %191 = arith.truncf %1 : vector<128x256xf32> to vector<128x256xbf16>
    %c0_40 = arith.constant 0 : index
    %c0_41 = arith.constant 0 : index
    %192 = vector.load %arg8[%c0_40, %c0_41] : memref<288x128xbf16, #tpu.memory_space<vmem>>, vector<288x128xbf16>
    %cst_42 = arith.constant dense<0.000000e+00> : vector<288x256xf32>
    %193 = tpu.matmul %192, %191, %cst_42 {dimension_numbers = #tpu.dot_dimension_numbers<[1], [0], [0], [1], [0, 0, 1, 1], [], []>} : vector<288x128xbf16>, vector<128x256xbf16>, vector<288x256xf32> -> vector<288x256xf32>
    %cst_43 = arith.constant 0.000000e+00 : f32
    %194 = vector.broadcast %cst_43 : f32 to vector<32x256xf32>
    %195 = vector.extract_strided_slice %193 {offsets = [0, 0], sizes = [96, 256], strides = [1, 1]} : vector<288x256xf32> to vector<96x256xf32>
    %cst_44 = arith.constant 0.000000e+00 : f32
    %196 = vector.broadcast %cst_44 : f32 to vector<96x16xf32>
    %197 = vector.extract_strided_slice %195 {offsets = [0, 0], sizes = [96, 240], strides = [1, 1]} : vector<96x256xf32> to vector<96x240xf32>
    %198 = tpu.concatenate %196, %197 in 1 : vector<96x16xf32>, vector<96x240xf32> -> vector<96x256xf32>
    %199 = vector.extract_strided_slice %198 {offsets = [0, 0], sizes = [32, 256], strides = [1, 1]} : vector<96x256xf32> to vector<32x256xf32>
    %cst_45 = arith.constant 0.000000e+00 : f32
    %200 = vector.broadcast %cst_45 : f32 to vector<32x1xf32>
    %201 = vector.extract_strided_slice %199 {offsets = [0, 0], sizes = [32, 255], strides = [1, 1]} : vector<32x256xf32> to vector<32x255xf32>
    %202 = tpu.concatenate %200, %201 in 1 : vector<32x1xf32>, vector<32x255xf32> -> vector<32x256xf32>
    %cst_46 = arith.constant 0.000000e+00 : f32
    %203 = vector.shape_cast %22 : vector<1x256xi1> to vector<1x256xi1>
    %204 = vector.broadcast %203 : vector<1x256xi1> to vector<32x256xi1>
    %205 = vector.broadcast %cst_46 : f32 to vector<32x256xf32>
    %206 = arith.select %204, %202, %205 : vector<32x256xi1>, vector<32x256xf32>
    %207 = arith.addf %194, %206 : vector<32x256xf32>
    %208 = vector.extract_strided_slice %198 {offsets = [32, 0], sizes = [32, 256], strides = [1, 1]} : vector<96x256xf32> to vector<32x256xf32>
    %209 = arith.addf %207, %208 : vector<32x256xf32>
    %210 = vector.extract_strided_slice %198 {offsets = [64, 0], sizes = [32, 256], strides = [1, 1]} : vector<96x256xf32> to vector<32x256xf32>
    %cst_47 = arith.constant 0.000000e+00 : f32
    %211 = vector.broadcast %cst_47 : f32 to vector<32x1xf32>
    %212 = vector.extract_strided_slice %210 {offsets = [0, 1], sizes = [32, 255], strides = [1, 1]} : vector<32x256xf32> to vector<32x255xf32>
    %213 = tpu.concatenate %212, %211 in 1 : vector<32x255xf32>, vector<32x1xf32> -> vector<32x256xf32>
    %cst_48 = arith.constant 0.000000e+00 : f32
    %214 = vector.shape_cast %20 : vector<1x256xi1> to vector<1x256xi1>
    %215 = vector.broadcast %214 : vector<1x256xi1> to vector<32x256xi1>
    %216 = vector.broadcast %cst_48 : f32 to vector<32x256xf32>
    %217 = arith.select %215, %213, %216 : vector<32x256xi1>, vector<32x256xf32>
    %218 = arith.addf %209, %217 : vector<32x256xf32>
    %219 = vector.extract_strided_slice %193 {offsets = [96, 0], sizes = [96, 256], strides = [1, 1]} : vector<288x256xf32> to vector<96x256xf32>
    %220 = vector.extract_strided_slice %219 {offsets = [0, 0], sizes = [32, 256], strides = [1, 1]} : vector<96x256xf32> to vector<32x256xf32>
    %cst_49 = arith.constant 0.000000e+00 : f32
    %221 = vector.broadcast %cst_49 : f32 to vector<32x1xf32>
    %222 = vector.extract_strided_slice %220 {offsets = [0, 0], sizes = [32, 255], strides = [1, 1]} : vector<32x256xf32> to vector<32x255xf32>
    %223 = tpu.concatenate %221, %222 in 1 : vector<32x1xf32>, vector<32x255xf32> -> vector<32x256xf32>
    %cst_50 = arith.constant 0.000000e+00 : f32
    %224 = vector.shape_cast %22 : vector<1x256xi1> to vector<1x256xi1>
    %225 = vector.broadcast %224 : vector<1x256xi1> to vector<32x256xi1>
    %226 = vector.broadcast %cst_50 : f32 to vector<32x256xf32>
    %227 = arith.select %225, %223, %226 : vector<32x256xi1>, vector<32x256xf32>
    %228 = arith.addf %218, %227 : vector<32x256xf32>
    %229 = vector.extract_strided_slice %219 {offsets = [32, 0], sizes = [32, 256], strides = [1, 1]} : vector<96x256xf32> to vector<32x256xf32>
    %230 = arith.addf %228, %229 : vector<32x256xf32>
    %231 = vector.extract_strided_slice %219 {offsets = [64, 0], sizes = [32, 256], strides = [1, 1]} : vector<96x256xf32> to vector<32x256xf32>
    %cst_51 = arith.constant 0.000000e+00 : f32
    %232 = vector.broadcast %cst_51 : f32 to vector<32x1xf32>
    %233 = vector.extract_strided_slice %231 {offsets = [0, 1], sizes = [32, 255], strides = [1, 1]} : vector<32x256xf32> to vector<32x255xf32>
    %234 = tpu.concatenate %233, %232 in 1 : vector<32x255xf32>, vector<32x1xf32> -> vector<32x256xf32>
    %cst_52 = arith.constant 0.000000e+00 : f32
    %235 = vector.shape_cast %20 : vector<1x256xi1> to vector<1x256xi1>
    %236 = vector.broadcast %235 : vector<1x256xi1> to vector<32x256xi1>
    %237 = vector.broadcast %cst_52 : f32 to vector<32x256xf32>
    %238 = arith.select %236, %234, %237 : vector<32x256xi1>, vector<32x256xf32>
    %239 = arith.addf %230, %238 : vector<32x256xf32>
    %240 = vector.extract_strided_slice %193 {offsets = [192, 0], sizes = [96, 256], strides = [1, 1]} : vector<288x256xf32> to vector<96x256xf32>
    %cst_53 = arith.constant 0.000000e+00 : f32
    %241 = vector.broadcast %cst_53 : f32 to vector<96x16xf32>
    %242 = vector.extract_strided_slice %240 {offsets = [0, 16], sizes = [96, 240], strides = [1, 1]} : vector<96x256xf32> to vector<96x240xf32>
    %243 = tpu.concatenate %242, %241 in 1 : vector<96x240xf32>, vector<96x16xf32> -> vector<96x256xf32>
    %244 = vector.extract_strided_slice %243 {offsets = [0, 0], sizes = [32, 256], strides = [1, 1]} : vector<96x256xf32> to vector<32x256xf32>
    %cst_54 = arith.constant 0.000000e+00 : f32
    %245 = vector.broadcast %cst_54 : f32 to vector<32x1xf32>
    %246 = vector.extract_strided_slice %244 {offsets = [0, 0], sizes = [32, 255], strides = [1, 1]} : vector<32x256xf32> to vector<32x255xf32>
    %247 = tpu.concatenate %245, %246 in 1 : vector<32x1xf32>, vector<32x255xf32> -> vector<32x256xf32>
    %cst_55 = arith.constant 0.000000e+00 : f32
    %248 = vector.shape_cast %22 : vector<1x256xi1> to vector<1x256xi1>
    %249 = vector.broadcast %248 : vector<1x256xi1> to vector<32x256xi1>
    %250 = vector.broadcast %cst_55 : f32 to vector<32x256xf32>
    %251 = arith.select %249, %247, %250 : vector<32x256xi1>, vector<32x256xf32>
    %252 = arith.addf %239, %251 : vector<32x256xf32>
    %253 = vector.extract_strided_slice %243 {offsets = [32, 0], sizes = [32, 256], strides = [1, 1]} : vector<96x256xf32> to vector<32x256xf32>
    %254 = arith.addf %252, %253 : vector<32x256xf32>
    %255 = vector.extract_strided_slice %243 {offsets = [64, 0], sizes = [32, 256], strides = [1, 1]} : vector<96x256xf32> to vector<32x256xf32>
    %cst_56 = arith.constant 0.000000e+00 : f32
    %256 = vector.broadcast %cst_56 : f32 to vector<32x1xf32>
    %257 = vector.extract_strided_slice %255 {offsets = [0, 1], sizes = [32, 255], strides = [1, 1]} : vector<32x256xf32> to vector<32x255xf32>
    %258 = tpu.concatenate %257, %256 in 1 : vector<32x255xf32>, vector<32x1xf32> -> vector<32x256xf32>
    %cst_57 = arith.constant 0.000000e+00 : f32
    %259 = vector.shape_cast %20 : vector<1x256xi1> to vector<1x256xi1>
    %260 = vector.broadcast %259 : vector<1x256xi1> to vector<32x256xi1>
    %261 = vector.broadcast %cst_57 : f32 to vector<32x256xf32>
    %262 = arith.select %260, %258, %261 : vector<32x256xi1>, vector<32x256xf32>
    %263 = arith.addf %254, %262 : vector<32x256xf32>
    %c0_58 = arith.constant 0 : index
    %c0_59 = arith.constant 0 : index
    %264 = vector.load %arg9[%c0_58, %c0_59] : memref<32x1xf32, #tpu.memory_space<vmem>>, vector<32x1xf32>
    %265 = vector.broadcast %264 : vector<32x1xf32> to vector<32x256xf32>
    %266 = arith.addf %263, %265 : vector<32x256xf32>
    %267 = arith.truncf %153 : vector<32x32xf32> to vector<32x32xbf16>
    %268 = arith.truncf %266 : vector<32x256xf32> to vector<32x256xbf16>
    %cst_60 = arith.constant dense<0.000000e+00> : vector<32x256xf32>
    %269 = tpu.matmul %267, %268, %cst_60 {dimension_numbers = #tpu.dot_dimension_numbers<[1], [0], [0], [1], [0, 0, 1, 1], [], []>} : vector<32x32xbf16>, vector<32x256xbf16>, vector<32x256xf32> -> vector<32x256xf32>
    %cst_61 = arith.constant 0.000000e+00 : f32
    %270 = vector.broadcast %cst_61 : f32 to vector<32x256xf32>
    %271 = arith.cmpf oge, %269, %270 : vector<32x256xf32>
    %cst_62 = arith.constant 2.000000e-01 : f32
    %272 = vector.broadcast %cst_62 : f32 to vector<32x256xf32>
    %273 = arith.mulf %272, %269 : vector<32x256xf32>
    %274 = arith.select %271, %269, %273 : vector<32x256xi1>, vector<32x256xf32>
    %275 = arith.truncf %190 : vector<32x32xf32> to vector<32x32xbf16>
    %276 = arith.truncf %274 : vector<32x256xf32> to vector<32x256xbf16>
    %cst_63 = arith.constant dense<0.000000e+00> : vector<32x256xf32>
    %277 = tpu.matmul %275, %276, %cst_63 {dimension_numbers = #tpu.dot_dimension_numbers<[1], [0], [0], [1], [0, 0, 1, 1], [], []>} : vector<32x32xbf16>, vector<32x256xbf16>, vector<32x256xf32> -> vector<32x256xf32>
    %278 = arith.truncf %277 : vector<32x256xf32> to vector<32x256xbf16>
    %cst_64 = arith.constant 0.000000e+00 : bf16
    %279 = vector.broadcast %cst_64 : bf16 to vector<32x17xbf16>
    %280 = vector.extract_strided_slice %278 {offsets = [0, 0], sizes = [32, 239], strides = [1, 1]} : vector<32x256xbf16> to vector<32x239xbf16>
    %281 = tpu.concatenate %279, %280 in 1 : vector<32x17xbf16>, vector<32x239xbf16> -> vector<32x256xbf16>
    %cst_65 = arith.constant 0.000000e+00 : f32
    %282 = arith.truncf %cst_65 : f32 to bf16
    %283 = vector.shape_cast %22 : vector<1x256xi1> to vector<1x256xi1>
    %284 = vector.broadcast %283 : vector<1x256xi1> to vector<32x256xi1>
    %285 = vector.broadcast %282 : bf16 to vector<32x256xbf16>
    %286 = arith.select %284, %281, %285 : vector<32x256xi1>, vector<32x256xbf16>
    %cst_66 = arith.constant 0.000000e+00 : bf16
    %287 = vector.broadcast %cst_66 : bf16 to vector<32x16xbf16>
    %288 = vector.extract_strided_slice %278 {offsets = [0, 0], sizes = [32, 240], strides = [1, 1]} : vector<32x256xbf16> to vector<32x240xbf16>
    %289 = tpu.concatenate %287, %288 in 1 : vector<32x16xbf16>, vector<32x240xbf16> -> vector<32x256xbf16>
    %cst_67 = arith.constant 0.000000e+00 : bf16
    %290 = vector.broadcast %cst_67 : bf16 to vector<32x15xbf16>
    %291 = vector.extract_strided_slice %278 {offsets = [0, 0], sizes = [32, 241], strides = [1, 1]} : vector<32x256xbf16> to vector<32x241xbf16>
    %292 = tpu.concatenate %290, %291 in 1 : vector<32x15xbf16>, vector<32x241xbf16> -> vector<32x256xbf16>
    %cst_68 = arith.constant 0.000000e+00 : f32
    %293 = arith.truncf %cst_68 : f32 to bf16
    %294 = vector.shape_cast %20 : vector<1x256xi1> to vector<1x256xi1>
    %295 = vector.broadcast %294 : vector<1x256xi1> to vector<32x256xi1>
    %296 = vector.broadcast %293 : bf16 to vector<32x256xbf16>
    %297 = arith.select %295, %292, %296 : vector<32x256xi1>, vector<32x256xbf16>
    %cst_69 = arith.constant 0.000000e+00 : bf16
    %298 = vector.broadcast %cst_69 : bf16 to vector<32x1xbf16>
    %299 = vector.extract_strided_slice %278 {offsets = [0, 0], sizes = [32, 255], strides = [1, 1]} : vector<32x256xbf16> to vector<32x255xbf16>
    %300 = tpu.concatenate %298, %299 in 1 : vector<32x1xbf16>, vector<32x255xbf16> -> vector<32x256xbf16>
    %cst_70 = arith.constant 0.000000e+00 : f32
    %301 = arith.truncf %cst_70 : f32 to bf16
    %302 = vector.shape_cast %22 : vector<1x256xi1> to vector<1x256xi1>
    %303 = vector.broadcast %302 : vector<1x256xi1> to vector<32x256xi1>
    %304 = vector.broadcast %301 : bf16 to vector<32x256xbf16>
    %305 = arith.select %303, %300, %304 : vector<32x256xi1>, vector<32x256xbf16>
    %cst_71 = arith.constant 0.000000e+00 : bf16
    %306 = vector.broadcast %cst_71 : bf16 to vector<32x1xbf16>
    %307 = vector.extract_strided_slice %278 {offsets = [0, 1], sizes = [32, 255], strides = [1, 1]} : vector<32x256xbf16> to vector<32x255xbf16>
    %308 = tpu.concatenate %307, %306 in 1 : vector<32x255xbf16>, vector<32x1xbf16> -> vector<32x256xbf16>
    %cst_72 = arith.constant 0.000000e+00 : f32
    %309 = arith.truncf %cst_72 : f32 to bf16
    %310 = vector.shape_cast %20 : vector<1x256xi1> to vector<1x256xi1>
    %311 = vector.broadcast %310 : vector<1x256xi1> to vector<32x256xi1>
    %312 = vector.broadcast %309 : bf16 to vector<32x256xbf16>
    %313 = arith.select %311, %308, %312 : vector<32x256xi1>, vector<32x256xbf16>
    %cst_73 = arith.constant 0.000000e+00 : bf16
    %314 = vector.broadcast %cst_73 : bf16 to vector<32x15xbf16>
    %315 = vector.extract_strided_slice %278 {offsets = [0, 15], sizes = [32, 241], strides = [1, 1]} : vector<32x256xbf16> to vector<32x241xbf16>
    %316 = tpu.concatenate %315, %314 in 1 : vector<32x241xbf16>, vector<32x15xbf16> -> vector<32x256xbf16>
    %cst_74 = arith.constant 0.000000e+00 : f32
    %317 = arith.truncf %cst_74 : f32 to bf16
    %318 = vector.shape_cast %22 : vector<1x256xi1> to vector<1x256xi1>
    %319 = vector.broadcast %318 : vector<1x256xi1> to vector<32x256xi1>
    %320 = vector.broadcast %317 : bf16 to vector<32x256xbf16>
    %321 = arith.select %319, %316, %320 : vector<32x256xi1>, vector<32x256xbf16>
    %cst_75 = arith.constant 0.000000e+00 : bf16
    %322 = vector.broadcast %cst_75 : bf16 to vector<32x16xbf16>
    %323 = vector.extract_strided_slice %278 {offsets = [0, 16], sizes = [32, 240], strides = [1, 1]} : vector<32x256xbf16> to vector<32x240xbf16>
    %324 = tpu.concatenate %323, %322 in 1 : vector<32x240xbf16>, vector<32x16xbf16> -> vector<32x256xbf16>
    %cst_76 = arith.constant 0.000000e+00 : bf16
    %325 = vector.broadcast %cst_76 : bf16 to vector<32x17xbf16>
    %326 = vector.extract_strided_slice %278 {offsets = [0, 17], sizes = [32, 239], strides = [1, 1]} : vector<32x256xbf16> to vector<32x239xbf16>
    %327 = tpu.concatenate %326, %325 in 1 : vector<32x239xbf16>, vector<32x17xbf16> -> vector<32x256xbf16>
    %cst_77 = arith.constant 0.000000e+00 : f32
    %328 = arith.truncf %cst_77 : f32 to bf16
    %329 = vector.shape_cast %20 : vector<1x256xi1> to vector<1x256xi1>
    %330 = vector.broadcast %329 : vector<1x256xi1> to vector<32x256xi1>
    %331 = vector.broadcast %328 : bf16 to vector<32x256xbf16>
    %332 = arith.select %330, %327, %331 : vector<32x256xi1>, vector<32x256xbf16>
    %333 = tpu.concatenate %286, %289, %297, %305, %278, %313, %321, %324, %332 in 0 : vector<32x256xbf16>, vector<32x256xbf16>, vector<32x256xbf16>, vector<32x256xbf16>, vector<32x256xbf16>, vector<32x256xbf16>, vector<32x256xbf16>, vector<32x256xbf16>, vector<32x256xbf16> -> vector<288x256xbf16>
    %c0_78 = arith.constant 0 : index
    %c0_79 = arith.constant 0 : index
    %334 = vector.load %arg10[%c0_78, %c0_79] : memref<128x288xbf16, #tpu.memory_space<vmem>>, vector<128x288xbf16>
    %cst_80 = arith.constant dense<0.000000e+00> : vector<128x256xf32>
    %335 = tpu.matmul %334, %333, %cst_80 {dimension_numbers = #tpu.dot_dimension_numbers<[1], [0], [0], [1], [0, 0, 1, 1], [], []>} : vector<128x288xbf16>, vector<288x256xbf16>, vector<128x256xf32> -> vector<128x256xf32>
    %c0_81 = arith.constant 0 : index
    %c0_82 = arith.constant 0 : index
    %336 = vector.load %arg11[%c0_81, %c0_82] : memref<128x1xf32, #tpu.memory_space<vmem>>, vector<128x1xf32>
    %337 = vector.broadcast %336 : vector<128x1xf32> to vector<128x256xf32>
    %338 = arith.addf %335, %337 : vector<128x256xf32>
    %339 = arith.addf %338, %1 : vector<128x256xf32>
    %c0_83 = arith.constant 0 : index
    %c0_84 = arith.constant 0 : index
    %c0_85 = arith.constant 0 : index
    %340 = vector.load %arg12[%c0_83, %c0_84, %c0_85] : memref<1x128x256xf32, #tpu.memory_space<vmem>>, vector<1x128x256xf32>
    %341 = vector.shape_cast %340 : vector<1x128x256xf32> to vector<128x256xf32>
    %342 = vector.shape_cast %339 : vector<128x256xf32> to vector<1x128x256xf32>
    tpu.vector_store %arg12[%c0_83, %c0_84, %c0_85], %342 {strides = array<i32>} : memref<1x128x256xf32, #tpu.memory_space<vmem>>, vector<1x128x256xf32>,
    return
  }
  func.func @transform_0(%arg0: i32) -> (i32, i32, i32) {
    %c0_i32 = arith.constant 0 : i32
    %c0_i32_0 = arith.constant 0 : i32
    %c0_i32_1 = arith.constant 0 : i32
    return %arg0, %c0_i32, %c0_i32_0 : i32, i32, i32
  }
  func.func @transform_1(%arg0: i32) -> (i32, i32, i32) {
    %c0_i32 = arith.constant 0 : i32
    %c0_i32_0 = arith.constant 0 : i32
    %c0_i32_1 = arith.constant 0 : i32
    return %arg0, %c0_i32, %c0_i32_0 : i32, i32, i32
  }
  func.func @transform_2(%arg0: i32) -> (i32, i32) {
    %c0_i32 = arith.constant 0 : i32
    %c0_i32_0 = arith.constant 0 : i32
    %c0_i32_1 = arith.constant 0 : i32
    return %c0_i32, %c0_i32_0 : i32, i32
  }
  func.func @transform_3(%arg0: i32) -> (i32, i32) {
    %c0_i32 = arith.constant 0 : i32
    %c0_i32_0 = arith.constant 0 : i32
    %c0_i32_1 = arith.constant 0 : i32
    return %c0_i32, %c0_i32_0 : i32, i32
  }
  func.func @transform_4(%arg0: i32) -> (i32, i32) {
    %c0_i32 = arith.constant 0 : i32
    %c0_i32_0 = arith.constant 0 : i32
    %c0_i32_1 = arith.constant 0 : i32
    return %c0_i32, %c0_i32_0 : i32, i32
  }
  func.func @transform_5(%arg0: i32) -> (i32, i32) {
    %c0_i32 = arith.constant 0 : i32
    %c0_i32_0 = arith.constant 0 : i32
    %c0_i32_1 = arith.constant 0 : i32
    return %c0_i32, %c0_i32_0 : i32, i32
  }
  func.func @transform_6(%arg0: i32) -> (i32, i32) {
    %c0_i32 = arith.constant 0 : i32
    %c0_i32_0 = arith.constant 0 : i32
    %c0_i32_1 = arith.constant 0 : i32
    return %c0_i32, %c0_i32_0 : i32, i32
  }
  func.func @transform_7(%arg0: i32) -> (i32, i32) {
    %c0_i32 = arith.constant 0 : i32
    %c0_i32_0 = arith.constant 0 : i32
    %c0_i32_1 = arith.constant 0 : i32
    return %c0_i32, %c0_i32_0 : i32, i32
  }
  func.func @transform_8(%arg0: i32) -> (i32, i32) {
    %c0_i32 = arith.constant 0 : i32
    %c0_i32_0 = arith.constant 0 : i32
    %c0_i32_1 = arith.constant 0 : i32
    return %c0_i32, %c0_i32_0 : i32, i32
  }
  func.func @transform_9(%arg0: i32) -> (i32, i32) {
    %c0_i32 = arith.constant 0 : i32
    %c0_i32_0 = arith.constant 0 : i32
    %c0_i32_1 = arith.constant 0 : i32
    return %c0_i32, %c0_i32_0 : i32, i32
  }
  func.func @transform_10(%arg0: i32) -> (i32, i32) {
    %c0_i32 = arith.constant 0 : i32
    %c0_i32_0 = arith.constant 0 : i32
    %c0_i32_1 = arith.constant 0 : i32
    return %c0_i32, %c0_i32_0 : i32, i32
  }
  func.func @transform_11(%arg0: i32) -> (i32, i32, i32) {
    %c0_i32 = arith.constant 0 : i32
    %c0_i32_0 = arith.constant 0 : i32
    %c0_i32_1 = arith.constant 0 : i32
    return %arg0, %c0_i32, %c0_i32_0 : i32, i32, i32
  }
}

</mosaic_0001>

<bundles_post_ra>
// kernel: kernel_filter_forward.2
= control target key start
LH: loop header
LB: loop body
LE: loop exit
PB: predicated region body
PF: predicated region fallthrough
CT: control target
= control target key end

     0   :  { %s2573_s12 = smov 0   ;;  %s4213_s0 = inlined_call_operand.vmem [shape: f32[2,128,256], index: 0, kind: input, shape index: {}]   ;;  %s4214_s1 = inlined_call_operand.vmem [shape: f32[64,1152], index: 1, kind: input, shape index: {}]   ;;  %s4215_s2 = inlined_call_operand.vmem [shape: f32[64,1], index: 2, kind: input, shape index: {}]   ;;  %s4216_s3 = inlined_call_operand.vmem [shape: f32[2,64,1], index: 3, kind: output, shape index: {}]  }
   0x1 LB: > { %s2171_s13 = sadd.s32 4294967295, %s2547_s12   ;;  %p2175_p0 = scmp.ge.s32.totalorder %s2547_s12, 1  ;;  %s2547_s12 = sphi %s2573_s12, %s13_s12  }
   0x2   : > { %p137_p1 = scmp.lt.s32.totalorder %s2547_s12, 3 }
   0x4   : > { %p138_p2 = pnand %p2175_p0, %p137_p1 }
   0x6   : > { %141 = sbr.rel (%p138_p2) target bundleno = 978 (0x3d2), region = 32 }
   0xb   : > { %p161_p3 = scmp.lt.s32.totalorder %s2171_s13, 1  ;;  %v203_v28 = vlaneseq  ;;  %s2549_s18 = smov 15   ;;  %vm2107_vm6 = vcmask 7168  }
   0xc   : > { %s2550_s19 = smov 112   ;;  %s2551_s20 = smov 1  }
   0xd   : > { %s4437_s13 = smov (!%p161_p3, %s2171_s13), 1  ;;  %v2681_v35 = vand.u32 127, %v203_v28  ;;  %s2552_s21 = smov 127  }
   0xe   : > { %s2182_s14 = sshll.u32 %s4437_s13, 8 }
   0xf   : > { %s2587_s17 = scalar_lea.vmem %s4213_s0, %s2182_s14  ;;  %v2686_v37 = vadd.s32 128, %v2681_v35  ;;  %vm278_vm0 = vcmp.lt.s32.totalorder %v2681_v35, 16  ;;  %v210_v48 = vand.u32 15, %v2681_v35 }
  0x10   : > { %v2590_v0 = vld [vmem:[%s2587_s17 + $0x20] sm:$0xff]  ;;  %v2593_v1 = vld [vmem:[%s2587_s17 + $0x28] sm:$0xff]  ;;  %v2604_v5 = vld [vmem:[%s2587_s17 + $0x30] sm:$0xff] }
  0x11   : > { %4299 = vst [vmem:[#allocation2_spill] sm:$0xff] %v2590_v0  ;;  %v2596_v2 = vld [vmem:[%s2587_s17] sm:$0xff]  ;;  %v236_v3 = vadd.f32 %v2593_v1, %v2590_v0  ;;  %v2601_v4 = vld [vmem:[%s2587_s17 + $0x8] sm:$0xff]  ;;  %4301 = vst [vmem:[#allocation4_spill] sm:$0xff] %v2604_v5  ;;  %v217_v49 = vand.u32 15, %v2686_v37  ;;  %v290_v53 = vsel %vm278_vm0, %v2604_v5, 0.0 }
  0x12   : > { %4300 = vst [vmem:[#allocation3_spill] sm:$0xff] %v2596_v2  ;;  %v2607_v6 = vld [vmem:[%s2587_s17 + $0x38] sm:$0xff]  ;;  %v230_v7 = vadd.f32 %v2601_v4, %v2596_v2  ;;  %v2612_v8 = vld [vmem:[%s2587_s17 + $0x10] sm:$0xff]  ;;  %v2628_v14 = vld [vmem:[%s2587_s17 + $0x40] sm:$0xff]  ;;  %v284_v52 = vsel %vm278_vm0, %v2596_v2, 0.0  ;;  %vm2736_vm1 = vcmp.eq.s32.totalorder %v210_v48, 15 }
  0x13   : > { %4302 = vst [vmem:[#allocation5_spill] sm:$0xff] %v2612_v8  ;;  %v2615_v9 = vld [vmem:[%s2587_s17 + $0x18] sm:$0xff]  ;;  %237 = vadd.xlane.f32.xlu1 %v236_v3  ;;  %v239_v10 = vadd.f32 %v2607_v6, %v2604_v5  ;;  %v2622_v12 = vld [vmem:[%s2587_s17 + $0x50] sm:$0xff]  ;;  %v2631_v15 = vld [vmem:[%s2587_s17 + $0x48] sm:$0xff]  ;;  %v286_v51 = vsel %vm278_vm0, %v2612_v8, 0.0  ;;  %vm2742_vm2 = vcmp.eq.s32.totalorder %v217_v49, 15 }
  0x14   : > { %231 = vadd.xlane.f32.xlu0 %v230_v7  ;;  %v233_v11 = vadd.f32 %v2615_v9, %v2612_v8  ;;  %4303 = vst [vmem:[#allocation6_spill] sm:$0xff] %v2622_v12  ;;  %v2625_v13 = vld [vmem:[%s2587_s17 + $0x58] sm:$0xff]  ;;  %v242_v17 = vadd.f32 %v2631_v15, %v2628_v14  ;;  %v2638_v18 = vld [vmem:[%s2587_s17 + $0x70] sm:$0xff]  ;;  %v2644_v20 = vld [vmem:[%s2587_s17 + $0x60] sm:$0xff]  ;;  %vm365_vm3 = vcmp.ge.s32.totalorder %v2686_v37, 240  ;;  %vm2910_vm4 = vcmp.eq.s32.totalorder %v210_v48, 0 }
  0x15   : > { %v245_v16 = vadd.f32 %v2625_v13, %v2622_v12  ;;  %v2641_v19 = vld [vmem:[%s2587_s17 + $0x78] sm:$0xff]  ;;  %v2647_v21 = vld [vmem:[%s2587_s17 + $0x68] sm:$0xff]  ;;  %v2654_v24 = vld [vmem:[%s2587_s17 + $0x90] sm:$0xff]  ;;  %v298_v56 = vsel %vm278_vm0, %v2638_v18, 0.0  ;;  %v296_v57 = vsel %vm278_vm0, %v2644_v20, 0.0  ;;  %vm2916_vm5 = vcmp.eq.s32.totalorder %v217_v49, 0 }
  0x16   : > { %v251_v22 = vadd.f32 %v2641_v19, %v2638_v18  ;;  %v248_v23 = vadd.f32 %v2647_v21, %v2644_v20  ;;  %v2657_v25 = vld [vmem:[%s2587_s17 + $0x98] sm:$0xff]  ;;  %v2660_v26 = vld [vmem:[%s2587_s17 + $0x80] sm:$0xff]  ;;  %v2663_v27 = vld [vmem:[%s2587_s17 + $0x88] sm:$0xff] }
  0x17   : > { %240 = vadd.xlane.f32.xlu1 %v239_v10  ;;  %v257_v29 = vadd.f32 %v2657_v25, %v2654_v24  ;;  %v254_v30 = vadd.f32 %v2663_v27, %v2660_v26  ;;  %v2670_v31 = vld [vmem:[%s2587_s17 + $0xb0] sm:$0xff]  ;;  %v2673_v32 = vld [vmem:[%s2587_s17 + $0xb8] sm:$0xff]  ;;  %v2676_v33 = vld [vmem:[%s2587_s17 + $0xa0] sm:$0xff] }
  0x18   : > { %234 = vadd.xlane.f32.xlu0 %v233_v11  ;;  %v2679_v34 = vld [vmem:[%s2587_s17 + $0xa8] sm:$0xff]  ;;  %v263_v36 = vadd.f32 %v2673_v32, %v2670_v31  ;;  %v2691_v39 = vld [vmem:[%s2587_s17 + $0xd0] sm:$0xff]  ;;  %v2694_v40 = vld [vmem:[%s2587_s17 + $0xd8] sm:$0xff]  ;;  %v564_v28 = vsel %vm2736_vm1, %v2670_v31, 0.0 }
  0x19   : > { %v260_v38 = vadd.f32 %v2679_v34, %v2676_v33  ;;  %4304 = vst [vmem:[#allocation7_spill] sm:$0xff] %v2694_v40  ;;  %v2697_v41 = vld [vmem:[%s2587_s17 + $0xc0] sm:$0xff]  ;;  %v2700_v42 = vld [vmem:[%s2587_s17 + $0xc8] sm:$0xff]  ;;  %v2703_v43 = vld [vmem:[%s2587_s17 + $0xf0] sm:$0xff]  ;;  %v269_v47 = vadd.f32 %v2694_v40, %v2691_v39  ;;  %v568_v11 = vsel %vm2736_vm1, %v2691_v39, 0.0 }
  0x1a   : > { %v2707_v44 = vld [vmem:[%s2587_s17 + $0xf8] sm:$0xff]  ;;  %v2710_v45 = vld [vmem:[%s2587_s17 + $0xe0] sm:$0xff]  ;;  %v2713_v46 = vld [vmem:[%s2587_s17 + $0xe8] sm:$0xff]  ;;  %v266_v50 = vadd.f32 %v2700_v42, %v2697_v41  ;;  %v572_v60 = vsel %vm2736_vm1, %v2703_v43, 0.0  ;;  %v566_v3 = vsel %vm2736_vm1, %v2697_v41, 0.0  ;;  %v567_v7 = vsel %vm2742_vm2, %v2700_v42, 0.0 }
  0x1b   : > { %246 = vadd.xlane.f32.xlu1 %v245_v16  ;;  %4305 = vst [vmem:[#allocation8_spill] sm:$0xff] %v2707_v44  ;;  %v275_v54 = vadd.f32 %v2707_v44, %v2703_v43  ;;  %v272_v55 = vadd.f32 %v2713_v46, %v2710_v45  ;;  %v570_v58 = vsel %vm2736_vm1, %v2710_v45, 0.0  ;;  %v571_v59 = vsel %vm2742_vm2, %v2713_v46, 0.0 }
  0x1c   : > { %243 = vadd.xlane.f32.xlu0 %v242_v17  ;;  %v573_v61 = vsel %vm2742_vm2, %v2707_v44, 0.0  ;;  %v2758_v62 = vadd.f32 %v571_v59, %v570_v58  ;;  %v2768_v10 = vadd.f32 %v567_v7, %v566_v3  ;;  %v569_v16 = vsel %vm2742_vm2, %v2694_v40, 0.0 }
  0x1d   : > { %v2760_v63 = vadd.f32 %v573_v61, %v572_v60  ;;  %v562_v17 = vsel %vm2736_vm1, %v2676_v33, 0.0  ;;  %v560_v58 = vsel %vm2736_vm1, %v2654_v24, 0.0  ;;  %v561_v59 = vsel %vm2742_vm2, %v2657_v25, 0.0 }
  0x1e   : > { %v554_v60 = vsel %vm2736_vm1, %v2644_v20, 0.0  ;;  %v2811_v61 = vadd.f32 %v561_v59, %v560_v58  ;;  %v556_v3 = vsel %vm2736_vm1, %v2638_v18, 0.0  ;;  %v557_v7 = vsel %vm2742_vm2, %v2641_v19, 0.0 }
  0x1f   : > { %252 = vadd.xlane.f32.xlu1 %v251_v22  ;;  %v2779_v22 = vadd.f32 %v569_v16, %v568_v11  ;;  %v2824_v16 = vadd.f32 %v557_v7, %v556_v3  ;;  %v547_v58 = vsel %vm2742_vm2, %v2593_v1, 0.0  ;;  %v548_v59 = vsel %vm2736_vm1, %v2604_v5, 0.0 }
  0x20   : > { %249 = vadd.xlane.f32.xlu0 %v248_v23  ;;  %v563_v23 = vsel %vm2742_vm2, %v2679_v34, 0.0  ;;  %v543_v7 = vsel %vm2742_vm2, %v2601_v4, 0.0  ;;  %v487_v48 = vsel %vm2916_vm5, %v2707_v44, 0.0  ;;  %v312_v49 = vsel %vm278_vm0, %v2710_v45, 0.0 }
  0x23   : > { %258 = vadd.xlane.f32.xlu1 %v257_v29  ;;  %v565_v29 = vsel %vm2742_vm2, %v2673_v32, 0.0 }
  0x24   : > { %255 = vadd.xlane.f32.xlu0 %v254_v30  ;;  %v2790_v30 = vadd.f32 %v563_v23, %v562_v17  ;;  %v551_v17 = vsel %vm2742_vm2, %v2631_v15, 0.0 }
  0x27   : > { %264 = vadd.xlane.f32.xlu1 %v263_v36  ;;  %v2792_v36 = vadd.f32 %v565_v29, %v564_v28  ;;  %v552_v28 = vsel %vm2736_vm1, %v2622_v12, 0.0  ;;  %v553_v29 = vsel %vm2742_vm2, %v2625_v13, 0.0 }
  0x28   : > { %261 = vadd.xlane.f32.xlu0 %v260_v38  ;;  %v558_v38 = vsel %vm2736_vm1, %v2660_v26, 0.0 }
  0x2b   : > { %270 = vadd.xlane.f32.xlu1 %v269_v47  ;;  %v559_v47 = vsel %vm2742_vm2, %v2663_v27, 0.0 }
  0x2c   : > { %267 = vadd.xlane.f32.xlu0 %v266_v50  ;;  %v2800_v50 = vadd.f32 %v559_v47, %v558_v38  ;;  %v546_v38 = vsel %vm2736_vm1, %v2590_v0, 0.0  ;;  %v2843_v47 = vadd.f32 %v553_v29, %v552_v28  ;;  %v545_v28 = vsel %vm2742_vm2, %v2615_v9, 0.0 }
  0x2f   : > { %276 = vadd.xlane.f32.xlu1 %v275_v54  ;;  %v555_v54 = vsel %vm2742_vm2, %v2647_v21, 0.0 }
  0x30   : > { %273 = vadd.xlane.f32.xlu0 %v272_v55  ;;  %v2822_v11 = vadd.f32 %v555_v54, %v554_v60  ;;  %v550_v55 = vsel %vm2736_vm1, %v2628_v14, 0.0  ;;  %v549_v60 = vsel %vm2742_vm2, %v2607_v6, 0.0  ;;  %v2854_v54 = vadd.f32 %v547_v58, %v546_v38 }
  0x31   : > { %v2832_v23 = vadd.f32 %v551_v17, %v550_v55  ;;  %v2856_v3 = vadd.f32 %v549_v60, %v548_v59  ;;  %v288_v55 = vsel %vm278_vm0, %v2590_v0, 0.0  ;;  %v294_v38 = vsel %vm278_vm0, %v2622_v12, 0.0 }
  0x32   : > { %v292_v58 = vsel %vm278_vm0, %v2628_v14, 0.0  ;;  %v300_v59 = vsel %vm278_vm0, %v2660_v26, 0.0  ;;  %v306_v60 = vsel %vm278_vm0, %v2670_v31, 0.0 }
  0x33   : > { %320 = vadd.xlane.f32.xlu1 %v286_v51  ;;  %v542_v51 = vsel %vm2736_vm1, %v2596_v2, 0.0 }
  0x34   : > { %317 = vadd.xlane.f32.xlu0 %v284_v52  ;;  %v2867_v17 = vadd.f32 %v543_v7, %v542_v51  ;;  %v544_v52 = vsel %vm2736_vm1, %v2612_v8, 0.0  ;;  %v304_v51 = vsel %vm278_vm0, %v2676_v33, 0.0  ;;  %v310_v7 = vsel %vm278_vm0, %v2691_v39, 0.0 }
  0x35   : > { %v2875_v29 = vadd.f32 %v545_v28, %v544_v52 }
  0x37   : > { %326 = vadd.xlane.f32.xlu1 %v290_v53  ;;  %v302_v53 = vsel %vm278_vm0, %v2654_v24, 0.0 }
  0x38   : > { %323 = vadd.xlane.f32.xlu0 %v288_v55  ;;  %v308_v55 = vsel %vm278_vm0, %v2697_v41, 0.0 }
  0x3b   : > { %332 = vadd.xlane.f32.xlu1 %v294_v38  ;;  %v401_v38 = vsel %vm365_vm3, %v2707_v44, 0.0 }
  0x3c   : > { %329 = vadd.xlane.f32.xlu0 %v292_v58  ;;  %v486_v58 = vsel %vm2910_vm4, %v2703_v43, 0.0 }
  0x3f   : > { %338 = vadd.xlane.f32.xlu1 %v298_v56  ;;  %v533_v56 = vadd.f32 %v487_v48, %v486_v58  ;;  %v480_v58 = vsel %vm2910_vm4, %v2697_v41, 0.0  ;;  %v481_v48 = vsel %vm2916_vm5, %v2700_v42, 0.0 }
  0x40   : > { %335 = vadd.xlane.f32.xlu0 %v296_v57  ;;  %v484_v57 = vsel %vm2910_vm4, %v2710_v45, 0.0 }
  0x43   : > { %344 = vadd.xlane.f32.xlu1 %v302_v53  ;;  %v485_v53 = vsel %vm2916_vm5, %v2713_v46, 0.0 }
  0x44   : > { %341 = vadd.xlane.f32.xlu0 %v300_v59  ;;  %v399_v59 = vsel %vm365_vm3, %v2713_v46, 0.0 }
  0x47   : > { %350 = vadd.xlane.f32.xlu1 %v306_v60  ;;  %v530_v60 = vadd.f32 %v485_v53, %v484_v57  ;;  %v478_v57 = vsel %vm2910_vm4, %v2670_v31, 0.0  ;;  %v479_v53 = vsel %vm2916_vm5, %v2673_v32, 0.0 }
  0x48   : > { %347 = vadd.xlane.f32.xlu0 %v304_v51  ;;  %v482_v51 = vsel %vm2910_vm4, %v2691_v39, 0.0 }
  0x4b   : > { %356 = vadd.xlane.f32.xlu1 %v310_v7  ;;  %v483_v7 = vsel %vm2916_vm5, %v2694_v40, 0.0 }
  0x4c   : > { %353 = vadd.xlane.f32.xlu0 %v308_v55  ;;  %v397_v55 = vsel %vm365_vm3, %v2694_v40, 0.0 }
  0x4f   : > { %448 = vadd.xlane.f32.xlu1 %v401_v38  ;;  %v527_v38 = vadd.f32 %v483_v7, %v482_v51  ;;  %v476_v51 = vsel %vm2910_vm4, %v2676_v33, 0.0  ;;  %v477_v7 = vsel %vm2916_vm5, %v2679_v34, 0.0 }
  0x50   : > { %359 = vadd.xlane.f32.xlu0 %v312_v49  ;;  %v395_v49 = vsel %vm365_vm3, %v2700_v42, 0.0 }
  0x53   : > { %534 = vadd.xlane.f32.xlu1 %v533_v56  ;;  %v524_v56 = vadd.f32 %v481_v48, %v480_v58  ;;  %v474_v58 = vsel %vm2910_vm4, %v2654_v24, 0.0  ;;  %v475_v48 = vsel %vm2916_vm5, %v2657_v25, 0.0 }
  0x54   : > { %445 = vadd.xlane.f32.xlu0 %v399_v59  ;;  %v393_v59 = vsel %vm365_vm3, %v2673_v32, 0.0 }
  0x57   : > { %531 = vadd.xlane.f32.xlu1 %v530_v60  ;;  %v521_v60 = vadd.f32 %v479_v53, %v478_v57  ;;  %v472_v57 = vsel %vm2910_vm4, %v2660_v26, 0.0  ;;  %v473_v53 = vsel %vm2916_vm5, %v2663_v27, 0.0 }
  0x58   : > { %442 = vadd.xlane.f32.xlu0 %v397_v55  ;;  %v391_v55 = vsel %vm365_vm3, %v2679_v34, 0.0 }
  0x5b   : > { %528 = vadd.xlane.f32.xlu1 %v527_v38  ;;  %v518_v38 = vadd.f32 %v477_v7, %v476_v51  ;;  %v470_v51 = vsel %vm2910_vm4, %v2638_v18, 0.0  ;;  %v471_v7 = vsel %vm2916_vm5, %v2641_v19, 0.0 }
  0x5c   : > { %439 = vadd.xlane.f32.xlu0 %v395_v49  ;;  %v389_v49 = vsel %vm365_vm3, %v2657_v25, 0.0 }
  0x5f   : > { %525 = vadd.xlane.f32.xlu1 %v524_v56  ;;  %v515_v56 = vadd.f32 %v475_v48, %v474_v58  ;;  %v468_v58 = vsel %vm2910_vm4, %v2644_v20, 0.0  ;;  %v469_v48 = vsel %vm2916_vm5, %v2647_v21, 0.0 }
  0x60   : > { %436 = vadd.xlane.f32.xlu0 %v393_v59  ;;  %v387_v59 = vsel %vm365_vm3, %v2663_v27, 0.0 }
  0x63   : > { %522 = vadd.xlane.f32.xlu1 %v521_v60  ;;  %v512_v60 = vadd.f32 %v473_v53, %v472_v57  ;;  %v466_v57 = vsel %vm2910_vm4, %v2622_v12, 0.0  ;;  %v467_v53 = vsel %vm2916_vm5, %v2625_v13, 0.0 }
  0x64   : > { %433 = vadd.xlane.f32.xlu0 %v391_v55  ;;  %v385_v55 = vsel %vm365_vm3, %v2641_v19, 0.0 }
  0x67   : > { %519 = vadd.xlane.f32.xlu1 %v518_v38  ;;  %v509_v38 = vadd.f32 %v471_v7, %v470_v51  ;;  %v464_v51 = vsel %vm2910_vm4, %v2628_v14, 0.0  ;;  %v465_v7 = vsel %vm2916_vm5, %v2631_v15, 0.0 }
  0x68   : > { %430 = vadd.xlane.f32.xlu0 %v389_v49  ;;  %v383_v49 = vsel %vm365_vm3, %v2647_v21, 0.0 }
  0x6b   : > { %516 = vadd.xlane.f32.xlu1 %v515_v56  ;;  %v506_v56 = vadd.f32 %v469_v48, %v468_v58  ;;  %v462_v58 = vsel %vm2910_vm4, %v2604_v5, 0.0  ;;  %v463_v48 = vsel %vm2916_vm5, %v2607_v6, 0.0 }
  0x6c   : > { %427 = vadd.xlane.f32.xlu0 %v387_v59  ;;  %v381_v59 = vsel %vm365_vm3, %v2625_v13, 0.0 }
  0x6f   : > { %513 = vadd.xlane.f32.xlu1 %v512_v60  ;;  %v503_v60 = vadd.f32 %v467_v53, %v466_v57  ;;  %v460_v57 = vsel %vm2910_vm4, %v2590_v0, 0.0  ;;  %v461_v53 = vsel %vm2916_vm5, %v2593_v1, 0.0 }
  0x70   : > { %424 = vadd.xlane.f32.xlu0 %v385_v55  ;;  %v379_v55 = vsel %vm365_vm3, %v2631_v15, 0.0 }
  0x73   : > { %510 = vadd.xlane.f32.xlu1 %v509_v38  ;;  %v500_v38 = vadd.f32 %v465_v7, %v464_v51  ;;  %v458_v51 = vsel %vm2910_vm4, %v2612_v8, 0.0  ;;  %v459_v7 = vsel %vm2916_vm5, %v2615_v9, 0.0 }
  0x74   : > { %421 = vadd.xlane.f32.xlu0 %v383_v49  ;;  %v377_v49 = vsel %vm365_vm3, %v2607_v6, 0.0 }
  0x77   : > { %507 = vadd.xlane.f32.xlu1 %v506_v56  ;;  %v497_v56 = vadd.f32 %v463_v48, %v462_v58  ;;  %v456_v58 = vsel %vm2910_vm4, %v2596_v2, 0.0  ;;  %v457_v48 = vsel %vm2916_vm5, %v2601_v4, 0.0 }
  0x78   : > { %418 = vadd.xlane.f32.xlu0 %v381_v59  ;;  %v375_v59 = vsel %vm365_vm3, %v2593_v1, 0.0 }
  0x7b   : > { %504 = vadd.xlane.f32.xlu1 %v503_v60  ;;  %v494_v60 = vadd.f32 %v461_v53, %v460_v57  ;;  %v314_v57 = vsel %vm278_vm0, %v2703_v43, 0.0 }
  0x7c   : > { %415 = vadd.xlane.f32.xlu0 %v379_v55  ;;  %v373_v55 = vsel %vm365_vm3, %v2615_v9, 0.0 }
  0x7f   : > { %501 = vadd.xlane.f32.xlu1 %v500_v38  ;;  %v491_v38 = vadd.f32 %v459_v7, %v458_v51 }
  0x80   : > { %412 = vadd.xlane.f32.xlu0 %v377_v49  ;;  %v371_v49 = vsel %vm365_vm3, %v2601_v4, 0.0 }
  0x83   : > { %498 = vadd.xlane.f32.xlu1 %v497_v56  ;;  %v488_v56 = vadd.f32 %v457_v48, %v456_v58 }
  0x84   : > { %409 = vadd.xlane.f32.xlu0 %v375_v59 }
  0x87   : > { %495 = vadd.xlane.f32.xlu1 %v494_v60 }
  0x88   : > { %406 = vadd.xlane.f32.xlu0 %v373_v55 }
  0x8b   : > { %492 = vadd.xlane.f32.xlu1 %v491_v38 }
  0x8c   : > { %403 = vadd.xlane.f32.xlu0 %v371_v49 }
  0x8f   : > { %489 = vadd.xlane.f32.xlu1 %v488_v56 }
  0x90   : > { %362 = vadd.xlane.f32.xlu0 %v314_v57 }
  0x93   : > { %617 = vadd.xlane.f32.xlu1 %v2758_v62 }
  0x94   : > { %620 = vadd.xlane.f32.xlu0 %v2760_v63 }
  0x97   : > { %611 = vadd.xlane.f32.xlu1 %v2768_v10 }
  0x98   : > { %614 = vadd.xlane.f32.xlu0 %v2779_v22 }
  0x9b   : > { %605 = vadd.xlane.f32.xlu1 %v2790_v30 }
  0x9c   : > { %608 = vadd.xlane.f32.xlu0 %v2792_v36  ;;  %v3076_v37 = vpop.xlane.xlu1 %237 }
  0x9d   : > { %4314 = vst [vmem:[#allocation9_spill] sm:$0xff] %v3076_v37  ;;  %v3078_v52 = vpop.xlane.xlu0 %231 }
  0x9f   : > { %599 = vadd.xlane.f32.xlu1 %v2800_v50 }
  0xa0   : > { %602 = vadd.xlane.f32.xlu0 %v2811_v61  ;;  %v3082_v35 = vpop.xlane.xlu1 %240 }
  0xa1   : > { %4315 = vst [vmem:[#allocation10_spill] sm:$0xff] %v3082_v35  ;;  %v3084_v62 = vpop.xlane.xlu0 %234 }
  0xa3   : > { %593 = vadd.xlane.f32.xlu1 %v2822_v11 }
  0xa4   : > { %596 = vadd.xlane.f32.xlu0 %v2824_v16  ;;  %v3088_v63 = vpop.xlane.xlu1 %246 }
  0xa5   : > { %4316 = vst [vmem:[#allocation11_spill] sm:$0xff] %v3088_v63  ;;  %v3090_v10 = vpop.xlane.xlu0 %243 }
  0xa6   : > { %4317 = vst [vmem:[#allocation12_spill] sm:$0xff] %v3090_v10 }
  0xa7   : > { %587 = vadd.xlane.f32.xlu1 %v2832_v23 }
  0xa8   : > { %590 = vadd.xlane.f32.xlu0 %v2843_v47  ;;  %v3094_v22 = vpop.xlane.xlu1 %252 }
  0xa9   : > { %4318 = vst [vmem:[#allocation13_spill] sm:$0xff] %v3094_v22  ;;  %v3096_v30 = vpop.xlane.xlu0 %249 }
  0xaa   : > { %4319 = vst [vmem:[#allocation14_spill] sm:$0xff] %v3096_v30 }
  0xab   : > { %581 = vadd.xlane.f32.xlu1 %v2854_v54 }
  0xac   : > { %584 = vadd.xlane.f32.xlu0 %v2856_v3  ;;  %v3100_v36 = vpop.xlane.xlu1 %258 }
  0xad   : > { %v3102_v50 = vpop.xlane.xlu0 %255 }
  0xaf   : > { %575 = vadd.xlane.f32.xlu1 %v2867_v17 }
  0xb0   : > { %578 = vadd.xlane.f32.xlu0 %v2875_v29  ;;  %v3106_v61 = vpop.xlane.xlu1 %264 }
  0xb1   : > { %v3108_v11 = vpop.xlane.xlu0 %261 }
  0xb4   : > { %v3110_v16 = vpop.xlane.xlu1 %270 }
  0xb5   : > { %v3112_v23 = vpop.xlane.xlu0 %267 }
  0xb8   : > { %v3114_v47 = vpop.xlane.xlu1 %276 }
  0xb9   : > { %v3116_v54 = vpop.xlane.xlu0 %273 }
  0xbc   : > { %v3118_v3 = vpop.xlane.xlu1 %320 }
  0xbd   : > { %4320 = vst [vmem:[#allocation15_spill] sm:$0xff] %v3118_v3  ;;  %v3120_v28 = vpop.xlane.xlu0 %317 }
  0xbe   : > { %4321 = vst [vmem:[#allocation16_spill] sm:$0xff] %v3120_v28 }
  0xc0   : > { %v3122_v53 = vpop.xlane.xlu1 %326 }
  0xc1   : > { %4322 = vst [vmem:[#allocation17_spill] sm:$0xff] %v3122_v53  ;;  %v3124_v17 = vpop.xlane.xlu0 %323 }
  0xc2   : > { %4323 = vst [vmem:[#allocation18_spill] sm:$0xff] %v3124_v17 }
  0xc4   : > { %v3126_v29 = vpop.xlane.xlu1 %332 }
  0xc5   : > { %v3128_v59 = vpop.xlane.xlu0 %329 }
  0xc8   : > { %v3130_v60 = vpop.xlane.xlu1 %338 }
  0xc9   : > { %v3132_v51 = vpop.xlane.xlu0 %335 }
  0xcc   : > { %v3134_v7 = vpop.xlane.xlu1 %344 }
  0xcd   : > { %v3136_v55 = vpop.xlane.xlu0 %341 }
  0xd0   : > { %v3138_v38 = vpop.xlane.xlu1 %350 }
  0xd1   : > { %v3140_v58 = vpop.xlane.xlu0 %347 }
  0xd4   : > { %v3142_v48 = vpop.xlane.xlu1 %356 }
  0xd5   : > { %v3144_v49 = vpop.xlane.xlu0 %353 }
  0xd8   : > { %v449_v56 = vpop.xlane.xlu1 %448 }
  0xd9   : > { %v3146_v57 = vpop.xlane.xlu0 %359  ;;  %v3149_v2 = vsub.f32 %v3114_v47, %v449_v56 }
  0xdb   : > { %4324 = vst [vmem:[#allocation19_spill] sm:$0xff] %v3149_v2 }
  0xdc   : > { %v3151_v8 = vpop.xlane.xlu1 %534 }
  0xdd   : > { %4325 = vst [vmem:[#allocation20_spill] sm:$0xff] %v3151_v8  ;;  %v685_v28 = vsub.f32 %v3149_v2, %v3151_v8  ;;  %v446_v3 = vpop.xlane.xlu0 %445 }
  0xde   : > { %v3156_v0 = vsub.f32 %v3116_v54, %v446_v3 }
  0xdf   : > { %v701_v5 = vadd.f32 %v685_v28, %v2707_v44 }
  0xe0   : > { %4326 = vst [vmem:[#allocation21_spill] sm:$0xff] %v3156_v0  ;;  %v3159_v17 = vpop.xlane.xlu1 %531 }
  0xe1   : > { %4327 = vst [vmem:[#allocation22_spill] sm:$0xff] %v3159_v17  ;;  %v684_v12 = vsub.f32 %v3156_v0, %v3159_v17  ;;  %v443_v53 = vpop.xlane.xlu0 %442  ;;  %860 = vrot.lane.b32.xlu0 %v701_v5, %s2549_s18 }
  0xe2   : > { %v3165_v56 = vsub.f32 %v3110_v16, %v443_v53 }
  0xe3   : > { %v700_v8 = vadd.f32 %v684_v12, %v2713_v46 }
  0xe4   : > { %4328 = vst [vmem:[#allocation23_spill] sm:$0xff] %v3165_v56  ;;  %v3168_v2 = vpop.xlane.xlu1 %528 }
  0xe5   : > { %4329 = vst [vmem:[#allocation24_spill] sm:$0xff] %v3168_v2  ;;  %v683_v3 = vsub.f32 %v3165_v56, %v3168_v2  ;;  %v440_v28 = vpop.xlane.xlu0 %439  ;;  %858 = vrot.lane.b32.xlu1 %v700_v8, %s2549_s18 }
  0xe6   : > { %v3174_v44 = vsub.f32 %v3112_v23, %v440_v28 }
  0xe7   : > { %v699_v17 = vadd.f32 %v683_v3, %v2694_v40 }
  0xe8   : > { %v3177_v0 = vpop.xlane.xlu1 %525 }
  0xe9   : > { %4330 = vst [vmem:[#allocation25_spill] sm:$0xff] %v3177_v0  ;;  %v682_v5 = vsub.f32 %v3174_v44, %v3177_v0  ;;  %v437_v53 = vpop.xlane.xlu0 %436  ;;  %856 = vrot.lane.b32.xlu1 %v699_v17, %s2549_s18 }
  0xea   : > { %v3183_v12 = vsub.f32 %v3106_v61, %v437_v53 }
  0xeb   : > { %v698_v2 = vadd.f32 %v682_v5, %v2700_v42 }
  0xec   : > { %4331 = vst [vmem:[#allocation26_spill] sm:$0xff] %v3183_v12  ;;  %v3186_v56 = vpop.xlane.xlu1 %522 }
  0xed   : > { %4332 = vst [vmem:[#allocation27_spill] sm:$0xff] %v3186_v56  ;;  %v681_v8 = vsub.f32 %v3183_v12, %v3186_v56  ;;  %v434_v28 = vpop.xlane.xlu0 %433  ;;  %854 = vrot.lane.b32.xlu1 %v698_v2, %s2549_s18 }
  0xee   : > { %v3192_v3 = vsub.f32 %v3108_v11, %v434_v28 }
  0xef   : > { %v697_v0 = vadd.f32 %v681_v8, %v2673_v32 }
  0xf0   : > { %4333 = vst [vmem:[#allocation28_spill] sm:$0xff] %v3192_v3  ;;  %v3195_v40 = vpop.xlane.xlu1 %519 }
  0xf1   : > { %4334 = vst [vmem:[#allocation29_spill] sm:$0xff] %v3195_v40  ;;  %v680_v17 = vsub.f32 %v3192_v3, %v3195_v40  ;;  %v431_v53 = vpop.xlane.xlu0 %430  ;;  %852 = vrot.lane.b32.xlu0 %v697_v0, %s2549_s18 }
  0xf2   : > { %v3201_v5 = vsub.f32 %v3100_v36, %v431_v53 }
  0xf3   : > { %v696_v56 = vadd.f32 %v680_v17, %v2679_v34 }
  0xf4   : > { %4335 = vst [vmem:[#allocation30_spill] sm:$0xff] %v3201_v5  ;;  %v3204_v12 = vpop.xlane.xlu1 %516 }
  0xf5   : > { %4336 = vst [vmem:[#allocation31_spill] sm:$0xff] %v3204_v12  ;;  %v679_v2 = vsub.f32 %v3201_v5, %v3204_v12  ;;  %v428_v28 = vpop.xlane.xlu0 %427  ;;  %850 = vrot.lane.b32.xlu1 %v696_v56, %s2549_s18 }
  0xf6   : > { %v3210_v8 = vsub.f32 %v3102_v50, %v428_v28 }
  0xf7   : > { %v695_v40 = vadd.f32 %v679_v2, %v2657_v25 }
  0xf8   : > { %v3213_v3 = vpop.xlane.xlu1 %513 }
  0xf9   : > { %4337 = vst [vmem:[#allocation32_spill] sm:$0xff] %v3213_v3  ;;  %v678_v0 = vsub.f32 %v3210_v8, %v3213_v3  ;;  %v425_v53 = vpop.xlane.xlu0 %424  ;;  %848 = vrot.lane.b32.xlu0 %v695_v40, %s2549_s18 }
  0xfa   : > { %v3219_v17 = vsub.f32 %v3094_v22, %v425_v53 }
  0xfb   : > { %v694_v12 = vadd.f32 %v678_v0, %v2663_v27 }
  0xfc   : > { %v3222_v5 = vpop.xlane.xlu1 %510 }
  0xfd   : > { %4338 = vst [vmem:[#allocation33_spill] sm:$0xff] %v3222_v5  ;;  %v677_v56 = vsub.f32 %v3219_v17, %v3222_v5  ;;  %v422_v28 = vpop.xlane.xlu0 %421  ;;  %846 = vrot.lane.b32.xlu1 %v694_v12, %s2549_s18 }
  0xfe   : > { %v3228_v25 = vsub.f32 %v3096_v30, %v422_v28 }
  0xff   : > { %v693_v2 = vadd.f32 %v677_v56, %v2641_v19 }
 0x100   : > { %v3231_v3 = vpop.xlane.xlu1 %507 }
 0x101   : > { %4339 = vst [vmem:[#allocation34_spill] sm:$0xff] %v3231_v3  ;;  %v676_v40 = vsub.f32 %v3228_v25, %v3231_v3  ;;  %v419_v53 = vpop.xlane.xlu0 %418  ;;  %844 = vrot.lane.b32.xlu0 %v693_v2, %s2549_s18 }
 0x102   : > { %v3237_v27 = vsub.f32 %v3088_v63, %v419_v53 }
 0x103   : > { %v692_v0 = vadd.f32 %v676_v40, %v2647_v21 }
 0x104   : > { %4340 = vst [vmem:[#allocation35_spill] sm:$0xff] %v3237_v27  ;;  %v3240_v5 = vpop.xlane.xlu1 %504 }
 0x105   : > { %4341 = vst [vmem:[#allocation36_spill] sm:$0xff] %v3240_v5  ;;  %v675_v12 = vsub.f32 %v3237_v27, %v3240_v5  ;;  %v416_v28 = vpop.xlane.xlu0 %415  ;;  %842 = vrot.lane.b32.xlu1 %v692_v0, %s2549_s18 }
 0x106   : > { %v3246_v19 = vsub.f32 %v3090_v10, %v416_v28 }
 0x107   : > { %v691_v56 = vadd.f32 %v675_v12, %v2625_v13 }
 0x108   : > { %4342 = vst [vmem:[#allocation37_spill] sm:$0xff] %v3246_v19  ;;  %v3249_v3 = vpop.xlane.xlu1 %501 }
 0x109   : > { %4343 = vst [vmem:[#allocation38_spill] sm:$0xff] %v3249_v3  ;;  %v674_v2 = vsub.f32 %v3246_v19, %v3249_v3  ;;  %v413_v53 = vpop.xlane.xlu0 %412  ;;  %840 = vrot.lane.b32.xlu0 %v691_v56, %s2549_s18 }
 0x10a   : > { %v3255_v21 = vsub.f32 %v3082_v35, %v413_v53 }
 0x10b   : > { %v690_v40 = vadd.f32 %v674_v2, %v2631_v15 }
 0x10c   : > { %4344 = vst [vmem:[#allocation39_spill] sm:$0xff] %v3255_v21  ;;  %v3258_v5 = vpop.xlane.xlu1 %498 }
 0x10d   : > { %4345 = vst [vmem:[#allocation40_spill] sm:$0xff] %v3258_v5  ;;  %v673_v0 = vsub.f32 %v3255_v21, %v3258_v5  ;;  %v410_v28 = vpop.xlane.xlu0 %409  ;;  %838 = vrot.lane.b32.xlu1 %v690_v40, %s2549_s18 }
 0x10e   : > { %v3264_v13 = vsub.f32 %v3076_v37, %v410_v28 }
 0x10f   : > { %v689_v12 = vadd.f32 %v673_v0, %v2607_v6 }
 0x110   : > { %4346 = vst [vmem:[#allocation41_spill] sm:$0xff] %v3264_v13  ;;  %v3267_v3 = vpop.xlane.xlu1 %495 }
 0x111   : > { %4347 = vst [vmem:[#allocation42_spill] sm:$0xff] %v3267_v3  ;;  %v672_v56 = vsub.f32 %v3264_v13, %v3267_v3  ;;  %v407_v53 = vpop.xlane.xlu0 %406  ;;  %836 = vrot.lane.b32.xlu0 %v689_v12, %s2549_s18 }
 0x112   : > { %v3273_v15 = vsub.f32 %v3084_v62, %v407_v53 }
 0x113   : > { %v688_v2 = vadd.f32 %v672_v56, %v2593_v1  ;;  %v3292_v1 = vsub.f32 %v3116_v54, %v3146_v57  ;;  %v3309_v57 = vsub.f32 %v3112_v23, %v3144_v49 }
 0x114   : > { %4348 = vst [vmem:[#allocation43_spill] sm:$0xff] %v3273_v15  ;;  %v3276_v5 = vpop.xlane.xlu1 %492 }
 0x115   : > { %4349 = vst [vmem:[#allocation44_spill] sm:$0xff] %v3276_v5  ;;  %v671_v40 = vsub.f32 %v3273_v15, %v3276_v5  ;;  %v404_v28 = vpop.xlane.xlu0 %403  ;;  %834 = vrot.lane.b32.xlu1 %v688_v2, %s2549_s18 }
 0x116   : > { %v3282_v6 = vsub.f32 %v3078_v52, %v404_v28 }
 0x117   : > { %v687_v0 = vadd.f32 %v671_v40, %v2615_v9 }
 0x118   : > { %4350 = vst [vmem:[#allocation45_spill] sm:$0xff] %v3282_v6  ;;  %v3285_v3 = vpop.xlane.xlu1 %489 }
 0x119   : > { %4351 = vst [vmem:[#allocation46_spill] sm:$0xff] %v3285_v3  ;;  %v670_v12 = vsub.f32 %v3282_v6, %v3285_v3  ;;  %v363_v53 = vpop.xlane.xlu0 %362  ;;  %832 = vrot.lane.b32.xlu0 %v687_v0, %s2549_s18 }
 0x11a   : > { %v3296_v2 = vsub.f32 %v3114_v47, %v363_v53 }
 0x11b   : > { %v686_v56 = vadd.f32 %v670_v12, %v2601_v4  ;;  %v3314_v12 = vsub.f32 %v3110_v16, %v3142_v48  ;;  %v3329_v48 = vsub.f32 %v3108_v11, %v3140_v58 }
 0x11c   : > { %v3298_v28 = vpop.xlane.xlu1 %617 }
 0x11d   : > { %v764_v9 = vsub.f32 %v3292_v1, %v3298_v28  ;;  %v3302_v40 = vpop.xlane.xlu0 %620  ;;  %830 = vrot.lane.b32.xlu1 %v686_v56, %s2549_s18 }
 0x11e   : > { %v765_v0 = vsub.f32 %v3296_v2, %v3302_v40 }
 0x11f   : > { %v780_v4 = vadd.f32 %v764_v9, %v2710_v45 }
 0x120   : > { %v3316_v53 = vpop.xlane.xlu1 %611  ;;  %v781_v3 = vadd.f32 %v765_v0, %v2703_v43  ;;  %v3334_v0 = vsub.f32 %v3106_v61, %v3138_v38  ;;  %v3349_v38 = vsub.f32 %v3102_v50, %v3136_v55 }
 0x121   : > { %v762_v56 = vsub.f32 %v3309_v57, %v3316_v53  ;;  %v3321_v5 = vpop.xlane.xlu0 %614  ;;  %906 = vrot.lane.b32.xlu1 %v780_v4, %s2550_s19 }
 0x122   : > { %v763_v49 = vsub.f32 %v3314_v12, %v3321_v5  ;;  %908 = vrot.lane.b32.xlu0 %v781_v3, %s2550_s19 }
 0x123   : > { %v778_v9 = vadd.f32 %v762_v56, %v2697_v41  ;;  %v3354_v56 = vsub.f32 %v3100_v36, %v3134_v7 }
 0x124   : > { %v3336_v6 = vpop.xlane.xlu1 %605  ;;  %v779_v15 = vadd.f32 %v763_v49, %v2691_v39 }
 0x125   : > { %v760_v4 = vsub.f32 %v3329_v48, %v3336_v6  ;;  %v3341_v13 = vpop.xlane.xlu0 %608  ;;  %902 = vrot.lane.b32.xlu1 %v778_v9, %s2550_s19 }
 0x126   : > { %v761_v58 = vsub.f32 %v3334_v0, %v3341_v13  ;;  %904 = vrot.lane.b32.xlu0 %v779_v15, %s2550_s19  ;;  %v3374_v15 = vsub.f32 %v3094_v22, %v3130_v60 }
 0x127   : > { %v776_v3 = vadd.f32 %v760_v4, %v2676_v33  ;;  %v3369_v33 = vsub.f32 %v3096_v30, %v3132_v51 }
 0x128   : > { %v3356_v49 = vpop.xlane.xlu1 %599  ;;  %v777_v21 = vadd.f32 %v761_v58, %v2670_v31  ;;  %4352 = vst [vmem:[#allocation47_spill] sm:$0xff] %v3374_v15 }
 0x129   : > { %v758_v9 = vsub.f32 %v3349_v38, %v3356_v49  ;;  %v3361_v19 = vpop.xlane.xlu0 %602  ;;  %898 = vrot.lane.b32.xlu1 %v776_v3, %s2550_s19 }
 0x12a   : > { %v759_v55 = vsub.f32 %v3354_v56, %v3361_v19  ;;  %900 = vrot.lane.b32.xlu0 %v777_v21, %s2550_s19 }
 0x12b   : > { %v774_v7 = vadd.f32 %v758_v9, %v2660_v26  ;;  %v3389_v26 = vsub.f32 %v3090_v10, %v3128_v59 }
 0x12c   : > { %v3376_v4 = vpop.xlane.xlu1 %593  ;;  %v775_v58 = vadd.f32 %v759_v55, %v2654_v24  ;;  %v3394_v24 = vsub.f32 %v3088_v63, %v3126_v29  ;;  %v4354_v29 = vld [vmem:[#allocation17_spill] sm:$0xff] }
 0x12d   : > { %v756_v3 = vsub.f32 %v3369_v33, %v3376_v4  ;;  %v3381_v27 = vpop.xlane.xlu0 %596  ;;  %894 = vrot.lane.b32.xlu1 %v774_v7, %s2550_s19  ;;  %4353 = vst [vmem:[#allocation48_spill] sm:$0xff] %v3389_v26 }
 0x12e   : > { %v757_v51 = vsub.f32 %v3374_v15, %v3381_v27  ;;  %896 = vrot.lane.b32.xlu0 %v775_v58, %s2550_s19  ;;  %v3410_v58 = vsub.f32 %v3082_v35, %v4354_v29 }
 0x12f   : > { %v772_v60 = vadd.f32 %v756_v3, %v2644_v20 }
 0x130   : > { %v3396_v21 = vpop.xlane.xlu1 %587  ;;  %v773_v9 = vadd.f32 %v757_v51, %v2638_v18  ;;  %4355 = vst [vmem:[#allocation17_spill] sm:$0xff] %v3410_v58  ;;  %v4356_v18 = vld [vmem:[#allocation6_spill] sm:$0xff] }
 0x131   : > { %v754_v55 = vsub.f32 %v3389_v26, %v3396_v21  ;;  %v3401_v7 = vpop.xlane.xlu0 %590  ;;  %890 = vrot.lane.b32.xlu1 %v772_v60, %s2550_s19  ;;  %v4357_v26 = vld [vmem:[#allocation18_spill] sm:$0xff] }
 0x132   : > { %v755_v59 = vsub.f32 %v3394_v24, %v3401_v7  ;;  %892 = vrot.lane.b32.xlu0 %v773_v9, %s2550_s19  ;;  %v3417_v10 = vsub.f32 %v3076_v37, %v4357_v26  ;;  %v4361_v26 = vld [vmem:[#allocation2_spill] sm:$0xff] }
 0x133   : > { %v770_v20 = vadd.f32 %v754_v55, %v2628_v14  ;;  %v4359_v55 = vld [vmem:[#allocation4_spill] sm:$0xff] }
 0x134   : > { %v3412_v3 = vpop.xlane.xlu1 %581  ;;  %v771_v51 = vadd.f32 %v755_v59, %v4356_v18  ;;  %4358 = vst [vmem:[#allocation6_spill] sm:$0xff] %v3417_v10  ;;  %v4360_v59 = vld [vmem:[#allocation19_spill] sm:$0xff] }
 0x135   : > { %v3419_v60 = vpop.xlane.xlu0 %584  ;;  %886 = vrot.lane.b32.xlu1 %v770_v20, %s2550_s19  ;;  %v752_v14 = vsub.f32 %v3417_v10, %v3412_v3  ;;  %v653_v20 = vsub.f32 %v4360_v59, %v3302_v40  ;;  %v4363_v10 = vld [vmem:[#allocation8_spill] sm:$0xff] }
 0x136   : > { %v753_v9 = vsub.f32 %v3410_v58, %v3419_v60  ;;  %888 = vrot.lane.b32.xlu0 %v771_v51, %s2550_s19  ;;  %v717_v58 = vsub.f32 %v3114_v47, %v3302_v40  ;;  %v4362_v51 = vld [vmem:[#allocation21_spill] sm:$0xff] }
 0x137   : > { %v768_v18 = vadd.f32 %v752_v14, %v4361_v26  ;;  %v4364_v14 = vld [vmem:[#allocation15_spill] sm:$0xff] }
 0x138   : > { %v769_v29 = vadd.f32 %v753_v9, %v4359_v55  ;;  %v652_v9 = vsub.f32 %v4362_v51, %v3298_v28  ;;  %v716_v55 = vsub.f32 %v3116_v54, %v3298_v28  ;;  %v4365_v28 = vld [vmem:[#allocation16_spill] sm:$0xff] }
 0x139   : > { %1188 = vrot.lane.b32.xlu1 %v4360_v59, %s2551_s20  ;;  %v3443_v37 = vpop.xlane.xlu0 %578  ;;  %v3448_v59 = vsub.f32 %v3084_v62, %v4364_v14 }
 0x13a   : > { %884 = vrot.lane.b32.xlu0 %v769_v29, %s2550_s19  ;;  %v669_v29 = vadd.f32 %v653_v20, %v4363_v10  ;;  %v668_v40 = vadd.f32 %v652_v9, %v2713_v46  ;;  %v3458_v10 = vsub.f32 %v3078_v52, %v4365_v28  ;;  %v4366_v20 = vld [vmem:[#allocation5_spill] sm:$0xff]  ;;  %v4367_v46 = vld [vmem:[#allocation23_spill] sm:$0xff] }
 0x13b   : > { %v751_v26 = vsub.f32 %v3448_v59, %v3443_v37  ;;  %v4368_v9 = vld [vmem:[#allocation3_spill] sm:$0xff]  ;;  %v651_v14 = vsub.f32 %v4367_v46, %v3321_v5 }
 0x13d   : > { %882 = vrot.lane.b32.xlu1 %v768_v18, %s2550_s19 }
 0x13e   : > { %1252 = vrot.lane.b32.xlu0 %v717_v58, %s2551_s20  ;;  %v3452_v58 = vpop.xlane.xlu1 %575 }
 0x13f   : > { %v750_v18 = vsub.f32 %v3458_v10, %v3452_v58 }
 0x141   : > { %1250 = vrot.lane.b32.xlu1 %v716_v55, %s2551_s20  ;;  %v767_v55 = vadd.f32 %v751_v26, %v4366_v20  ;;  %v4369_v26 = vld [vmem:[#allocation20_spill] sm:$0xff]  ;;  %v4370_v20 = vld [vmem:[#allocation7_spill] sm:$0xff] }
 0x142   : > { %1156 = vrot.lane.b32.xlu0 %v669_v29, %s2551_s20  ;;  %v766_v29 = vadd.f32 %v750_v18, %v4368_v9  ;;  %v797_v28 = vsub.f32 %v3296_v2, %v4369_v26  ;;  %v714_v9 = vsub.f32 %v3112_v23, %v3316_v53 }
 0x145   : > { %1154 = vrot.lane.b32.xlu1 %v668_v40, %s2551_s20  ;;  %v715_v40 = vsub.f32 %v3110_v16, %v3321_v5  ;;  %v813_v5 = vadd.f32 %v797_v28, %v2703_v43 }
 0x146   : > { %1186 = vrot.lane.b32.xlu0 %v4362_v51, %s2551_s20  ;;  %v650_v51 = vsub.f32 %v3174_v44, %v3316_v53  ;;  %v713_v53 = vsub.f32 %v3106_v61, %v3341_v13 }
 0x148   : > { %v666_v18 = vadd.f32 %v650_v51, %v2700_v42  ;;  %v4372_v51 = vld [vmem:[#allocation26_spill] sm:$0xff] }
 0x149   : > { %1184 = vrot.lane.b32.xlu1 %v4367_v46, %s2551_s20  ;;  %v649_v28 = vsub.f32 %v4372_v51, %v3341_v13 }
 0x14a   : > { %880 = vrot.lane.b32.xlu0 %v767_v55, %s2550_s19  ;;  %v667_v55 = vadd.f32 %v651_v14, %v4370_v20  ;;  %v4373_v20 = vld [vmem:[#allocation24_spill] sm:$0xff] }
 0x14d   : > { %878 = vrot.lane.b32.xlu1 %v766_v29, %s2550_s19 }
 0x14e   : > { %1248 = vrot.lane.b32.xlu0 %v715_v40, %s2551_s20 }
 0x151   : > { %1182 = vrot.lane.b32.xlu1 %v3174_v44, %s2551_s20  ;;  %v4371_v44 = vld [vmem:[#allocation22_spill] sm:$0xff] }
 0x152   : > { %1152 = vrot.lane.b32.xlu0 %v667_v55, %s2551_s20  ;;  %v796_v14 = vsub.f32 %v3292_v1, %v4371_v44  ;;  %v795_v55 = vsub.f32 %v3314_v12, %v4373_v20 }
 0x153   : > { %v861_v29 = vpop.permute.xlu0 %860 }
 0x154   : > { %v812_v40 = vadd.f32 %v796_v14, %v2710_v45  ;;  %v665_v45 = vadd.f32 %v649_v28, %v2673_v32  ;;  %v811_v13 = vadd.f32 %v795_v55, %v2691_v39  ;;  %v712_v14 = vsub.f32 %v3108_v11, %v3336_v6 }
 0x155   : > { %1150 = vrot.lane.b32.xlu1 %v666_v18, %s2551_s20 }
 0x156   : > { %956 = vrot.lane.b32.xlu0 %v813_v5, %s2552_s21  ;;  %v4374_v5 = vld [vmem:[#allocation28_spill] sm:$0xff] }
 0x157   : > { %v859_v46 = vpop.permute.xlu1 %858 }
 0x159   : > { %1220 = vrot.lane.b32.xlu1 %v861_v29, %s2551_s20 }
 0x15a   : > { %1246 = vrot.lane.b32.xlu0 %v714_v9, %s2551_s20  ;;  %v4375_v9 = vld [vmem:[#allocation25_spill] sm:$0xff] }
 0x15b   : > { %v857_v42 = vpop.permute.xlu1 %856  ;;  %v794_v29 = vsub.f32 %v3309_v57, %v4375_v9 }
 0x15d   : > { %1216 = vrot.lane.b32.xlu1 %v857_v42, %s2551_s20  ;;  %v810_v39 = vadd.f32 %v794_v29, %v2697_v41 }
 0x15e   : > { %1218 = vrot.lane.b32.xlu0 %v859_v46, %s2551_s20  ;;  %v648_v46 = vsub.f32 %v4374_v5, %v3336_v6  ;;  %v4377_v6 = vld [vmem:[#allocation27_spill] sm:$0xff] }
 0x15f   : > { %v855_v43 = vpop.permute.xlu1 %854  ;;  %v793_v41 = vsub.f32 %v3334_v0, %v4377_v6 }
 0x160   : > { %v664_v32 = vadd.f32 %v648_v46, %v2679_v34 }
 0x161   : > { %954 = vrot.lane.b32.xlu1 %v812_v40, %s2552_s21  ;;  %v4376_v40 = vld [vmem:[#allocation30_spill] sm:$0xff] }
 0x162   : > { %1214 = vrot.lane.b32.xlu0 %v855_v43, %s2551_s20  ;;  %v711_v43 = vsub.f32 %v3100_v36, %v3361_v19  ;;  %v647_v34 = vsub.f32 %v4376_v40, %v3361_v19  ;;  %v646_v19 = vsub.f32 %v3210_v8, %v3356_v49 }
 0x163   : > { %v853_v18 = vpop.permute.xlu0 %852 }
 0x165   : > { %1244 = vrot.lane.b32.xlu1 %v713_v53, %s2551_s20 }
 0x166   : > { %1180 = vrot.lane.b32.xlu0 %v4372_v51, %s2551_s20  ;;  %v2520_v51 = vld [vmem:[%s2587_s17 + $0x98] sm:$0xff] }
 0x167   : > { %v851_v42 = vpop.permute.xlu1 %850  ;;  %v663_v28 = vadd.f32 %v2520_v51, %v647_v34 }
 0x169   : > { %1212 = vrot.lane.b32.xlu1 %v853_v18, %s2551_s20  ;;  %v809_v18 = vadd.f32 %v793_v41, %v2670_v31 }
 0x16a   : > { %1148 = vrot.lane.b32.xlu0 %v665_v45, %s2551_s20  ;;  %v4378_v45 = vld [vmem:[#allocation29_spill] sm:$0xff] }
 0x16b   : > { %v849_v53 = vpop.permute.xlu0 %848 }
 0x16d   : > { %1178 = vrot.lane.b32.xlu1 %v4374_v5, %s2551_s20  ;;  %v792_v5 = vsub.f32 %v3329_v48, %v4378_v45 }
 0x16e   : > { %952 = vrot.lane.b32.xlu0 %v811_v13, %s2552_s21  ;;  %v2521_v13 = vld [vmem:[%s2587_s17 + $0x88] sm:$0xff] }
 0x16f   : > { %v847_v55 = vpop.permute.xlu1 %846  ;;  %v662_v29 = vadd.f32 %v2521_v13, %v646_v19  ;;  %v2523_v19 = vld [vmem:[%s2587_s17 + $0x78] sm:$0xff] }
 0x171   : > { %1146 = vrot.lane.b32.xlu1 %v664_v32, %s2551_s20  ;;  %v710_v32 = vsub.f32 %v3102_v50, %v3356_v49 }
 0x172   : > { %1242 = vrot.lane.b32.xlu0 %v712_v14, %s2551_s20 }
 0x173   : > { %v845_v14 = vpop.permute.xlu0 %844 }
 0x175   : > { %950 = vrot.lane.b32.xlu1 %v810_v39, %s2552_s21 }
 0x176   : > { %1210 = vrot.lane.b32.xlu0 %v851_v42, %s2551_s20 }
 0x177   : > { %v843_v46 = vpop.permute.xlu1 %842 }
 0x179   : > { %1240 = vrot.lane.b32.xlu1 %v711_v43, %s2551_s20  ;;  %v709_v43 = vsub.f32 %v3094_v22, %v3381_v27 }
 0x17a   : > { %1176 = vrot.lane.b32.xlu0 %v4376_v40, %s2551_s20  ;;  %v645_v40 = vsub.f32 %v3219_v17, %v3381_v27  ;;  %v644_v27 = vsub.f32 %v3228_v25, %v3376_v4 }
 0x17b   : > { %v841_v42 = vpop.permute.xlu0 %840 }
 0x17d   : > { %1208 = vrot.lane.b32.xlu1 %v849_v53, %s2551_s20  ;;  %v4379_v53 = vld [vmem:[#allocation31_spill] sm:$0xff] }
 0x17e   : > { %1144 = vrot.lane.b32.xlu0 %v663_v28, %s2551_s20  ;;  %v791_v51 = vsub.f32 %v3354_v56, %v4379_v53 }
 0x17f   : > { %v3552_v31 = vpop.permute.xlu1 %838 }
 0x181   : > { %1174 = vrot.lane.b32.xlu1 %v3210_v8, %s2551_s20  ;;  %v2522_v8 = vld [vmem:[%s2587_s17 + $0xa0] sm:$0xff] }
 0x182   : > { %948 = vrot.lane.b32.xlu0 %v809_v18, %s2552_s21  ;;  %v808_v39 = vadd.f32 %v2522_v8, %v792_v5  ;;  %v2524_v5 = vld [vmem:[%s2587_s17 + $0x90] sm:$0xff]  ;;  %v2525_v8 = vld [vmem:[%s2587_s17 + $0x68] sm:$0xff] }
 0x183   : > { %v3563_v34 = vpop.permute.xlu0 %836  ;;  %v807_v13 = vadd.f32 %v2524_v5, %v791_v51  ;;  %v2526_v51 = vld [vmem:[%s2587_s17 + $0x80] sm:$0xff]  ;;  %v4381_v5 = vld [vmem:[#allocation35_spill] sm:$0xff] }
 0x185   : > { %1142 = vrot.lane.b32.xlu1 %v662_v29, %s2551_s20  ;;  %v4380_v29 = vld [vmem:[#allocation32_spill] sm:$0xff] }
 0x186   : > { %1238 = vrot.lane.b32.xlu0 %v710_v32, %s2551_s20  ;;  %v790_v32 = vsub.f32 %v3349_v38, %v4380_v29 }
 0x187   : > { %v3559_v49 = vpop.permute.xlu1 %834 }
 0x189   : > { %946 = vrot.lane.b32.xlu1 %v808_v39, %s2552_s21  ;;  %v660_v39 = vadd.f32 %v2525_v8, %v644_v27 }
 0x18a   : > { %1206 = vrot.lane.b32.xlu0 %v847_v55, %s2551_s20  ;;  %v661_v55 = vadd.f32 %v2523_v19, %v645_v40  ;;  %v806_v19 = vadd.f32 %v2526_v51, %v790_v32  ;;  %v2527_v51 = vld [vmem:[%s2587_s17 + $0x58] sm:$0xff] }
 0x18b   : > { %v3572_v28 = vpop.permute.xlu0 %832 }
 0x18d   : > { %1236 = vrot.lane.b32.xlu1 %v709_v43, %s2551_s20  ;;  %v708_v43 = vsub.f32 %v3096_v30, %v3376_v4  ;;  %v707_v4 = vsub.f32 %v3088_v63, %v3401_v7 }
 0x18e   : > { %1172 = vrot.lane.b32.xlu0 %v3219_v17, %s2551_s20 }
 0x18f   : > { %v3568_v41 = vpop.permute.xlu1 %830 }
 0x191   : > { %1204 = vrot.lane.b32.xlu1 %v845_v14, %s2551_s20 }
 0x192   : > { %1140 = vrot.lane.b32.xlu0 %v661_v55, %s2551_s20 }
 0x193   : > { %v3579_v18 = vpop.permute.xlu1 %906 }
 0x194   : > { %v3581_v17 = vpop.permute.xlu0 %908 }
 0x195   : > { %1170 = vrot.lane.b32.xlu1 %v3228_v25, %s2551_s20 }
 0x196   : > { %944 = vrot.lane.b32.xlu0 %v807_v13, %s2552_s21  ;;  %v643_v13 = vsub.f32 %v4381_v5, %v3401_v7  ;;  %v4385_v7 = vld [vmem:[#allocation37_spill] sm:$0xff] }
 0x197   : > { %v3589_v14 = vpop.permute.xlu1 %902 }
 0x198   : > { %v3594_v40 = vpop.permute.xlu0 %904 }
 0x199   : > { %1138 = vrot.lane.b32.xlu1 %v660_v39, %s2551_s20  ;;  %v4383_v39 = vld [vmem:[#allocation33_spill] sm:$0xff] }
 0x19a   : > { %1234 = vrot.lane.b32.xlu0 %v708_v43, %s2551_s20 }
 0x19b   : > { %v3598_v25 = vpop.permute.xlu1 %898 }
 0x19c   : > { %v3601_v55 = vpop.permute.xlu0 %900 }
 0x19d   : > { %942 = vrot.lane.b32.xlu1 %v806_v19, %s2552_s21  ;;  %v659_v19 = vadd.f32 %v2527_v51, %v643_v13  ;;  %v4388_v13 = vld [vmem:[#allocation34_spill] sm:$0xff] }
 0x19e   : > { %1202 = vrot.lane.b32.xlu0 %v843_v46, %s2551_s20  ;;  %v789_v46 = vsub.f32 %v3374_v15, %v4383_v39  ;;  %v4389_v15 = vld [vmem:[#allocation12_spill] sm:$0xff] }
 0x19f   : > { %v3607_v27 = vpop.permute.xlu1 %894  ;;  %v706_v22 = vsub.f32 %v4389_v15, %v3396_v21 }
 0x1a0   : > { %v3611_v8 = vpop.permute.xlu0 %896 }
 0x1a1   : > { %1232 = vrot.lane.b32.xlu1 %v707_v4, %s2551_s20  ;;  %v642_v4 = vsub.f32 %v4385_v7, %v3396_v21  ;;  %v705_v21 = vsub.f32 %v3082_v35, %v3419_v60  ;;  %v4399_v35 = vld [vmem:[#allocation9_spill] sm:$0xff] }
 0x1a2   : > { %1168 = vrot.lane.b32.xlu0 %v4381_v5, %s2551_s20  ;;  %v704_v15 = vsub.f32 %v4399_v35, %v3412_v3 }
 0x1a3   : > { %v3616_v32 = vpop.permute.xlu1 %890 }
 0x1a4   : > { %4382 = vst [vmem:[#allocation18_spill] sm:$0xff] %v3616_v32  ;;  %v3620_v43 = vpop.permute.xlu0 %892  ;;  %v2528_v32 = vld [vmem:[%s2587_s17 + $0x70] sm:$0xff] }
 0x1a5   : > { %4384 = vst [vmem:[#allocation4_spill] sm:$0xff] %v3620_v43  ;;  %1200 = vrot.lane.b32.xlu1 %v841_v42, %s2551_s20  ;;  %v805_v30 = vadd.f32 %v2528_v32, %v789_v46  ;;  %v788_v42 = vsub.f32 %v3369_v33, %v4388_v13  ;;  %v2530_v46 = vld [vmem:[%s2587_s17 + $0x60] sm:$0xff] }
 0x1a6   : > { %1136 = vrot.lane.b32.xlu0 %v659_v19, %s2551_s20  ;;  %v2529_v19 = vld [vmem:[%s2587_s17 + $0x48] sm:$0xff] }
 0x1a7   : > { %v3627_v63 = vpop.permute.xlu1 %886  ;;  %v658_v43 = vadd.f32 %v2529_v19, %v642_v4  ;;  %v4393_v19 = vld [vmem:[#allocation36_spill] sm:$0xff] }
 0x1a8   : > { %4386 = vst [vmem:[#allocation19_spill] sm:$0xff] %v3627_v63  ;;  %v3629_v5 = vpop.permute.xlu0 %888 }
 0x1a9   : > { %4387 = vst [vmem:[#allocation2_spill] sm:$0xff] %v3629_v5  ;;  %1166 = vrot.lane.b32.xlu1 %v4385_v7, %s2551_s20 }
 0x1aa   : > { %940 = vrot.lane.b32.xlu0 %v805_v30, %s2552_s21  ;;  %v804_v30 = vadd.f32 %v2530_v46, %v788_v42  ;;  %v787_v46 = vsub.f32 %v3394_v24, %v4393_v19 }
 0x1ab   : > { %v1189_v51 = vpop.permute.xlu1 %1188 }
 0x1ac   : > { %v3640_v63 = vpop.permute.xlu0 %884  ;;  %2184 = vmatprep.subr.mxu0 %v1189_v51 }
 0x1ad   : > { %4390 = vst [vmem:[#allocation21_spill] sm:$0xff] %v3640_v63  ;;  %1134 = vrot.lane.b32.xlu1 %v658_v43, %s2551_s20  ;;  %v4392_v43 = vld [vmem:[#allocation39_spill] sm:$0xff] }
 0x1ae   : > { %1230 = vrot.lane.b32.xlu0 %v706_v22, %s2551_s20  ;;  %v641_v51 = vsub.f32 %v4392_v43, %v3419_v60  ;;  %v4394_v60 = vld [vmem:[#allocation41_spill] sm:$0xff] }
 0x1af   : > { %v3644_v32 = vpop.permute.xlu1 %882 }
 0x1b0   : > { %4391 = vst [vmem:[#allocation8_spill] sm:$0xff] %v3644_v32  ;;  %v1253_v7 = vpop.permute.xlu0 %1252  ;;  %v2532_v32 = vld [vmem:[%s2587_s17 + $0x50] sm:$0xff] }
 0x1b1   : > { %2240 = vmatprep.subr.mxu1 %v1253_v7  ;;  %938 = vrot.lane.b32.xlu1 %v804_v30, %s2552_s21  ;;  %v2531_v30 = vld [vmem:[%s2587_s17 + $0x38] sm:$0xff]  ;;  %v803_v63 = vadd.f32 %v2532_v32, %v787_v46  ;;  %v2534_v46 = vld [vmem:[%s2587_s17 + $0x40] sm:$0xff] }
 0x1b2   : > { %1198 = vrot.lane.b32.xlu0 %v3552_v31, %s2551_s20  ;;  %v657_v7 = vadd.f32 %v2531_v30, %v641_v51  ;;  %v4396_v51 = vld [vmem:[#allocation38_spill] sm:$0xff] }
 0x1b3   : > { %v1251_v4 = vpop.permute.xlu1 %1250 }
 0x1b4   : > { %v1157_v22 = vpop.permute.xlu0 %1156 }
 0x1b5   : > { %2185 = vmatpush3.msra.mxu0 %v1157_v22  ;;  %1228 = vrot.lane.b32.xlu1 %v705_v21, %s2551_s20  ;;  %v640_v21 = vsub.f32 %v4394_v60, %v3412_v3 }
 0x1b6   : > { %1164 = vrot.lane.b32.xlu0 %v4392_v43, %s2551_s20 }
 0x1b7   : > { %v1155_v42 = vpop.permute.xlu1 %1154 }
 0x1b8   : > { %v1187_v31 = vpop.permute.xlu0 %1186 }
 0x1b9   : > { %2186 = vmatprep.subr.mxu0 %v1187_v31  ;;  %1196 = vrot.lane.b32.xlu1 %v3563_v34, %s2551_s20  ;;  %v4397_v34 = vld [vmem:[#allocation48_spill] sm:$0xff] }
 0x1ba   : > { %1132 = vrot.lane.b32.xlu0 %v657_v7, %s2551_s20  ;;  %2187 = vmatpush3.msra.mxu0 %v1155_v42  ;;  %v786_v31 = vsub.f32 %v4397_v34, %v4396_v51  ;;  %v2533_v42 = vld [vmem:[%s2587_s17 + $0x28] sm:$0xff] }
 0x1bb   : > { %v1185_v22 = vpop.permute.xlu1 %1184  ;;  %v656_v7 = vadd.f32 %v2533_v42, %v640_v21  ;;  %v4400_v21 = vld [vmem:[#allocation43_spill] sm:$0xff] }
 0x1bc   : > { %v3665_v43 = vpop.permute.xlu0 %880  ;;  %2188 = vmatprep.subr.mxu0 %v1185_v22  ;;  %v639_v42 = vsub.f32 %v4400_v21, %v3443_v37 }
 0x1bd   : > { %4395 = vst [vmem:[#allocation15_spill] sm:$0xff] %v3665_v43  ;;  %1162 = vrot.lane.b32.xlu1 %v4394_v60, %s2551_s20  ;;  %v802_v60 = vadd.f32 %v2534_v46, %v786_v31 }
 0x1be   : > { %936 = vrot.lane.b32.xlu0 %v803_v63, %s2552_s21  ;;  %v703_v63 = vsub.f32 %v3084_v62, %v3443_v37  ;;  %v4404_v37 = vld [vmem:[#allocation45_spill] sm:$0xff] }
 0x1bf   : > { %v3673_v30 = vpop.permute.xlu1 %878 }
 0x1c0   : > { %4398 = vst [vmem:[#allocation16_spill] sm:$0xff] %v3673_v30  ;;  %v1249_v5 = vpop.permute.xlu0 %1248 }
 0x1c1   : > { %1130 = vrot.lane.b32.xlu1 %v656_v7, %s2551_s20  ;;  %v4402_v7 = vld [vmem:[#allocation40_spill] sm:$0xff] }
 0x1c2   : > { %1226 = vrot.lane.b32.xlu0 %v704_v15, %s2551_s20 }
 0x1c3   : > { %v1183_v32 = vpop.permute.xlu1 %1182 }
 0x1c4   : > { %v1153_v22 = vpop.permute.xlu0 %1152 }
 0x1c5   : > { %2189 = vmatpush3.msra.mxu0 %v1153_v22  ;;  %934 = vrot.lane.b32.xlu1 %v802_v60, %s2552_s21  ;;  %v2535_v60 = vld [vmem:[%s2587_s17 + $0x18] sm:$0xff] }
 0x1c6   : > { %1194 = vrot.lane.b32.xlu0 %v3559_v49, %s2551_s20  ;;  %2190 = vmatprep.subr.mxu0 %v1183_v32  ;;  %v4403_v49 = vld [vmem:[#allocation17_spill] sm:$0xff]  ;;  %v655_v22 = vadd.f32 %v2535_v60, %v639_v42  ;;  %v4405_v42 = vld [vmem:[#allocation42_spill] sm:$0xff] }
 0x1c7   : > { %v1151_v3 = vpop.permute.xlu1 %1150  ;;  %v785_v32 = vsub.f32 %v4403_v49, %v4402_v7 }
 0x1c8   : > { %v3688_v15 = vpop.permute.xlu0 %956  ;;  %2191 = vmatpush3.msra.mxu0 %v1151_v3 }
 0x1c9   : > { %4401 = vst [vmem:[#allocation5_spill] sm:$0xff] %v3688_v15  ;;  %1224 = vrot.lane.b32.xlu1 %v703_v63, %s2551_s20  ;;  %v638_v63 = vsub.f32 %v4404_v37, %v3452_v58  ;;  %v2536_v15 = vld [vmem:[%s2587_s17 + $0x30] sm:$0xff] }
 0x1ca   : > { %1160 = vrot.lane.b32.xlu0 %v4400_v21, %s2551_s20  ;;  %v801_v30 = vadd.f32 %v2536_v15, %v785_v32  ;;  %v2537_v32 = vld [vmem:[%s2587_s17 + $0x8] sm:$0xff] }
 0x1cb   : > { %v1221_v31 = vpop.permute.xlu1 %1220 }
 0x1cc   : > { %v1247_v46 = vpop.permute.xlu0 %1246  ;;  %2241 = vmatpush3.msra.mxu1 %v1221_v31  ;;  %v4406_v31 = vld [vmem:[#allocation6_spill] sm:$0xff] }
 0x1cd   : > { %1192 = vrot.lane.b32.xlu1 %v3572_v28, %s2551_s20  ;;  %2242 = vmatprep.subr.mxu1 %v1251_v4  ;;  %v959_v28 = vld [vmem:[%s4214_s1 + $0x8] sm:$0xff]  ;;  %v961_v4 = vld [vmem:[%s4214_s1 + $0x18] sm:$0xff]  ;;  %v784_v60 = vsub.f32 %v4406_v31, %v4405_v42 }
 0x1ce   : > { %1128 = vrot.lane.b32.xlu0 %v655_v22, %s2551_s20  ;;  %v654_v22 = vadd.f32 %v2537_v32, %v638_v63  ;;  %1622 = vmatprep.mubr.f32.mxu0 %v959_v28  ;;  %v2539_v32 = vld [vmem:[%s2587_s17 + $0x10] sm:$0xff] }
 0x1cf   : > { %v1217_v3 = vpop.permute.xlu1 %1216  ;;  %1727 = vmatprep.mubr.f32.mxu1 %v961_v4  ;;  %v4407_v4 = vld [vmem:[#allocation44_spill] sm:$0xff] }
 0x1d0   : > { %v1219_v21 = vpop.permute.xlu0 %1218 }
 0x1d1   : > { %2243 = vmatpush3.msra.mxu1 %v1219_v21  ;;  %1158 = vrot.lane.b32.xlu1 %v4404_v37, %s2551_s20  ;;  %v2538_v21 = vld [vmem:[%s2587_s17 + $0x20] sm:$0xff] }
 0x1d2   : > { %932 = vrot.lane.b32.xlu0 %v801_v30, %s2552_s21  ;;  %2244 = vmatprep.subr.mxu1 %v1249_v5  ;;  %v702_v5 = vsub.f32 %v3078_v52, %v3452_v58  ;;  %v800_v43 = vadd.f32 %v2538_v21, %v784_v60 }
 0x1d3   : > { %2245 = vmatpush3.msra.mxu1 %v1217_v3  ;;  %v3713_v15 = vpop.permute.xlu1 %954 }
 0x1d4   : > { %2246 = vmatprep.subr.mxu1 %v1247_v46  ;;  %v1215_v30 = vpop.permute.xlu0 %1214  ;;  %v733_v46 = vsub.f32 %v3114_v47, %v4369_v26  ;;  %v732_v26 = vsub.f32 %v3116_v54, %v4371_v44 }
 0x1d5   : > { %2247 = vmatpush3.msra.mxu1 %v1215_v30  ;;  %1126 = vrot.lane.b32.xlu1 %v654_v22, %s2551_s20 }
 0x1d6   : > { %1222 = vrot.lane.b32.xlu0 %v702_v5, %s2551_s20  ;;  %v4408_v5 = vld [vmem:[#allocation46_spill] sm:$0xff] }
 0x1d7   : > { %v1245_v37 = vpop.permute.xlu1 %1244 }
 0x1d8   : > { %v1181_v3 = vpop.permute.xlu0 %1180  ;;  %2248 = vmatprep.subr.mxu1 %v1245_v37  ;;  %v2540_v37 = vld [vmem:[%s2587_s17] sm:$0xff]  ;;  %s2183_s17 = sshll.u32 %s4437_s13, 6 }
 0x1d9   : > { %2192 = vmatprep.subr.mxu0 %v1181_v3  ;;  %930 = vrot.lane.b32.xlu1 %v800_v43, %s2552_s21  ;;  %v783_v43 = vsub.f32 %v3448_v59, %v4407_v4  ;;  %s4174_s24 = scalar_lea.vmem %s4216_s3, %s2183_s17 }
 0x1da   : > { %1190 = vrot.lane.b32.xlu0 %v3568_v41, %s2551_s20 }
 0x1db   : > { %v1213_v58 = vpop.permute.xlu1 %1212  ;;  %v799_v22 = vadd.f32 %v2539_v32, %v783_v43 }
 0x1dc   : > { %v1149_v63 = vpop.permute.xlu0 %1148  ;;  %2249 = vmatpush3.msra.mxu1 %v1213_v58 }
 0x1dd   : > { %2193 = vmatpush3.msra.mxu0 %v1149_v63  ;;  %1380 = vrot.lane.b32.xlu1 %v3296_v2, %s2551_s20 }
 0x1de   : > { %1316 = vrot.lane.b32.xlu0 %v733_v46, %s2551_s20  ;;  %v731_v46 = vsub.f32 %v3110_v16, %v4373_v20  ;;  %v730_v20 = vsub.f32 %v3112_v23, %v4375_v9  ;;  %v729_v9 = vsub.f32 %v3106_v61, %v4377_v6  ;;  %v728_v6 = vsub.f32 %v3108_v11, %v4378_v45 }
 0x1df   : > { %v1179_v28 = vpop.permute.xlu1 %1178  ;;  %v727_v45 = vsub.f32 %v3100_v36, %v4379_v53  ;;  %v726_v53 = vsub.f32 %v3102_v50, %v4380_v29  ;;  %v4409_v29 = vld [vmem:[#allocation13_spill] sm:$0xff] }
 0x1e0   : > { %v3731_v60 = vpop.permute.xlu0 %952  ;;  %2194 = vmatprep.subr.mxu0 %v1179_v28 }
 0x1e1   : > { %1348 = vrot.lane.b32.xlu1 %v3581_v17, %s2551_s20  ;;  %v782_v17 = vsub.f32 %v3458_v10, %v4408_v5 }
 0x1e2   : > { %1284 = vrot.lane.b32.xlu0 %v3114_v47, %s2551_s20 }
 0x1e3   : > { %v1147_v2 = vpop.permute.xlu1 %1146  ;;  %v798_v21 = vadd.f32 %v2540_v37, %v782_v17 }
 0x1e4   : > { %v1243_v41 = vpop.permute.xlu0 %1242  ;;  %2195 = vmatpush3.msra.mxu0 %v1147_v2 }
 0x1e5   : > { %2250 = vmatprep.subr.mxu1 %v1243_v41  ;;  %1314 = vrot.lane.b32.xlu1 %v732_v26, %s2551_s20 }
 0x1e6   : > { %928 = vrot.lane.b32.xlu0 %v799_v22, %s2552_s21 }
 0x1e7   : > { %v3744_v30 = vpop.permute.xlu1 %950 }
 0x1e8   : > { %v1211_v47 = vpop.permute.xlu0 %1210 }
 0x1e9   : > { %2251 = vmatpush3.msra.mxu1 %v1211_v47  ;;  %1282 = vrot.lane.b32.xlu1 %v3116_v54, %s2551_s20 }
 0x1ea   : > { %1378 = vrot.lane.b32.xlu0 %v3292_v1, %s2551_s20 }
 0x1eb   : > { %v1241_v44 = vpop.permute.xlu1 %1240 }
 0x1ec   : > { %v1177_v3 = vpop.permute.xlu0 %1176  ;;  %2252 = vmatprep.subr.mxu1 %v1241_v44 }
 0x1ed   : > { %2196 = vmatprep.subr.mxu0 %v1177_v3  ;;  %926 = vrot.lane.b32.xlu1 %v798_v21, %s2552_s21 }
 0x1ee   : > { %1346 = vrot.lane.b32.xlu0 %v3579_v18, %s2551_s20 }
 0x1ef   : > { %v1209_v58 = vpop.permute.xlu1 %1208 }
 0x1f0   : > { %v1145_v63 = vpop.permute.xlu0 %1144  ;;  %2253 = vmatpush3.msra.mxu1 %v1209_v58  ;;  %v4413_v58 = vld [vmem:[#allocation18_spill] sm:$0xff] }
 0x1f1   : > { %2197 = vmatpush3.msra.mxu0 %v1145_v63  ;;  %1376 = vrot.lane.b32.xlu1 %v3314_v12, %s2551_s20 }
 0x1f2   : > { %1312 = vrot.lane.b32.xlu0 %v731_v46, %s2551_s20 }
 0x1f3   : > { %v1175_v54 = vpop.permute.xlu1 %1174 }
 0x1f4   : > { %v3759_v1 = vpop.permute.xlu0 %948  ;;  %2198 = vmatprep.subr.mxu0 %v1175_v54 }
 0x1f5   : > { %1344 = vrot.lane.b32.xlu1 %v3594_v40, %s2551_s20 }
 0x1f6   : > { %1280 = vrot.lane.b32.xlu0 %v3110_v16, %s2551_s20 }
 0x1f7   : > { %v1143_v18 = vpop.permute.xlu1 %1142 }
 0x1f8   : > { %v1239_v28 = vpop.permute.xlu0 %1238  ;;  %2199 = vmatpush3.msra.mxu0 %v1143_v18 }
 0x1f9   : > { %2254 = vmatprep.subr.mxu1 %v1239_v28  ;;  %1374 = vrot.lane.b32.xlu1 %v3309_v57, %s2551_s20 }
 0x1fa   : > { %1310 = vrot.lane.b32.xlu0 %v730_v20, %s2551_s20  ;;  %v4415_v20 = vld [vmem:[#allocation2_spill] sm:$0xff] }
 0x1fb   : > { %v3770_v12 = vpop.permute.xlu1 %946 }
 0x1fc   : > { %v1207_v43 = vpop.permute.xlu0 %1206 }
 0x1fd   : > { %2255 = vmatpush3.msra.mxu1 %v1207_v43  ;;  %1342 = vrot.lane.b32.xlu1 %v3589_v14, %s2551_s20 }
 0x1fe   : > { %1278 = vrot.lane.b32.xlu0 %v3112_v23, %s2551_s20 }
 0x1ff   : > { %v1237_v16 = vpop.permute.xlu1 %1236 }
 0x200   : > { %v1173_v40 = vpop.permute.xlu0 %1172  ;;  %2256 = vmatprep.subr.mxu1 %v1237_v16 }
 0x201   : > { %2200 = vmatprep.subr.mxu0 %v1173_v40  ;;  %1372 = vrot.lane.b32.xlu1 %v3334_v0, %s2551_s20  ;;  %v4417_v40 = vld [vmem:[#allocation19_spill] sm:$0xff] }
 0x202   : > { %1308 = vrot.lane.b32.xlu0 %v729_v9, %s2551_s20 }
 0x203   : > { %v1205_v57 = vpop.permute.xlu1 %1204 }
 0x204   : > { %v1141_v26 = vpop.permute.xlu0 %1140  ;;  %2257 = vmatpush3.msra.mxu1 %v1205_v57 }
 0x205   : > { %2201 = vmatpush3.msra.mxu0 %v1141_v26  ;;  %1340 = vrot.lane.b32.xlu1 %v3601_v55, %s2551_s20 }
 0x206   : > { %1276 = vrot.lane.b32.xlu0 %v3106_v61, %s2551_s20 }
 0x207   : > { %v1171_v23 = vpop.permute.xlu1 %1170 }
 0x208   : > { %v3787_v14 = vpop.permute.xlu0 %944  ;;  %2202 = vmatprep.subr.mxu0 %v1171_v23 }
 0x209   : > { %1370 = vrot.lane.b32.xlu1 %v3329_v48, %s2551_s20 }
 0x20a   : > { %1306 = vrot.lane.b32.xlu0 %v728_v6, %s2551_s20 }
 0x20b   : > { %v1139_v0 = vpop.permute.xlu1 %1138 }
 0x20c   : > { %v1235_v2 = vpop.permute.xlu0 %1234  ;;  %2203 = vmatpush3.msra.mxu0 %v1139_v0  ;;  %v4419_v0 = vld [vmem:[#allocation21_spill] sm:$0xff] }
 0x20d   : > { %2258 = vmatprep.subr.mxu1 %v1235_v2  ;;  %1338 = vrot.lane.b32.xlu1 %v3598_v25, %s2551_s20 }
 0x20e   : > { %1274 = vrot.lane.b32.xlu0 %v3108_v11, %s2551_s20 }
 0x20f   : > { %v3796_v61 = vpop.permute.xlu1 %942 }
 0x210   : > { %v1203_v55 = vpop.permute.xlu0 %1202 }
 0x211   : > { %2259 = vmatpush3.msra.mxu1 %v1203_v55  ;;  %1368 = vrot.lane.b32.xlu1 %v3354_v56, %s2551_s20  ;;  %v968_v55 = vld [vmem:[%s4214_s1 + $0x50] sm:$0xff] }
 0x212   : > { %1304 = vrot.lane.b32.xlu0 %v727_v45, %s2551_s20 }
 0x213   : > { %v1233_v48 = vpop.permute.xlu1 %1232 }
 0x214   : > { %v1169_v41 = vpop.permute.xlu0 %1168  ;;  %2260 = vmatprep.subr.mxu1 %v1233_v48 }
 0x215   : > { %2204 = vmatprep.subr.mxu0 %v1169_v41  ;;  %1336 = vrot.lane.b32.xlu1 %v3611_v8, %s2551_s20  ;;  %v725_v8 = vsub.f32 %v4409_v29, %v4383_v39  ;;  %v4412_v39 = vld [vmem:[#allocation14_spill] sm:$0xff]  ;;  %v960_v41 = vld [vmem:[%s4214_s1 + $0x10] sm:$0xff] }
 0x216   : > { %1272 = vrot.lane.b32.xlu0 %v3100_v36, %s2551_s20  ;;  %v724_v44 = vsub.f32 %v4412_v39, %v4388_v13  ;;  %v4414_v13 = vld [vmem:[#allocation11_spill] sm:$0xff] }
 0x217   : > { %v1201_v11 = vpop.permute.xlu1 %1200  ;;  %v723_v63 = vsub.f32 %v4414_v13, %v4393_v19  ;;  %v4416_v19 = vld [vmem:[#allocation12_spill] sm:$0xff] }
 0x218   : > { %v1137_v25 = vpop.permute.xlu0 %1136  ;;  %2261 = vmatpush3.msra.mxu1 %v1201_v11  ;;  %v722_v43 = vsub.f32 %v4416_v19, %v4396_v51  ;;  %v4418_v51 = vld [vmem:[#allocation10_spill] sm:$0xff]  ;;  %v967_v11 = vld [vmem:[%s4214_s1 + $0x48] sm:$0xff] }
 0x219   : > { %2205 = vmatpush3.msra.mxu0 %v1137_v25  ;;  %1366 = vrot.lane.b32.xlu1 %v3349_v38, %s2551_s20  ;;  %v4410_v38 = vld [vmem:[#allocation47_spill] sm:$0xff]  ;;  %v721_v26 = vsub.f32 %v4418_v51, %v4402_v7  ;;  %v958_v7 = vld [vmem:[%s4214_s1] sm:$0xff]  ;;  %v977_v25 = vld [vmem:[%s4214_s1 + $0x98] sm:$0xff] }
 0x21a   : > { %1302 = vrot.lane.b32.xlu0 %v726_v53, %s2551_s20  ;;  %v970_v53 = vld [vmem:[%s4214_s1 + $0x60] sm:$0xff] }
 0x21b   : > { %v1167_v56 = vpop.permute.xlu1 %1166 }
 0x21c   : > { %v3812_v32 = vpop.permute.xlu0 %940  ;;  %2206 = vmatprep.subr.mxu0 %v1167_v56 }
 0x21d   : > { %1334 = vrot.lane.b32.xlu1 %v3607_v27, %s2551_s20  ;;  %v4411_v27 = vld [vmem:[#allocation4_spill] sm:$0xff] }
 0x21e   : > { %1270 = vrot.lane.b32.xlu0 %v3102_v50, %s2551_s20 }
 0x21f   : > { %v1135_v36 = vpop.permute.xlu1 %1134 }
 0x220   : > { %v1231_v22 = vpop.permute.xlu0 %1230  ;;  %2207 = vmatpush3.msra.mxu0 %v1135_v36  ;;  %v969_v36 = vld [vmem:[%s4214_s1 + $0x58] sm:$0xff] }
 0x221   : > { %2262 = vmatprep.subr.mxu1 %v1231_v22  ;;  %1364 = vrot.lane.b32.xlu1 %v4410_v38, %s2551_s20  ;;  %v976_v22 = vld [vmem:[%s4214_s1 + $0x90] sm:$0xff]  ;;  %v986_v38 = vld [vmem:[%s4214_s1 + $0xe0] sm:$0xff] }
 0x222   : > { %1300 = vrot.lane.b32.xlu0 %v725_v8, %s2551_s20 }
 0x223   : > { %v3823_v17 = vpop.permute.xlu1 %938 }
 0x224   : > { %v1199_v47 = vpop.permute.xlu0 %1198 }
 0x225   : > { %2263 = vmatpush3.msra.mxu1 %v1199_v47  ;;  %1332 = vrot.lane.b32.xlu1 %v4411_v27, %s2551_s20  ;;  %v978_v47 = vld [vmem:[%s4214_s1 + $0xa0] sm:$0xff] }
 0x226   : > { %1268 = vrot.lane.b32.xlu0 %v4409_v29, %s2551_s20  ;;  %v719_v29 = vsub.f32 %v3084_v62, %v4407_v4 }
 0x227   : > { %v1229_v50 = vpop.permute.xlu1 %1228 }
 0x228   : > { %v1165_v37 = vpop.permute.xlu0 %1164  ;;  %2264 = vmatprep.subr.mxu1 %v1229_v50  ;;  %v988_v50 = vld [vmem:[%s4214_s1 + $0xf0] sm:$0xff] }
 0x229   : > { %2208 = vmatprep.subr.mxu0 %v1165_v37  ;;  %1362 = vrot.lane.b32.xlu1 %v3369_v33, %s2551_s20 }
 0x22a   : > { %1298 = vrot.lane.b32.xlu0 %v724_v44, %s2551_s20  ;;  %v995_v44 = vld [vmem:[%s4214_s1 + $0x128] sm:$0xff] }
 0x22b   : > { %v1197_v21 = vpop.permute.xlu1 %1196 }
 0x22c   : > { %v1133_v3 = vpop.permute.xlu0 %1132  ;;  %2265 = vmatpush3.msra.mxu1 %v1197_v21  ;;  %v987_v21 = vld [vmem:[%s4214_s1 + $0xe8] sm:$0xff] }
 0x22d   : > { %2209 = vmatpush3.msra.mxu0 %v1133_v3  ;;  %1330 = vrot.lane.b32.xlu1 %v4413_v58, %s2551_s20  ;;  %v718_v3 = vsub.f32 %v3078_v52, %v4408_v5 }
 0x22e   : > { %1266 = vrot.lane.b32.xlu0 %v4412_v39, %s2551_s20  ;;  %v4421_v39 = vld [vmem:[#allocation15_spill] sm:$0xff] }
 0x22f   : > { %v1163_v46 = vpop.permute.xlu1 %1162 }
 0x230   : > { %v3840_v54 = vpop.permute.xlu0 %936  ;;  %2210 = vmatprep.subr.mxu0 %v1163_v46  ;;  %v994_v46 = vld [vmem:[%s4214_s1 + $0x120] sm:$0xff] }
 0x231   : > { %1360 = vrot.lane.b32.xlu1 %v3394_v24, %s2551_s20 }
 0x232   : > { %1296 = vrot.lane.b32.xlu0 %v723_v63, %s2551_s20  ;;  %v996_v63 = vld [vmem:[%s4214_s1 + $0x130] sm:$0xff] }
 0x233   : > { %v1131_v33 = vpop.permute.xlu1 %1130 }
 0x234   : > { %v1227_v18 = vpop.permute.xlu0 %1226  ;;  %2211 = vmatpush3.msra.mxu0 %v1131_v33 }
 0x235   : > { %2266 = vmatprep.subr.mxu1 %v1227_v18  ;;  %1328 = vrot.lane.b32.xlu1 %v4415_v20, %s2551_s20  ;;  %v1006_v18 = vld [vmem:[%s4214_s1 + $0x180] sm:$0xff]  ;;  %v4422_v20 = vld [vmem:[#allocation16_spill] sm:$0xff] }
 0x236   : > { %1264 = vrot.lane.b32.xlu0 %v4414_v13, %s2551_s20  ;;  %v1004_v13 = vld [vmem:[%s4214_s1 + $0x170] sm:$0xff] }
 0x237   : > { %v3849_v28 = vpop.permute.xlu1 %934 }
 0x238   : > { %v1195_v16 = vpop.permute.xlu0 %1194 }
 0x239   : > { %2267 = vmatpush3.msra.mxu1 %v1195_v16  ;;  %1358 = vrot.lane.b32.xlu1 %v4397_v34, %s2551_s20  ;;  %v1005_v16 = vld [vmem:[%s4214_s1 + $0x178] sm:$0xff] }
 0x23a   : > { %1294 = vrot.lane.b32.xlu0 %v722_v43, %s2551_s20 }
 0x23b   : > { %v1225_v24 = vpop.permute.xlu1 %1224 }
 0x23c   : > { %v1161_v9 = vpop.permute.xlu0 %1160  ;;  %2268 = vmatprep.subr.mxu1 %v1225_v24 }
 0x23d   : > { %2212 = vmatprep.subr.mxu0 %v1161_v9  ;;  %1326 = vrot.lane.b32.xlu1 %v4417_v40, %s2551_s20  ;;  %v1012_v9 = vld [vmem:[%s4214_s1 + $0x1b0] sm:$0xff]  ;;  %v1015_v40 = vld [vmem:[%s4214_s1 + $0x1c8] sm:$0xff] }
 0x23e   : > { %1262 = vrot.lane.b32.xlu0 %v4416_v19, %s2551_s20  ;;  %v1013_v19 = vld [vmem:[%s4214_s1 + $0x1b8] sm:$0xff] }
 0x23f   : > { %v1193_v57 = vpop.permute.xlu1 %1192 }
 0x240   : > { %v1129_v23 = vpop.permute.xlu0 %1128  ;;  %2269 = vmatpush3.msra.mxu1 %v1193_v57  ;;  %v4423_v57 = vld [vmem:[#allocation5_spill] sm:$0xff] }
 0x241   : > { %2213 = vmatpush3.msra.mxu0 %v1129_v23  ;;  %1356 = vrot.lane.b32.xlu1 %v4403_v49, %s2551_s20  ;;  %v720_v49 = vsub.f32 %v4399_v35, %v4405_v42 }
 0x242   : > { %1292 = vrot.lane.b32.xlu0 %v721_v26, %s2551_s20  ;;  %v1014_v26 = vld [vmem:[%s4214_s1 + $0x1c0] sm:$0xff] }
 0x243   : > { %v1159_v34 = vpop.permute.xlu1 %1158 }
 0x244   : > { %v3865_v6 = vpop.permute.xlu0 %932  ;;  %2214 = vmatprep.subr.mxu0 %v1159_v34  ;;  %v1024_v34 = vld [vmem:[%s4214_s1 + $0x210] sm:$0xff] }
 0x245   : > { %1324 = vrot.lane.b32.xlu1 %v4419_v0, %s2551_s20  ;;  %v963_v0 = vld [vmem:[%s4214_s1 + $0x28] sm:$0xff] }
 0x246   : > { %1260 = vrot.lane.b32.xlu0 %v4418_v51, %s2551_s20 }
 0x247   : > { %v1127_v2 = vpop.permute.xlu1 %1126 }
 0x248   : > { %v1223_v45 = vpop.permute.xlu0 %1222  ;;  %2215 = vmatpush3.msra.mxu0 %v1127_v2 }
 0x249   : > { %2270 = vmatprep.subr.mxu1 %v1223_v45  ;;  %1354 = vrot.lane.b32.xlu1 %v4406_v31, %s2551_s20  ;;  %v4420_v31 = vld [vmem:[#allocation8_spill] sm:$0xff] }
 0x24a   : > { %1290 = vrot.lane.b32.xlu0 %v720_v49, %s2551_s20  ;;  %1623 = vmatmul.mubr.f32.vlgmr.msra.gmra.mxu0 %v958_v7  ;;  %v1023_v7 = vld [vmem:[%s4214_s1 + $0x208] sm:$0xff] }
 0x24b   : > { %v3882_v48 = vpop.permute.xlu1 %930  ;;  %1627 = vmatprep.mubr.f32.mxu0 %v968_v55 }
 0x24c   : > { %v1191_v42 = vpop.permute.xlu0 %1190 }
 0x24d   : > { %2271 = vmatpush3.msra.mxu1 %v1191_v42  ;;  %1322 = vrot.lane.b32.xlu1 %v4420_v31, %s2551_s20 }
 0x24e   : > { %1258 = vrot.lane.b32.xlu0 %v4399_v35, %s2551_s20  ;;  %1728 = vmatmul.mubr.f32.vlgmr.msra.gmra.mxu1 %v960_v41  ;;  %v979_v35 = vld [vmem:[%s4214_s1 + $0xa8] sm:$0xff] }
 0x24f   : > { %v1381_v56 = vpop.permute.xlu1 %1380  ;;  %1628 = vmatmul.mubr.f32.gmra.mxu0 %v967_v11  ;;  %1732 = vmatprep.mubr.f32.mxu1 %v970_v53 }
 0x250   : > { %v1317_v8 = vpop.permute.xlu0 %1316  ;;  %2352 = vmatprep.subr.mxu1 %v1381_v56  ;;  %1632 = vmatprep.mubr.f32.mxu0 %v977_v25 }
 0x251   : > { %2296 = vmatprep.subr.mxu0 %v1317_v8  ;;  %1352 = vrot.lane.b32.xlu1 %v3448_v59, %s2551_s20  ;;  %v985_v59 = vld [vmem:[%s4214_s1 + $0xd8] sm:$0xff] }
 0x252   : > { %1288 = vrot.lane.b32.xlu0 %v719_v29, %s2551_s20  ;;  %1733 = vmatmul.mubr.f32.gmra.mxu1 %v969_v36 }
 0x253   : > { %v1349_v4 = vpop.permute.xlu1 %1348  ;;  %1633 = vmatmul.mubr.f32.gmra.mxu0 %v976_v22  ;;  %1737 = vmatprep.mubr.f32.mxu1 %v979_v35 }
 0x254   : > { %v1285_v27 = vpop.permute.xlu0 %1284  ;;  %2353 = vmatpush3.msra.mxu1 %v1349_v4  ;;  %1637 = vmatprep.mubr.f32.mxu0 %v986_v38 }
 0x255   : > { %2297 = vmatpush3.msra.mxu0 %v1285_v27  ;;  %1320 = vrot.lane.b32.xlu1 %v4421_v39, %s2551_s20 }
 0x256   : > { %1256 = vrot.lane.b32.xlu0 %v3084_v62, %s2551_s20  ;;  %1738 = vmatmul.mubr.f32.gmra.mxu1 %v978_v47  ;;  %v997_v62 = vld [vmem:[%s4214_s1 + $0x138] sm:$0xff] }
 0x257   : > { %v1315_v37 = vpop.permute.xlu1 %1314  ;;  %1638 = vmatmul.mubr.f32.gmra.mxu0 %v985_v59  ;;  %1742 = vmatprep.mubr.f32.mxu1 %v988_v50 }
 0x258   : > { %v3938_v58 = vpop.permute.xlu0 %928  ;;  %2298 = vmatprep.subr.mxu0 %v1315_v37  ;;  %1642 = vmatprep.mubr.f32.mxu0 %v995_v44 }
 0x259   : > { %1350 = vrot.lane.b32.xlu1 %v3458_v10, %s2551_s20  ;;  %v1003_v10 = vld [vmem:[%s4214_s1 + $0x168] sm:$0xff] }
 0x25a   : > { %1286 = vrot.lane.b32.xlu0 %v718_v3, %s2551_s20  ;;  %1743 = vmatmul.mubr.f32.gmra.mxu1 %v987_v21 }
 0x25b   : > { %v1283_v5 = vpop.permute.xlu1 %1282  ;;  %1643 = vmatmul.mubr.f32.gmra.mxu0 %v994_v46  ;;  %1747 = vmatprep.mubr.f32.mxu1 %v997_v62 }
 0x25c   : > { %v1379_v33 = vpop.permute.xlu0 %1378  ;;  %2299 = vmatpush3.msra.mxu0 %v1283_v5  ;;  %1647 = vmatprep.mubr.f32.mxu0 %v1004_v13 }
 0x25d   : > { %2354 = vmatprep.subr.mxu1 %v1379_v33  ;;  %1318 = vrot.lane.b32.xlu1 %v4422_v20, %s2551_s20 }
 0x25e   : > { %1254 = vrot.lane.b32.xlu0 %v3078_v52, %s2551_s20  ;;  %1748 = vmatmul.mubr.f32.gmra.mxu1 %v996_v63  ;;  %v1022_v52 = vld [vmem:[%s4214_s1 + $0x200] sm:$0xff] }
 0x25f   : > { %v3968_v43 = vpop.permute.xlu1 %926  ;;  %1648 = vmatmul.mubr.f32.gmra.mxu0 %v1003_v10  ;;  %1752 = vmatprep.mubr.f32.mxu1 %v1006_v18 }
 0x260   : > { %v1347_v24 = vpop.permute.xlu0 %1346  ;;  %1652 = vmatprep.mubr.f32.mxu0 %v1013_v19 }
 0x261   : > { %2355 = vmatpush3.msra.mxu1 %v1347_v24  ;;  %1410 = vrot.lane.b32.xlu1 %v3713_v15, %s2551_s20  ;;  %v1021_v15 = vld [vmem:[%s4214_s1 + $0x1f8] sm:$0xff] }
 0x262   : > { %1412 = vrot.lane.b32.xlu0 %v4423_v57, %s2551_s20  ;;  %1753 = vmatmul.mubr.f32.gmra.mxu1 %v1005_v16  ;;  %v974_v57 = vld [vmem:[%s4214_s1 + $0x80] sm:$0xff] }
 0x263   : > { %v1377_v51 = vpop.permute.xlu1 %1376  ;;  %1653 = vmatmul.mubr.f32.gmra.mxu0 %v1012_v9  ;;  %1757 = vmatprep.mubr.f32.mxu1 %v1015_v40  ;;  %v964_v9 = vld [vmem:[%s4214_s1 + $0x30] sm:$0xff] }
 0x264   : > { %v1313_v23 = vpop.permute.xlu0 %1312  ;;  %2356 = vmatprep.subr.mxu1 %v1377_v51  ;;  %1657 = vmatprep.mubr.f32.mxu0 %v1022_v52  ;;  %v962_v52 = vld [vmem:[%s4214_s1 + $0x20] sm:$0xff] }
 0x265   : > { %2300 = vmatprep.subr.mxu0 %v1313_v23  ;;  %1406 = vrot.lane.b32.xlu1 %v3744_v30, %s2551_s20  ;;  %v965_v30 = vld [vmem:[%s4214_s1 + $0x38] sm:$0xff]  ;;  %v971_v23 = vld [vmem:[%s4214_s1 + $0x68] sm:$0xff] }
 0x266   : > { %1408 = vrot.lane.b32.xlu0 %v3731_v60, %s2551_s20  ;;  %1758 = vmatmul.mubr.f32.gmra.mxu1 %v1014_v26  ;;  %v972_v26 = vld [vmem:[%s4214_s1 + $0x70] sm:$0xff] }
 0x267   : > { %v1345_v2 = vpop.permute.xlu1 %1344  ;;  %1658 = vmatmul.mubr.f32.gmra.mxu0 %v1021_v15  ;;  %1762 = vmatprep.mubr.f32.mxu1 %v1024_v34 }
 0x268   : > { %v1281_v49 = vpop.permute.xlu0 %1280  ;;  %2357 = vmatpush3.msra.mxu1 %v1345_v2  ;;  %1832 = vmatprep.mubr.f32.mxu0 %v963_v0  ;;  %v973_v0 = vld [vmem:[%s4214_s1 + $0x78] sm:$0xff] }
 0x269   : > { %2301 = vmatpush3.msra.mxu0 %v1281_v49  ;;  %1402 = vrot.lane.b32.xlu1 %v3770_v12, %s2551_s20  ;;  %v981_v2 = vld [vmem:[%s4214_s1 + $0xb8] sm:$0xff]  ;;  %v980_v49 = vld [vmem:[%s4214_s1 + $0xb0] sm:$0xff] }
 0x26a   : > { %1404 = vrot.lane.b32.xlu0 %v3759_v1, %s2551_s20  ;;  %1763 = vmatmul.mubr.f32.gmra.mxu1 %v1023_v7 }
 0x26b   : > { %v1375_v60 = vpop.permute.xlu1 %1374  ;;  %1937 = vmatprep.mubr.f32.mxu1 %v965_v30  ;;  %v983_v30 = vld [vmem:[%s4214_s1 + $0xc8] sm:$0xff] }
 0x26c   : > { %v1311_v45 = vpop.permute.xlu0 %1310  ;;  %2358 = vmatprep.subr.mxu1 %v1375_v60 }
 0x26d   : > { %2302 = vmatprep.subr.mxu0 %v1311_v45  ;;  %1398 = vrot.lane.b32.xlu1 %v3796_v61, %s2551_s20  ;;  %v982_v45 = vld [vmem:[%s4214_s1 + $0xc0] sm:$0xff] }
 0x26e   : > { %1400 = vrot.lane.b32.xlu0 %v3787_v14, %s2551_s20 }
 0x26f   : > { %v1343_v55 = vpop.permute.xlu1 %1342 }
 0x270   : > { %v1279_v41 = vpop.permute.xlu0 %1278  ;;  %2359 = vmatpush3.msra.mxu1 %v1343_v55 }
 0x271   : > { %2303 = vmatpush3.msra.mxu0 %v1279_v41  ;;  %1394 = vrot.lane.b32.xlu1 %v3823_v17, %s2551_s20  ;;  %v990_v41 = vld [vmem:[%s4214_s1 + $0x100] sm:$0xff] }
 0x272   : > { %1396 = vrot.lane.b32.xlu0 %v3812_v32, %s2551_s20 }
 0x273   : > { %v1373_v1 = vpop.permute.xlu1 %1372 }
 0x274   : > { %v1309_v12 = vpop.permute.xlu0 %1308  ;;  %2360 = vmatprep.subr.mxu1 %v1373_v1  ;;  %v989_v1 = vld [vmem:[%s4214_s1 + $0xf8] sm:$0xff] }
 0x275   : > { %2304 = vmatprep.subr.mxu0 %v1309_v12  ;;  %1390 = vrot.lane.b32.xlu1 %v3849_v28, %s2551_s20  ;;  %v992_v12 = vld [vmem:[%s4214_s1 + $0x110] sm:$0xff] }
 0x276   : > { %1392 = vrot.lane.b32.xlu0 %v3840_v54, %s2551_s20 }
 0x277   : > { %v1341_v14 = vpop.permute.xlu1 %1340 }
 0x278   : > { %v1277_v61 = vpop.permute.xlu0 %1276  ;;  %2361 = vmatpush3.msra.mxu1 %v1341_v14 }
 0x279   : > { %2305 = vmatpush3.msra.mxu0 %v1277_v61  ;;  %1386 = vrot.lane.b32.xlu1 %v3882_v48, %s2551_s20  ;;  %v991_v61 = vld [vmem:[%s4214_s1 + $0x108] sm:$0xff] }
 0x27a   : > { %1388 = vrot.lane.b32.xlu0 %v3865_v6, %s2551_s20 }
 0x27b   : > { %v1371_v32 = vpop.permute.xlu1 %1370 }
 0x27c   : > { %v1307_v17 = vpop.permute.xlu0 %1306  ;;  %2362 = vmatprep.subr.mxu1 %v1371_v32 }
 0x27d   : > { %2306 = vmatprep.subr.mxu0 %v1307_v17  ;;  %1382 = vrot.lane.b32.xlu1 %v3968_v43, %s2551_s20  ;;  %v999_v17 = vld [vmem:[%s4214_s1 + $0x148] sm:$0xff] }
 0x27e   : > { %1384 = vrot.lane.b32.xlu0 %v3938_v58, %s2551_s20 }
 0x27f   : > { %v1339_v54 = vpop.permute.xlu1 %1338 }
 0x280   : > { %v1275_v28 = vpop.permute.xlu0 %1274  ;;  %2363 = vmatpush3.msra.mxu1 %v1339_v54  ;;  %v998_v54 = vld [vmem:[%s4214_s1 + $0x140] sm:$0xff] }
 0x281   : > { %2307 = vmatpush3.msra.mxu0 %v1275_v28  ;;  %v1001_v28 = vld [vmem:[%s4214_s1 + $0x158] sm:$0xff] }
 0x283   : > { %v1369_v42 = vpop.permute.xlu1 %1368 }
 0x284   : > { %v1305_v11 = vpop.permute.xlu0 %1304  ;;  %2364 = vmatprep.subr.mxu1 %v1369_v42 }
 0x285   : > { %2308 = vmatprep.subr.mxu0 %v1305_v11  ;;  %v1000_v11 = vld [vmem:[%s4214_s1 + $0x150] sm:$0xff] }
 0x287   : > { %v1337_v48 = vpop.permute.xlu1 %1336 }
 0x288   : > { %v1273_v6 = vpop.permute.xlu0 %1272  ;;  %2365 = vmatpush3.msra.mxu1 %v1337_v48 }
 0x289   : > { %2309 = vmatpush3.msra.mxu0 %v1273_v6  ;;  %v1008_v6 = vld [vmem:[%s4214_s1 + $0x190] sm:$0xff] }
 0x28b   : > { %v1367_v53 = vpop.permute.xlu1 %1366 }
 0x28c   : > { %v1303_v31 = vpop.permute.xlu0 %1302  ;;  %2366 = vmatprep.subr.mxu1 %v1367_v53  ;;  %v1007_v53 = vld [vmem:[%s4214_s1 + $0x188] sm:$0xff] }
 0x28d   : > { %2310 = vmatprep.subr.mxu0 %v1303_v31  ;;  %v1010_v31 = vld [vmem:[%s4214_s1 + $0x1a0] sm:$0xff] }
 0x28f   : > { %v1335_v25 = vpop.permute.xlu1 %1334 }
 0x290   : > { %v1271_v56 = vpop.permute.xlu0 %1270  ;;  %2367 = vmatpush3.msra.mxu1 %v1335_v25 }
 0x291   : > { %2311 = vmatpush3.msra.mxu0 %v1271_v56  ;;  %v1009_v56 = vld [vmem:[%s4214_s1 + $0x198] sm:$0xff] }
 0x293   : > { %v1365_v36 = vpop.permute.xlu1 %1364 }
 0x294   : > { %v1301_v29 = vpop.permute.xlu0 %1300  ;;  %2368 = vmatprep.subr.mxu1 %v1365_v36 }
 0x295   : > { %2312 = vmatprep.subr.mxu0 %v1301_v29  ;;  %v1017_v29 = vld [vmem:[%s4214_s1 + $0x1d8] sm:$0xff] }
 0x297   : > { %v1333_v8 = vpop.permute.xlu1 %1332 }
 0x298   : > { %v1269_v22 = vpop.permute.xlu0 %1268  ;;  %2369 = vmatpush3.msra.mxu1 %v1333_v8  ;;  %v1016_v8 = vld [vmem:[%s4214_s1 + $0x1d0] sm:$0xff] }
 0x299   : > { %2313 = vmatpush3.msra.mxu0 %v1269_v22  ;;  %v1019_v22 = vld [vmem:[%s4214_s1 + $0x1e8] sm:$0xff] }
 0x29b   : > { %v1363_v35 = vpop.permute.xlu1 %1362 }
 0x29c   : > { %v1299_v38 = vpop.permute.xlu0 %1298  ;;  %2370 = vmatprep.subr.mxu1 %v1363_v35 }
 0x29d   : > { %2314 = vmatprep.subr.mxu0 %v1299_v38  ;;  %v1018_v38 = vld [vmem:[%s4214_s1 + $0x1e0] sm:$0xff] }
 0x29f   : > { %v1331_v4 = vpop.permute.xlu1 %1330 }
 0x2a0   : > { %v1267_v47 = vpop.permute.xlu0 %1266  ;;  %2371 = vmatpush3.msra.mxu1 %v1331_v4 }
 0x2a1   : > { %2315 = vmatpush3.msra.mxu0 %v1267_v47  ;;  %v1026_v47 = vld [vmem:[%s4214_s1 + $0x220] sm:$0xff] }
 0x2a3   : > { %v1361_v27 = vpop.permute.xlu1 %1360 }
 0x2a4   : > { %v1297_v59 = vpop.permute.xlu0 %1296  ;;  %2372 = vmatprep.subr.mxu1 %v1361_v27  ;;  %v1025_v27 = vld [vmem:[%s4214_s1 + $0x218] sm:$0xff] }
 0x2a5   : > { %2316 = vmatprep.subr.mxu0 %v1297_v59  ;;  %v1028_v59 = vld [vmem:[%s4214_s1 + $0x230] sm:$0xff] }
 0x2a7   : > { %v1329_v50 = vpop.permute.xlu1 %1328 }
 0x2a8   : > { %v1265_v39 = vpop.permute.xlu0 %1264  ;;  %2373 = vmatpush3.msra.mxu1 %v1329_v50 }
 0x2a9   : > { %2317 = vmatpush3.msra.mxu0 %v1265_v39  ;;  %v1027_v39 = vld [vmem:[%s4214_s1 + $0x228] sm:$0xff] }
 0x2ab   : > { %v1359_v44 = vpop.permute.xlu1 %1358 }
 0x2ac   : > { %v1295_v37 = vpop.permute.xlu0 %1294  ;;  %2374 = vmatprep.subr.mxu1 %v1359_v44 }
 0x2ad   : > { %2318 = vmatprep.subr.mxu0 %v1295_v37 }
 0x2af   : > { %v1327_v21 = vpop.permute.xlu1 %1326 }
 0x2b0   : > { %v1263_v3 = vpop.permute.xlu0 %1262  ;;  %2375 = vmatpush3.msra.mxu1 %v1327_v21  ;;  %v966_v21 = vld [vmem:[%s4214_s1 + $0x40] sm:$0xff] }
 0x2b1   : > { %2319 = vmatpush3.msra.mxu0 %v1263_v3  ;;  %v1002_v3 = vld [vmem:[%s4214_s1 + $0x160] sm:$0xff] }
 0x2b3   : > { %v1357_v58 = vpop.permute.xlu1 %1356 }
 0x2b4   : > { %v1293_v46 = vpop.permute.xlu0 %1292  ;;  %2376 = vmatprep.subr.mxu1 %v1357_v58  ;;  %v975_v58 = vld [vmem:[%s4214_s1 + $0x88] sm:$0xff] }
 0x2b5   : > { %2320 = vmatprep.subr.mxu0 %v1293_v46  ;;  %v1011_v46 = vld [vmem:[%s4214_s1 + $0x1a8] sm:$0xff] }
 0x2b7   : > { %v1325_v62 = vpop.permute.xlu1 %1324 }
 0x2b8   : > { %v1261_v13 = vpop.permute.xlu0 %1260  ;;  %2377 = vmatpush3.msra.mxu1 %v1325_v62  ;;  %v984_v62 = vld [vmem:[%s4214_s1 + $0xd0] sm:$0xff] }
 0x2b9   : > { %2321 = vmatpush3.msra.mxu0 %v1261_v13  ;;  %v1020_v13 = vld [vmem:[%s4214_s1 + $0x1f0] sm:$0xff] }
 0x2bb   : > { %v1355_v5 = vpop.permute.xlu1 %1354 }
 0x2bc   : > { %v1291_v63 = vpop.permute.xlu0 %1290  ;;  %2378 = vmatprep.subr.mxu1 %v1355_v5  ;;  %v993_v5 = vld [vmem:[%s4214_s1 + $0x118] sm:$0xff] }
 0x2bd   : > { %2322 = vmatprep.subr.mxu0 %v1291_v63  ;;  %v1029_v63 = vld [vmem:[%s4214_s1 + $0x238] sm:$0xff] }
 0x2bf   : > { %v1323_v33 = vpop.permute.xlu1 %1322 }
 0x2c0   : > { %v1259_v10 = vpop.permute.xlu0 %1258  ;;  %2379 = vmatpush3.msra.mxu1 %v1323_v33 }
 0x2c1   : > { %2323 = vmatpush3.msra.mxu0 %v1259_v10 }
 0x2c3   : > { %v1353_v18 = vpop.permute.xlu1 %1352 }
 0x2c4   : > { %v1289_v20 = vpop.permute.xlu0 %1288  ;;  %2380 = vmatprep.subr.mxu1 %v1353_v18 }
 0x2c5   : > { %2324 = vmatprep.subr.mxu0 %v1289_v20 }
 0x2c7   : > { %v1321_v19 = vpop.permute.xlu1 %1320 }
 0x2c8   : > { %v1257_v43 = vpop.permute.xlu0 %1256  ;;  %2381 = vmatpush3.msra.mxu1 %v1321_v19 }
 0x2c9   : > { %2325 = vmatpush3.msra.mxu0 %v1257_v43 }
 0x2cb   : > { %v1351_v16 = vpop.permute.xlu1 %1350 }
 0x2cc   : > { %v1287_v24 = vpop.permute.xlu0 %1286  ;;  %2382 = vmatprep.subr.mxu1 %v1351_v16 }
 0x2cd   : > { %2326 = vmatprep.subr.mxu0 %v1287_v24 }
 0x2cf   : > { %v1319_v40 = vpop.permute.xlu1 %1318 }
 0x2d0   : > { %v1255_v51 = vpop.permute.xlu0 %1254  ;;  %2383 = vmatpush3.msra.mxu1 %v1319_v40 }
 0x2d1   : > { %2327 = vmatpush3.msra.mxu0 %v1255_v51  ;;  %1938 = vmatmul.mubr.f32.vlgmr.msra.gmra.mxu1 %v964_v9 }
 0x2d2   : > { %1833 = vmatmul.mubr.f32.vlgmr.msra.gmra.mxu0 %v962_v52  ;;  %1942 = vmatprep.mubr.f32.mxu1 %v974_v57 }
 0x2d3   : > { %1837 = vmatprep.mubr.f32.mxu0 %v972_v26  ;;  %v1411_v34 = vpop.permute.xlu1 %1410 }
 0x2d4   : > { %v1413_v15 = vpop.permute.xlu0 %1412 }
 0x2d5   : > { %2432 = vmatprep.subr.mxu0 %v1413_v15  ;;  %2476 = vmatprep.subr.mxu1 %v1413_v15 }
 0x2d6   : > { %1838 = vmatmul.mubr.f32.gmra.mxu0 %v971_v23  ;;  %2492 = vmatpush3.msra.mxu1 %v1413_v15 }
 0x2d7   : > { %2433 = vmatpush3.msra.mxu0 %v1413_v15  ;;  %2477 = vmatprep.subr.mxu1 %v1411_v34  ;;  %v1407_v60 = vpop.permute.xlu1 %1406 }
 0x2d8   : > { %2434 = vmatprep.subr.mxu0 %v1411_v34  ;;  %1943 = vmatmul.mubr.f32.gmra.mxu1 %v973_v0  ;;  %v1409_v7 = vpop.permute.xlu0 %1408 }
 0x2d9   : > { %2435 = vmatpush3.msra.mxu0 %v1411_v34  ;;  %2493 = vmatpush3.msra.mxu1 %v1411_v34 }
 0x2da   : > { %1842 = vmatprep.mubr.f32.mxu0 %v981_v2  ;;  %2436 = vmatprep.subr.mxu0 %v1409_v7 }
 0x2db   : > { %2478 = vmatprep.subr.mxu1 %v1409_v7  ;;  %1843 = vmatmul.mubr.f32.gmra.mxu0 %v980_v49  ;;  %v1403_v14 = vpop.permute.xlu1 %1402 }
 0x2dc   : > { %2437 = vmatpush3.msra.mxu0 %v1409_v7  ;;  %2494 = vmatpush3.msra.mxu1 %v1409_v7  ;;  %v1405_v55 = vpop.permute.xlu0 %1404 }
 0x2dd   : > { %1947 = vmatprep.mubr.f32.mxu1 %v983_v30  ;;  %2438 = vmatprep.subr.mxu0 %v1407_v60 }
 0x2de   : > { %2479 = vmatprep.subr.mxu1 %v1407_v60  ;;  %1948 = vmatmul.mubr.f32.gmra.mxu1 %v982_v45 }
 0x2df   : > { %2439 = vmatpush3.msra.mxu0 %v1407_v60  ;;  %2495 = vmatpush3.msra.mxu1 %v1407_v60  ;;  %v1399_v42 = vpop.permute.xlu1 %1398 }
 0x2e0   : > { %1847 = vmatprep.mubr.f32.mxu0 %v990_v41  ;;  %2440 = vmatprep.subr.mxu0 %v1405_v55  ;;  %v1401_v32 = vpop.permute.xlu0 %1400 }
 0x2e1   : > { %2480 = vmatprep.subr.mxu1 %v1405_v55  ;;  %1848 = vmatmul.mubr.f32.gmra.mxu0 %v989_v1 }
 0x2e2   : > { %2441 = vmatpush3.msra.mxu0 %v1405_v55  ;;  %2496 = vmatpush3.msra.mxu1 %v1405_v55 }
 0x2e3   : > { %1952 = vmatprep.mubr.f32.mxu1 %v992_v12  ;;  %2442 = vmatprep.subr.mxu0 %v1403_v14  ;;  %v1395_v25 = vpop.permute.xlu1 %1394 }
 0x2e4   : > { %2481 = vmatprep.subr.mxu1 %v1403_v14  ;;  %1953 = vmatmul.mubr.f32.gmra.mxu1 %v991_v61  ;;  %v1397_v48 = vpop.permute.xlu0 %1396 }
 0x2e5   : > { %2443 = vmatpush3.msra.mxu0 %v1403_v14  ;;  %2497 = vmatpush3.msra.mxu1 %v1403_v14 }
 0x2e6   : > { %1852 = vmatprep.mubr.f32.mxu0 %v999_v17  ;;  %2444 = vmatprep.subr.mxu0 %v1401_v32 }
 0x2e7   : > { %2482 = vmatprep.subr.mxu1 %v1401_v32  ;;  %1853 = vmatmul.mubr.f32.gmra.mxu0 %v998_v54  ;;  %v1391_v35 = vpop.permute.xlu1 %1390 }
 0x2e8   : > { %2445 = vmatpush3.msra.mxu0 %v1401_v32  ;;  %2498 = vmatpush3.msra.mxu1 %v1401_v32  ;;  %v1393_v36 = vpop.permute.xlu0 %1392 }
 0x2e9   : > { %1957 = vmatprep.mubr.f32.mxu1 %v1001_v28  ;;  %2446 = vmatprep.subr.mxu0 %v1399_v42 }
 0x2ea   : > { %2483 = vmatprep.subr.mxu1 %v1399_v42  ;;  %1958 = vmatmul.mubr.f32.gmra.mxu1 %v1000_v11 }
 0x2eb   : > { %2447 = vmatpush3.msra.mxu0 %v1399_v42  ;;  %2499 = vmatpush3.msra.mxu1 %v1399_v42  ;;  %v1387_v50 = vpop.permute.xlu1 %1386 }
 0x2ec   : > { %1857 = vmatprep.mubr.f32.mxu0 %v1008_v6  ;;  %2448 = vmatprep.subr.mxu0 %v1397_v48  ;;  %v1389_v4 = vpop.permute.xlu0 %1388 }
 0x2ed   : > { %2484 = vmatprep.subr.mxu1 %v1397_v48  ;;  %1858 = vmatmul.mubr.f32.gmra.mxu0 %v1007_v53 }
 0x2ee   : > { %2449 = vmatpush3.msra.mxu0 %v1397_v48  ;;  %2500 = vmatpush3.msra.mxu1 %v1397_v48 }
 0x2ef   : > { %1962 = vmatprep.mubr.f32.mxu1 %v1010_v31  ;;  %2450 = vmatprep.subr.mxu0 %v1395_v25  ;;  %v1383_v37 = vpop.permute.xlu1 %1382 }
 0x2f0   : > { %2485 = vmatprep.subr.mxu1 %v1395_v25  ;;  %1963 = vmatmul.mubr.f32.gmra.mxu1 %v1009_v56  ;;  %v1385_v44 = vpop.permute.xlu0 %1384 }
 0x2f1   : > { %2451 = vmatpush3.msra.mxu0 %v1395_v25  ;;  %2501 = vmatpush3.msra.mxu1 %v1395_v25 }
 0x2f2   : > { %1862 = vmatprep.mubr.f32.mxu0 %v1017_v29  ;;  %2452 = vmatprep.subr.mxu0 %v1393_v36 }
 0x2f3   : > { %2486 = vmatprep.subr.mxu1 %v1393_v36  ;;  %1863 = vmatmul.mubr.f32.gmra.mxu0 %v1016_v8 }
 0x2f4   : > { %2453 = vmatpush3.msra.mxu0 %v1393_v36  ;;  %2502 = vmatpush3.msra.mxu1 %v1393_v36 }
 0x2f5   : > { %1967 = vmatprep.mubr.f32.mxu1 %v1019_v22  ;;  %2454 = vmatprep.subr.mxu0 %v1391_v35 }
 0x2f6   : > { %2487 = vmatprep.subr.mxu1 %v1391_v35  ;;  %1968 = vmatmul.mubr.f32.gmra.mxu1 %v1018_v38 }
 0x2f7   : > { %2455 = vmatpush3.msra.mxu0 %v1391_v35  ;;  %2503 = vmatpush3.msra.mxu1 %v1391_v35 }
 0x2f8   : > { %1867 = vmatprep.mubr.f32.mxu0 %v1026_v47  ;;  %2456 = vmatprep.subr.mxu0 %v1389_v4 }
 0x2f9   : > { %2488 = vmatprep.subr.mxu1 %v1389_v4  ;;  %1868 = vmatmul.mubr.f32.gmra.mxu0 %v1025_v27 }
 0x2fa   : > { %2457 = vmatpush3.msra.mxu0 %v1389_v4  ;;  %2504 = vmatpush3.msra.mxu1 %v1389_v4 }
 0x2fb   : > { %1972 = vmatprep.mubr.f32.mxu1 %v1028_v59  ;;  %2458 = vmatprep.subr.mxu0 %v1387_v50 }
 0x2fc   : > { %2489 = vmatprep.subr.mxu1 %v1387_v50  ;;  %1973 = vmatmul.mubr.f32.gmra.mxu1 %v1027_v39 }
 0x2fd   : > { %2459 = vmatpush3.msra.mxu0 %v1387_v50  ;;  %2505 = vmatpush3.msra.mxu1 %v1387_v50 }
 0x2fe   : > { %2460 = vmatprep.subr.mxu0 %v1385_v44  ;;  %2490 = vmatprep.subr.mxu1 %v1385_v44 }
 0x2ff   : > { %2461 = vmatpush3.msra.mxu0 %v1385_v44  ;;  %2506 = vmatpush3.msra.mxu1 %v1385_v44 }
 0x300   : > { %2462 = vmatprep.subr.mxu0 %v1383_v37  ;;  %2491 = vmatprep.subr.mxu1 %v1383_v37 }
 0x301   : > { %2463 = vmatpush3.msra.mxu0 %v1383_v37  ;;  %2507 = vmatpush3.msra.mxu1 %v1383_v37 }
 0x302   : > { %2464 = vmatprep.mubr.f32.mxu0 %v966_v21  ;;  %2470 = vmatprep.mubr.f32.mxu1 %v1002_v3 }
 0x303   : > { %2465 = vmatmul.mubr.f32.vlgmr.msra.gmra.mxu0 %v975_v58  ;;  %2471 = vmatmul.mubr.f32.vlgmr.msra.gmra.mxu1 %v1011_v46 }
 0x304   : > { %2467 = vmatprep.mubr.f32.mxu0 %v984_v62  ;;  %2473 = vmatprep.mubr.f32.mxu1 %v1020_v13 }
 0x307   : > { %2468 = vmatmul.mubr.f32.gmra.mxu0 %v993_v5  ;;  %2474 = vmatmul.mubr.f32.gmra.mxu1 %v1029_v63 }
 0x30a   : > { %v2216_v10 = vpop.f32.mrf.mxu0 }
 0x30c   : > { %v2217_v20 = vpop.f32.mrf.mxu0 }
 0x30d   : > { %v2218_v3 = vadd.f32 %v2217_v20, %v2216_v10 }
 0x30e   : > { %v2272_v33 = vpop.f32.mrf.mxu1 }
 0x30f   : > { %v2219_v43 = vpop.f32.mrf.mxu0 }
 0x310   : > { %v2273_v18 = vpop.f32.mrf.mxu1 }
 0x311   : > { %v2220_v24 = vpop.f32.mrf.mxu0  ;;  %v2274_v58 = vadd.f32 %v2273_v18, %v2272_v33 }
 0x312   : > { %v2275_v19 = vpop.f32.mrf.mxu1  ;;  %v2221_v46 = vadd.f32 %v2220_v24, %v2219_v43 }
 0x313   : > { %v2222_v40 = vpop.f32.mrf.mxu0 }
 0x314   : > { %v2276_v16 = vpop.f32.mrf.mxu1 }
 0x315   : > { %v2223_v57 = vpop.f32.mrf.mxu0  ;;  %v2277_v62 = vadd.f32 %v2276_v16, %v2275_v19 }
 0x316   : > { %v4146_v9 = vpop.f32.mrf.mxu1 }
 0x317   : > { %4424 = vst [vmem:[#allocation23_spill] sm:$0xff] %v4146_v9  ;;  %v2225_v26 = vpop.f32.mrf.mxu0 }
 0x318   : > { %v2279_v52 = vpop.f32.mrf.mxu1 }
 0x319   : > { %v2226_v15 = vpop.f32.mrf.mxu0 }
 0x31a   : > { %v4148_v51 = vpop.f32.mrf.mxu1  ;;  %v2227_v16 = vadd.f32 %v2226_v15, %v2225_v26 }
 0x31b   : > { %4425 = vst [vmem:[#allocation3_spill] sm:$0xff] %v4148_v51  ;;  %v2228_v0 = vpop.f32.mrf.mxu0  ;;  %v2224_v51 = vadd.f32 %v2223_v57, %v2222_v40 }
 0x31c   : > { %v2282_v23 = vpop.f32.mrf.mxu1 }
 0x31d   : > { %v2229_v7 = vpop.f32.mrf.mxu0 }
 0x31e   : > { %v2284_v34 = vpop.f32.mrf.mxu1  ;;  %v4430_v20 = vld [vmem:[#allocation23_spill] sm:$0xff]  ;;  %v2230_v33 = vadd.f32 %v2229_v7, %v2228_v0 }
 0x31f   : > { %v2231_v30 = vpop.f32.mrf.mxu0  ;;  %v2280_v18 = vadd.f32 %v2279_v52, %v4430_v20 }
 0x320   : > { %v2285_v2 = vpop.f32.mrf.mxu1 }
 0x321   : > { %v2232_v45 = vpop.f32.mrf.mxu0  ;;  %v2286_v24 = vadd.f32 %v2285_v2, %v2284_v34  ;;  %v1740_v2 = vadd.f32 %v2280_v18, %v2224_v51 }
 0x322   : > { %v2287_v49 = vpop.f32.mrf.mxu1  ;;  %v2233_v63 = vadd.f32 %v2232_v45, %v2231_v30  ;;  %v4431_v19 = vld [vmem:[#allocation3_spill] sm:$0xff] }
 0x323   : > { %v2234_v41 = vpop.f32.mrf.mxu0  ;;  %v2283_v30 = vadd.f32 %v2282_v23, %v4431_v19  ;;  %v1750_v52 = vadd.f32 %v2286_v24, %v2230_v33 }
 0x324   : > { %v2288_v60 = vpop.f32.mrf.mxu1 }
 0x325   : > { %v2235_v12 = vpop.f32.mrf.mxu0  ;;  %v1745_v26 = vadd.f32 %v2283_v30, %v2227_v16 }
 0x326   : > { %v2290_v55 = vpop.f32.mrf.mxu1 }
 0x327   : > { %v2237_v61 = vpop.f32.mrf.mxu0 }
 0x328   : > { %v2291_v1 = vpop.f32.mrf.mxu1 }
 0x329   : > { %v2238_v17 = vpop.f32.mrf.mxu0 }
 0x32a   : > { %v2293_v14 = vpop.f32.mrf.mxu1 }
 0x32c   : > { %v2294_v32 = vpop.f32.mrf.mxu1 }
 0x32d   : > { %v2295_v57 = vadd.f32 %v2294_v32, %v2293_v14 }
 0x391   : > { %v4150_v54 = vpop.f32.mrf.mxu1 }
 0x392   : > { %4426 = vst [vmem:[#allocation20_spill] sm:$0xff] %v4150_v54  ;;  %v2328_v28 = vpop.f32.mrf.mxu0  ;;  %v1735_v54 = vadd.f32 %v2277_v62, %v2221_v46 }
 0x393   : > { %v4152_v11 = vpop.f32.mrf.mxu1 }
 0x394   : > { %v2329_v42 = vpop.f32.mrf.mxu0  ;;  %4427 = vst [vmem:[#allocation7_spill] sm:$0xff] %v4152_v11  ;;  %v1730_v11 = vadd.f32 %v2274_v58, %v2218_v3  ;;  %v2239_v3 = vadd.f32 %v2238_v17, %v2237_v61 }
 0x395   : > { %v2330_v58 = vadd.f32 %v2329_v42, %v2328_v28 }
 0x396   : > { %v2331_v48 = vpop.f32.mrf.mxu0 }
 0x398   : > { %v2332_v6 = vpop.f32.mrf.mxu0  ;;  %v2387_v53 = vpop.f32.mrf.mxu1 }
 0x399   : > { %v2333_v9 = vadd.f32 %v2332_v6, %v2331_v48 }
 0x39a   : > { %v2388_v31 = vpop.f32.mrf.mxu1 }
 0x39b   : > { %v2334_v25 = vpop.f32.mrf.mxu0  ;;  %v1840_v6 = vadd.f32 %v2333_v9, %v1735_v54  ;;  %v2389_v48 = vadd.f32 %v2388_v31, %v2387_v53  ;;  %v1765_v9 = vadd.f32 %v2295_v57, %v2239_v3 }
 0x39d   : > { %v2335_v56 = vpop.f32.mrf.mxu0  ;;  %v1945_v54 = vadd.f32 %v2389_v48, %v1840_v6  ;;  %v2094_v6 = vld [vmem:[%s4215_s2 + $0x18] sm:$0xff] }
 0x39e   : > { %v4154_v36 = vpop.f32.mrf.mxu1  ;;  %v2336_v20 = vadd.f32 %v2335_v56, %v2334_v25  ;;  %v2098_v48 = vld [vmem:[%s4215_s2 + $0x38] sm:$0xff] }
 0x39f   : > { %4428 = vst [vmem:[#allocation22_spill] sm:$0xff] %v4154_v36 }
 0x3a0   : > { %v4156_v29 = vpop.f32.mrf.mxu1  ;;  %v1845_v32 = vadd.f32 %v2336_v20, %v1740_v2  ;;  %v2097_v2 = vld [vmem:[%s4215_s2 + $0x30] sm:$0xff] }
 0x3a1   : > { %4429 = vst [vmem:[#allocation26_spill] sm:$0xff] %v4156_v29  ;;  %v2337_v8 = vpop.f32.mrf.mxu0  ;;  %v2289_v29 = vadd.f32 %v2288_v60, %v2287_v49  ;;  %v2236_v49 = vadd.f32 %v2235_v12, %v2234_v41  ;;  %v2292_v60 = vadd.f32 %v2291_v1, %v2290_v55  ;;  %v4432_v41 = vld [vmem:[#allocation20_spill] sm:$0xff]  ;;  %v4433_v55 = vld [vmem:[#allocation7_spill] sm:$0xff] }
 0x3a2   : > { %v2386_v1 = vadd.f32 %v4433_v55, %v4432_v41 }
 0x3a3   : > { %v2338_v22 = vpop.f32.mrf.mxu0  ;;  %v1755_v45 = vadd.f32 %v2289_v29, %v2233_v63  ;;  %v1835_v29 = vadd.f32 %v2330_v58, %v1730_v11  ;;  %v1760_v14 = vadd.f32 %v2292_v60, %v2236_v49  ;;  %v2091_v63 = vld [vmem:[%s4215_s2] sm:$0xff] }
 0x3a4   : > { %v2393_v35 = vpop.f32.mrf.mxu1  ;;  %v2339_v0 = vadd.f32 %v2338_v22, %v2337_v8 }
 0x3a6   : > { %v2394_v38 = vpop.f32.mrf.mxu1  ;;  %v4434_v28 = vld [vmem:[#allocation22_spill] sm:$0xff]  ;;  %v1850_v31 = vadd.f32 %v2339_v0, %v1745_v26 }
 0x3a7   : > { %v2340_v4 = vpop.f32.mrf.mxu0  ;;  %v2395_v51 = vadd.f32 %v2394_v38, %v2393_v35  ;;  %v2096_v35 = vld [vmem:[%s4215_s2 + $0x28] sm:$0xff] }
 0x3a8   : > { %v4435_v42 = vld [vmem:[#allocation26_spill] sm:$0xff] }
 0x3a9   : > { %v2341_v47 = vpop.f32.mrf.mxu0  ;;  %v2392_v53 = vadd.f32 %v4435_v42, %v4434_v28  ;;  %v1955_v18 = vadd.f32 %v2395_v51, %v1850_v31 }
 0x3aa   : > { %v2396_v27 = vpop.f32.mrf.mxu1  ;;  %v2342_v46 = vadd.f32 %v2341_v47, %v2340_v4 }
 0x3ab   : > { %v1950_v16 = vadd.f32 %v2392_v53, %v1845_v32 }
 0x3ac   : > { %v2397_v59 = vpop.f32.mrf.mxu1  ;;  %v1855_v12 = vadd.f32 %v2342_v46, %v1750_v52 }
 0x3ad   : > { %v2343_v50 = vpop.f32.mrf.mxu0  ;;  %v2398_v61 = vadd.f32 %v2397_v59, %v2396_v27 }
 0x3af   : > { %v2344_v39 = vpop.f32.mrf.mxu0 }
 0x3b0   : > { %v2399_v44 = vpop.f32.mrf.mxu1  ;;  %v2345_v43 = vadd.f32 %v2344_v39, %v2343_v50  ;;  %v1940_v50 = vadd.f32 %v2386_v1, %v1835_v29  ;;  %v1960_v39 = vadd.f32 %v2398_v61, %v1855_v12 }
 0x3b2   : > { %v2400_v37 = vpop.f32.mrf.mxu1  ;;  %v1860_v7 = vadd.f32 %v2345_v43, %v1755_v45 }
 0x3b3   : > { %v2346_v21 = vpop.f32.mrf.mxu0  ;;  %v2401_v34 = vadd.f32 %v2400_v37, %v2399_v44  ;;  %v2092_v44 = vld [vmem:[%s4215_s2 + $0x8] sm:$0xff] }
 0x3b5   : > { %v2347_v13 = vpop.f32.mrf.mxu0  ;;  %v1965_v25 = vadd.f32 %v2401_v34, %v1860_v7  ;;  %v2093_v34 = vld [vmem:[%s4215_s2 + $0x10] sm:$0xff] }
 0x3b6   : > { %v2402_v5 = vpop.f32.mrf.mxu1  ;;  %v2348_v15 = vadd.f32 %v2347_v13, %v2346_v21 }
 0x3b8   : > { %v2403_v36 = vpop.f32.mrf.mxu1  ;;  %v1865_v56 = vadd.f32 %v2348_v15, %v1760_v14 }
 0x3b9   : > { %v2349_v10 = vpop.f32.mrf.mxu0  ;;  %v2404_v8 = vadd.f32 %v2403_v36, %v2402_v5 }
 0x3bb   : > { %v2350_v62 = vpop.f32.mrf.mxu0  ;;  %v1970_v19 = vadd.f32 %v2404_v8, %v1865_v56 }
 0x3bc   : > { %v2405_v40 = vpop.f32.mrf.mxu1  ;;  %v2351_v23 = vadd.f32 %v2350_v62, %v2349_v10  ;;  %v2095_v10 = vld [vmem:[%s4215_s2 + $0x20] sm:$0xff] }
 0x3be   : > { %v2406_v17 = vpop.f32.mrf.mxu1  ;;  %v1870_v11 = vadd.f32 %v2351_v23, %v1765_v9 }
 0x3bf   : > { %v2407_v22 = vadd.f32 %v2406_v17, %v2405_v40 }
 0x3c1   : > { %v1975_v24 = vadd.f32 %v2407_v22, %v1870_v11 }
 0x3c3   : > { %v2466_v4 = vpop.f32.mrf.mxu0  ;;  %v2472_v47 = vpop.f32.mrf.mxu1 }
 0x3c4   : > { %v2050_v27 = vadd.f32 %v2466_v4, %v1945_v54  ;;  %v2070_v59 = vadd.f32 %v2472_v47, %v1965_v25 }
 0x3c5   : > { %v2044_v38 = vpop.f32.mrf.mxu0  ;;  %v2064_v36 = vpop.f32.mrf.mxu1 }
 0x3c6   : > { %v2084_v37 = vmul.f32 0.00390625, %v2050_v27  ;;  %v2088_v21 = vmul.f32 0.00390625, %v2070_v59  ;;  %v2045_v13 = vadd.f32 %v2044_v38, %v1940_v50  ;;  %v2065_v5 = vadd.f32 %v2064_v36, %v1960_v39 }
 0x3c7   : > { %v2469_v33 = vpop.f32.mrf.mxu0  ;;  %v2475_v43 = vpop.f32.mrf.mxu1 }
 0x3c8   : > { %v2100_v30 = vadd.f32 %v2092_v44, %v2084_v37  ;;  %v2104_v45 = vadd.f32 %v2096_v35, %v2088_v21  ;;  %v2083_v49 = vmul.f32 0.00390625, %v2045_v13  ;;  %v2087_v60 = vmul.f32 0.00390625, %v2065_v5 }
 0x3c9   : > { %v2060_v3 = vadd.f32 %v2469_v33, %v1955_v18  ;;  %v2080_v58 = vadd.f32 %v2475_v43, %v1975_v24  ;;  %v2054_v46 = vpop.f32.mrf.mxu0  ;;  %v2074_v62 = vpop.f32.mrf.mxu1 }
 0x3ca   : > { %2109 = vst.msk [vmem:[%s4174_s24 + $0x8] sm:$0xff] %vm2107_vm6, %v2100_v30  ;;  %2113 = vst.msk [vmem:[%s4174_s24 + $0x28] sm:$0xff] %vm2107_vm6, %v2104_v45  ;;  %v2099_v40 = vadd.f32 %v2091_v63, %v2083_v49  ;;  %v2103_v57 = vadd.f32 %v2095_v10, %v2087_v60  ;;  %v2055_v20 = vadd.f32 %v2054_v46, %v1950_v16 }
 0x3cb   : > { %v2075_v52 = vadd.f32 %v2074_v62, %v1970_v19  ;;  %v2086_v0 = vmul.f32 0.00390625, %v2060_v3  ;;  %v2090_v7 = vmul.f32 0.00390625, %v2080_v58 }
 0x3cc   : > { %2108 = vst.msk [vmem:[%s4174_s24] sm:$0xff] %vm2107_vm6, %v2099_v40  ;;  %2112 = vst.msk [vmem:[%s4174_s24 + $0x20] sm:$0xff] %vm2107_vm6, %v2103_v57  ;;  %v2085_v26 = vmul.f32 0.00390625, %v2055_v20 }
 0x3cd   : > { %v2089_v15 = vmul.f32 0.00390625, %v2075_v52  ;;  %v2102_v23 = vadd.f32 %v2094_v6, %v2086_v0  ;;  %v2106_v29 = vadd.f32 %v2098_v48, %v2090_v7 }
 0x3ce   : > { %v2101_v41 = vadd.f32 %v2093_v34, %v2085_v26 }
 0x3cf   : > { %v2105_v55 = vadd.f32 %v2097_v2, %v2089_v15  ;;  %2111 = vst.msk [vmem:[%s4174_s24 + $0x18] sm:$0xff] %vm2107_vm6, %v2102_v23  ;;  %2115 = vst.msk [vmem:[%s4174_s24 + $0x38] sm:$0xff] %vm2107_vm6, %v2106_v29 }
 0x3d0   : > { %2110 = vst.msk [vmem:[%s4174_s24 + $0x10] sm:$0xff] %vm2107_vm6, %v2101_v41 }
 0x3d1   : > { %2114 = vst.msk [vmem:[%s4174_s24 + $0x30] sm:$0xff] %vm2107_vm6, %v2105_v55 }
 0x3d2 PF: > { %s13_s12 = sadd.s32 1, %s2547_s12  }
 0x3d3   : > { %p10_p4 = scmp.ge.s32.totalorder %s13_s12, 4  }
 0x3d5   :  { %12 = sbr.rel (!%p10_p4) target bundleno = 1 (0x1), region = 62 }

// kernel: kernel_filter_forward.3
= control target key start
LH: loop header
LB: loop body
LE: loop exit
PB: predicated region body
PF: predicated region fallthrough
CT: control target
= control target key end

     0   :  { %s6066_s17 = smov 0   ;;  %s9556_s0 = inlined_call_operand.vmem [shape: f32[2,128,256], index: 0, kind: input, shape index: {}]   ;;  %s9557_s1 = inlined_call_operand.vmem [shape: f32[2,64,1], index: 1, kind: input, shape index: {}]   ;;  %s9558_s2 = inlined_call_operand.vmem [shape: f32[64,1152], index: 2, kind: input, shape index: {}]   ;;  %s9559_s3 = inlined_call_operand.vmem [shape: f32[64,1], index: 3, kind: input, shape index: {}]   ;;  %s9560_s4 = inlined_call_operand.vmem [shape: f32[64,2048], index: 4, kind: input, shape index: {}]   ;;  %s9561_s5 = inlined_call_operand.vmem [shape: f32[32,32], index: 5, kind: input, shape index: {}]   ;;  %s9562_s6 = inlined_call_operand.vmem [shape: f32[32,32], index: 6, kind: input, shape index: {}]   ;;  %s9563_s7 = inlined_call_operand.vmem [shape: bf16[288,128], index: 7, kind: input, shape index: {}]   ;;  %s9564_s8 = inlined_call_operand.vmem [shape: f32[32,1], index: 8, kind: input, shape index: {}]   ;;  %s9565_s9 = inlined_call_operand.vmem [shape: bf16[128,288], index: 9, kind: input, shape index: {}]   ;;  %s9566_s10 = inlined_call_operand.vmem [shape: f32[128,1], index: 10, kind: input, shape index: {}]   ;;  %s9567_s11 = inlined_call_operand.vmem [shape: f32[2,128,256], index: 11, kind: output, shape index: {}]  }
   0x1 LB: > { %s5443_s18 = sadd.s32 4294967295, %s5991_s17   ;;  %p5447_p0 = scmp.ge.s32.totalorder %s5991_s17, 1  ;;  %s5991_s17 = sphi %s6066_s17, %s21_s17  }
   0x2   : > { %p347_p1 = scmp.lt.s32.totalorder %s5991_s17, 3 }
   0x4   : > { %p348_p2 = pnand %p5447_p0, %p347_p1 }
   0x6   : > { %351 = sbr.rel (%p348_p2) target bundleno = 2817 (0xb01), region = 64 }
   0xb   : > { %p392_p3 = scmp.lt.s32.totalorder %s5443_s18, 1  ;;  %v9568_v0 = vlaneseq  ;;  %s5993_s23 = smov 15   ;;  %vm9649_vm6 = vcmask 7168   ;;  %vm2399_vm7 = vcmask 15360   ;;  %vm2445_vm8 = vcmask 261120  }
   0xc   : > { %s5994_s24 = smov 1   ;;  %s5995_s25 = smov 112   ;;  %vm2455_vm9 = vcmask 1040384   ;;  %vm2585_vm10 = vcmask 523264   ;;  %vm9648_vm11 = vcmask 130048   ;;  %vm9647_vm12 = vcmask 916480  }
   0xd   : > { %s9825_s18 = smov (!%p392_p3, %s5443_s18), 1  ;;  %v6077_v1 = vand.u32 127, %v9568_v0  ;;  %s5996_s26 = smov 127   ;;  %vm3214_vm13 = vcmask 1041408   ;;  %vm3216_vm14 = vcmask 1042432   ;;  %vm3218_vm15 = vcmask 1043456  }
   0xe   : > { %s9623_s19 = sshll.u32 %s9825_s18, 8  ;;  %s5537_s13 = sshll.u32 %s9825_s18, 6 }
   0xf   : > { %v6081_v2 = vadd.s32 128, %v6077_v1  ;;  %s6088_s22 = scalar_lea.vmem %s9556_s0, %s9623_s19  ;;  %v6104_v7 = vand.u32 15, %v6077_v1  ;;  %vm521_vm5 = vcmp.lt.s32.totalorder %v6077_v1, 16  ;;  %s7471_s16 = scalar_lea.vmem %s9557_s1, %s5537_s13 }
  0x10   : > { %v6091_v3 = vld [vmem:[%s6088_s22 + $0xf8] sm:$0xff]  ;;  %v6098_v5 = vld [vmem:[%s6088_s22 + $0xe8] sm:$0xff]  ;;  %v6101_v6 = vld [vmem:[%s6088_s22 + $0xe0] sm:$0xff]  ;;  %s5998_s28 = smov 96   ;;  %s5999_s29 = smov 32  }
  0x11   : > { %v6094_v4 = vand.u32 15, %v6081_v2  ;;  %vm608_vm0 = vcmp.ge.s32.totalorder %v6081_v2, 240  ;;  %9655 = vst [vmem:[#allocation3_spill] sm:$0xff] %v6104_v7  ;;  %v6113_v10 = vld [vmem:[%s6088_s22 + $0xd8] sm:$0xff]  ;;  %v515_v11 = vadd.f32 %v6098_v5, %v6101_v6  ;;  %v6121_v13 = vld [vmem:[%s6088_s22 + $0xf0] sm:$0xff]  ;;  %vm693_vm1 = vcmp.eq.s32.totalorder %v6104_v7, 0 }
  0x12   : > { %v644_v8 = vsel %vm608_vm0, %v6091_v3, 0.0  ;;  %v642_v9 = vsel %vm608_vm0, %v6098_v5, 0.0  ;;  %v640_v12 = vsel %vm608_vm0, %v6113_v10, 0.0  ;;  %v6124_v14 = vld [vmem:[%s6088_s22 + $0xd0] sm:$0xff]  ;;  %v518_v15 = vadd.f32 %v6091_v3, %v6121_v13  ;;  %v6145_v23 = vld [vmem:[%s6088_s22 + $0xc8] sm:$0xff]  ;;  %v6148_v24 = vld [vmem:[%s6088_s22 + $0xc0] sm:$0xff] }
  0x13   : > { %9654 = vst [vmem:[#allocation2_spill] sm:$0xff] %v6094_v4  ;;  %691 = vadd.xlane.f32.xlu0 %v644_v8  ;;  %688 = vadd.xlane.f32.xlu1 %v642_v9  ;;  %vm694_vm2 = vcmp.eq.s32.totalorder %v6094_v4, 0  ;;  %v512_v16 = vadd.f32 %v6113_v10, %v6124_v14  ;;  %v729_v17 = vsel %vm693_vm1, %v6121_v13, 0.0  ;;  %v727_v19 = vsel %vm693_vm1, %v6101_v6, 0.0  ;;  %v6151_v25 = vld [vmem:[%s6088_s22 + $0xb0] sm:$0xff]  ;;  %v6154_v26 = vld [vmem:[%s6088_s22 + $0xb8] sm:$0xff] }
  0x14   : > { %v730_v18 = vsel %vm694_vm2, %v6091_v3, 0.0  ;;  %v728_v20 = vsel %vm694_vm2, %v6098_v5, 0.0  ;;  %v638_v27 = vsel %vm608_vm0, %v6145_v23, 0.0  ;;  %v509_v28 = vadd.f32 %v6145_v23, %v6148_v24  ;;  %v6162_v29 = vld [vmem:[%s6088_s22 + $0x30] sm:$0xff]  ;;  %v6165_v30 = vld [vmem:[%s6088_s22 + $0x38] sm:$0xff]  ;;  %v6174_v33 = vld [vmem:[%s6088_s22 + $0x28] sm:$0xff] }
  0x15   : > { %v776_v21 = vadd.f32 %v730_v18, %v729_v17  ;;  %v773_v22 = vadd.f32 %v728_v20, %v727_v19  ;;  %v725_v31 = vsel %vm693_vm1, %v6124_v14, 0.0  ;;  %v726_v32 = vsel %vm694_vm2, %v6113_v10, 0.0  ;;  %v6180_v35 = vld [vmem:[%s6088_s22 + $0x20] sm:$0xff]  ;;  %v6202_v44 = vld [vmem:[%s6088_s22 + $0x10] sm:$0xff]  ;;  %v6207_v46 = vld [vmem:[%s6088_s22 + $0x18] sm:$0xff]  ;;  %s6001_s19 = smov 64  }
  0x16   : > { %v723_v34 = vsel %vm693_vm1, %v6148_v24, 0.0  ;;  %v506_v36 = vadd.f32 %v6154_v26, %v6151_v25  ;;  %v705_v37 = vsel %vm693_vm1, %v6162_v29, 0.0  ;;  %v706_v38 = vsel %vm694_vm2, %v6165_v30, 0.0  ;;  %v6213_v48 = vld [vmem:[%s6088_s22] sm:$0xff]  ;;  %v6219_v51 = vld [vmem:[%s6088_s22 + $0x8] sm:$0xff]  ;;  %v6241_v59 = vld [vmem:[%s6088_s22 + $0x90] sm:$0xff] }
  0x17   : > { %516 = vadd.xlane.f32.xlu1 %v515_v11  ;;  %685 = vadd.xlane.f32.xlu0 %v640_v12  ;;  %v770_v39 = vadd.f32 %v726_v32, %v725_v31  ;;  %v6190_v40 = vadd.f32 %v706_v38, %v705_v37  ;;  %v703_v41 = vsel %vm693_vm1, %v6180_v35, 0.0  ;;  %v704_v42 = vsel %vm694_vm2, %v6174_v33, 0.0  ;;  %v6230_v55 = vld [vmem:[%s6088_s22 + $0xa8] sm:$0xff]  ;;  %v6233_v56 = vld [vmem:[%s6088_s22 + $0xa0] sm:$0xff]  ;;  %v6244_v60 = vld [vmem:[%s6088_s22 + $0x98] sm:$0xff]  ;;  %s6002_s15 = smov 16  }
  0x18   : > { %v724_v43 = vsel %vm694_vm2, %v6145_v23, 0.0  ;;  %v6204_v45 = vadd.f32 %v704_v42, %v703_v41  ;;  %v701_v47 = vsel %vm693_vm1, %v6202_v44, 0.0  ;;  %v702_v49 = vsel %vm694_vm2, %v6207_v46, 0.0  ;;  %v6272_v19 = vld [vmem:[%s6088_s22 + $0x80] sm:$0xff]  ;;  %v6292_v31 = vld [vmem:[%s6088_s22 + $0x70] sm:$0xff]  ;;  %v6295_v32 = vld [vmem:[%s6088_s22 + $0x78] sm:$0xff] }
  0x19   : > { %v767_v50 = vadd.f32 %v724_v43, %v723_v34  ;;  %v6221_v52 = vadd.f32 %v702_v49, %v701_v47  ;;  %v699_v53 = vsel %vm693_vm1, %v6213_v48, 0.0  ;;  %v636_v54 = vsel %vm608_vm0, %v6154_v26, 0.0  ;;  %v6313_v47 = vld [vmem:[%s6088_s22 + $0x68] sm:$0xff]  ;;  %v6316_v49 = vld [vmem:[%s6088_s22 + $0x60] sm:$0xff] }
  0x1a   : > { %v700_v57 = vsel %vm694_vm2, %v6219_v51, 0.0  ;;  %v503_v61 = vadd.f32 %v6230_v55, %v6233_v56  ;;  %v634_v62 = vsel %vm608_vm0, %v6230_v55, 0.0  ;;  %v721_v63 = vsel %vm693_vm1, %v6151_v25, 0.0 }
  0x1b   : > { %519 = vadd.xlane.f32.xlu0 %v518_v15  ;;  %513 = vadd.xlane.f32.xlu1 %v512_v16  ;;  %v6238_v58 = vadd.f32 %v700_v57, %v699_v53  ;;  %v722_v8 = vsel %vm694_vm2, %v6154_v26, 0.0  ;;  %v500_v11 = vadd.f32 %v6244_v60, %v6241_v59  ;;  %v719_v12 = vsel %vm693_vm1, %v6233_v56, 0.0  ;;  %v6266_v16 = vld [vmem:[%s6088_s22 + $0x88] sm:$0xff] }
  0x1c   : > { %v764_v9 = vadd.f32 %v722_v8, %v721_v63  ;;  %v720_v15 = vsel %vm694_vm2, %v6230_v55, 0.0  ;;  %v632_v18 = vsel %vm608_vm0, %v6244_v60, 0.0  ;;  %vm779_vm3 = vcmp.eq.s32.totalorder %v6104_v7, 15 }
  0x1d   : > { %v761_v17 = vadd.f32 %v720_v15, %v719_v12  ;;  %vm780_vm4 = vcmp.eq.s32.totalorder %v6094_v4, 15  ;;  %v630_v20 = vsel %vm608_vm0, %v6266_v16, 0.0  ;;  %v494_v38 = vadd.f32 %v6295_v32, %v6292_v31 }
  0x1e   : > { %v716_v41 = vsel %vm694_vm2, %v6266_v16, 0.0  ;;  %v628_v43 = vsel %vm608_vm0, %v6295_v32, 0.0  ;;  %v626_v53 = vsel %vm608_vm0, %v6313_v47, 0.0  ;;  %v714_v57 = vsel %vm694_vm2, %v6295_v32, 0.0 }
  0x1f   : > { %777 = vadd.xlane.f32.xlu0 %v776_v21  ;;  %774 = vadd.xlane.f32.xlu1 %v773_v22  ;;  %v785_v21 = vsel %vm779_vm3, %v6213_v48, 0.0  ;;  %v786_v22 = vsel %vm780_vm4, %v6219_v51, 0.0  ;;  %v811_v2 = vsel %vm779_vm3, %v6124_v14, 0.0 }
  0x20   : > { %v6297_v34 = vadd.f32 %v786_v22, %v785_v21 }
  0x23   : > { %682 = vadd.xlane.f32.xlu1 %v638_v27  ;;  %510 = vadd.xlane.f32.xlu0 %v509_v28  ;;  %v717_v27 = vsel %vm693_vm1, %v6241_v59, 0.0  ;;  %v718_v28 = vsel %vm694_vm2, %v6244_v60, 0.0 }
  0x24   : > { %v758_v37 = vadd.f32 %v718_v28, %v717_v27 }
  0x27   : > { %771 = vadd.xlane.f32.xlu0 %v770_v39  ;;  %507 = vadd.xlane.f32.xlu1 %v506_v36  ;;  %v497_v36 = vadd.f32 %v6266_v16, %v6272_v19  ;;  %v715_v39 = vsel %vm693_vm1, %v6272_v19, 0.0 }
  0x28   : > { %v755_v42 = vadd.f32 %v716_v41, %v715_v39  ;;  %v620_v41 = vsel %vm608_vm0, %v6165_v30, 0.0 }
  0x2b   : > { %679 = vadd.xlane.f32.xlu0 %v636_v54  ;;  %768 = vadd.xlane.f32.xlu1 %v767_v50  ;;  %v491_v50 = vadd.f32 %v6313_v47, %v6316_v49  ;;  %v713_v54 = vsel %vm693_vm1, %v6292_v31, 0.0 }
  0x2c   : > { %v752_v63 = vadd.f32 %v714_v57, %v713_v54  ;;  %v815_v54 = vsel %vm779_vm3, %v6121_v13, 0.0  ;;  %v816_v57 = vsel %vm780_vm4, %v6091_v3, 0.0 }
  0x2f   : > { %676 = vadd.xlane.f32.xlu1 %v634_v62  ;;  %504 = vadd.xlane.f32.xlu0 %v503_v61  ;;  %v6330_v61 = vld [vmem:[%s6088_s22 + $0x50] sm:$0xff]  ;;  %v6333_v62 = vld [vmem:[%s6088_s22 + $0x58] sm:$0xff] }
  0x30   : > { %9656 = vst [vmem:[#allocation4_spill] sm:$0xff] %v6330_v61  ;;  %v488_v8 = vadd.f32 %v6333_v62, %v6330_v61  ;;  %v624_v15 = vsel %vm608_vm0, %v6333_v62, 0.0  ;;  %v709_v22 = vsel %vm693_vm1, %v6330_v61, 0.0  ;;  %v710_v27 = vsel %vm694_vm2, %v6333_v62, 0.0 }
  0x31   : > { %v746_v28 = vadd.f32 %v710_v27, %v709_v22  ;;  %v555_v27 = vsel %vm521_vm5, %v6101_v6, 0.0 }
  0x33   : > { %765 = vadd.xlane.f32.xlu0 %v764_v9  ;;  %501 = vadd.xlane.f32.xlu1 %v500_v11  ;;  %v711_v9 = vsel %vm693_vm1, %v6316_v49, 0.0  ;;  %v712_v11 = vsel %vm694_vm2, %v6313_v47, 0.0 }
  0x34   : > { %v749_v12 = vadd.f32 %v712_v11, %v711_v9  ;;  %v813_v9 = vsel %vm779_vm3, %v6101_v6, 0.0  ;;  %v814_v11 = vsel %vm780_vm4, %v6098_v5, 0.0 }
  0x37   : > { %673 = vadd.xlane.f32.xlu0 %v632_v18  ;;  %762 = vadd.xlane.f32.xlu1 %v761_v17  ;;  %v6347_v17 = vld [vmem:[%s6088_s22 + $0x48] sm:$0xff]  ;;  %v6350_v18 = vld [vmem:[%s6088_s22 + $0x40] sm:$0xff] }
  0x38   : > { %9657 = vst [vmem:[#allocation5_spill] sm:$0xff] %v6350_v18  ;;  %v622_v21 = vsel %vm608_vm0, %v6347_v17, 0.0 }
  0x3b   : > { %670 = vadd.xlane.f32.xlu1 %v630_v20  ;;  %498 = vadd.xlane.f32.xlu0 %v497_v36  ;;  %v485_v20 = vadd.f32 %v6347_v17, %v6350_v18  ;;  %v482_v36 = vadd.f32 %v6165_v30, %v6162_v29 }
  0x3f   : > { %759 = vadd.xlane.f32.xlu0 %v758_v37  ;;  %495 = vadd.xlane.f32.xlu1 %v494_v38  ;;  %v707_v37 = vsel %vm693_vm1, %v6350_v18, 0.0  ;;  %v708_v38 = vsel %vm694_vm2, %v6347_v17, 0.0  ;;  %vm3222_vm1 = vcmask 1045504   ;;  %vm3224_vm2 = vcmask 1046528  }
  0x40   : > { %v743_v39 = vadd.f32 %v708_v38, %v707_v37  ;;  %v805_v38 = vsel %vm779_vm3, %v6233_v56, 0.0 }
  0x43   : > { %667 = vadd.xlane.f32.xlu0 %v628_v43  ;;  %756 = vadd.xlane.f32.xlu1 %v755_v42  ;;  %v479_v42 = vadd.f32 %v6174_v33, %v6180_v35  ;;  %v618_v43 = vsel %vm608_vm0, %v6174_v33, 0.0 }
  0x47   : > { %664 = vadd.xlane.f32.xlu1 %v626_v53  ;;  %492 = vadd.xlane.f32.xlu0 %v491_v50  ;;  %v476_v50 = vadd.f32 %v6207_v46, %v6202_v44  ;;  %v616_v53 = vsel %vm608_vm0, %v6207_v46, 0.0 }
  0x4b   : > { %753 = vadd.xlane.f32.xlu0 %v752_v63  ;;  %489 = vadd.xlane.f32.xlu1 %v488_v8  ;;  %v862_v63 = vadd.f32 %v816_v57, %v815_v54  ;;  %v614_v8 = vsel %vm608_vm0, %v6219_v51, 0.0  ;;  %v549_v54 = vsel %vm521_vm5, %v6151_v25, 0.0  ;;  %v801_v57 = vsel %vm779_vm3, %v6272_v19, 0.0 }
  0x4c   : > { %vm3220_vm0 = vcmask 1044480  }
  0x4f   : > { %661 = vadd.xlane.f32.xlu0 %v624_v15  ;;  %750 = vadd.xlane.f32.xlu1 %v749_v12  ;;  %v557_v12 = vsel %vm521_vm5, %v6121_v13, 0.0  ;;  %v812_v15 = vsel %vm780_vm4, %v6113_v10, 0.0 }
  0x53   : > { %658 = vadd.xlane.f32.xlu1 %v622_v21  ;;  %486 = vadd.xlane.f32.xlu0 %v485_v20  ;;  %v856_v20 = vadd.f32 %v812_v15, %v811_v2  ;;  %v810_v21 = vsel %vm780_vm4, %v6145_v23, 0.0  ;;  %v797_v2 = vsel %vm779_vm3, %v6316_v49, 0.0  ;;  %v798_v15 = vsel %vm780_vm4, %v6313_v47, 0.0 }
  0x57   : > { %747 = vadd.xlane.f32.xlu0 %v746_v28  ;;  %483 = vadd.xlane.f32.xlu1 %v482_v36  ;;  %v807_v28 = vsel %vm779_vm3, %v6151_v25, 0.0  ;;  %v808_v36 = vsel %vm780_vm4, %v6154_v26, 0.0 }
  0x58   : > { %v850_v37 = vadd.f32 %v808_v36, %v807_v28  ;;  %v541_v28 = vsel %vm521_vm5, %v6292_v31, 0.0  ;;  %v793_v36 = vsel %vm779_vm3, %v6350_v18, 0.0 }
  0x5b   : > { %655 = vadd.xlane.f32.xlu0 %v620_v41  ;;  %744 = vadd.xlane.f32.xlu1 %v743_v39  ;;  %v806_v39 = vsel %vm780_vm4, %v6230_v55, 0.0 }
  0x5c   : > { %v847_v41 = vadd.f32 %v806_v39, %v805_v38  ;;  %v539_v38 = vsel %vm521_vm5, %v6316_v49, 0.0  ;;  %v791_v39 = vsel %vm779_vm3, %v6162_v29, 0.0 }
  0x5f   : > { %652 = vadd.xlane.f32.xlu1 %v618_v43  ;;  %480 = vadd.xlane.f32.xlu0 %v479_v42  ;;  %v551_v42 = vsel %vm521_vm5, %v6148_v24, 0.0  ;;  %v803_v43 = vsel %vm779_vm3, %v6241_v59, 0.0 }
  0x63   : > { %741 = vadd.xlane.f32.xlu0 %v6190_v40  ;;  %477 = vadd.xlane.f32.xlu1 %v476_v50  ;;  %v473_v40 = vadd.f32 %v6219_v51, %v6213_v48  ;;  %v804_v50 = vsel %vm780_vm4, %v6244_v60, 0.0 }
  0x67   : > { %649 = vadd.xlane.f32.xlu0 %v616_v53  ;;  %738 = vadd.xlane.f32.xlu1 %v6204_v45  ;;  %v859_v45 = vadd.f32 %v814_v11, %v813_v9  ;;  %v844_v53 = vadd.f32 %v804_v50, %v803_v43  ;;  %v799_v9 = vsel %vm779_vm3, %v6292_v31, 0.0  ;;  %v800_v11 = vsel %vm780_vm4, %v6295_v32, 0.0 }
  0x6b   : > { %863 = vadd.xlane.f32.xlu0 %v862_v63  ;;  %474 = vadd.xlane.f32.xlu1 %v473_v40  ;;  %v802_v63 = vsel %vm780_vm4, %v6266_v16, 0.0 }
  0x6c   : > { %v841_v40 = vadd.f32 %v802_v63, %v801_v57  ;;  %v790_v57 = vsel %vm780_vm4, %v6174_v33, 0.0 }
  0x6f   : > { %646 = vadd.xlane.f32.xlu0 %v614_v8  ;;  %735 = vadd.xlane.f32.xlu1 %v6221_v52  ;;  %v809_v52 = vsel %vm779_vm3, %v6148_v24, 0.0  ;;  %v547_v8 = vsel %vm521_vm5, %v6233_v56, 0.0 }
  0x70   : > { %v853_v22 = vadd.f32 %v810_v21, %v809_v52  ;;  %v543_v52 = vsel %vm521_vm5, %v6272_v19, 0.0  ;;  %v795_v21 = vsel %vm779_vm3, %v6330_v61, 0.0 }
  0x73   : > { %860 = vadd.xlane.f32.xlu0 %v859_v45  ;;  %605 = vadd.xlane.f32.xlu1 %v557_v12  ;;  %v838_v45 = vadd.f32 %v800_v11, %v799_v9  ;;  %v545_v12 = vsel %vm521_vm5, %v6241_v59, 0.0  ;;  %v535_v9 = vsel %vm521_vm5, %v6350_v18, 0.0  ;;  %v787_v11 = vsel %vm779_vm3, %v6202_v44, 0.0 }
  0x77   : > { %732 = vadd.xlane.f32.xlu0 %v6238_v58  ;;  %857 = vadd.xlane.f32.xlu1 %v856_v20  ;;  %v553_v58 = vsel %vm521_vm5, %v6124_v14, 0.0  ;;  %v835_v20 = vadd.f32 %v798_v15, %v797_v2 }
  0x7b   : > { %602 = vadd.xlane.f32.xlu0 %v555_v27  ;;  %854 = vadd.xlane.f32.xlu1 %v853_v22  ;;  %v796_v22 = vsel %vm780_vm4, %v6333_v62, 0.0 }
  0x7c   : > { %v832_v27 = vadd.f32 %v796_v22, %v795_v21  ;;  %v531_v22 = vsel %vm521_vm5, %v6180_v35, 0.0 }
  0x7f   : > { %599 = vadd.xlane.f32.xlu0 %v553_v58  ;;  %851 = vadd.xlane.f32.xlu1 %v850_v37  ;;  %v794_v37 = vsel %vm780_vm4, %v6347_v17, 0.0 }
  0x80   : > { %v829_v58 = vadd.f32 %v794_v37, %v793_v36  ;;  %v527_v36 = vsel %vm521_vm5, %v6213_v48, 0.0 }
  0x83   : > { %596 = vadd.xlane.f32.xlu0 %v551_v42  ;;  %848 = vadd.xlane.f32.xlu1 %v847_v41  ;;  %v792_v41 = vsel %vm780_vm4, %v6165_v30, 0.0 }
  0x84   : > { %v826_v42 = vadd.f32 %v792_v41, %v791_v39 }
  0x87   : > { %593 = vadd.xlane.f32.xlu0 %v549_v54  ;;  %845 = vadd.xlane.f32.xlu1 %v844_v53  ;;  %v537_v53 = vsel %vm521_vm5, %v6330_v61, 0.0  ;;  %v789_v54 = vsel %vm779_vm3, %v6180_v35, 0.0 }
  0x88   : > { %v823_v63 = vadd.f32 %v790_v57, %v789_v54 }
  0x8b   : > { %590 = vadd.xlane.f32.xlu0 %v547_v8  ;;  %842 = vadd.xlane.f32.xlu1 %v841_v40 }
  0x8f   : > { %587 = vadd.xlane.f32.xlu0 %v545_v12  ;;  %839 = vadd.xlane.f32.xlu1 %v838_v45  ;;  %v788_v45 = vsel %vm780_vm4, %v6207_v46, 0.0 }
  0x90   : > { %v820_v12 = vadd.f32 %v788_v45, %v787_v11 }
  0x93   : > { %584 = vadd.xlane.f32.xlu0 %v543_v52  ;;  %836 = vadd.xlane.f32.xlu1 %v835_v20  ;;  %v533_v20 = vsel %vm521_vm5, %v6162_v29, 0.0  ;;  %v529_v29 = vsel %vm521_vm5, %v6202_v44, 0.0 }
  0x97   : > { %581 = vadd.xlane.f32.xlu0 %v541_v28  ;;  %833 = vadd.xlane.f32.xlu1 %v832_v27 }
  0x9b   : > { %578 = vadd.xlane.f32.xlu0 %v539_v38  ;;  %830 = vadd.xlane.f32.xlu1 %v829_v58 }
  0x9c   : > { %v692_v43 = vpop.xlane.xlu0 %691  ;;  %v689_v50 = vpop.xlane.xlu1 %688 }
  0x9f   : > { %575 = vadd.xlane.f32.xlu0 %v537_v53  ;;  %827 = vadd.xlane.f32.xlu1 %v826_v42 }
  0xa0   : > { %v6511_v40 = vpop.xlane.xlu1 %516  ;;  %v686_v8 = vpop.xlane.xlu0 %685 }
  0xa3   : > { %572 = vadd.xlane.f32.xlu0 %v535_v9  ;;  %824 = vadd.xlane.f32.xlu1 %v823_v63 }
  0xa4   : > { %v6522_v2 = vpop.xlane.xlu0 %519  ;;  %v6524_v15 = vpop.xlane.xlu1 %513 }
  0xa5   : > { %v6559_v1 = vsub.f32 %v6524_v15, %v686_v8  ;;  %v6566_v53 = vsub.f32 %v6522_v2, %v692_v43 }
  0xa7   : > { %569 = vadd.xlane.f32.xlu0 %v533_v20  ;;  %821 = vadd.xlane.f32.xlu1 %v820_v12 }
  0xa8   : > { %v6529_v52 = vpop.xlane.xlu0 %777  ;;  %v6531_v21 = vpop.xlane.xlu1 %774 }
  0xa9   : > { %9658 = vst [vmem:[#allocation6_spill] sm:$0xff] %v6531_v21  ;;  %v928_v57 = vsub.f32 %v6566_v53, %v6529_v52 }
  0xab   : > { %566 = vadd.xlane.f32.xlu0 %v531_v22  ;;  %818 = vadd.xlane.f32.xlu1 %v6297_v34  ;;  %v6552_v34 = vsub.f32 %v6511_v40, %v689_v50  ;;  %v944_v20 = vadd.f32 %v928_v57, %v6091_v3 }
  0xac   : > { %v683_v27 = vpop.xlane.xlu1 %682  ;;  %v6537_v28 = vpop.xlane.xlu0 %510 }
  0xad   : > { %v927_v44 = vsub.f32 %v6552_v34, %v6531_v21  ;;  %v6574_v63 = vsub.f32 %v6537_v28, %v683_v27 }
  0xaf   : > { %563 = vadd.xlane.f32.xlu0 %v529_v29  ;;  %560 = vadd.xlane.f32.xlu1 %v527_v36  ;;  %v943_v54 = vadd.f32 %v927_v44, %v6098_v5 }
  0xb0   : > { %v6545_v37 = vpop.xlane.xlu0 %771  ;;  %v6547_v58 = vpop.xlane.xlu1 %507 }
  0xb1   : > { %9659 = vst [vmem:[#allocation7_spill] sm:$0xff] %v6545_v37  ;;  %v926_v50 = vsub.f32 %v6559_v1, %v6545_v37 }
  0xb3   : > { %v942_v45 = vadd.f32 %v926_v50, %v6113_v10 }
  0xb4   : > { %v680_v35 = vpop.xlane.xlu0 %679  ;;  %v6549_v38 = vpop.xlane.xlu1 %768 }
  0xb5   : > { %9660 = vst [vmem:[#allocation8_spill] sm:$0xff] %v6549_v38  ;;  %v6580_v43 = vsub.f32 %v6547_v58, %v680_v35  ;;  %v925_v11 = vsub.f32 %v6574_v63, %v6549_v38 }
  0xb7   : > { %v941_v35 = vadd.f32 %v925_v11, %v6145_v23 }
  0xb8   : > { %v677_v39 = vpop.xlane.xlu1 %676  ;;  %v6554_v41 = vpop.xlane.xlu0 %504 }
  0xb9   : > { %v6589_v22 = vsub.f32 %v6554_v41, %v677_v39 }
  0xbc   : > { %v6561_v48 = vpop.xlane.xlu0 %765  ;;  %v6563_v42 = vpop.xlane.xlu1 %501 }
  0xbd   : > { %9661 = vst [vmem:[#allocation9_spill] sm:$0xff] %v6561_v48  ;;  %v924_v12 = vsub.f32 %v6580_v43, %v6561_v48 }
  0xbf   : > { %v940_v50 = vadd.f32 %v924_v12, %v6154_v26 }
  0xc0   : > { %v674_v8 = vpop.xlane.xlu0 %673  ;;  %v6576_v9 = vpop.xlane.xlu1 %762  ;;  %1101 = vrot.lane.b32.xlu1 %v943_v54, %s5993_s23 }
  0xc1   : > { %9662 = vst [vmem:[#allocation10_spill] sm:$0xff] %v6576_v9  ;;  %v923_v36 = vsub.f32 %v6589_v22, %v6576_v9  ;;  %v6599_v44 = vsub.f32 %v6563_v42, %v674_v8 }
  0xc4   : > { %v671_v27 = vpop.xlane.xlu1 %670  ;;  %v6591_v29 = vpop.xlane.xlu0 %498  ;;  %1099 = vrot.lane.b32.xlu1 %v942_v45, %s5993_s23  ;;  %v939_v45 = vadd.f32 %v923_v36, %v6230_v55 }
  0xc5   : > { %1103 = vrot.lane.b32.xlu0 %v944_v20, %s5993_s23  ;;  %v6612_v11 = vsub.f32 %v6591_v29, %v671_v27 }
  0xc8   : > { %v6602_v54 = vpop.xlane.xlu0 %759  ;;  %v6604_v39 = vpop.xlane.xlu1 %495  ;;  %1097 = vrot.lane.b32.xlu1 %v941_v35, %s5993_s23 }
  0xc9   : > { %9663 = vst [vmem:[#allocation11_spill] sm:$0xff] %v6602_v54  ;;  %v922_v57 = vsub.f32 %v6599_v44, %v6602_v54  ;;  %1095 = vrot.lane.b32.xlu0 %v940_v50, %s5993_s23 }
  0xcb   : > { %v938_v8 = vadd.f32 %v922_v57, %v6244_v60 }
  0xcc   : > { %v668_v20 = vpop.xlane.xlu0 %667  ;;  %v6615_v12 = vpop.xlane.xlu1 %756  ;;  %1093 = vrot.lane.b32.xlu1 %v939_v45, %s5993_s23 }
  0xcd   : > { %9664 = vst [vmem:[#allocation12_spill] sm:$0xff] %v6615_v12  ;;  %v921_v35 = vsub.f32 %v6612_v11, %v6615_v12  ;;  %1091 = vrot.lane.b32.xlu0 %v938_v8, %s5993_s23  ;;  %v6626_v27 = vsub.f32 %v6604_v39, %v668_v20 }
  0xcf   : > { %v937_v0 = vadd.f32 %v921_v35, %v6266_v16 }
  0xd0   : > { %v665_v50 = vpop.xlane.xlu1 %664  ;;  %v6622_v4 = vpop.xlane.xlu0 %492 }
  0xd1   : > { %1089 = vrot.lane.b32.xlu1 %v937_v0, %s5993_s23  ;;  %v6635_v7 = vsub.f32 %v6622_v4, %v665_v50 }
  0xd4   : > { %v6628_v36 = vpop.xlane.xlu0 %753  ;;  %v6630_v57 = vpop.xlane.xlu1 %489 }
  0xd5   : > { %9665 = vst [vmem:[#allocation13_spill] sm:$0xff] %v6628_v36  ;;  %9666 = vst [vmem:[#allocation14_spill] sm:$0xff] %v6630_v57  ;;  %v920_v45 = vsub.f32 %v6626_v27, %v6628_v36 }
  0xd7   : > { %v936_v8 = vadd.f32 %v920_v45, %v6295_v32 }
  0xd8   : > { %v662_v35 = vpop.xlane.xlu0 %661  ;;  %v6638_v12 = vpop.xlane.xlu1 %750 }
  0xd9   : > { %9667 = vst [vmem:[#allocation15_spill] sm:$0xff] %v6638_v12  ;;  %v919_v0 = vsub.f32 %v6635_v7, %v6638_v12  ;;  %1087 = vrot.lane.b32.xlu0 %v936_v8, %s5993_s23  ;;  %v6648_v50 = vsub.f32 %v6630_v57, %v662_v35 }
  0xdb   : > { %v935_v20 = vadd.f32 %v919_v0, %v6313_v47 }
  0xdc   : > { %v659_v54 = vpop.xlane.xlu1 %658  ;;  %v6644_v9 = vpop.xlane.xlu0 %486 }
  0xdd   : > { %9668 = vst [vmem:[#allocation16_spill] sm:$0xff] %v6644_v9  ;;  %1085 = vrot.lane.b32.xlu1 %v935_v20, %s5993_s23  ;;  %v6657_v12 = vsub.f32 %v6644_v9, %v659_v54 }
  0xe0   : > { %v6650_v36 = vpop.xlane.xlu0 %747  ;;  %v6652_v45 = vpop.xlane.xlu1 %483 }
  0xe1   : > { %9669 = vst [vmem:[#allocation17_spill] sm:$0xff] %v6650_v36  ;;  %9670 = vst [vmem:[#allocation18_spill] sm:$0xff] %v6652_v45  ;;  %v918_v48 = vsub.f32 %v6648_v50, %v6650_v36 }
  0xe3   : > { %v934_v8 = vadd.f32 %v918_v48, %v6333_v62 }
  0xe4   : > { %v656_v0 = vpop.xlane.xlu0 %655  ;;  %v6660_v18 = vpop.xlane.xlu1 %744 }
  0xe5   : > { %9671 = vst [vmem:[#allocation19_spill] sm:$0xff] %v6660_v18  ;;  %v917_v20 = vsub.f32 %v6657_v12, %v6660_v18  ;;  %1083 = vrot.lane.b32.xlu0 %v934_v8, %s5993_s23  ;;  %v6670_v54 = vsub.f32 %v6652_v45, %v656_v0 }
  0xe7   : > { %v933_v35 = vadd.f32 %v917_v20, %v6347_v17 }
  0xe8   : > { %v653_v38 = vpop.xlane.xlu1 %652  ;;  %v6666_v61 = vpop.xlane.xlu0 %480 }
  0xe9   : > { %9672 = vst [vmem:[#allocation20_spill] sm:$0xff] %v6666_v61  ;;  %1081 = vrot.lane.b32.xlu1 %v933_v35, %s5993_s23  ;;  %v6681_v8 = vsub.f32 %v6666_v61, %v653_v38 }
  0xec   : > { %v6672_v36 = vpop.xlane.xlu0 %741  ;;  %v6674_v48 = vpop.xlane.xlu1 %477 }
  0xed   : > { %9673 = vst [vmem:[#allocation21_spill] sm:$0xff] %v6672_v36  ;;  %v916_v9 = vsub.f32 %v6670_v54, %v6672_v36  ;;  %1431 = vrot.lane.b32.xlu1 %v6566_v53, %s5994_s24 }
  0xef   : > { %v932_v20 = vadd.f32 %v916_v9, %v6165_v30 }
  0xf0   : > { %v650_v35 = vpop.xlane.xlu0 %649  ;;  %v6684_v18 = vpop.xlane.xlu1 %738 }
  0xf1   : > { %9674 = vst [vmem:[#allocation22_spill] sm:$0xff] %v6684_v18  ;;  %v915_v0 = vsub.f32 %v6681_v8, %v6684_v18  ;;  %1079 = vrot.lane.b32.xlu0 %v932_v20, %s5993_s23  ;;  %v6698_v30 = vsub.f32 %v6674_v48, %v650_v35 }
  0xf3   : > { %v931_v45 = vadd.f32 %v915_v0, %v6174_v33 }
  0xf4   : > { %v6690_v36 = vpop.xlane.xlu0 %863  ;;  %v6692_v37 = vpop.xlane.xlu1 %474 }
  0xf5   : > { %v896_v38 = vsub.f32 %v6566_v53, %v6690_v36  ;;  %1077 = vrot.lane.b32.xlu0 %v931_v45, %s5993_s23 }
  0xf7   : > { %v912_v9 = vadd.f32 %v896_v38, %v6091_v3 }
  0xf8   : > { %v647_v61 = vpop.xlane.xlu0 %646  ;;  %v6701_v18 = vpop.xlane.xlu1 %735 }
  0xf9   : > { %9675 = vst [vmem:[#allocation23_spill] sm:$0xff] %v6701_v18  ;;  %v914_v33 = vsub.f32 %v6698_v30, %v6701_v18  ;;  %1429 = vrot.lane.b32.xlu0 %v6552_v34, %s5994_s24  ;;  %1399 = vrot.lane.b32.xlu1 %v912_v9, %s5994_s24  ;;  %v6715_v3 = vsub.f32 %v6692_v37, %v647_v61 }
  0xfb   : > { %v930_v53 = vadd.f32 %v914_v33, %v6207_v46 }
  0xfc   : > { %v6709_v20 = vpop.xlane.xlu0 %860  ;;  %v606_v45 = vpop.xlane.xlu1 %605 }
  0xfd   : > { %v895_v35 = vsub.f32 %v6552_v34, %v6709_v20  ;;  %1075 = vrot.lane.b32.xlu1 %v930_v53, %s5993_s23  ;;  %v6719_v38 = vsub.f32 %v6522_v2, %v606_v45 }
  0xff   : > { %v911_v0 = vadd.f32 %v895_v35, %v6098_v5  ;;  %9676 = vst [vmem:[#allocation24_spill] sm:$0xff] %v6719_v38  ;;  %v1008_v33 = vsub.f32 %v6719_v38, %v6690_v36 }
 0x100   : > { %v6721_v18 = vpop.xlane.xlu0 %732  ;;  %v6723_v9 = vpop.xlane.xlu1 %857 }
 0x101   : > { %9677 = vst [vmem:[#allocation25_spill] sm:$0xff] %v6721_v18  ;;  %v913_v46 = vsub.f32 %v6715_v3, %v6721_v18  ;;  %v894_v34 = vsub.f32 %v6559_v1, %v6723_v9  ;;  %1397 = vrot.lane.b32.xlu0 %v911_v0, %s5994_s24  ;;  %1427 = vrot.lane.b32.xlu1 %v6559_v1, %s5994_s24 }
 0x103   : > { %v929_v5 = vadd.f32 %v913_v46, %v6219_v51  ;;  %v910_v61 = vadd.f32 %v894_v34, %v6113_v10  ;;  %v1024_v10 = vadd.f32 %v1008_v33, %v6121_v13 }
 0x104   : > { %v603_v53 = vpop.xlane.xlu0 %602  ;;  %v6736_v45 = vpop.xlane.xlu1 %854 }
 0x105   : > { %1073 = vrot.lane.b32.xlu0 %v929_v5, %s5993_s23  ;;  %1395 = vrot.lane.b32.xlu1 %v910_v61, %s5994_s24  ;;  %v6741_v35 = vsub.f32 %v6511_v40, %v603_v53  ;;  %v893_v1 = vsub.f32 %v6574_v63, %v6736_v45 }
 0x107   : > { %9678 = vst [vmem:[#allocation26_spill] sm:$0xff] %v6741_v35  ;;  %v1007_v46 = vsub.f32 %v6741_v35, %v6709_v20  ;;  %v909_v34 = vadd.f32 %v893_v1, %v6145_v23 }
 0x108   : > { %v600_v0 = vpop.xlane.xlu0 %599  ;;  %v6745_v51 = vpop.xlane.xlu1 %851 }
 0x109   : > { %1425 = vrot.lane.b32.xlu0 %v6574_v63, %s5994_s24  ;;  %1151 = vrot.lane.b32.xlu1 %v1024_v10, %s5995_s25  ;;  %v6755_v5 = vsub.f32 %v6524_v15, %v600_v0  ;;  %v892_v61 = vsub.f32 %v6580_v43, %v6745_v51  ;;  %v1023_v13 = vadd.f32 %v1007_v46, %v6101_v6 }
 0x10b   : > { %9679 = vst [vmem:[#allocation27_spill] sm:$0xff] %v6755_v5  ;;  %v1006_v63 = vsub.f32 %v6755_v5, %v6723_v9  ;;  %v908_v1 = vadd.f32 %v892_v61, %v6154_v26 }
 0x10c   : > { %v597_v53 = vpop.xlane.xlu0 %596  ;;  %v6759_v18 = vpop.xlane.xlu1 %848 }
 0x10d   : > { %1393 = vrot.lane.b32.xlu0 %v909_v34, %s5994_s24  ;;  %1423 = vrot.lane.b32.xlu1 %v6580_v43, %s5994_s24  ;;  %v6773_v0 = vsub.f32 %v6537_v28, %v597_v53  ;;  %v891_v43 = vsub.f32 %v6589_v22, %v6759_v18  ;;  %v1022_v46 = vadd.f32 %v1006_v63, %v6124_v14 }
 0x10f   : > { %9680 = vst [vmem:[#allocation28_spill] sm:$0xff] %v6773_v0  ;;  %v1005_v26 = vsub.f32 %v6773_v0, %v6736_v45  ;;  %v907_v34 = vadd.f32 %v891_v43, %v6230_v55 }
 0x110   : > { %v594_v23 = vpop.xlane.xlu0 %593  ;;  %v6767_v33 = vpop.xlane.xlu1 %845 }
 0x111   : > { %1149 = vrot.lane.b32.xlu0 %v1023_v13, %s5995_s25  ;;  %1391 = vrot.lane.b32.xlu1 %v908_v1, %s5994_s24  ;;  %v6787_v61 = vsub.f32 %v6547_v58, %v594_v23  ;;  %v890_v53 = vsub.f32 %v6599_v44, %v6767_v33  ;;  %v1021_v14 = vadd.f32 %v1005_v26, %v6148_v24 }
 0x113   : > { %9681 = vst [vmem:[#allocation29_spill] sm:$0xff] %v6787_v61  ;;  %v906_v23 = vadd.f32 %v890_v53, %v6244_v60 }
 0x114   : > { %v591_v10 = vpop.xlane.xlu0 %590  ;;  %v6777_v6 = vpop.xlane.xlu1 %842 }
 0x115   : > { %1421 = vrot.lane.b32.xlu0 %v6589_v22, %s5994_s24  ;;  %1147 = vrot.lane.b32.xlu1 %v1022_v46, %s5995_s25  ;;  %v1004_v22 = vsub.f32 %v6787_v61, %v6745_v51  ;;  %v6805_v43 = vsub.f32 %v6554_v41, %v591_v10 }
 0x117   : > { %9682 = vst [vmem:[#allocation30_spill] sm:$0xff] %v6805_v43  ;;  %v1020_v24 = vadd.f32 %v1004_v22, %v6151_v25  ;;  %v1003_v60 = vsub.f32 %v6805_v43, %v6759_v18 }
 0x118   : > { %v588_v13 = vpop.xlane.xlu0 %587  ;;  %v6791_v1 = vpop.xlane.xlu1 %839 }
 0x119   : > { %1389 = vrot.lane.b32.xlu0 %v907_v34, %s5994_s24  ;;  %1419 = vrot.lane.b32.xlu1 %v6599_v44, %s5994_s24  ;;  %v889_v44 = vsub.f32 %v6612_v11, %v6777_v6  ;;  %v6819_v10 = vsub.f32 %v6563_v42, %v588_v13  ;;  %v888_v53 = vsub.f32 %v6626_v27, %v6791_v1 }
 0x11b   : > { %v905_v34 = vadd.f32 %v889_v44, %v6266_v16  ;;  %9683 = vst [vmem:[#allocation31_spill] sm:$0xff] %v6819_v10  ;;  %v1002_v22 = vsub.f32 %v6819_v10, %v6767_v33  ;;  %v904_v13 = vadd.f32 %v888_v53, %v6295_v32 }
 0x11c   : > { %v585_v55 = vpop.xlane.xlu0 %584  ;;  %v6799_v63 = vpop.xlane.xlu1 %836 }
 0x11d   : > { %1145 = vrot.lane.b32.xlu0 %v1021_v14, %s5995_s25  ;;  %1387 = vrot.lane.b32.xlu1 %v906_v23, %s5994_s24  ;;  %v6837_v23 = vsub.f32 %v6591_v29, %v585_v55 }
 0x11f   : > { %v1001_v32 = vsub.f32 %v6837_v23, %v6777_v6 }
 0x120   : > { %v6809_v46 = vpop.xlane.xlu1 %833  ;;  %v582_v26 = vpop.xlane.xlu0 %581 }
 0x121   : > { %1417 = vrot.lane.b32.xlu0 %v6612_v11, %s5994_s24  ;;  %1143 = vrot.lane.b32.xlu1 %v1020_v24, %s5995_s25  ;;  %v1019_v11 = vadd.f32 %v1003_v60, %v6233_v56  ;;  %v1018_v56 = vadd.f32 %v1002_v22, %v6241_v59  ;;  %v6851_v55 = vsub.f32 %v6604_v39, %v582_v26 }
 0x122   : > { %v1017_v59 = vadd.f32 %v1001_v32, %v6272_v19 }
 0x124   : > { %v6823_v14 = vpop.xlane.xlu1 %830  ;;  %v579_v25 = vpop.xlane.xlu0 %578 }
 0x125   : > { %9684 = vst [vmem:[#allocation32_spill] sm:$0xff] %v6823_v14  ;;  %1385 = vrot.lane.b32.xlu0 %v905_v34, %s5994_s24  ;;  %1415 = vrot.lane.b32.xlu1 %v6626_v27, %s5994_s24  ;;  %v887_v27 = vsub.f32 %v6635_v7, %v6799_v63  ;;  %v886_v34 = vsub.f32 %v6648_v50, %v6809_v46 }
 0x126   : > { %v885_v22 = vsub.f32 %v6657_v12, %v6823_v14  ;;  %v6873_v19 = vsub.f32 %v6622_v4, %v579_v25  ;;  %v5904_v25 = vld [vmem:[%s6088_s22 + $0xf0] sm:$0xff] }
 0x127   : > { %v903_v60 = vadd.f32 %v887_v27, %v6313_v47  ;;  %v902_v26 = vadd.f32 %v886_v34, %v6333_v62 }
 0x128   : > { %v6831_v16 = vpop.xlane.xlu1 %827  ;;  %v576_v24 = vpop.xlane.xlu0 %575  ;;  %v901_v62 = vadd.f32 %v885_v22, %v6347_v17  ;;  %v999_v32 = vsub.f32 %v6873_v19, %v6799_v63  ;;  %v1039_v17 = vsub.f32 %v6741_v35, %v6531_v21  ;;  %v5905_v22 = vld [vmem:[%s6088_s22 + $0x38] sm:$0xff]  ;;  %v9688_v35 = vld [vmem:[#allocation4_spill] sm:$0xff] }
 0x129   : > { %9685 = vst [vmem:[#allocation33_spill] sm:$0xff] %v6831_v16  ;;  %1141 = vrot.lane.b32.xlu0 %v1019_v11, %s5995_s25  ;;  %1383 = vrot.lane.b32.xlu1 %v904_v13, %s5994_s24  ;;  %v1000_v11 = vsub.f32 %v6851_v55, %v6791_v1 }
 0x12b   : > { %v1016_v27 = vadd.f32 %v1000_v11, %v6292_v31  ;;  %v884_v31 = vsub.f32 %v6670_v54, %v6831_v16 }
 0x12c   : > { %v6841_v44 = vpop.xlane.xlu1 %824 }
 0x12d   : > { %1413 = vrot.lane.b32.xlu0 %v6635_v7, %s5994_s24  ;;  %1139 = vrot.lane.b32.xlu1 %v1018_v56, %s5995_s25  ;;  %v573_v7 = vpop.xlane.xlu0 %572 }
 0x130   : > { %v6855_v53 = vpop.xlane.xlu1 %821 }
 0x131   : > { %1381 = vrot.lane.b32.xlu0 %v903_v60, %s5994_s24  ;;  %1411 = vrot.lane.b32.xlu1 %v6648_v50, %s5994_s24  ;;  %v1040_v50 = vsub.f32 %v6719_v38, %v6529_v52  ;;  %v570_v56 = vpop.xlane.xlu0 %569 }
 0x133   : > { %v1056_v34 = vadd.f32 %v5904_v25, %v1040_v50  ;;  %v900_v50 = vadd.f32 %v5905_v22, %v884_v31 }
 0x134   : > { %v6863_v47 = vpop.xlane.xlu1 %818 }
 0x135   : > { %1137 = vrot.lane.b32.xlu0 %v1017_v59, %s5995_s25  ;;  %1379 = vrot.lane.b32.xlu1 %v902_v26, %s5994_s24  ;;  %v6894_v59 = vsub.f32 %v6630_v57, %v576_v24  ;;  %v1015_v26 = vadd.f32 %v999_v32, %v6316_v49  ;;  %v9686_v32 = vld [vmem:[#allocation7_spill] sm:$0xff] }
 0x136   : > { %v1038_v31 = vsub.f32 %v6755_v5, %v9686_v32  ;;  %v5908_v5 = vld [vmem:[%s6088_s22 + $0xd0] sm:$0xff]  ;;  %v9690_v32 = vld [vmem:[#allocation18_spill] sm:$0xff] }
 0x138   : > { %v6875_v13 = vpop.xlane.xlu1 %560 }
 0x139   : > { %1409 = vrot.lane.b32.xlu0 %v6657_v12, %s5994_s24  ;;  %1135 = vrot.lane.b32.xlu1 %v1016_v27, %s5995_s25  ;;  %v567_v12 = vpop.xlane.xlu0 %566  ;;  %v998_v27 = vsub.f32 %v6894_v59, %v6809_v46 }
 0x13b   : > { %v1014_v38 = vadd.f32 %v998_v27, %v9688_v35 }
 0x13c   : > { %v6884_v60 = vpop.permute.xlu1 %1101 }
 0x13d   : > { %1377 = vrot.lane.b32.xlu0 %v901_v62, %s5994_s24  ;;  %1199 = vrot.lane.b32.xlu1 %v1056_v34, %s5996_s26  ;;  %v5906_v62 = vld [vmem:[%s6088_s22 + $0xe0] sm:$0xff]  ;;  %v564_v24 = vpop.xlane.xlu0 %563 }
 0x13e   : > { %v1055_v25 = vadd.f32 %v5906_v62, %v1039_v17  ;;  %v5907_v62 = vld [vmem:[%s6088_s22 + $0x28] sm:$0xff] }
 0x140   : > { %v6896_v11 = vpop.permute.xlu1 %1099 }
 0x141   : > { %1407 = vrot.lane.b32.xlu0 %v6670_v54, %s5994_s24  ;;  %1133 = vrot.lane.b32.xlu1 %v1015_v26, %s5995_s25  ;;  %v883_v54 = vsub.f32 %v6681_v8, %v6841_v44  ;;  %v9687_v26 = vld [vmem:[#allocation16_spill] sm:$0xff]  ;;  %v1104_v17 = vpop.permute.xlu0 %1103 }
 0x142   : > { %v6915_v22 = vsub.f32 %v9687_v26, %v573_v7  ;;  %v1054_v7 = vadd.f32 %v5908_v5, %v1038_v31  ;;  %v6934_v26 = vsub.f32 %v9690_v32, %v570_v56  ;;  %v5909_v5 = vld [vmem:[%s6088_s22 + $0x18] sm:$0xff] }
 0x144   : > { %v6906_v34 = vpop.permute.xlu1 %1097  ;;  %v997_v21 = vsub.f32 %v6915_v22, %v6823_v14 }
 0x145   : > { %1375 = vrot.lane.b32.xlu0 %v900_v50, %s5994_s24  ;;  %1197 = vrot.lane.b32.xlu1 %v1055_v25, %s5996_s26  ;;  %v899_v25 = vadd.f32 %v5907_v62, %v883_v54  ;;  %v9691_v54 = vld [vmem:[#allocation5_spill] sm:$0xff]  ;;  %v6937_v57 = vpop.permute.xlu0 %1095 }
 0x146   : > { %v1013_v62 = vadd.f32 %v997_v21, %v9691_v54  ;;  %v1202_v21 = vld [vmem:[%s9558_s2 + $0x8] sm:$0xff] }
 0x147   : > { %1865 = vmatprep.mubr.f32.mxu1 %v1202_v21  ;;  %v5912_v21 = vld [vmem:[%s6088_s22 + $0x8] sm:$0xff] }
 0x148   : > { %v6921_v50 = vpop.permute.xlu1 %1093 }
 0x149   : > { %1405 = vrot.lane.b32.xlu0 %v6681_v8, %s5994_s24  ;;  %1131 = vrot.lane.b32.xlu1 %v1014_v38, %s5995_s25  ;;  %v882_v8 = vsub.f32 %v6698_v30, %v6855_v53  ;;  %v9689_v38 = vld [vmem:[#allocation8_spill] sm:$0xff] }
 0x14a   : > { %v1037_v27 = vsub.f32 %v6773_v0, %v9689_v38 }
 0x14b   : > { %v898_v31 = vadd.f32 %v5909_v5, %v882_v8  ;;  %v9692_v5 = vld [vmem:[#allocation9_spill] sm:$0xff] }
 0x14c   : > { %v6939_v14 = vpop.permute.xlu1 %1089 }
 0x14d   : > { %1373 = vrot.lane.b32.xlu0 %v899_v25, %s5994_s24  ;;  %1195 = vrot.lane.b32.xlu1 %v1054_v7, %s5996_s26  ;;  %v996_v25 = vsub.f32 %v6934_v26, %v6831_v16  ;;  %v5910_v7 = vld [vmem:[%s6088_s22 + $0xc0] sm:$0xff] }
 0x14e   : > { %v1053_v56 = vadd.f32 %v5910_v7, %v1037_v27  ;;  %v1036_v27 = vsub.f32 %v6787_v61, %v9692_v5  ;;  %v9693_v7 = vld [vmem:[#allocation20_spill] sm:$0xff] }
 0x14f   : > { %v5913_v61 = vld [vmem:[%s6088_s22 + $0xb0] sm:$0xff] }
 0x150   : > { %v6957_v8 = vpop.permute.xlu1 %1085  ;;  %v1052_v5 = vadd.f32 %v5913_v61, %v1036_v27 }
 0x151   : > { %1403 = vrot.lane.b32.xlu0 %v6698_v30, %s5994_s24  ;;  %1129 = vrot.lane.b32.xlu1 %v1013_v62, %s5995_s25  ;;  %v881_v30 = vsub.f32 %v6715_v3, %v6863_v47  ;;  %v6955_v62 = vpop.permute.xlu0 %1091 }
 0x153   : > { %v897_v16 = vadd.f32 %v5912_v21, %v881_v30  ;;  %v6988_v30 = vsub.f32 %v6674_v48, %v564_v24  ;;  %v6991_v21 = vld [vmem:[%s6088_s22 + $0x20] sm:$0xff]  ;;  %v959_v24 = vsub.f32 %v6511_v40, %v6709_v20 }
 0x155   : > { %1371 = vrot.lane.b32.xlu0 %v898_v31, %s5994_s24  ;;  %1193 = vrot.lane.b32.xlu1 %v1053_v56, %s5996_s26  ;;  %v6962_v31 = vsub.f32 %v9693_v7, %v567_v12  ;;  %v6965_v56 = vld [vmem:[%s6088_s22 + $0x30] sm:$0xff]  ;;  %v6971_v38 = vpop.permute.xlu0 %1087  ;;  %v9695_v7 = vld [vmem:[#allocation10_spill] sm:$0xff] }
 0x156   : > { %v1012_v0 = vadd.f32 %v6965_v56, %v996_v25 }
 0x157   : > { %v995_v12 = vsub.f32 %v6962_v31, %v6841_v44 }
 0x159   : > { %1401 = vrot.lane.b32.xlu0 %v6715_v3, %s5994_s24  ;;  %1127 = vrot.lane.b32.xlu1 %v1012_v0, %s5995_s25  ;;  %v960_v3 = vsub.f32 %v6522_v2, %v6690_v36  ;;  %v6983_v0 = vpop.permute.xlu0 %1083  ;;  %v1011_v61 = vadd.f32 %v6991_v21, %v995_v12 }
 0x15b   : > { %v6973_v32 = vpop.permute.xlu1 %1081 }
 0x15c   : > { %9694 = vst [vmem:[#allocation4_spill] sm:$0xff] %v6973_v32  ;;  %v1035_v32 = vsub.f32 %v6805_v43, %v9695_v7  ;;  %v7014_v43 = vld [vmem:[%s6088_s22 + $0x10] sm:$0xff] }
 0x15d   : > { %1369 = vrot.lane.b32.xlu0 %v897_v16, %s5994_s24  ;;  %1191 = vrot.lane.b32.xlu1 %v1052_v5, %s5996_s26  ;;  %v994_v16 = vsub.f32 %v6988_v30, %v6855_v53  ;;  %v5915_v5 = vld [vmem:[%s6088_s22 + $0xa0] sm:$0xff] }
 0x15e   : > { %v1051_v27 = vadd.f32 %v5915_v5, %v1035_v32 }
 0x15f   : > { %v1432_v25 = vpop.permute.xlu1 %1431  ;;  %v1010_v32 = vadd.f32 %v7014_v43, %v994_v16 }
 0x160   : > { %5539 = vmatprep.subr.mxu1 %v1432_v25 }
 0x161   : > { %1495 = vrot.lane.b32.xlu0 %v960_v3, %s5994_s24  ;;  %1125 = vrot.lane.b32.xlu1 %v1011_v61, %s5995_s25  ;;  %v9696_v3 = vld [vmem:[#allocation11_spill] sm:$0xff]  ;;  %v7011_v61 = vsub.f32 %v6692_v37, %v6875_v13  ;;  %v958_v13 = vsub.f32 %v6524_v15, %v6723_v9  ;;  %v957_v9 = vsub.f32 %v6537_v28, %v6736_v45 }
 0x162   : > { %v1034_v25 = vsub.f32 %v6819_v10, %v9696_v3  ;;  %v7032_v3 = vld [vmem:[%s6088_s22] sm:$0xff] }
 0x163   : > { %v6996_v36 = vpop.permute.xlu0 %1079  ;;  %v993_v5 = vsub.f32 %v7011_v61, %v6863_v47 }
 0x165   : > { %1463 = vrot.lane.b32.xlu0 %v1104_v17, %s5994_s24  ;;  %1189 = vrot.lane.b32.xlu1 %v1051_v27, %s5996_s26  ;;  %v5917_v27 = vld [vmem:[%s6088_s22 + $0x90] sm:$0xff] }
 0x166   : > { %v1050_v10 = vadd.f32 %v5917_v27, %v1034_v25 }
 0x167   : > { %v7005_v12 = vpop.permute.xlu0 %1077 }
 0x169   : > { %1493 = vrot.lane.b32.xlu0 %v959_v24, %s5994_s24  ;;  %1123 = vrot.lane.b32.xlu1 %v1010_v32, %s5995_s25  ;;  %v9697_v24 = vld [vmem:[#allocation12_spill] sm:$0xff] }
 0x16a   : > { %v1033_v32 = vsub.f32 %v6837_v23, %v9697_v24 }
 0x16b   : > { %v1430_v17 = vpop.permute.xlu0 %1429  ;;  %v1400_v20 = vpop.permute.xlu1 %1399 }
 0x16c   : > { %5540 = vmatpush3.msra.mxu1 %v1400_v20  ;;  %v1009_v20 = vadd.f32 %v7032_v3, %v993_v5  ;;  %v9698_v5 = vld [vmem:[#allocation13_spill] sm:$0xff] }
 0x16d   : > { %1461 = vrot.lane.b32.xlu0 %v6884_v60, %s5994_s24  ;;  %5541 = vmatprep.subr.mxu1 %v1430_v17  ;;  %v1032_v27 = vsub.f32 %v6851_v55, %v9698_v5 }
 0x16e   : > { %1187 = vrot.lane.b32.xlu1 %v1050_v10, %s5996_s26  ;;  %v5919_v10 = vld [vmem:[%s6088_s22 + $0x80] sm:$0xff] }
 0x16f   : > { %v7027_v16 = vpop.permute.xlu1 %1075  ;;  %v1049_v17 = vadd.f32 %v5919_v10, %v1033_v32  ;;  %v9699_v10 = vld [vmem:[#allocation15_spill] sm:$0xff] }
 0x170   : > { %v1031_v45 = vsub.f32 %v6873_v19, %v9699_v10 }
 0x171   : > { %1491 = vrot.lane.b32.xlu0 %v958_v13, %s5994_s24 }
 0x172   : > { %1121 = vrot.lane.b32.xlu1 %v1009_v20, %s5995_s25 }
 0x173   : > { %v1398_v60 = vpop.permute.xlu0 %1397  ;;  %v1428_v25 = vpop.permute.xlu1 %1427 }
 0x174   : > { %5542 = vmatpush3.msra.mxu1 %v1398_v60 }
 0x175   : > { %1459 = vrot.lane.b32.xlu0 %v6896_v11, %s5994_s24  ;;  %5543 = vmatprep.subr.mxu1 %v1428_v25  ;;  %v5920_v11 = vld [vmem:[%s6088_s22 + $0x70] sm:$0xff]  ;;  %v956_v25 = vsub.f32 %v6547_v58, %v6745_v51  ;;  %v955_v51 = vsub.f32 %v6554_v41, %v6759_v18 }
 0x176   : > { %1185 = vrot.lane.b32.xlu1 %v1049_v17, %s5996_s26  ;;  %v1048_v60 = vadd.f32 %v5920_v11, %v1032_v27  ;;  %v9700_v27 = vld [vmem:[#allocation17_spill] sm:$0xff] }
 0x177   : > { %v7045_v13 = vpop.permute.xlu0 %1073  ;;  %v1396_v20 = vpop.permute.xlu1 %1395 }
 0x178   : > { %5544 = vmatpush3.msra.mxu1 %v1396_v20 }
 0x179   : > { %1489 = vrot.lane.b32.xlu0 %v957_v9, %s5994_s24 }
 0x17a   : > { %1457 = vrot.lane.b32.xlu1 %v6906_v34, %s5994_s24  ;;  %v1047_v34 = vadd.f32 %v1031_v45, %v6316_v49  ;;  %v9701_v45 = vld [vmem:[#allocation19_spill] sm:$0xff] }
 0x17b   : > { %v1426_v32 = vpop.permute.xlu0 %1425  ;;  %v7055_v17 = vpop.permute.xlu1 %1151  ;;  %v1029_v18 = vsub.f32 %v6915_v22, %v9701_v45 }
 0x17c   : > { %5545 = vmatprep.subr.mxu1 %v1426_v32  ;;  %v1030_v32 = vsub.f32 %v6894_v59, %v9700_v27 }
 0x17d   : > { %1183 = vrot.lane.b32.xlu0 %v1048_v60, %s5996_s26 }
 0x17e   : > { %1487 = vrot.lane.b32.xlu1 %v956_v25, %s5994_s24  ;;  %v954_v25 = vsub.f32 %v6563_v42, %v6767_v33  ;;  %v9702_v33 = vld [vmem:[#allocation21_spill] sm:$0xff] }
 0x17f   : > { %v1394_v9 = vpop.permute.xlu0 %1393  ;;  %v1424_v20 = vpop.permute.xlu1 %1423 }
 0x180   : > { %5546 = vmatpush3.msra.mxu1 %v1394_v9 }
 0x181   : > { %1455 = vrot.lane.b32.xlu0 %v6937_v57, %s5994_s24  ;;  %5547 = vmatprep.subr.mxu1 %v1424_v20  ;;  %v1046_v57 = vadd.f32 %v1030_v32, %v9688_v35  ;;  %v953_v35 = vsub.f32 %v6591_v29, %v6777_v6 }
 0x182   : > { %1181 = vrot.lane.b32.xlu1 %v1047_v34, %s5996_s26 }
 0x183   : > { %v7067_v11 = vpop.permute.xlu0 %1149  ;;  %v1392_v60 = vpop.permute.xlu1 %1391 }
 0x184   : > { %5548 = vmatpush3.msra.mxu1 %v1392_v60 }
 0x185   : > { %1485 = vrot.lane.b32.xlu0 %v955_v51, %s5994_s24  ;;  %v1028_v51 = vsub.f32 %v6934_v26, %v9702_v33 }
 0x186   : > { %1453 = vrot.lane.b32.xlu1 %v6921_v50, %s5994_s24  ;;  %v1045_v50 = vadd.f32 %v1029_v18, %v9691_v54 }
 0x187   : > { %v1422_v49 = vpop.permute.xlu0 %1421  ;;  %v7077_v9 = vpop.permute.xlu1 %1147 }
 0x188   : > { %5549 = vmatprep.subr.mxu1 %v1422_v49  ;;  %v952_v49 = vsub.f32 %v6604_v39, %v6791_v1  ;;  %v951_v1 = vsub.f32 %v6622_v4, %v6799_v63 }
 0x189   : > { %1179 = vrot.lane.b32.xlu0 %v1046_v57, %s5996_s26  ;;  %v9703_v57 = vld [vmem:[#allocation22_spill] sm:$0xff] }
 0x18a   : > { %1483 = vrot.lane.b32.xlu1 %v954_v25, %s5994_s24  ;;  %v1027_v6 = vsub.f32 %v6962_v31, %v9703_v57 }
 0x18b   : > { %v1390_v20 = vpop.permute.xlu0 %1389  ;;  %v1420_v34 = vpop.permute.xlu1 %1419 }
 0x18c   : > { %5550 = vmatpush3.msra.mxu1 %v1390_v20 }
 0x18d   : > { %1451 = vrot.lane.b32.xlu0 %v6955_v62, %s5994_s24  ;;  %5551 = vmatprep.subr.mxu1 %v1420_v34  ;;  %v1044_v62 = vadd.f32 %v6965_v56, %v1028_v51  ;;  %v976_v34 = vsub.f32 %v6522_v2, %v6529_v52 }
 0x18e   : > { %1177 = vrot.lane.b32.xlu1 %v1045_v50, %s5996_s26 }
 0x18f   : > { %v7089_v32 = vpop.permute.xlu0 %1145  ;;  %v1388_v60 = vpop.permute.xlu1 %1387 }
 0x190   : > { %5552 = vmatpush3.msra.mxu1 %v1388_v60  ;;  %v9705_v60 = vld [vmem:[#allocation14_spill] sm:$0xff] }
 0x191   : > { %1481 = vrot.lane.b32.xlu0 %v953_v35, %s5994_s24 }
 0x192   : > { %1449 = vrot.lane.b32.xlu1 %v6939_v14, %s5994_s24  ;;  %v1043_v14 = vadd.f32 %v6991_v21, %v1027_v6  ;;  %v9704_v21 = vld [vmem:[#allocation23_spill] sm:$0xff] }
 0x193   : > { %v1418_v54 = vpop.permute.xlu0 %1417  ;;  %v7099_v25 = vpop.permute.xlu1 %1143 }
 0x194   : > { %5553 = vmatprep.subr.mxu1 %v1418_v54  ;;  %v950_v54 = vsub.f32 %v9705_v60, %v6809_v46 }
 0x195   : > { %1175 = vrot.lane.b32.xlu0 %v1044_v62, %s5996_s26 }
 0x196   : > { %1479 = vrot.lane.b32.xlu1 %v952_v49, %s5994_s24  ;;  %v9706_v49 = vld [vmem:[#allocation6_spill] sm:$0xff] }
 0x197   : > { %v1386_v18 = vpop.permute.xlu0 %1385  ;;  %v1416_v20 = vpop.permute.xlu1 %1415  ;;  %v975_v6 = vsub.f32 %v6511_v40, %v9706_v49 }
 0x198   : > { %5554 = vmatpush3.msra.mxu1 %v1386_v18  ;;  %v9707_v18 = vld [vmem:[#allocation25_spill] sm:$0xff] }
 0x199   : > { %1447 = vrot.lane.b32.xlu0 %v6971_v38, %s5994_s24  ;;  %5555 = vmatprep.subr.mxu1 %v1416_v20  ;;  %v1026_v38 = vsub.f32 %v6988_v30, %v9704_v21 }
 0x19a   : > { %1173 = vrot.lane.b32.xlu1 %v1043_v14, %s5996_s26 }
 0x19b   : > { %v7109_v56 = vpop.permute.xlu0 %1141  ;;  %v1384_v50 = vpop.permute.xlu1 %1383  ;;  %v1042_v63 = vadd.f32 %v7014_v43, %v1026_v38 }
 0x19c   : > { %5556 = vmatpush3.msra.mxu1 %v1384_v50 }
 0x19d   : > { %1477 = vrot.lane.b32.xlu0 %v951_v1, %s5994_s24  ;;  %v9708_v1 = vld [vmem:[#allocation32_spill] sm:$0xff] }
 0x19e   : > { %1559 = vrot.lane.b32.xlu1 %v976_v34, %s5994_s24  ;;  %v9709_v34 = vld [vmem:[#allocation16_spill] sm:$0xff] }
 0x19f   : > { %v1414_v35 = vpop.permute.xlu0 %1413  ;;  %v7117_v51 = vpop.permute.xlu1 %1139  ;;  %v949_v50 = vsub.f32 %v9709_v34, %v9708_v1 }
 0x1a0   : > { %5557 = vmatprep.subr.mxu1 %v1414_v35  ;;  %v9710_v35 = vld [vmem:[#allocation7_spill] sm:$0xff] }
 0x1a1   : > { %1445 = vrot.lane.b32.xlu0 %v6957_v8, %s5994_s24 }
 0x1a2   : > { %1527 = vrot.lane.b32.xlu1 %v6522_v2, %s5994_s24  ;;  %v1025_v2 = vsub.f32 %v7011_v61, %v9707_v18 }
 0x1a3   : > { %v1382_v52 = vpop.permute.xlu0 %1381  ;;  %v1412_v62 = vpop.permute.xlu1 %1411 }
 0x1a4   : > { %5558 = vmatpush3.msra.mxu1 %v1382_v52  ;;  %v1041_v14 = vadd.f32 %v7032_v3, %v1025_v2  ;;  %v974_v52 = vsub.f32 %v6524_v15, %v9710_v35  ;;  %v9714_v2 = vld [vmem:[#allocation8_spill] sm:$0xff]  ;;  %v9716_v35 = vld [vmem:[#allocation9_spill] sm:$0xff] }
 0x1a5   : > { %1171 = vrot.lane.b32.xlu0 %v1042_v63, %s5996_s26  ;;  %5559 = vmatprep.subr.mxu1 %v1412_v62  ;;  %v9713_v62 = vld [vmem:[#allocation18_spill] sm:$0xff] }
 0x1a6   : > { %1475 = vrot.lane.b32.xlu1 %v950_v54, %s5994_s24  ;;  %v9712_v54 = vld [vmem:[#allocation33_spill] sm:$0xff] }
 0x1a7   : > { %v7130_v8 = vpop.permute.xlu0 %1137  ;;  %v1380_v20 = vpop.permute.xlu1 %1379  ;;  %v948_v49 = vsub.f32 %v9713_v62, %v9712_v54 }
 0x1a8   : > { %5560 = vmatpush3.msra.mxu1 %v1380_v20  ;;  %v973_v20 = vsub.f32 %v6537_v28, %v9714_v2 }
 0x1a9   : > { %1557 = vrot.lane.b32.xlu0 %v975_v6, %s5994_s24 }
 0x1aa   : > { %1443 = vrot.lane.b32.xlu1 %v6983_v0, %s5994_s24 }
 0x1ab   : > { %v1410_v43 = vpop.permute.xlu0 %1409  ;;  %v7137_v46 = vpop.permute.xlu1 %1135 }
 0x1ac   : > { %5561 = vmatprep.subr.mxu1 %v1410_v43 }
 0x1ad   : > { %1525 = vrot.lane.b32.xlu0 %v6511_v40, %s5994_s24  ;;  %v9711_v40 = vld [vmem:[#allocation4_spill] sm:$0xff] }
 0x1ae   : > { %1169 = vrot.lane.b32.xlu1 %v1041_v14, %s5996_s26 }
 0x1af   : > { %v1378_v38 = vpop.permute.xlu0 %1377  ;;  %v7147_v63 = vpop.permute.xlu1 %1199 }
 0x1b0   : > { %5562 = vmatpush3.msra.mxu1 %v1378_v38 }
 0x1b1   : > { %1473 = vrot.lane.b32.xlu0 %v949_v50, %s5994_s24 }
 0x1b2   : > { %1555 = vrot.lane.b32.xlu1 %v974_v52, %s5994_s24  ;;  %v972_v52 = vsub.f32 %v6547_v58, %v9716_v35  ;;  %v1219_v35 = vld [vmem:[%s9558_s2 + $0x90] sm:$0xff] }
 0x1b3   : > { %v1408_v0 = vpop.permute.xlu0 %1407  ;;  %v7151_v3 = vpop.permute.xlu1 %1133 }
 0x1b4   : > { %5563 = vmatprep.subr.mxu1 %v1408_v0 }
 0x1b5   : > { %1441 = vrot.lane.b32.xlu0 %v9711_v40, %s5994_s24 }
 0x1b6   : > { %1523 = vrot.lane.b32.xlu1 %v6524_v15, %s5994_s24  ;;  %v9715_v15 = vld [vmem:[#allocation20_spill] sm:$0xff] }
 0x1b7   : > { %v1376_v6 = vpop.permute.xlu0 %1375  ;;  %v7161_v43 = vpop.permute.xlu1 %1197  ;;  %v947_v50 = vsub.f32 %v9715_v15, %v6841_v44 }
 0x1b8   : > { %5564 = vmatpush3.msra.mxu1 %v1376_v6 }
 0x1b9   : > { %1471 = vrot.lane.b32.xlu0 %v948_v49, %s5994_s24 }
 0x1ba   : > { %1553 = vrot.lane.b32.xlu1 %v973_v20, %s5994_s24  ;;  %v9717_v20 = vld [vmem:[#allocation11_spill] sm:$0xff] }
 0x1bb   : > { %v1406_v14 = vpop.permute.xlu0 %1405  ;;  %v7165_v1 = vpop.permute.xlu1 %1131 }
 0x1bc   : > { %5565 = vmatprep.subr.mxu1 %v1406_v14  ;;  %v970_v14 = vsub.f32 %v6563_v42, %v9717_v20 }
 0x1bd   : > { %1439 = vrot.lane.b32.xlu0 %v6996_v36, %s5994_s24  ;;  %v971_v36 = vsub.f32 %v6554_v41, %v9695_v7 }
 0x1be   : > { %1521 = vrot.lane.b32.xlu1 %v6537_v28, %s5994_s24  ;;  %v946_v28 = vsub.f32 %v6674_v48, %v6855_v53  ;;  %v945_v53 = vsub.f32 %v6692_v37, %v6863_v47 }
 0x1bf   : > { %v1374_v38 = vpop.permute.xlu0 %1373  ;;  %v7175_v0 = vpop.permute.xlu1 %1195 }
 0x1c0   : > { %5566 = vmatpush3.msra.mxu1 %v1374_v38 }
 0x1c1   : > { %1469 = vrot.lane.b32.xlu0 %v947_v50, %s5994_s24 }
 0x1c2   : > { %1551 = vrot.lane.b32.xlu1 %v972_v52, %s5994_s24  ;;  %v969_v52 = vsub.f32 %v6591_v29, %v9697_v24 }
 0x1c3   : > { %v1404_v40 = vpop.permute.xlu0 %1403  ;;  %v7179_v54 = vpop.permute.xlu1 %1129 }
 0x1c4   : > { %5567 = vmatprep.subr.mxu1 %v1404_v40 }
 0x1c5   : > { %1437 = vrot.lane.b32.xlu0 %v7005_v12, %s5994_s24  ;;  %v1211_v12 = vld [vmem:[%s9558_s2 + $0x50] sm:$0xff] }
 0x1c6   : > { %1519 = vrot.lane.b32.xlu1 %v6547_v58, %s5994_s24  ;;  %v1201_v58 = vld [vmem:[%s9558_s2] sm:$0xff] }
 0x1c7   : > { %v1372_v44 = vpop.permute.xlu0 %1371  ;;  %v7189_v49 = vpop.permute.xlu1 %1193 }
 0x1c8   : > { %5568 = vmatpush3.msra.mxu1 %v1372_v44 }
 0x1c9   : > { %1467 = vrot.lane.b32.xlu0 %v946_v28, %s5994_s24  ;;  %v1229_v28 = vld [vmem:[%s9558_s2 + $0xe0] sm:$0xff] }
 0x1ca   : > { %1549 = vrot.lane.b32.xlu1 %v971_v36, %s5994_s24  ;;  %v1238_v36 = vld [vmem:[%s9558_s2 + $0x128] sm:$0xff] }
 0x1cb   : > { %v1402_v6 = vpop.permute.xlu0 %1401  ;;  %v7193_v2 = vpop.permute.xlu1 %1127 }
 0x1cc   : > { %5569 = vmatprep.subr.mxu1 %v1402_v6 }
 0x1cd   : > { %1435 = vrot.lane.b32.xlu0 %v7027_v16, %s5994_s24  ;;  %v1220_v16 = vld [vmem:[%s9558_s2 + $0x98] sm:$0xff] }
 0x1ce   : > { %1517 = vrot.lane.b32.xlu1 %v6554_v41, %s5994_s24  ;;  %v1210_v41 = vld [vmem:[%s9558_s2 + $0x48] sm:$0xff] }
 0x1cf   : > { %v1370_v7 = vpop.permute.xlu0 %1369  ;;  %v7209_v50 = vpop.permute.xlu1 %1191 }
 0x1d0   : > { %5570 = vmatpush3.msra.mxu1 %v1370_v7 }
 0x1d1   : > { %1465 = vrot.lane.b32.xlu0 %v945_v53, %s5994_s24  ;;  %1866 = vmatmul.mubr.f32.vlgmr.msra.gmra.mxu1 %v1201_v58  ;;  %v1237_v58 = vld [vmem:[%s9558_s2 + $0x120] sm:$0xff]  ;;  %v968_v53 = vsub.f32 %v6604_v39, %v9698_v5 }
 0x1d2   : > { %1547 = vrot.lane.b32.xlu1 %v970_v14, %s5994_s24  ;;  %1870 = vmatprep.mubr.f32.mxu1 %v1211_v12  ;;  %v1247_v12 = vld [vmem:[%s9558_s2 + $0x170] sm:$0xff]  ;;  %v1256_v14 = vld [vmem:[%s9558_s2 + $0x1b8] sm:$0xff] }
 0x1d3   : > { %v1496_v47 = vpop.permute.xlu0 %1495  ;;  %v7219_v38 = vpop.permute.xlu1 %1125 }
 0x1d4   : > { %5595 = vmatprep.subr.mxu1 %v1496_v47  ;;  %v1255_v47 = vld [vmem:[%s9558_s2 + $0x1b0] sm:$0xff] }
 0x1d5   : > { %1433 = vrot.lane.b32.xlu0 %v7045_v13, %s5994_s24  ;;  %1871 = vmatmul.mubr.f32.gmra.mxu1 %v1210_v41  ;;  %v1228_v13 = vld [vmem:[%s9558_s2 + $0xd8] sm:$0xff] }
 0x1d6   : > { %1515 = vrot.lane.b32.xlu1 %v6563_v42, %s5994_s24  ;;  %1875 = vmatprep.mubr.f32.mxu1 %v1220_v16  ;;  %v9718_v42 = vld [vmem:[#allocation24_spill] sm:$0xff]  ;;  %v967_v16 = vsub.f32 %v6622_v4, %v9699_v10  ;;  %v1264_v10 = vld [vmem:[%s9558_s2 + $0x1f8] sm:$0xff] }
 0x1d7   : > { %v1464_v40 = vpop.permute.xlu0 %1463  ;;  %v7233_v44 = vpop.permute.xlu1 %1189 }
 0x1d8   : > { %5596 = vmatpush3.msra.mxu1 %v1464_v40 }
 0x1d9   : > { %1545 = vrot.lane.b32.xlu0 %v969_v52, %s5994_s24  ;;  %1876 = vmatmul.mubr.f32.gmra.mxu1 %v1219_v35  ;;  %v1265_v52 = vld [vmem:[%s9558_s2 + $0x200] sm:$0xff] }
 0x1da   : > { %1623 = vrot.lane.b32.xlu1 %v9718_v42, %s5994_s24  ;;  %1880 = vmatprep.mubr.f32.mxu1 %v1229_v28  ;;  %v1204_v42 = vld [vmem:[%s9558_s2 + $0x18] sm:$0xff] }
 0x1db   : > { %v1494_v24 = vpop.permute.xlu0 %1493  ;;  %v7244_v6 = vpop.permute.xlu1 %1123 }
 0x1dc   : > { %5597 = vmatprep.subr.mxu1 %v1494_v24 }
 0x1dd   : > { %1513 = vrot.lane.b32.xlu0 %v6591_v29, %s5994_s24  ;;  %1881 = vmatmul.mubr.f32.gmra.mxu1 %v1228_v13  ;;  %v9719_v29 = vld [vmem:[#allocation26_spill] sm:$0xff]  ;;  %v966_v13 = vsub.f32 %v9705_v60, %v9700_v27  ;;  %v965_v27 = vsub.f32 %v9709_v34, %v9701_v45  ;;  %v964_v45 = vsub.f32 %v9713_v62, %v9702_v33 }
 0x1de   : > { %1591 = vrot.lane.b32.xlu1 %v7055_v17, %s5994_s24  ;;  %1885 = vmatprep.mubr.f32.mxu1 %v1238_v36  ;;  %v1246_v17 = vld [vmem:[%s9558_s2 + $0x168] sm:$0xff]  ;;  %v963_v33 = vsub.f32 %v9715_v15, %v9703_v57  ;;  %v962_v57 = vsub.f32 %v6674_v48, %v9704_v21  ;;  %v961_v21 = vsub.f32 %v6692_v37, %v9707_v18 }
 0x1df   : > { %v1462_v7 = vpop.permute.xlu0 %1461 }
 0x1e0   : > { %v7258_v20 = vpop.permute.xlu1 %1187  ;;  %5598 = vmatpush3.msra.mxu1 %v1462_v7 }
 0x1e1   : > { %1543 = vrot.lane.b32.xlu0 %v968_v53, %s5994_s24  ;;  %1886 = vmatmul.mubr.f32.gmra.mxu1 %v1237_v58  ;;  %v9721_v58 = vld [vmem:[#allocation28_spill] sm:$0xff] }
 0x1e2   : > { %1621 = vrot.lane.b32.xlu1 %v9719_v29, %s5994_s24  ;;  %1890 = vmatprep.mubr.f32.mxu1 %v1247_v12  ;;  %v9722_v12 = vld [vmem:[#allocation29_spill] sm:$0xff] }
 0x1e3   : > { %v1492_v5 = vpop.permute.xlu0 %1491 }
 0x1e4   : > { %v7269_v41 = vpop.permute.xlu1 %1121  ;;  %5599 = vmatprep.subr.mxu1 %v1492_v5  ;;  %v9723_v5 = vld [vmem:[#allocation30_spill] sm:$0xff] }
 0x1e5   : > { %1511 = vrot.lane.b32.xlu0 %v6604_v39, %s5994_s24  ;;  %1891 = vmatmul.mubr.f32.gmra.mxu1 %v1246_v17  ;;  %v9720_v39 = vld [vmem:[#allocation27_spill] sm:$0xff] }
 0x1e6   : > { %1589 = vrot.lane.b32.xlu1 %v7067_v11, %s5994_s24  ;;  %1895 = vmatprep.mubr.f32.mxu1 %v1256_v14 }
 0x1e7   : > { %v1460_v35 = vpop.permute.xlu0 %1459 }
 0x1e8   : > { %v7283_v40 = vpop.permute.xlu1 %1185  ;;  %5600 = vmatpush3.msra.mxu1 %v1460_v35 }
 0x1e9   : > { %1541 = vrot.lane.b32.xlu0 %v967_v16, %s5994_s24  ;;  %1896 = vmatmul.mubr.f32.gmra.mxu1 %v1255_v47  ;;  %v9724_v16 = vld [vmem:[#allocation31_spill] sm:$0xff] }
 0x1ea   : > { %1619 = vrot.lane.b32.xlu1 %v9720_v39, %s5994_s24  ;;  %1900 = vmatprep.mubr.f32.mxu1 %v1265_v52  ;;  %v1206_v39 = vld [vmem:[%s9558_s2 + $0x28] sm:$0xff] }
 0x1eb   : > { %v1490_v11 = vpop.permute.xlu0 %1489  ;;  %2075 = vmatprep.mubr.f32.mxu0 %v1206_v39  ;;  %v2355_v39 = vld [vmem:[%s7471_s16 + $0x28] sm:$0xff] }
 0x1ec   : > { %v1458_v28 = vpop.permute.xlu1 %1457  ;;  %5601 = vmatprep.subr.mxu1 %v1490_v11 }
 0x1ed   : > { %1509 = vrot.lane.b32.xlu0 %v6622_v4, %s5994_s24  ;;  %5602 = vmatpush3.msra.mxu1 %v1458_v28 }
 0x1ee   : > { %1587 = vrot.lane.b32.xlu1 %v7077_v9, %s5994_s24  ;;  %1901 = vmatmul.mubr.f32.gmra.mxu1 %v1264_v10 }
 0x1ef   : > { %v7300_v24 = vpop.permute.xlu0 %1183  ;;  %1970 = vmatprep.mubr.f32.mxu1 %v1204_v42 }
 0x1f0   : > { %v1488_v36 = vpop.permute.xlu1 %1487 }
 0x1f1   : > { %5603 = vmatprep.subr.mxu1 %v1488_v36  ;;  %1539 = vrot.lane.b32.xlu0 %v966_v13, %s5994_s24  ;;  %v1222_v13 = vld [vmem:[%s9558_s2 + $0xa8] sm:$0xff] }
 0x1f2   : > { %1617 = vrot.lane.b32.xlu1 %v9721_v58, %s5994_s24  ;;  %v1231_v58 = vld [vmem:[%s9558_s2 + $0xf0] sm:$0xff] }
 0x1f3   : > { %v1456_v53 = vpop.permute.xlu0 %1455 }
 0x1f4   : > { %v7305_v4 = vpop.permute.xlu1 %1181  ;;  %5604 = vmatpush3.msra.mxu1 %v1456_v53  ;;  %v1230_v53 = vld [vmem:[%s9558_s2 + $0xe8] sm:$0xff] }
 0x1f5   : > { %1507 = vrot.lane.b32.xlu0 %v9705_v60, %s5994_s24 }
 0x1f6   : > { %1585 = vrot.lane.b32.xlu1 %v7089_v32, %s5994_s24 }
 0x1f7   : > { %v1486_v9 = vpop.permute.xlu0 %1485 }
 0x1f8   : > { %v1454_v7 = vpop.permute.xlu1 %1453  ;;  %5605 = vmatprep.subr.mxu1 %v1486_v9 }
 0x1f9   : > { %1537 = vrot.lane.b32.xlu0 %v965_v27, %s5994_s24  ;;  %5606 = vmatpush3.msra.mxu1 %v1454_v7  ;;  %v1240_v27 = vld [vmem:[%s9558_s2 + $0x138] sm:$0xff]  ;;  %v1239_v7 = vld [vmem:[%s9558_s2 + $0x130] sm:$0xff] }
 0x1fa   : > { %1615 = vrot.lane.b32.xlu1 %v9722_v12, %s5994_s24 }
 0x1fb   : > { %v7316_v29 = vpop.permute.xlu0 %1179 }
 0x1fc   : > { %v1484_v17 = vpop.permute.xlu1 %1483 }
 0x1fd   : > { %5607 = vmatprep.subr.mxu1 %v1484_v17  ;;  %1505 = vrot.lane.b32.xlu0 %v9709_v34, %s5994_s24 }
 0x1fe   : > { %1583 = vrot.lane.b32.xlu1 %v7099_v25, %s5994_s24 }
 0x1ff   : > { %v1452_v32 = vpop.permute.xlu0 %1451 }
 0x200   : > { %v7324_v60 = vpop.permute.xlu1 %1177  ;;  %5608 = vmatpush3.msra.mxu1 %v1452_v32 }
 0x201   : > { %1535 = vrot.lane.b32.xlu0 %v964_v45, %s5994_s24  ;;  %v1248_v45 = vld [vmem:[%s9558_s2 + $0x178] sm:$0xff] }
 0x202   : > { %1613 = vrot.lane.b32.xlu1 %v9723_v5, %s5994_s24  ;;  %v2351_v5 = vld [vmem:[%s7471_s16 + $0x8] sm:$0xff] }
 0x203   : > { %v1482_v14 = vpop.permute.xlu0 %1481 }
 0x204   : > { %v1450_v47 = vpop.permute.xlu1 %1449  ;;  %5609 = vmatprep.subr.mxu1 %v1482_v14  ;;  %v2350_v14 = vld [vmem:[%s7471_s16] sm:$0xff] }
 0x205   : > { %1503 = vrot.lane.b32.xlu0 %v9713_v62, %s5994_s24  ;;  %5610 = vmatpush3.msra.mxu1 %v1450_v47 }
 0x206   : > { %1581 = vrot.lane.b32.xlu1 %v7109_v56, %s5994_s24 }
 0x207   : > { %v7335_v25 = vpop.permute.xlu0 %1175 }
 0x208   : > { %v1480_v34 = vpop.permute.xlu1 %1479 }
 0x209   : > { %5611 = vmatprep.subr.mxu1 %v1480_v34  ;;  %1533 = vrot.lane.b32.xlu0 %v963_v33, %s5994_s24  ;;  %v1257_v33 = vld [vmem:[%s9558_s2 + $0x1c0] sm:$0xff]  ;;  %v1267_v34 = vld [vmem:[%s9558_s2 + $0x210] sm:$0xff] }
 0x20a   : > { %1611 = vrot.lane.b32.xlu1 %v9724_v16, %s5994_s24  ;;  %v2353_v16 = vld [vmem:[%s7471_s16 + $0x18] sm:$0xff] }
 0x20b   : > { %v1448_v35 = vpop.permute.xlu0 %1447 }
 0x20c   : > { %v7340_v52 = vpop.permute.xlu1 %1173  ;;  %5612 = vmatpush3.msra.mxu1 %v1448_v35  ;;  %v2352_v35 = vld [vmem:[%s7471_s16 + $0x10] sm:$0xff] }
 0x20d   : > { %1501 = vrot.lane.b32.xlu0 %v9715_v15, %s5994_s24 }
 0x20e   : > { %1579 = vrot.lane.b32.xlu1 %v7117_v51, %s5994_s24 }
 0x20f   : > { %v1478_v56 = vpop.permute.xlu0 %1477 }
 0x210   : > { %v1560_v62 = vpop.permute.xlu1 %1559  ;;  %5613 = vmatprep.subr.mxu1 %v1478_v56 }
 0x211   : > { %5651 = vmatprep.subr.mxu0 %v1560_v62  ;;  %1531 = vrot.lane.b32.xlu0 %v962_v57, %s5994_s24  ;;  %v1266_v57 = vld [vmem:[%s9558_s2 + $0x208] sm:$0xff]  ;;  %v1208_v62 = vld [vmem:[%s9558_s2 + $0x38] sm:$0xff] }
 0x212   : > { %1609 = vrot.lane.b32.xlu1 %v6837_v23, %s5994_s24 }
 0x213   : > { %v1446_v15 = vpop.permute.xlu0 %1445 }
 0x214   : > { %v1528_v11 = vpop.permute.xlu1 %1527  ;;  %5614 = vmatpush3.msra.mxu1 %v1446_v15  ;;  %v2354_v15 = vld [vmem:[%s7471_s16 + $0x20] sm:$0xff] }
 0x215   : > { %5652 = vmatpush3.msra.mxu0 %v1528_v11  ;;  %1499 = vrot.lane.b32.xlu0 %v6674_v48, %s5994_s24 }
 0x216   : > { %1577 = vrot.lane.b32.xlu1 %v7130_v8, %s5994_s24 }
 0x217   : > { %v7360_v51 = vpop.permute.xlu0 %1171 }
 0x218   : > { %v1476_v10 = vpop.permute.xlu1 %1475 }
 0x219   : > { %5615 = vmatprep.subr.mxu1 %v1476_v10  ;;  %1529 = vrot.lane.b32.xlu0 %v961_v21, %s5994_s24  ;;  %v2356_v10 = vld [vmem:[%s7471_s16 + $0x30] sm:$0xff] }
 0x21a   : > { %1607 = vrot.lane.b32.xlu1 %v6851_v55, %s5994_s24 }
 0x21b   : > { %v1558_v23 = vpop.permute.xlu0 %1557 }
 0x21c   : > { %v1444_v28 = vpop.permute.xlu1 %1443  ;;  %5653 = vmatprep.subr.mxu0 %v1558_v23 }
 0x21d   : > { %5616 = vmatpush3.msra.mxu1 %v1444_v28  ;;  %1497 = vrot.lane.b32.xlu0 %v6692_v37, %s5994_s24 }
 0x21e   : > { %1575 = vrot.lane.b32.xlu1 %v7137_v46, %s5994_s24 }
 0x21f   : > { %v1526_v48 = vpop.permute.xlu0 %1525 }
 0x220   : > { %v7369_v8 = vpop.permute.xlu1 %1169  ;;  %5654 = vmatpush3.msra.mxu0 %v1526_v48 }
 0x221   : > { %1605 = vrot.lane.b32.xlu0 %v6873_v19, %s5994_s24 }
 0x222   : > { %1655 = vrot.lane.b32.xlu1 %v7147_v63, %s5994_s24 }
 0x223   : > { %v1474_v55 = vpop.permute.xlu0 %1473 }
 0x224   : > { %v1556_v18 = vpop.permute.xlu1 %1555  ;;  %5617 = vmatprep.subr.mxu1 %v1474_v55 }
 0x225   : > { %5655 = vmatprep.subr.mxu0 %v1556_v18  ;;  %1573 = vrot.lane.b32.xlu0 %v7151_v3, %s5994_s24 }
 0x226   : > { %1603 = vrot.lane.b32.xlu1 %v6894_v59, %s5994_s24 }
 0x227   : > { %v1442_v37 = vpop.permute.xlu0 %1441 }
 0x228   : > { %v1524_v46 = vpop.permute.xlu1 %1523  ;;  %5618 = vmatpush3.msra.mxu1 %v1442_v37 }
 0x229   : > { %5656 = vmatpush3.msra.mxu0 %v1524_v46  ;;  %1653 = vrot.lane.b32.xlu0 %v7161_v43, %s5994_s24 }
 0x22a   : > { %1571 = vrot.lane.b32.xlu1 %v7165_v1, %s5994_s24 }
 0x22b   : > { %v1472_v19 = vpop.permute.xlu0 %1471 }
 0x22c   : > { %v1554_v63 = vpop.permute.xlu1 %1553  ;;  %5619 = vmatprep.subr.mxu1 %v1472_v19 }
 0x22d   : > { %5657 = vmatprep.subr.mxu0 %v1554_v63  ;;  %1601 = vrot.lane.b32.xlu0 %v6915_v22, %s5994_s24 }
 0x22e   : > { %1651 = vrot.lane.b32.xlu1 %v7175_v0, %s5994_s24 }
 0x22f   : > { %v1440_v59 = vpop.permute.xlu0 %1439 }
 0x230   : > { %v1522_v3 = vpop.permute.xlu1 %1521  ;;  %5620 = vmatpush3.msra.mxu1 %v1440_v59 }
 0x231   : > { %5658 = vmatpush3.msra.mxu0 %v1522_v3  ;;  %1569 = vrot.lane.b32.xlu0 %v7179_v54, %s5994_s24 }
 0x232   : > { %1599 = vrot.lane.b32.xlu1 %v6934_v26, %s5994_s24 }
 0x233   : > { %v1470_v43 = vpop.permute.xlu0 %1469 }
 0x234   : > { %v1552_v1 = vpop.permute.xlu1 %1551  ;;  %5621 = vmatprep.subr.mxu1 %v1470_v43 }
 0x235   : > { %5659 = vmatprep.subr.mxu0 %v1552_v1  ;;  %1649 = vrot.lane.b32.xlu0 %v7189_v49, %s5994_s24 }
 0x236   : > { %1567 = vrot.lane.b32.xlu1 %v7193_v2, %s5994_s24 }
 0x237   : > { %v1438_v22 = vpop.permute.xlu0 %1437 }
 0x238   : > { %v1520_v0 = vpop.permute.xlu1 %1519  ;;  %5622 = vmatpush3.msra.mxu1 %v1438_v22 }
 0x239   : > { %5660 = vmatpush3.msra.mxu0 %v1520_v0  ;;  %1597 = vrot.lane.b32.xlu0 %v6962_v31, %s5994_s24 }
 0x23a   : > { %1647 = vrot.lane.b32.xlu1 %v7209_v50, %s5994_s24 }
 0x23b   : > { %v1468_v26 = vpop.permute.xlu0 %1467 }
 0x23c   : > { %v1550_v54 = vpop.permute.xlu1 %1549  ;;  %5623 = vmatprep.subr.mxu1 %v1468_v26 }
 0x23d   : > { %5661 = vmatprep.subr.mxu0 %v1550_v54  ;;  %1565 = vrot.lane.b32.xlu0 %v7219_v38, %s5994_s24  ;;  %v1203_v38 = vld [vmem:[%s9558_s2 + $0x10] sm:$0xff] }
 0x23e   : > { %1595 = vrot.lane.b32.xlu1 %v6988_v30, %s5994_s24 }
 0x23f   : > { %v1436_v49 = vpop.permute.xlu0 %1435 }
 0x240   : > { %v1518_v2 = vpop.permute.xlu1 %1517  ;;  %5624 = vmatpush3.msra.mxu1 %v1436_v49  ;;  %v1205_v49 = vld [vmem:[%s9558_s2 + $0x20] sm:$0xff] }
 0x241   : > { %5662 = vmatpush3.msra.mxu0 %v1518_v2  ;;  %1645 = vrot.lane.b32.xlu0 %v7233_v44, %s5994_s24  ;;  %v1213_v44 = vld [vmem:[%s9558_s2 + $0x60] sm:$0xff] }
 0x242   : > { %1563 = vrot.lane.b32.xlu1 %v7244_v6, %s5994_s24  ;;  %v1212_v6 = vld [vmem:[%s9558_s2 + $0x58] sm:$0xff] }
 0x243   : > { %v1466_v31 = vpop.permute.xlu0 %1465 }
 0x244   : > { %v1548_v50 = vpop.permute.xlu1 %1547  ;;  %5625 = vmatprep.subr.mxu1 %v1466_v31  ;;  %v1215_v31 = vld [vmem:[%s9558_s2 + $0x70] sm:$0xff] }
 0x245   : > { %5663 = vmatprep.subr.mxu0 %v1548_v50  ;;  %1593 = vrot.lane.b32.xlu0 %v7011_v61, %s5994_s24 }
 0x246   : > { %1643 = vrot.lane.b32.xlu1 %v7258_v20, %s5994_s24 }
 0x247   : > { %v1434_v30 = vpop.permute.xlu0 %1433 }
 0x248   : > { %v1516_v42 = vpop.permute.xlu1 %1515  ;;  %5626 = vmatpush3.msra.mxu1 %v1434_v30  ;;  %v1214_v30 = vld [vmem:[%s9558_s2 + $0x68] sm:$0xff] }
 0x249   : > { %5664 = vmatpush3.msra.mxu0 %v1516_v42  ;;  %1561 = vrot.lane.b32.xlu0 %v7269_v41, %s5994_s24  ;;  %v1224_v42 = vld [vmem:[%s9558_s2 + $0xb8] sm:$0xff] }
 0x24a   : > { %1641 = vrot.lane.b32.xlu1 %v7283_v40, %s5994_s24  ;;  %1971 = vmatmul.mubr.f32.vlgmr.msra.gmra.mxu1 %v1203_v38  ;;  %v1221_v40 = vld [vmem:[%s9558_s2 + $0xa0] sm:$0xff] }
 0x24b   : > { %v1546_v61 = vpop.permute.xlu0 %1545  ;;  %1975 = vmatprep.mubr.f32.mxu1 %v1213_v44 }
 0x24c   : > { %v1624_v20 = vpop.permute.xlu1 %1623  ;;  %5665 = vmatprep.subr.mxu0 %v1546_v61  ;;  %v1223_v61 = vld [vmem:[%s9558_s2 + $0xb0] sm:$0xff] }
 0x24d   : > { %5707 = vmatprep.subr.mxu1 %v1624_v20  ;;  %1639 = vrot.lane.b32.xlu0 %v7300_v24, %s5994_s24  ;;  %v1233_v20 = vld [vmem:[%s9558_s2 + $0x100] sm:$0xff] }
 0x24e   : > { %1637 = vrot.lane.b32.xlu1 %v7305_v4, %s5994_s24  ;;  %1976 = vmatmul.mubr.f32.gmra.mxu1 %v1212_v6 }
 0x24f   : > { %v1514_v41 = vpop.permute.xlu0 %1513  ;;  %1980 = vmatprep.mubr.f32.mxu1 %v1222_v13 }
 0x250   : > { %v1592_v36 = vpop.permute.xlu1 %1591  ;;  %5666 = vmatpush3.msra.mxu0 %v1514_v41  ;;  %v1232_v41 = vld [vmem:[%s9558_s2 + $0xf8] sm:$0xff] }
 0x251   : > { %5708 = vmatpush3.msra.mxu1 %v1592_v36  ;;  %1635 = vrot.lane.b32.xlu0 %v7316_v29, %s5994_s24  ;;  %v1249_v29 = vld [vmem:[%s9558_s2 + $0x180] sm:$0xff]  ;;  %v1242_v36 = vld [vmem:[%s9558_s2 + $0x148] sm:$0xff] }
 0x252   : > { %1633 = vrot.lane.b32.xlu1 %v7324_v60, %s5994_s24  ;;  %1981 = vmatmul.mubr.f32.gmra.mxu1 %v1221_v40  ;;  %v1258_v60 = vld [vmem:[%s9558_s2 + $0x1c8] sm:$0xff] }
 0x253   : > { %v1544_v24 = vpop.permute.xlu0 %1543  ;;  %1985 = vmatprep.mubr.f32.mxu1 %v1231_v58 }
 0x254   : > { %v1622_v4 = vpop.permute.xlu1 %1621  ;;  %5667 = vmatprep.subr.mxu0 %v1544_v24  ;;  %v1241_v24 = vld [vmem:[%s9558_s2 + $0x140] sm:$0xff] }
 0x255   : > { %5709 = vmatprep.subr.mxu1 %v1622_v4  ;;  %1631 = vrot.lane.b32.xlu0 %v7335_v25, %s5994_s24  ;;  %v1251_v4 = vld [vmem:[%s9558_s2 + $0x190] sm:$0xff] }
 0x256   : > { %1629 = vrot.lane.b32.xlu1 %v7340_v52, %s5994_s24  ;;  %1986 = vmatmul.mubr.f32.gmra.mxu1 %v1230_v53 }
 0x257   : > { %v1512_v9 = vpop.permute.xlu0 %1511  ;;  %1990 = vmatprep.mubr.f32.mxu1 %v1240_v27 }
 0x258   : > { %v1590_v12 = vpop.permute.xlu1 %1589  ;;  %5668 = vmatpush3.msra.mxu0 %v1512_v9  ;;  %v1250_v9 = vld [vmem:[%s9558_s2 + $0x188] sm:$0xff] }
 0x259   : > { %5710 = vmatpush3.msra.mxu1 %v1590_v12  ;;  %1627 = vrot.lane.b32.xlu0 %v7360_v51, %s5994_s24  ;;  %v2357_v51 = vld [vmem:[%s7471_s16 + $0x38] sm:$0xff] }
 0x25a   : > { %1625 = vrot.lane.b32.xlu1 %v7369_v8, %s5994_s24  ;;  %1991 = vmatmul.mubr.f32.gmra.mxu1 %v1239_v7  ;;  %v1260_v12 = vld [vmem:[%s9558_s2 + $0x1d8] sm:$0xff] }
 0x25b   : > { %v1542_v17 = vpop.permute.xlu0 %1541  ;;  %1995 = vmatprep.mubr.f32.mxu1 %v1249_v29 }
 0x25c   : > { %v1620_v32 = vpop.permute.xlu1 %1619  ;;  %5669 = vmatprep.subr.mxu0 %v1542_v17  ;;  %v1259_v17 = vld [vmem:[%s9558_s2 + $0x1d0] sm:$0xff] }
 0x25d   : > { %5711 = vmatprep.subr.mxu1 %v1620_v32  ;;  %2366 = vrot.lane.b32.xlu0 %v2350_v14, %s5994_s24  ;;  %v1269_v32 = vld [vmem:[%s9558_s2 + $0x220] sm:$0xff] }
 0x25e   : > { %1996 = vmatmul.mubr.f32.gmra.mxu1 %v1248_v45  ;;  %2368 = vrot.lane.b32.xlu1 %v2351_v5, %s5994_s24  ;;  %v1268_v5 = vld [vmem:[%s9558_s2 + $0x218] sm:$0xff] }
 0x25f   : > { %v1510_v47 = vpop.permute.xlu0 %1509  ;;  %2000 = vmatprep.mubr.f32.mxu1 %v1258_v60 }
 0x260   : > { %v1588_v25 = vpop.permute.xlu1 %1587  ;;  %5670 = vmatpush3.msra.mxu0 %v1510_v47  ;;  %v1209_v47 = vld [vmem:[%s9558_s2 + $0x40] sm:$0xff] }
 0x261   : > { %5712 = vmatpush3.msra.mxu1 %v1588_v25  ;;  %2370 = vrot.lane.b32.xlu0 %v2352_v35, %s5994_s24 }
 0x262   : > { %2001 = vmatmul.mubr.f32.gmra.mxu1 %v1257_v33  ;;  %2372 = vrot.lane.b32.xlu1 %v2353_v16, %s5994_s24 }
 0x263   : > { %v1540_v52 = vpop.permute.xlu0 %1539  ;;  %2005 = vmatprep.mubr.f32.mxu1 %v1267_v34 }
 0x264   : > { %v1618_v56 = vpop.permute.xlu1 %1617  ;;  %5671 = vmatprep.subr.mxu0 %v1540_v52 }
 0x265   : > { %5713 = vmatprep.subr.mxu1 %v1618_v56  ;;  %2374 = vrot.lane.b32.xlu0 %v2354_v15, %s5994_s24  ;;  %v1207_v56 = vld [vmem:[%s9558_s2 + $0x30] sm:$0xff] }
 0x266   : > { %2006 = vmatmul.mubr.f32.gmra.mxu1 %v1266_v57  ;;  %2376 = vrot.lane.b32.xlu1 %v2355_v39, %s5994_s24  ;;  %v1217_v39 = vld [vmem:[%s9558_s2 + $0x80] sm:$0xff] }
 0x267   : > { %v1508_v11 = vpop.permute.xlu0 %1507  ;;  %2180 = vmatprep.mubr.f32.mxu1 %v1208_v62 }
 0x268   : > { %v1586_v21 = vpop.permute.xlu1 %1585  ;;  %5672 = vmatpush3.msra.mxu0 %v1508_v11  ;;  %v1216_v11 = vld [vmem:[%s9558_s2 + $0x78] sm:$0xff] }
 0x269   : > { %5714 = vmatpush3.msra.mxu1 %v1586_v21  ;;  %2378 = vrot.lane.b32.xlu0 %v2356_v10, %s5994_s24 }
 0x26a   : > { %2380 = vrot.lane.b32.xlu1 %v2357_v51, %s5994_s24  ;;  %v1226_v51 = vld [vmem:[%s9558_s2 + $0xc8] sm:$0xff] }
 0x26b   : > { %v1538_v23 = vpop.permute.xlu0 %1537 }
 0x26c   : > { %v1616_v28 = vpop.permute.xlu1 %1615  ;;  %5673 = vmatprep.subr.mxu0 %v1538_v23  ;;  %v1225_v23 = vld [vmem:[%s9558_s2 + $0xc0] sm:$0xff] }
 0x26d   : > { %5715 = vmatprep.subr.mxu1 %v1616_v28 }
 0x26f   : > { %v1506_v48 = vpop.permute.xlu0 %1505 }
 0x270   : > { %v1584_v8 = vpop.permute.xlu1 %1583  ;;  %5674 = vmatpush3.msra.mxu0 %v1506_v48  ;;  %v1235_v48 = vld [vmem:[%s9558_s2 + $0x110] sm:$0xff] }
 0x271   : > { %5716 = vmatpush3.msra.mxu1 %v1584_v8 }
 0x273   : > { %v1536_v55 = vpop.permute.xlu0 %1535 }
 0x274   : > { %v1614_v18 = vpop.permute.xlu1 %1613  ;;  %5675 = vmatprep.subr.mxu0 %v1536_v55  ;;  %v1234_v55 = vld [vmem:[%s9558_s2 + $0x108] sm:$0xff] }
 0x275   : > { %5717 = vmatprep.subr.mxu1 %v1614_v18 }
 0x277   : > { %v1504_v37 = vpop.permute.xlu0 %1503 }
 0x278   : > { %v1582_v46 = vpop.permute.xlu1 %1581  ;;  %5676 = vmatpush3.msra.mxu0 %v1504_v37  ;;  %v1244_v37 = vld [vmem:[%s9558_s2 + $0x158] sm:$0xff] }
 0x279   : > { %5718 = vmatpush3.msra.mxu1 %v1582_v46 }
 0x27b   : > { %v1534_v19 = vpop.permute.xlu0 %1533 }
 0x27c   : > { %v1612_v63 = vpop.permute.xlu1 %1611  ;;  %5677 = vmatprep.subr.mxu0 %v1534_v19  ;;  %v1243_v19 = vld [vmem:[%s9558_s2 + $0x150] sm:$0xff] }
 0x27d   : > { %5719 = vmatprep.subr.mxu1 %v1612_v63 }
 0x27f   : > { %v1502_v59 = vpop.permute.xlu0 %1501 }
 0x280   : > { %v1580_v3 = vpop.permute.xlu1 %1579  ;;  %5678 = vmatpush3.msra.mxu0 %v1502_v59  ;;  %v1253_v59 = vld [vmem:[%s9558_s2 + $0x1a0] sm:$0xff] }
 0x281   : > { %5720 = vmatpush3.msra.mxu1 %v1580_v3 }
 0x283   : > { %v1532_v43 = vpop.permute.xlu0 %1531 }
 0x284   : > { %v1610_v1 = vpop.permute.xlu1 %1609  ;;  %5679 = vmatprep.subr.mxu0 %v1532_v43  ;;  %v1218_v43 = vld [vmem:[%s9558_s2 + $0x88] sm:$0xff] }
 0x285   : > { %5721 = vmatprep.subr.mxu1 %v1610_v1  ;;  %v1252_v1 = vld [vmem:[%s9558_s2 + $0x198] sm:$0xff] }
 0x287   : > { %v1500_v22 = vpop.permute.xlu0 %1499 }
 0x288   : > { %v1578_v0 = vpop.permute.xlu1 %1577  ;;  %5680 = vmatpush3.msra.mxu0 %v1500_v22  ;;  %v1227_v22 = vld [vmem:[%s9558_s2 + $0xd0] sm:$0xff] }
 0x289   : > { %5722 = vmatpush3.msra.mxu1 %v1578_v0  ;;  %v1262_v0 = vld [vmem:[%s9558_s2 + $0x1e8] sm:$0xff] }
 0x28b   : > { %v1530_v26 = vpop.permute.xlu0 %1529 }
 0x28c   : > { %v1608_v54 = vpop.permute.xlu1 %1607  ;;  %5681 = vmatprep.subr.mxu0 %v1530_v26  ;;  %v1236_v26 = vld [vmem:[%s9558_s2 + $0x118] sm:$0xff] }
 0x28d   : > { %5723 = vmatprep.subr.mxu1 %v1608_v54  ;;  %v1261_v54 = vld [vmem:[%s9558_s2 + $0x1e0] sm:$0xff] }
 0x28f   : > { %v1498_v2 = vpop.permute.xlu0 %1497 }
 0x290   : > { %v1576_v50 = vpop.permute.xlu1 %1575  ;;  %5682 = vmatpush3.msra.mxu0 %v1498_v2  ;;  %v1271_v2 = vld [vmem:[%s9558_s2 + $0x230] sm:$0xff] }
 0x291   : > { %5724 = vmatpush3.msra.mxu1 %v1576_v50  ;;  %2076 = vmatmul.mubr.f32.vlgmr.msra.gmra.mxu0 %v1205_v49  ;;  %v1245_v49 = vld [vmem:[%s9558_s2 + $0x160] sm:$0xff]  ;;  %v1270_v50 = vld [vmem:[%s9558_s2 + $0x228] sm:$0xff] }
 0x292   : > { %2080 = vmatprep.mubr.f32.mxu0 %v1215_v31  ;;  %v1254_v31 = vld [vmem:[%s9558_s2 + $0x1a8] sm:$0xff] }
 0x293   : > { %v1606_v38 = vpop.permute.xlu0 %1605 }
 0x294   : > { %v1656_v44 = vpop.permute.xlu1 %1655  ;;  %5725 = vmatprep.subr.mxu1 %v1606_v38  ;;  %v1272_v38 = vld [vmem:[%s9558_s2 + $0x238] sm:$0xff] }
 0x295   : > { %5787 = vmatprep.subr.mxu0 %v1656_v44  ;;  %2081 = vmatmul.mubr.f32.gmra.mxu0 %v1214_v30  ;;  %v1263_v30 = vld [vmem:[%s9558_s2 + $0x1f0] sm:$0xff] }
 0x296   : > { %5788 = vmatpush3.msra.mxu0 %v1656_v44  ;;  %2085 = vmatprep.mubr.f32.mxu0 %v1224_v42  ;;  %v5571_v42 = vpop.f32.mrf.mxu1 }
 0x297   : > { %v1574_v6 = vpop.permute.xlu0 %1573 }
 0x298   : > { %v1604_v13 = vpop.permute.xlu1 %1603  ;;  %5726 = vmatpush3.msra.mxu1 %v1574_v6  ;;  %v5572_v44 = vpop.f32.mrf.mxu1 }
 0x299   : > { %2086 = vmatmul.mubr.f32.gmra.mxu0 %v1223_v61  ;;  %5727 = vmatprep.subr.mxu1 %v1604_v13 }
 0x29a   : > { %2090 = vmatprep.mubr.f32.mxu0 %v1233_v20  ;;  %v5574_v61 = vpop.f32.mrf.mxu1 }
 0x29b   : > { %v1654_v40 = vpop.permute.xlu0 %1653 }
 0x29c   : > { %v1572_v58 = vpop.permute.xlu1 %1571  ;;  %5789 = vmatprep.subr.mxu0 %v1654_v40  ;;  %v5575_v6 = vpop.f32.mrf.mxu1 }
 0x29d   : > { %5728 = vmatpush3.msra.mxu1 %v1572_v58  ;;  %2091 = vmatmul.mubr.f32.gmra.mxu0 %v1232_v41 }
 0x29e   : > { %5790 = vmatpush3.msra.mxu0 %v1654_v40  ;;  %2095 = vmatprep.mubr.f32.mxu0 %v1242_v36  ;;  %v5577_v20 = vpop.f32.mrf.mxu1 }
 0x29f   : > { %v1602_v53 = vpop.permute.xlu0 %1601 }
 0x2a0   : > { %v1652_v27 = vpop.permute.xlu1 %1651  ;;  %5729 = vmatprep.subr.mxu1 %v1602_v53  ;;  %v5578_v13 = vpop.f32.mrf.mxu1 }
 0x2a1   : > { %5791 = vmatprep.subr.mxu0 %v1652_v27  ;;  %2096 = vmatmul.mubr.f32.gmra.mxu0 %v1241_v24 }
 0x2a2   : > { %5792 = vmatpush3.msra.mxu0 %v1652_v27  ;;  %2100 = vmatprep.mubr.f32.mxu0 %v1251_v4  ;;  %v5580_v41 = vpop.f32.mrf.mxu1 }
 0x2a3   : > { %v1570_v7 = vpop.permute.xlu0 %1569 }
 0x2a4   : > { %v1600_v29 = vpop.permute.xlu1 %1599  ;;  %5730 = vmatpush3.msra.mxu1 %v1570_v7  ;;  %v5581_v40 = vpop.f32.mrf.mxu1 }
 0x2a5   : > { %2101 = vmatmul.mubr.f32.gmra.mxu0 %v1250_v9  ;;  %5731 = vmatprep.subr.mxu1 %v1600_v29 }
 0x2a6   : > { %2105 = vmatprep.mubr.f32.mxu0 %v1260_v12  ;;  %v7615_v36 = vpop.f32.mrf.mxu1 }
 0x2a7   : > { %v1650_v45 = vpop.permute.xlu0 %1649 }
 0x2a8   : > { %v1568_v60 = vpop.permute.xlu1 %1567  ;;  %5793 = vmatprep.subr.mxu0 %v1650_v45  ;;  %v7617_v58 = vpop.f32.mrf.mxu1 }
 0x2a9   : > { %5732 = vmatpush3.msra.mxu1 %v1568_v60  ;;  %2106 = vmatmul.mubr.f32.gmra.mxu0 %v1259_v17 }
 0x2aa   : > { %5794 = vmatpush3.msra.mxu0 %v1650_v45  ;;  %2110 = vmatprep.mubr.f32.mxu0 %v1269_v32  ;;  %v7619_v24 = vpop.f32.mrf.mxu1 }
 0x2ab   : > { %v1598_v14 = vpop.permute.xlu0 %1597 }
 0x2ac   : > { %v1648_v33 = vpop.permute.xlu1 %1647  ;;  %5733 = vmatprep.subr.mxu1 %v1598_v14  ;;  %v7621_v53 = vpop.f32.mrf.mxu1 }
 0x2ad   : > { %5795 = vmatprep.subr.mxu0 %v1648_v33  ;;  %2111 = vmatmul.mubr.f32.gmra.mxu0 %v1268_v5 }
 0x2ae   : > { %5796 = vmatpush3.msra.mxu0 %v1648_v33  ;;  %5819 = vmatprep.mubr.f32.mxu0 %v1209_v47  ;;  %v7623_v4 = vpop.f32.mrf.mxu1 }
 0x2af   : > { %v1566_v25 = vpop.permute.xlu0 %1565 }
 0x2b0   : > { %v1596_v34 = vpop.permute.xlu1 %1595  ;;  %5734 = vmatpush3.msra.mxu1 %v1566_v25  ;;  %v7625_v27 = vpop.f32.mrf.mxu1 }
 0x2b1   : > { %5735 = vmatprep.subr.mxu1 %v1596_v34 }
 0x2b2   : > { %v7627_v9 = vpop.f32.mrf.mxu1 }
 0x2b3   : > { %v1646_v16 = vpop.permute.xlu0 %1645 }
 0x2b4   : > { %v1564_v35 = vpop.permute.xlu1 %1563  ;;  %5797 = vmatprep.subr.mxu0 %v1646_v16  ;;  %v7629_v7 = vpop.f32.mrf.mxu1 }
 0x2b5   : > { %5736 = vmatpush3.msra.mxu1 %v1564_v35  ;;  %5798 = vmatpush3.msra.mxu0 %v1646_v16 }
 0x2b7   : > { %v1594_v52 = vpop.permute.xlu0 %1593 }
 0x2b8   : > { %v1644_v57 = vpop.permute.xlu1 %1643  ;;  %5737 = vmatprep.subr.mxu1 %v1594_v52 }
 0x2b9   : > { %5799 = vmatprep.subr.mxu0 %v1644_v57 }
 0x2ba   : > { %5800 = vmatpush3.msra.mxu0 %v1644_v57 }
 0x2bb   : > { %v1562_v62 = vpop.permute.xlu0 %1561 }
 0x2bc   : > { %v1642_v15 = vpop.permute.xlu1 %1641  ;;  %5738 = vmatpush3.msra.mxu1 %v1562_v62 }
 0x2bd   : > { %5801 = vmatprep.subr.mxu0 %v1642_v15  ;;  %2181 = vmatmul.mubr.f32.vlgmr.msra.gmra.mxu1 %v1207_v56 }
 0x2be   : > { %5802 = vmatpush3.msra.mxu0 %v1642_v15  ;;  %2185 = vmatprep.mubr.f32.mxu1 %v1217_v39 }
 0x2bf   : > { %v1640_v21 = vpop.permute.xlu0 %1639 }
 0x2c0   : > { %v1638_v10 = vpop.permute.xlu1 %1637  ;;  %5803 = vmatprep.subr.mxu0 %v1640_v21 }
 0x2c1   : > { %2186 = vmatmul.mubr.f32.gmra.mxu1 %v1216_v11  ;;  %5804 = vmatpush3.msra.mxu0 %v1640_v21 }
 0x2c2   : > { %5805 = vmatprep.subr.mxu0 %v1638_v10  ;;  %2190 = vmatprep.mubr.f32.mxu1 %v1226_v51 }
 0x2c3   : > { %v1636_v28 = vpop.permute.xlu0 %1635  ;;  %5806 = vmatpush3.msra.mxu0 %v1638_v10 }
 0x2c4   : > { %v1634_v8 = vpop.permute.xlu1 %1633  ;;  %5807 = vmatprep.subr.mxu0 %v1636_v28 }
 0x2c5   : > { %2191 = vmatmul.mubr.f32.gmra.mxu1 %v1225_v23  ;;  %5808 = vmatpush3.msra.mxu0 %v1636_v28 }
 0x2c6   : > { %5809 = vmatprep.subr.mxu0 %v1634_v8  ;;  %2195 = vmatprep.mubr.f32.mxu1 %v1235_v48 }
 0x2c7   : > { %v1632_v18 = vpop.permute.xlu0 %1631  ;;  %5810 = vmatpush3.msra.mxu0 %v1634_v8 }
 0x2c8   : > { %v1630_v46 = vpop.permute.xlu1 %1629  ;;  %5811 = vmatprep.subr.mxu0 %v1632_v18 }
 0x2c9   : > { %2196 = vmatmul.mubr.f32.gmra.mxu1 %v1234_v55  ;;  %5812 = vmatpush3.msra.mxu0 %v1632_v18 }
 0x2ca   : > { %5813 = vmatprep.subr.mxu0 %v1630_v46  ;;  %2200 = vmatprep.mubr.f32.mxu1 %v1244_v37 }
 0x2cb   : > { %v1628_v63 = vpop.permute.xlu0 %1627  ;;  %5814 = vmatpush3.msra.mxu0 %v1630_v46 }
 0x2cc   : > { %5815 = vmatprep.subr.mxu0 %v1628_v63  ;;  %v1626_v3 = vpop.permute.xlu1 %1625 }
 0x2cd   : > { %2201 = vmatmul.mubr.f32.gmra.mxu1 %v1243_v19  ;;  %5816 = vmatpush3.msra.mxu0 %v1628_v63 }
 0x2ce   : > { %5817 = vmatprep.subr.mxu0 %v1626_v3  ;;  %2205 = vmatprep.mubr.f32.mxu1 %v1253_v59 }
 0x2cf   : > { %5818 = vmatpush3.msra.mxu0 %v1626_v3  ;;  %v5576_v3 = vadd.f32 %v5575_v6, %v5574_v61 }
 0x2d0   : > { %5820 = vmatmul.mubr.f32.vlgmr.msra.gmra.mxu0 %v1218_v43 }
 0x2d1   : > { %2206 = vmatmul.mubr.f32.gmra.mxu1 %v1252_v1  ;;  %5822 = vmatprep.mubr.f32.mxu0 %v1227_v22  ;;  %v5573_v22 = vadd.f32 %v5572_v44, %v5571_v42 }
 0x2d2   : > { %2210 = vmatprep.mubr.f32.mxu1 %v1262_v0 }
 0x2d4   : > { %5823 = vmatmul.mubr.f32.gmra.mxu0 %v1236_v26 }
 0x2d5   : > { %2211 = vmatmul.mubr.f32.gmra.mxu1 %v1261_v54  ;;  %5825 = vmatprep.mubr.f32.mxu0 %v1245_v49 }
 0x2d6   : > { %2215 = vmatprep.mubr.f32.mxu1 %v1271_v2 }
 0x2d8   : > { %5826 = vmatmul.mubr.f32.gmra.mxu0 %v1254_v31 }
 0x2d9   : > { %2216 = vmatmul.mubr.f32.gmra.mxu1 %v1270_v50  ;;  %5828 = vmatprep.mubr.f32.mxu0 %v1263_v30 }
 0x2dc   : > { %5829 = vmatmul.mubr.f32.gmra.mxu0 %v1272_v38  ;;  %v5579_v38 = vadd.f32 %v5578_v13, %v5577_v20 }
 0x30a   : > { %v5627_v12 = vpop.f32.mrf.mxu1 }
 0x30c   : > { %v5628_v29 = vpop.f32.mrf.mxu1 }
 0x30d   : > { %v5629_v0 = vadd.f32 %v5628_v29, %v5627_v12 }
 0x30e   : > { %v5630_v17 = vpop.f32.mrf.mxu1 }
 0x310   : > { %v5631_v45 = vpop.f32.mrf.mxu1 }
 0x311   : > { %v5632_v43 = vadd.f32 %v5631_v45, %v5630_v17  ;;  %v5585_v45 = vadd.f32 %v7617_v58, %v7615_v36 }
 0x312   : > { %v5633_v32 = vpop.f32.mrf.mxu1 }
 0x313   : > { %v1978_v2 = vadd.f32 %v5632_v43, %v5576_v3 }
 0x314   : > { %v5634_v5 = vpop.f32.mrf.mxu1 }
 0x316   : > { %v5636_v47 = vpop.f32.mrf.mxu1 }
 0x318   : > { %v5637_v25 = vpop.f32.mrf.mxu1 }
 0x31a   : > { %v5639_v16 = vpop.f32.mrf.mxu1 }
 0x31c   : > { %v5640_v52 = vpop.f32.mrf.mxu1 }
 0x31e   : > { %v5642_v56 = vpop.f32.mrf.mxu1 }
 0x320   : > { %v5643_v39 = vpop.f32.mrf.mxu1 }
 0x322   : > { %v7631_v11 = vpop.f32.mrf.mxu1 }
 0x323   : > { %9725 = vst [vmem:[#allocation5_spill] sm:$0xff] %v7631_v11 }
 0x324   : > { %v7633_v51 = vpop.f32.mrf.mxu1 }
 0x325   : > { %9726 = vst [vmem:[#allocation10_spill] sm:$0xff] %v7633_v51  ;;  %v5635_v51 = vadd.f32 %v5634_v5, %v5633_v32 }
 0x326   : > { %v7635_v23 = vpop.f32.mrf.mxu1 }
 0x327   : > { %9727 = vst [vmem:[#allocation12_spill] sm:$0xff] %v7635_v23  ;;  %v1973_v23 = vadd.f32 %v5629_v0, %v5573_v22  ;;  %v2336_v0 = vld [vmem:[%s9559_s3 + $0x10] sm:$0xff] }
 0x328   : > { %v7637_v48 = vpop.f32.mrf.mxu1 }
 0x329   : > { %9728 = vst [vmem:[#allocation13_spill] sm:$0xff] %v7637_v48  ;;  %v5582_v48 = vadd.f32 %v5581_v40, %v5580_v41  ;;  %v1983_v41 = vadd.f32 %v5635_v51, %v5579_v38 }
 0x330   : > { %v9734_v38 = vld [vmem:[#allocation13_spill] sm:$0xff] }
 0x351   : > { %v5683_v60 = vpop.f32.mrf.mxu0 }
 0x353   : > { %v5684_v14 = vpop.f32.mrf.mxu0 }
 0x354   : > { %v5685_v31 = vadd.f32 %v5684_v14, %v5683_v60  ;;  %v5641_v14 = vadd.f32 %v5640_v52, %v5639_v16  ;;  %v2335_v16 = vld [vmem:[%s9559_s3 + $0x8] sm:$0xff]  ;;  %v2334_v52 = vld [vmem:[%s9559_s3] sm:$0xff] }
 0x355   : > { %v5686_v33 = vpop.f32.mrf.mxu0 }
 0x356   : > { %v2078_v42 = vadd.f32 %v5685_v31, %v1973_v23  ;;  %v1993_v58 = vadd.f32 %v5641_v14, %v5585_v45 }
 0x357   : > { %v5687_v34 = vpop.f32.mrf.mxu0 }
 0x358   : > { %v5688_v26 = vadd.f32 %v5687_v34, %v5686_v33  ;;  %v5588_v33 = vadd.f32 %v7621_v53, %v7619_v24  ;;  %v5644_v34 = vadd.f32 %v5643_v39, %v5642_v56 }
 0x359   : > { %v5689_v35 = vpop.f32.mrf.mxu0 }
 0x35a   : > { %v2083_v11 = vadd.f32 %v5688_v26, %v1978_v2 }
 0x35b   : > { %v5690_v57 = vpop.f32.mrf.mxu0 }
 0x35c   : > { %v5691_v44 = vadd.f32 %v5690_v57, %v5689_v35 }
 0x35d   : > { %v5692_v62 = vpop.f32.mrf.mxu0 }
 0x35f   : > { %v5693_v15 = vpop.f32.mrf.mxu0 }
 0x360   : > { %v5694_v6 = vadd.f32 %v5693_v15, %v5692_v62  ;;  %v2088_v62 = vadd.f32 %v5691_v44, %v1983_v41 }
 0x361   : > { %v5695_v21 = vpop.f32.mrf.mxu0 }
 0x363   : > { %v5696_v10 = vpop.f32.mrf.mxu0 }
 0x364   : > { %v5697_v35 = vadd.f32 %v5696_v10, %v5695_v21  ;;  %v2367_v10 = vpop.permute.xlu0 %2366 }
 0x365   : > { %v5698_v28 = vpop.f32.mrf.mxu0 }
 0x367   : > { %v5699_v55 = vpop.f32.mrf.mxu0 }
 0x368   : > { %v5700_v24 = vadd.f32 %v5699_v55, %v5698_v28  ;;  %v5594_v28 = vadd.f32 %v7629_v7, %v7627_v9  ;;  %v9731_v55 = vld [vmem:[#allocation5_spill] sm:$0xff] }
 0x369   : > { %v7639_v46 = vpop.f32.mrf.mxu0 }
 0x36a   : > { %9729 = vst [vmem:[#allocation15_spill] sm:$0xff] %v7639_v46  ;;  %v5638_v46 = vadd.f32 %v5637_v25, %v5636_v47 }
 0x36b   : > { %v7641_v59 = vpop.f32.mrf.mxu0 }
 0x36c   : > { %9730 = vst [vmem:[#allocation17_spill] sm:$0xff] %v7641_v59  ;;  %v1988_v60 = vadd.f32 %v5638_v46, %v5582_v48  ;;  %v5591_v48 = vadd.f32 %v7625_v27, %v7623_v4  ;;  %v2369_v4 = vpop.permute.xlu1 %2368 }
 0x36d   : > { %v7643_v49 = vpop.f32.mrf.mxu0 }
 0x36e   : > { %v2093_v25 = vadd.f32 %v5694_v6, %v1988_v60 }
 0x36f   : > { %v7645_v17 = vpop.f32.mrf.mxu0 }
 0x371   : > { %v9735_v7 = vld [vmem:[#allocation15_spill] sm:$0xff] }
 0x37d   : > { %v5739_v8 = vpop.f32.mrf.mxu1 }
 0x37f   : > { %v5740_v18 = vpop.f32.mrf.mxu1 }
 0x380   : > { %v5741_v59 = vadd.f32 %v5740_v18, %v5739_v8  ;;  %v1998_v8 = vadd.f32 %v5644_v34, %v5588_v33  ;;  %v2098_v18 = vadd.f32 %v5697_v35, %v1993_v58  ;;  %v2554_v33 = vld [vmem:[%s9560_s4 + $0x308] sm:$0xff]  ;;  %v2553_v35 = vld [vmem:[%s9560_s4 + $0x300] sm:$0xff]  ;;  %v2556_v58 = vld [vmem:[%s9560_s4 + $0x318] sm:$0xff] }
 0x381   : > { %v5742_v37 = vpop.f32.mrf.mxu1 }
 0x382   : > { %v2183_v47 = vadd.f32 %v5741_v59, %v2078_v42  ;;  %v2103_v26 = vadd.f32 %v5700_v24, %v1998_v8 }
 0x383   : > { %v5743_v19 = vpop.f32.mrf.mxu1 }
 0x384   : > { %v5744_v50 = vadd.f32 %v5743_v19, %v5742_v37 }
 0x385   : > { %v5745_v63 = vpop.f32.mrf.mxu1 }
 0x386   : > { %v2188_v29 = vadd.f32 %v5744_v50, %v2083_v11 }
 0x387   : > { %v5746_v1 = vpop.f32.mrf.mxu1 }
 0x388   : > { %v5747_v40 = vadd.f32 %v5746_v1, %v5745_v63  ;;  %v9732_v1 = vld [vmem:[#allocation10_spill] sm:$0xff] }
 0x389   : > { %v5748_v54 = vpop.f32.mrf.mxu1  ;;  %v5647_v22 = vadd.f32 %v9732_v1, %v9731_v55  ;;  %v2523_v1 = vld [vmem:[%s9560_s4 + $0x210] sm:$0xff] }
 0x38a   : > { %v2193_v21 = vadd.f32 %v5747_v40, %v2088_v62 }
 0x38b   : > { %v5749_v30 = vpop.f32.mrf.mxu1  ;;  %v2003_v41 = vadd.f32 %v5647_v22, %v5591_v48  ;;  %v2506_v22 = vld [vmem:[%s9560_s4 + $0x188] sm:$0xff] }
 0x38c   : > { %v5750_v20 = vadd.f32 %v5749_v30, %v5748_v54  ;;  %v9733_v30 = vld [vmem:[#allocation12_spill] sm:$0xff] }
 0x38d   : > { %v5751_v61 = vpop.f32.mrf.mxu1  ;;  %v5650_v9 = vadd.f32 %v9734_v38, %v9733_v30 }
 0x38e   : > { %v2198_v51 = vadd.f32 %v5750_v20, %v2093_v25  ;;  %v5706_v25 = vadd.f32 %v7645_v17, %v7643_v49  ;;  %v2538_v49 = vld [vmem:[%s9560_s4 + $0x288] sm:$0xff]  ;;  %v2571_v17 = vld [vmem:[%s9560_s4 + $0x390] sm:$0xff] }
 0x38f   : > { %v5752_v12 = vpop.f32.mrf.mxu1  ;;  %v2008_v62 = vadd.f32 %v5650_v9, %v5594_v28 }
 0x390   : > { %v5821_v13 = vpop.f32.mrf.mxu0  ;;  %v5753_v53 = vadd.f32 %v5752_v12, %v5751_v61  ;;  %v9736_v61 = vld [vmem:[#allocation17_spill] sm:$0xff] }
 0x391   : > { %v2293_v32 = vadd.f32 %v5821_v13, %v2188_v29  ;;  %v5754_v5 = vpop.f32.mrf.mxu1  ;;  %v5703_v6 = vadd.f32 %v9736_v61, %v9735_v7  ;;  %v2337_v29 = vld [vmem:[%s9559_s3 + $0x18] sm:$0xff]  ;;  %v2371_v13 = vpop.permute.xlu0 %2370  ;;  %v2113_v48 = vadd.f32 %v5706_v25, %v2008_v62  ;;  %v2340_v61 = vld [vmem:[%s9559_s3 + $0x30] sm:$0xff]  ;;  %v2474_v25 = vld [vmem:[%s9560_s4 + $0x88] sm:$0xff] }
 0x392   : > { %v2287_v57 = vpop.f32.mrf.mxu0  ;;  %v2203_v50 = vadd.f32 %v5753_v53, %v2098_v18  ;;  %v2537_v53 = vld [vmem:[%s9560_s4 + $0x280] sm:$0xff]  ;;  %v2522_v18 = vld [vmem:[%s9560_s4 + $0x208] sm:$0xff] }
 0x393   : > { %v2327_v15 = vmul.f32 0.00390625, %v2293_v32  ;;  %v2288_v11 = vadd.f32 %v2287_v57, %v2183_v47  ;;  %v5755_v36 = vpop.f32.mrf.mxu1  ;;  %v2569_v47 = vld [vmem:[%s9560_s4 + $0x380] sm:$0xff]  ;;  %v2572_v57 = vld [vmem:[%s9560_s4 + $0x398] sm:$0xff]  ;;  %v2458_v62 = vld [vmem:[%s9560_s4 + $0x8] sm:$0xff] }
 0x394   : > { %v5824_v23 = vpop.f32.mrf.mxu0  ;;  %v5756_v59 = vadd.f32 %v5755_v36, %v5754_v5  ;;  %v2570_v5 = vld [vmem:[%s9560_s4 + $0x388] sm:$0xff]  ;;  %2676 = vmatprep.subr.mxu0 %v2572_v57  ;;  %v2475_v57 = vld [vmem:[%s9560_s4 + $0x90] sm:$0xff] }
 0x395   : > { %v2326_v56 = vmul.f32 0.00390625, %v2288_v11  ;;  %v5757_v39 = vpop.f32.mrf.mxu1  ;;  %v2303_v37 = vadd.f32 %v5824_v23, %v2198_v51  ;;  %v2343_v19 = vadd.f32 %v2335_v16, %v2327_v15  ;;  %2605 = vmatprep.subr.mxu1 %v2570_v5  ;;  %v2108_v15 = vadd.f32 %v5703_v6, %v2003_v41  ;;  %v2373_v51 = vpop.permute.xlu1 %2372  ;;  %2677 = vmatpush1.msra.mxu0 %v2571_v17  ;;  %v2576_v17 = vld [vmem:[%s9560_s4 + $0x3b8] sm:$0xff] }
 0x396   : > { %v2297_v46 = vpop.f32.mrf.mxu0  ;;  %v2208_v14 = vadd.f32 %v5756_v59, %v2103_v26  ;;  %2606 = vmatpush1.msra.mxu1 %v2569_v47  ;;  %2678 = vmatprep.subr.mxu0 %v2556_v58  ;;  %v2524_v59 = vld [vmem:[%s9560_s4 + $0x218] sm:$0xff]  ;;  %v2505_v26 = vld [vmem:[%s9560_s4 + $0x180] sm:$0xff]  ;;  %v5997_v58 = vmov 0.0  }
 0x397   : > { %v2342_v63 = vadd.f32 %v2334_v52, %v2326_v56  ;;  %v2298_v3 = vadd.f32 %v2297_v46, %v2193_v21  ;;  %v5758_v43 = vpop.f32.mrf.mxu1  ;;  %v2329_v42 = vmul.f32 0.00390625, %v2303_v37  ;;  %v2392_v60 = vsel %vm9649_vm6, %v2343_v19, %v2369_v4  ;;  %2607 = vmatprep.subr.mxu1 %v2554_v33  ;;  %v2555_v56 = vld [vmem:[%s9560_s4 + $0x310] sm:$0xff]  ;;  %v2375_v4 = vpop.permute.xlu0 %2374  ;;  %v2489_v47 = vld [vmem:[%s9560_s4 + $0x100] sm:$0xff]  ;;  %2653 = vmatprep.mubr.f32.mxu1 %v5997_v58 }
 0x398   : > { %v5827_v27 = vpop.f32.mrf.mxu0  ;;  %v5759_v34 = vadd.f32 %v5758_v43, %v5757_v39  ;;  %v2401_v36 = vsel %vm2399_vm7, %v2392_v60, 0.0  ;;  %v2338_v39 = vld [vmem:[%s9559_s3 + $0x20] sm:$0xff]  ;;  %2608 = vmatpush1.msra.mxu1 %v2553_v35  ;;  %v2539_v37 = vld [vmem:[%s9560_s4 + $0x290] sm:$0xff]  ;;  %2679 = vmatpush1.msra.mxu0 %v2555_v56 }
 0x399   : > { %v2328_v54 = vmul.f32 0.00390625, %v2298_v3  ;;  %v2391_v2 = vsel %vm9649_vm6, %v2342_v63, %v2367_v10  ;;  %v5760_v31 = vpop.f32.mrf.mxu1  ;;  %v2345_v11 = vadd.f32 %v2337_v29, %v2329_v42  ;;  %v2313_v16 = vadd.f32 %v5827_v27, %v2208_v14  ;;  %v2540_v10 = vld [vmem:[%s9560_s4 + $0x298] sm:$0xff]  ;;  %2609 = vmatprep.subr.mxu1 %v2538_v49  ;;  %v2521_v63 = vld [vmem:[%s9560_s4 + $0x200] sm:$0xff]  ;;  %v2377_v6 = vpop.permute.xlu1 %2376  ;;  %v2491_v33 = vld [vmem:[%s9560_s4 + $0x110] sm:$0xff]  ;;  %2724 = vmatprep.mubr.f32.mxu0 %v5997_v58 }
 0x39a   : > { %v2307_v44 = vpop.f32.mrf.mxu0  ;;  %v2400_v12 = vsel %vm2399_vm7, %v2391_v2, 0.0  ;;  %v2213_v8 = vadd.f32 %v5759_v34, %v2108_v15  ;;  %2610 = vmatpush1.msra.mxu1 %v2537_v53  ;;  %2680 = vmatprep.subr.mxu0 %v2540_v10  ;;  %v2508_v27 = vld [vmem:[%s9560_s4 + $0x198] sm:$0xff]  ;;  %v2473_v35 = vld [vmem:[%s9560_s4 + $0x80] sm:$0xff]  ;;  %v2574_v49 = vld [vmem:[%s9560_s4 + $0x3a8] sm:$0xff] }
 0x39b   : > { %v2344_v45 = vadd.f32 %v2336_v0, %v2328_v54  ;;  %v2308_v20 = vadd.f32 %v2307_v44, %v2203_v50  ;;  %2408 = vxpose.xlu0.b32.start [1/8] (short) (narrow) %v2400_v12, 8  ;;  %v5761_v40 = vpop.f32.mrf.mxu1  ;;  %v2394_v46 = vsel %vm9649_vm6, %v2345_v11, %v2373_v51  ;;  %v2331_v3 = vmul.f32 0.00390625, %v2313_v16  ;;  %v2339_v0 = vld [vmem:[%s9559_s3 + $0x28] sm:$0xff]  ;;  %2611 = vmatprep.subr.mxu1 %v2522_v18  ;;  %v2507_v54 = vld [vmem:[%s9560_s4 + $0x190] sm:$0xff]  ;;  %v2492_v50 = vld [vmem:[%s9560_s4 + $0x118] sm:$0xff]  ;;  %v2379_v60 = vpop.permute.xlu0 %2378 }
 0x39c   : > { %v7676_v32 = vpop.f32.mrf.mxu0  ;;  %v5762_v23 = vadd.f32 %v5761_v40, %v5760_v31  ;;  %2681 = vmatpush1.msra.mxu0 %v2539_v37  ;;  %2612 = vmatpush1.msra.mxu1 %v2521_v63  ;;  %v2403_v2 = vsel %vm2399_vm7, %v2394_v46, 0.0  ;;  %v2490_v31 = vld [vmem:[%s9560_s4 + $0x108] sm:$0xff]  ;;  %v2476_v34 = vld [vmem:[%s9560_s4 + $0x98] sm:$0xff]  ;;  %v2457_v11 = vld [vmem:[%s9560_s4] sm:$0xff]  ;;  %v9624_v51 = vmov 0  }
 0x39d   : > { %v2330_v52 = vmul.f32 0.00390625, %v2308_v20  ;;  %v2393_v24 = vsel %vm9649_vm6, %v2344_v45, %v2371_v13  ;;  %2682 = vmatprep.subr.mxu0 %v2524_v59  ;;  %2613 = vmatprep.subr.mxu1 %v2506_v22  ;;  %v2347_v30 = vadd.f32 %v2339_v0, %v2331_v3  ;;  %v2341_v45 = vld [vmem:[%s9559_s3 + $0x38] sm:$0xff]  ;;  %v2381_v41 = vpop.permute.xlu1 %2380  ;;  %v2575_v10 = vld [vmem:[%s9560_s4 + $0x3b0] sm:$0xff]  ;;  %v2557_v37 = vld [vmem:[%s9560_s4 + $0x320] sm:$0xff] }
 0x39e   : > { %v2317_v21 = vpop.f32.mrf.mxu0  ;;  %v2402_v19 = vsel %vm2399_vm7, %v2393_v24, 0.0  ;;  %v2218_v28 = vadd.f32 %v5762_v23, %v2113_v48  ;;  %2683 = vmatpush1.msra.mxu0 %v2523_v1  ;;  %2614 = vmatpush1.msra.mxu1 %v2505_v26  ;;  %v2460_v15 = vld [vmem:[%s9560_s4 + $0x18] sm:$0xff]  ;;  %v2559_v46 = vld [vmem:[%s9560_s4 + $0x330] sm:$0xff]  ;;  %v2541_v59 = vld [vmem:[%s9560_s4 + $0x2a0] sm:$0xff] }
 0x39f   : > { %2409 = vxpose.xlu0.b32.cont [2/8] (short) (narrow) %v2401_v36, 8  ;;  %v2346_v43 = vadd.f32 %v2338_v39, %v2330_v52  ;;  %v2318_v55 = vadd.f32 %v2317_v21, %v2213_v8  ;;  %2684 = vmatprep.subr.mxu0 %v2508_v27  ;;  %v2396_v29 = vsel %vm9649_vm6, %v2347_v30, %v2377_v6  ;;  %v2459_v36 = vld [vmem:[%s9560_s4 + $0x10] sm:$0xff]  ;;  %v2573_v21 = vld [vmem:[%s9560_s4 + $0x3a0] sm:$0xff]  ;;  %v2558_v8 = vld [vmem:[%s9560_s4 + $0x328] sm:$0xff] }
 0x3a0   : > { %v2323_v38 = vadd.f32 %v7676_v32, %v2218_v28  ;;  %2685 = vmatpush1.msra.mxu0 %v2507_v54  ;;  %2615 = vmatprep.subr.mxu1 %v2490_v31  ;;  %v2405_v14 = vsel %vm2399_vm7, %v2396_v29, 0.0  ;;  %v2560_v18 = vld [vmem:[%s9560_s4 + $0x338] sm:$0xff]  ;;  %v2543_v3 = vld [vmem:[%s9560_s4 + $0x2b0] sm:$0xff]  ;;  %v2510_v22 = vld [vmem:[%s9560_s4 + $0x1a8] sm:$0xff] }
 0x3a1   : > { %v2332_v9 = vmul.f32 0.00390625, %v2318_v55  ;;  %v2395_v7 = vsel %vm9649_vm6, %v2346_v43, %v2375_v4  ;;  %2686 = vmatprep.subr.mxu0 %v2492_v50  ;;  %2616 = vmatpush1.msra.mxu1 %v2489_v47  ;;  %v2544_v63 = vld [vmem:[%s9560_s4 + $0x2b8] sm:$0xff]  ;;  %v2526_v43 = vld [vmem:[%s9560_s4 + $0x228] sm:$0xff]  ;;  %v2525_v55 = vld [vmem:[%s9560_s4 + $0x220] sm:$0xff] }
 0x3a2   : > { %v2404_v42 = vsel %vm2399_vm7, %v2395_v7, 0.0  ;;  %v2333_v44 = vmul.f32 0.00390625, %v2323_v38  ;;  %2687 = vmatpush1.msra.mxu0 %v2491_v33  ;;  %2617 = vmatprep.subr.mxu1 %v2474_v25  ;;  %v2528_v28 = vld [vmem:[%s9560_s4 + $0x238] sm:$0xff]  ;;  %v2527_v1 = vld [vmem:[%s9560_s4 + $0x230] sm:$0xff]  ;;  %v2509_v4 = vld [vmem:[%s9560_s4 + $0x1a0] sm:$0xff] }
 0x3a3   : > { %2410 = vxpose.xlu0.b32.cont [3/8] (short) (narrow) %v2402_v19, 8  ;;  %v2348_v12 = vadd.f32 %v2340_v61, %v2332_v9  ;;  %2688 = vmatprep.subr.mxu0 %v2476_v34  ;;  %v2542_v19 = vld [vmem:[%s9560_s4 + $0x2a8] sm:$0xff]  ;;  %v2512_v0 = vld [vmem:[%s9560_s4 + $0x1b8] sm:$0xff]  ;;  %v2511_v27 = vld [vmem:[%s9560_s4 + $0x1b0] sm:$0xff] }
 0x3a4   : > { %v2349_v20 = vadd.f32 %v2341_v45, %v2333_v44  ;;  %2618 = vmatpush1.msra.mxu1 %v2473_v35  ;;  %2689 = vmatpush1.msra.mxu0 %v2475_v57  ;;  %v2494_v26 = vld [vmem:[%s9560_s4 + $0x128] sm:$0xff]  ;;  %v2496_v54 = vld [vmem:[%s9560_s4 + $0x138] sm:$0xff]  ;;  %v2495_v31 = vld [vmem:[%s9560_s4 + $0x130] sm:$0xff] }
 0x3a5   : > { %v2397_v13 = vsel %vm9649_vm6, %v2348_v12, %v2379_v60  ;;  %2619 = vmatprep.subr.mxu1 %v2458_v62  ;;  %2690 = vmatprep.subr.mxu0 %v2460_v15  ;;  %v2478_v50 = vld [vmem:[%s9560_s4 + $0xa8] sm:$0xff]  ;;  %v2480_v30 = vld [vmem:[%s9560_s4 + $0xb8] sm:$0xff]  ;;  %v2477_v38 = vld [vmem:[%s9560_s4 + $0xa0] sm:$0xff] }
 0x3a6   : > { %v2406_v40 = vsel %vm2399_vm7, %v2397_v13, 0.0  ;;  %v2398_v32 = vsel %vm9649_vm6, %v2349_v20, %v2381_v41  ;;  %2620 = vmatpush1.msra.mxu1 %v2457_v11  ;;  %2691 = vmatpush1.msra.mxu0 %v2459_v36  ;;  %v2479_v9 = vld [vmem:[%s9560_s4 + $0xb0] sm:$0xff]  ;;  %v2462_v7 = vld [vmem:[%s9560_s4 + $0x28] sm:$0xff]  ;;  %v2464_v61 = vld [vmem:[%s9560_s4 + $0x38] sm:$0xff] }
 0x3a7   : > { %2411 = vxpose.xlu0.b32.cont [4/8] (short) (narrow) %v2403_v2, 8  ;;  %v2407_v5 = vsel %vm2399_vm7, %v2398_v32, 0.0  ;;  %2747 = vmatprep.subr.mxu1 %v2574_v49  ;;  %v2493_v2 = vld [vmem:[%s9560_s4 + $0x120] sm:$0xff]  ;;  %v2578_v44 = vld [vmem:[%s9560_s4 + $0x3c8] sm:$0xff]  ;;  %v2580_v12 = vld [vmem:[%s9560_s4 + $0x3d8] sm:$0xff] }
 0x3a8   : > { %2818 = vmatprep.subr.mxu0 %v2576_v17  ;;  %5852 = vset.pattern.permute.xlu1 %v9624_v51  ;;  %v2461_v6 = vld [vmem:[%s9560_s4 + $0x20] sm:$0xff]  ;;  %v2579_v45 = vld [vmem:[%s9560_s4 + $0x3d0] sm:$0xff]  ;;  %v2562_v60 = vld [vmem:[%s9560_s4 + $0x348] sm:$0xff] }
 0x3a9   : > { %v2577_v29 = vld [vmem:[%s9560_s4 + $0x3c0] sm:$0xff]  ;;  %v2563_v13 = vld [vmem:[%s9560_s4 + $0x350] sm:$0xff]  ;;  %v2546_v41 = vld [vmem:[%s9560_s4 + $0x2c8] sm:$0xff] }
 0x3aa   : > { %v2561_v20 = vld [vmem:[%s9560_s4 + $0x340] sm:$0xff]  ;;  %v2530_v47 = vld [vmem:[%s9560_s4 + $0x248] sm:$0xff]  ;;  %v2532_v33 = vld [vmem:[%s9560_s4 + $0x258] sm:$0xff] }
 0x3ab   : > { %2412 = vxpose.xlu0.b32.cont [5/8] (short) (narrow) %v2404_v42, 8  ;;  %v2463_v42 = vld [vmem:[%s9560_s4 + $0x30] sm:$0xff]  ;;  %v2545_v32 = vld [vmem:[%s9560_s4 + $0x2c0] sm:$0xff]  ;;  %v2514_v35 = vld [vmem:[%s9560_s4 + $0x1c8] sm:$0xff] }
 0x3ac   : > { %v2529_v25 = vld [vmem:[%s9560_s4 + $0x240] sm:$0xff]  ;;  %v2531_v34 = vld [vmem:[%s9560_s4 + $0x250] sm:$0xff]  ;;  %v2516_v57 = vld [vmem:[%s9560_s4 + $0x1d8] sm:$0xff] }
 0x3ad   : > { %v2513_v62 = vld [vmem:[%s9560_s4 + $0x1c0] sm:$0xff]  ;;  %v2515_v15 = vld [vmem:[%s9560_s4 + $0x1d0] sm:$0xff]  ;;  %v2498_v11 = vld [vmem:[%s9560_s4 + $0x148] sm:$0xff] }
 0x3ae   : > { %v2500_v36 = vld [vmem:[%s9560_s4 + $0x158] sm:$0xff]  ;;  %v2497_v49 = vld [vmem:[%s9560_s4 + $0x140] sm:$0xff]  ;;  %v2499_v17 = vld [vmem:[%s9560_s4 + $0x150] sm:$0xff] }
 0x3af   : > { %2413 = vxpose.xlu0.b32.cont [6/8] (short) (narrow) %v2405_v14, 8  ;;  %v2564_v14 = vld [vmem:[%s9560_s4 + $0x358] sm:$0xff] }
 0x3b3   : > { %2414 = vxpose.xlu0.b32.cont [7/8] (short) (narrow) %v2406_v40, 8  ;;  %v2548_v40 = vld [vmem:[%s9560_s4 + $0x2d8] sm:$0xff] }
 0x3b7   : > { %2415 = vxpose.xlu0.b32.end [8/8] (short) (narrow) %v2407_v5, 8  ;;  %v2547_v5 = vld [vmem:[%s9560_s4 + $0x2d0] sm:$0xff] }
 0x3e0   : > { %5853 = vset.pattern.permute.xlu0 %v9624_v51 }
 0x417   : > { %v2424_v16 = vpop.trf.xlu0 }
 0x418   : > { %2447 = vrot.lane.b32.xlu1 %v2424_v16, %s5998_s28  ;;  %v2441_v52 = vrot.slane %v2424_v16, 1 }
 0x41c   : > { %2442 = vrot.lane.b32.xlu1 %v2441_v52, %s5999_s29 }
 0x48a   : > { %v2448_v23 = vpop.permute.xlu1 %2447 }
 0x48b   : > { %v2451_v24 = vsel %vm2445_vm8, %v2448_v23, %v2441_v52  ;;  %v2484_v52 = vld [vmem:[%s9560_s4 + $0xd8] sm:$0xff]  ;;  %v2481_v23 = vld [vmem:[%s9560_s4 + $0xc0] sm:$0xff] }
 0x48c   : > { %v2453_v53 = vrot.slane %v2451_v24, 7  ;;  %v2483_v24 = vld [vmem:[%s9560_s4 + $0xd0] sm:$0xff] }
 0x48e   : > { %v2443_v56 = vpop.permute.xlu1 %2442 }
 0x48f   : > { %v2446_v39 = vsel %vm2445_vm8, %v2424_v16, %v2443_v56  ;;  %v2482_v16 = vld [vmem:[%s9560_s4 + $0xc8] sm:$0xff]  ;;  %v2468_v56 = vld [vmem:[%s9560_s4 + $0x58] sm:$0xff] }
 0x490   : > { %v7823_v48 = vsel %vm2455_vm9, %v2446_v39, %v2453_v53  ;;  %v2466_v53 = vld [vmem:[%s9560_s4 + $0x48] sm:$0xff]  ;;  %v2465_v39 = vld [vmem:[%s9560_s4 + $0x40] sm:$0xff] }
 0x491   : > { %5454 = vmatmul.mubr.msk.f32.vlgmr.msra.gmra.mxu1 %vm2585_vm10, %v7823_v48  ;;  %5455 = vmatmul.mubr.msk.f32.vlgmr.msra.gmra.mxu0 %vm2585_vm10, %v7823_v48 }
 0x492   : > { %2748 = vmatpush1.msra.mxu1 %v2573_v21  ;;  %2819 = vmatpush1.msra.mxu0 %v2575_v10  ;;  %v2467_v21 = vld [vmem:[%s9560_s4 + $0x50] sm:$0xff]  ;;  %v2582_v10 = vld [vmem:[%s9560_s4 + $0x3e8] sm:$0xff] }
 0x493   : > { %2749 = vmatprep.subr.mxu1 %v2558_v8  ;;  %2820 = vmatprep.subr.mxu0 %v2560_v18  ;;  %v2584_v8 = vld [vmem:[%s9560_s4 + $0x3f8] sm:$0xff]  ;;  %v2581_v18 = vld [vmem:[%s9560_s4 + $0x3e0] sm:$0xff] }
 0x494   : > { %2750 = vmatpush1.msra.mxu1 %v2557_v37  ;;  %2821 = vmatpush1.msra.mxu0 %v2559_v46  ;;  %v2583_v37 = vld [vmem:[%s9560_s4 + $0x3f0] sm:$0xff]  ;;  %v2566_v46 = vld [vmem:[%s9560_s4 + $0x368] sm:$0xff] }
 0x495   : > { %2751 = vmatprep.subr.mxu1 %v2542_v19  ;;  %2822 = vmatprep.subr.mxu0 %v2544_v63  ;;  %v2568_v19 = vld [vmem:[%s9560_s4 + $0x378] sm:$0xff]  ;;  %v2565_v63 = vld [vmem:[%s9560_s4 + $0x360] sm:$0xff] }
 0x496   : > { %2752 = vmatpush1.msra.mxu1 %v2541_v59  ;;  %2823 = vmatpush1.msra.mxu0 %v2543_v3  ;;  %v2567_v59 = vld [vmem:[%s9560_s4 + $0x370] sm:$0xff]  ;;  %v2550_v3 = vld [vmem:[%s9560_s4 + $0x2e8] sm:$0xff] }
 0x497   : > { %2753 = vmatprep.subr.mxu1 %v2526_v43  ;;  %2824 = vmatprep.subr.mxu0 %v2528_v28  ;;  %v2552_v43 = vld [vmem:[%s9560_s4 + $0x2f8] sm:$0xff]  ;;  %v2549_v28 = vld [vmem:[%s9560_s4 + $0x2e0] sm:$0xff] }
 0x498   : > { %2754 = vmatpush1.msra.mxu1 %v2525_v55  ;;  %2825 = vmatpush1.msra.mxu0 %v2527_v1  ;;  %v2551_v55 = vld [vmem:[%s9560_s4 + $0x2f0] sm:$0xff]  ;;  %v2534_v1 = vld [vmem:[%s9560_s4 + $0x268] sm:$0xff] }
 0x499   : > { %2755 = vmatprep.subr.mxu1 %v2510_v22  ;;  %2826 = vmatprep.subr.mxu0 %v2512_v0  ;;  %v2536_v22 = vld [vmem:[%s9560_s4 + $0x278] sm:$0xff]  ;;  %v2533_v0 = vld [vmem:[%s9560_s4 + $0x260] sm:$0xff] }
 0x49a   : > { %2756 = vmatpush1.msra.mxu1 %v2509_v4  ;;  %2827 = vmatpush1.msra.mxu0 %v2511_v27  ;;  %v2535_v4 = vld [vmem:[%s9560_s4 + $0x270] sm:$0xff]  ;;  %v2518_v27 = vld [vmem:[%s9560_s4 + $0x1e8] sm:$0xff] }
 0x49b   : > { %2757 = vmatprep.subr.mxu1 %v2494_v26  ;;  %2828 = vmatprep.subr.mxu0 %v2496_v54  ;;  %v2520_v26 = vld [vmem:[%s9560_s4 + $0x1f8] sm:$0xff]  ;;  %v2517_v54 = vld [vmem:[%s9560_s4 + $0x1e0] sm:$0xff] }
 0x49c   : > { %2758 = vmatpush1.msra.mxu1 %v2493_v2  ;;  %2829 = vmatpush1.msra.mxu0 %v2495_v31  ;;  %v2519_v2 = vld [vmem:[%s9560_s4 + $0x1f0] sm:$0xff]  ;;  %v2502_v31 = vld [vmem:[%s9560_s4 + $0x168] sm:$0xff] }
 0x49d   : > { %2759 = vmatprep.subr.mxu1 %v2478_v50  ;;  %2830 = vmatprep.subr.mxu0 %v2480_v30  ;;  %v2504_v50 = vld [vmem:[%s9560_s4 + $0x178] sm:$0xff]  ;;  %v2501_v30 = vld [vmem:[%s9560_s4 + $0x160] sm:$0xff] }
 0x49e   : > { %2760 = vmatpush1.msra.mxu1 %v2477_v38  ;;  %2831 = vmatpush1.msra.mxu0 %v2479_v9  ;;  %v2503_v38 = vld [vmem:[%s9560_s4 + $0x170] sm:$0xff]  ;;  %v2486_v9 = vld [vmem:[%s9560_s4 + $0xe8] sm:$0xff] }
 0x49f   : > { %2761 = vmatprep.subr.mxu1 %v2462_v7  ;;  %2832 = vmatprep.subr.mxu0 %v2464_v61  ;;  %v2488_v7 = vld [vmem:[%s9560_s4 + $0xf8] sm:$0xff]  ;;  %v2485_v61 = vld [vmem:[%s9560_s4 + $0xe0] sm:$0xff] }
 0x4a0   : > { %2762 = vmatpush1.msra.mxu1 %v2461_v6  ;;  %2795 = vmatprep.mubr.f32.mxu1 %v5997_v58  ;;  %v2487_v6 = vld [vmem:[%s9560_s4 + $0xf0] sm:$0xff] }
 0x4a1   : > { %2833 = vmatpush1.msra.mxu0 %v2463_v42  ;;  %2866 = vmatprep.mubr.f32.mxu0 %v5997_v58  ;;  %v2470_v42 = vld [vmem:[%s9560_s4 + $0x68] sm:$0xff] }
 0x4a2   : > { %5456 = vmatmul.mubr.msk.f32.vlgmr.msra.gmra.mxu1 %vm2585_vm10, %v7823_v48  ;;  %5457 = vmatmul.mubr.msk.f32.vlgmr.msra.gmra.mxu0 %vm2585_vm10, %v7823_v48 }
 0x4a3   : > { %2889 = vmatprep.subr.mxu1 %v2578_v44  ;;  %2960 = vmatprep.subr.mxu0 %v2580_v12  ;;  %v2472_v44 = vld [vmem:[%s9560_s4 + $0x78] sm:$0xff]  ;;  %v2469_v12 = vld [vmem:[%s9560_s4 + $0x60] sm:$0xff] }
 0x4a4   : > { %2890 = vmatpush1.msra.mxu1 %v2577_v29  ;;  %2961 = vmatpush1.msra.mxu0 %v2579_v45  ;;  %v2471_v29 = vld [vmem:[%s9560_s4 + $0x70] sm:$0xff]  ;;  %v5921_v45 = vld [vmem:[%s6088_s22 + $0xf8] sm:$0xff] }
 0x4a5   : > { %2891 = vmatprep.subr.mxu1 %v2562_v60  ;;  %2962 = vmatprep.subr.mxu0 %v2564_v14  ;;  %v5922_v60 = vld [vmem:[%s6088_s22 + $0xe8] sm:$0xff] }
 0x4a6   : > { %2892 = vmatpush1.msra.mxu1 %v2561_v20  ;;  %2963 = vmatpush1.msra.mxu0 %v2563_v13  ;;  %v3478_v14 = vpack.c.bf16 %v5921_v45, %v5922_v60  ;;  %v5923_v20 = vld [vmem:[%s6088_s22 + $0xe0] sm:$0xff]  ;;  %v5924_v13 = vld [vmem:[%s6088_s22 + $0xf0] sm:$0xff]  ;;  %v5865_v45 = vld [vmem:[%s9563_s7 + $0x58] sm:$0xff]  }
 0x4a7   : > { %2893 = vmatprep.subr.mxu1 %v2546_v41  ;;  %2964 = vmatprep.subr.mxu0 %v2548_v40  ;;  %v3477_v41 = vpack.c.bf16 %v5924_v13, %v5923_v20  ;;  %v5925_v40 = vld [vmem:[%s6088_s22 + $0xd8] sm:$0xff]  ;;  %v5866_v60 = vld [vmem:[%s9563_s7 + $0x60] sm:$0xff]  }
 0x4a8   : > { %2894 = vmatpush1.msra.mxu1 %v2545_v32  ;;  %2965 = vmatpush1.msra.mxu0 %v2547_v5  ;;  %v5926_v32 = vld [vmem:[%s6088_s22 + $0xc8] sm:$0xff] }
 0x4a9   : > { %2895 = vmatprep.subr.mxu1 %v2530_v47  ;;  %2966 = vmatprep.subr.mxu0 %v2532_v33  ;;  %v3476_v5 = vpack.c.bf16 %v5925_v40, %v5926_v32  ;;  %v4418_v47 = vld [vmem:[%s9564_s8 + $0x18] sm:$0xff]  ;;  %v5927_v33 = vld [vmem:[%s6088_s22 + $0xd0] sm:$0xff] }
 0x4aa   : > { %2896 = vmatpush1.msra.mxu1 %v2529_v25  ;;  %2967 = vmatpush1.msra.mxu0 %v2531_v34  ;;  %v5928_v25 = vld [vmem:[%s6088_s22 + $0xc0] sm:$0xff]  ;;  %v5868_v32 = vld [vmem:[%s9563_s7 + $0x70] sm:$0xff]  }
 0x4ab   : > { %2897 = vmatprep.subr.mxu1 %v2514_v35  ;;  %2968 = vmatprep.subr.mxu0 %v2516_v57  ;;  %v3475_v34 = vpack.c.bf16 %v5927_v33, %v5928_v25  ;;  %v5930_v35 = vld [vmem:[%s6088_s22 + $0xa8] sm:$0xff] }
 0x4ac   : > { %2898 = vmatpush1.msra.mxu1 %v2513_v62  ;;  %2969 = vmatpush1.msra.mxu0 %v2515_v15  ;;  %v4415_v62 = vld [vmem:[%s9564_s8] sm:$0xff]  ;;  %v4416_v15 = vld [vmem:[%s9564_s8 + $0x8] sm:$0xff] }
 0x4ad   : > { %2899 = vmatprep.subr.mxu1 %v2498_v11  ;;  %2970 = vmatprep.subr.mxu0 %v2500_v36  ;;  %v5931_v11 = vld [vmem:[%s6088_s22 + $0xb0] sm:$0xff]  ;;  %v5932_v36 = vld [vmem:[%s6088_s22 + $0xa0] sm:$0xff] }
 0x4ae   : > { %2900 = vmatpush1.msra.mxu1 %v2497_v49  ;;  %2971 = vmatpush1.msra.mxu0 %v2499_v17  ;;  %v3473_v49 = vpack.c.bf16 %v5931_v11, %v5932_v36  ;;  %v5933_v17 = vld [vmem:[%s6088_s22 + $0x98] sm:$0xff] }
 0x4af   : > { %2901 = vmatprep.subr.mxu1 %v2482_v16  ;;  %2972 = vmatprep.subr.mxu0 %v2484_v52  ;;  %v5934_v16 = vld [vmem:[%s6088_s22 + $0x88] sm:$0xff] }
 0x4b0   : > { %2902 = vmatpush1.msra.mxu1 %v2481_v23  ;;  %2973 = vmatpush1.msra.mxu0 %v2483_v24  ;;  %v3472_v52 = vpack.c.bf16 %v5933_v17, %v5934_v16  ;;  %v5935_v23 = vld [vmem:[%s6088_s22 + $0x90] sm:$0xff]  ;;  %v5936_v24 = vld [vmem:[%s6088_s22 + $0x80] sm:$0xff] }
 0x4b1   : > { %2903 = vmatprep.subr.mxu1 %v2466_v53  ;;  %2974 = vmatprep.subr.mxu0 %v2468_v56  ;;  %v3471_v53 = vpack.c.bf16 %v5935_v23, %v5936_v24  ;;  %v5937_v56 = vld [vmem:[%s6088_s22 + $0x78] sm:$0xff] }
 0x4b2   : > { %2904 = vmatpush1.msra.mxu1 %v2465_v39  ;;  %2937 = vmatprep.mubr.f32.mxu1 %v5997_v58  ;;  %v5938_v39 = vld [vmem:[%s6088_s22 + $0x68] sm:$0xff] }
 0x4b3   : > { %2975 = vmatpush1.msra.mxu0 %v2467_v21  ;;  %3008 = vmatprep.mubr.f32.mxu0 %v5997_v58  ;;  %v3470_v21 = vpack.c.bf16 %v5937_v56, %v5938_v39 }
 0x4b4   : > { %5458 = vmatmul.mubr.msk.f32.vlgmr.msra.gmra.mxu1 %vm2585_vm10, %v7823_v48  ;;  %5459 = vmatmul.mubr.msk.f32.vlgmr.msra.gmra.mxu0 %vm2585_vm10, %v7823_v48 }
 0x4b5   : > { %3031 = vmatprep.subr.mxu1 %v2582_v10  ;;  %3102 = vmatprep.subr.mxu0 %v2584_v8  ;;  %v5939_v10 = vld [vmem:[%s6088_s22 + $0x70] sm:$0xff]  ;;  %v5940_v8 = vld [vmem:[%s6088_s22 + $0x60] sm:$0xff] }
 0x4b6   : > { %3032 = vmatpush1.msra.mxu1 %v2581_v18  ;;  %3103 = vmatpush1.msra.mxu0 %v2583_v37  ;;  %v3469_v18 = vpack.c.bf16 %v5939_v10, %v5940_v8  ;;  %v5941_v37 = vld [vmem:[%s6088_s22 + $0x58] sm:$0xff] }
 0x4b7   : > { %3033 = vmatprep.subr.mxu1 %v2566_v46  ;;  %3104 = vmatprep.subr.mxu0 %v2568_v19  ;;  %v5942_v46 = vld [vmem:[%s6088_s22 + $0x48] sm:$0xff] }
 0x4b8   : > { %3034 = vmatpush1.msra.mxu1 %v2565_v63  ;;  %3105 = vmatpush1.msra.mxu0 %v2567_v59  ;;  %v3468_v19 = vpack.c.bf16 %v5941_v37, %v5942_v46  ;;  %v5943_v63 = vld [vmem:[%s6088_s22 + $0x50] sm:$0xff]  ;;  %v5944_v59 = vld [vmem:[%s6088_s22 + $0x40] sm:$0xff] }
 0x4b9   : > { %3035 = vmatprep.subr.mxu1 %v2550_v3  ;;  %3106 = vmatprep.subr.mxu0 %v2552_v43  ;;  %v3467_v3 = vpack.c.bf16 %v5943_v63, %v5944_v59  ;;  %v5945_v43 = vld [vmem:[%s6088_s22 + $0x38] sm:$0xff] }
 0x4ba   : > { %3036 = vmatpush1.msra.mxu1 %v2549_v28  ;;  %3107 = vmatpush1.msra.mxu0 %v2551_v55  ;;  %v5946_v28 = vld [vmem:[%s6088_s22 + $0x28] sm:$0xff] }
 0x4bb   : > { %3037 = vmatprep.subr.mxu1 %v2534_v1  ;;  %3108 = vmatprep.subr.mxu0 %v2536_v22  ;;  %v3466_v55 = vpack.c.bf16 %v5945_v43, %v5946_v28  ;;  %v5947_v1 = vld [vmem:[%s6088_s22 + $0x30] sm:$0xff]  ;;  %v5948_v22 = vld [vmem:[%s6088_s22 + $0x20] sm:$0xff] }
 0x4bc   : > { %3038 = vmatpush1.msra.mxu1 %v2533_v0  ;;  %3109 = vmatpush1.msra.mxu0 %v2535_v4  ;;  %v3465_v0 = vpack.c.bf16 %v5947_v1, %v5948_v22  ;;  %v5949_v4 = vld [vmem:[%s6088_s22 + $0x18] sm:$0xff] }
 0x4bd   : > { %3039 = vmatprep.subr.mxu1 %v2518_v27  ;;  %3110 = vmatprep.subr.mxu0 %v2520_v26  ;;  %v5950_v27 = vld [vmem:[%s6088_s22 + $0x8] sm:$0xff] }
 0x4be   : > { %3040 = vmatpush1.msra.mxu1 %v2517_v54  ;;  %3111 = vmatpush1.msra.mxu0 %v2519_v2  ;;  %v3464_v26 = vpack.c.bf16 %v5949_v4, %v5950_v27  ;;  %v5951_v54 = vld [vmem:[%s6088_s22 + $0x10] sm:$0xff]  ;;  %v5952_v2 = vld [vmem:[%s6088_s22] sm:$0xff] }
 0x4bf   : > { %3041 = vmatprep.subr.mxu1 %v2502_v31  ;;  %3112 = vmatprep.subr.mxu0 %v2504_v50  ;;  %v3463_v31 = vpack.c.bf16 %v5951_v54, %v5952_v2  ;;  %v5854_v50 = vld [vmem:[%s9563_s7] sm:$0xff]  }
 0x4c0   : > { %3042 = vmatpush1.msra.mxu1 %v2501_v30  ;;  %3113 = vmatpush1.msra.mxu0 %v2503_v38  ;;  %v5855_v30 = vld [vmem:[%s9563_s7 + $0x8] sm:$0xff]   ;;  %v5856_v38 = vld [vmem:[%s9563_s7 + $0x10] sm:$0xff]  }
 0x4c1   : > { %3043 = vmatprep.subr.mxu1 %v2486_v9  ;;  %3114 = vmatprep.subr.mxu0 %v2488_v7  ;;  %v5857_v9 = vld [vmem:[%s9563_s7 + $0x18] sm:$0xff]   ;;  %v5858_v7 = vld [vmem:[%s9563_s7 + $0x20] sm:$0xff]  }
 0x4c2   : > { %3044 = vmatpush1.msra.mxu1 %v2485_v61  ;;  %3115 = vmatpush1.msra.mxu0 %v2487_v6  ;;  %v5859_v61 = vld [vmem:[%s9563_s7 + $0x28] sm:$0xff]   ;;  %v5860_v6 = vld [vmem:[%s9563_s7 + $0x30] sm:$0xff]  }
 0x4c3   : > { %3045 = vmatprep.subr.mxu1 %v2470_v42  ;;  %3116 = vmatprep.subr.mxu0 %v2472_v44  ;;  %v5861_v42 = vld [vmem:[%s9563_s7 + $0x38] sm:$0xff]   ;;  %v5862_v44 = vld [vmem:[%s9563_s7 + $0x40] sm:$0xff]  }
 0x4c4   : > { %3046 = vmatpush1.msra.mxu1 %v2469_v12  ;;  %3079 = vmatprep.mubr.f32.mxu1 %v5997_v58  ;;  %v5863_v12 = vld [vmem:[%s9563_s7 + $0x48] sm:$0xff]  }
 0x4c5   : > { %3117 = vmatpush1.msra.mxu0 %v2471_v29  ;;  %3150 = vmatprep.mubr.f32.mxu0 %v5997_v58  ;;  %v4417_v58 = vld [vmem:[%s9564_s8 + $0x10] sm:$0xff] }
 0x4c6   : > { %5460 = vmatmul.mubr.msk.f32.vlgmr.msra.gmra.mxu1 %vm2585_vm10, %v7823_v48  ;;  %5461 = vmatmul.mubr.msk.f32.vlgmr.msra.gmra.mxu0 %vm2585_vm10, %v7823_v48  ;;  %v5929_v48 = vld [vmem:[%s6088_s22 + $0xb8] sm:$0xff]  ;;  %v5864_v29 = vld [vmem:[%s9563_s7 + $0x50] sm:$0xff]   ;;  %vm9646_vm10 = vcmask 1039360  }
 0x4c7   : > { %3623 = vmatprep.subr.bf16.mxu1 %v3478_v14  ;;  %3655 = vmatprep.mubr.bf16.mxu1 %v9624_v51  ;;  %v3474_v57 = vpack.c.bf16 %v5929_v48, %v5930_v35  ;;  %v5867_v14 = vld [vmem:[%s9563_s7 + $0x68] sm:$0xff]   ;;  %v5869_v48 = vld [vmem:[%s9563_s7 + $0x78] sm:$0xff]  }
 0x4c8   : > { %3624 = vmatpush1.bf16.msra.mxu1 %v3477_v41  ;;  %4436 = vperm.xlu0 %5853, %v4418_v47  }
 0x4c9   : > { %3625 = vmatprep.subr.bf16.mxu1 %v3476_v5  ;;  %4431 = vperm.xlu1 %5852, %v4417_v58  }
 0x4ca   : > { %4491 = vmatprep.mubr.bf16.mxu0 %v9624_v51 }
 0x4cc   : > { %3626 = vmatpush1.bf16.msra.mxu1 %v3475_v34  ;;  %4421 = vperm.xlu0 %5853, %v4415_v62   ;;  %v5870_v62 = vld [vmem:[%s9563_s7 + $0x80] sm:$0xff]  }
 0x4cd   : > { %3627 = vmatprep.subr.bf16.mxu1 %v3474_v57  ;;  %4426 = vperm.xlu1 %5852, %v4416_v15   ;;  %v5871_v15 = vld [vmem:[%s9563_s7 + $0x88] sm:$0xff]  }
 0x4d0   : > { %3628 = vmatpush1.bf16.msra.mxu1 %v3473_v49 }
 0x4d1   : > { %3629 = vmatprep.subr.bf16.mxu1 %v3472_v52 }
 0x4d4   : > { %3630 = vmatpush1.bf16.msra.mxu1 %v3471_v53 }
 0x4d5   : > { %3631 = vmatprep.subr.bf16.mxu1 %v3470_v21 }
 0x4d8   : > { %3632 = vmatpush1.bf16.msra.mxu1 %v3469_v18 }
 0x4d9   : > { %3633 = vmatprep.subr.bf16.mxu1 %v3468_v19 }
 0x4dc   : > { %3634 = vmatpush1.bf16.msra.mxu1 %v3467_v3 }
 0x4dd   : > { %3635 = vmatprep.subr.bf16.mxu1 %v3466_v55 }
 0x4e0   : > { %3636 = vmatpush1.bf16.msra.mxu1 %v3465_v0 }
 0x4e1   : > { %3637 = vmatprep.subr.bf16.mxu1 %v3464_v26 }
 0x4e4   : > { %3638 = vmatpush1.bf16.msra.mxu1 %v3463_v31 }
 0x4e7   : > { %3656 = vmatmul.mubr.bf16.vlgmr.msra.gmra.mxu1 %v5854_v50 }
 0x4e8   : > { %3665 = vmatprep.mubr.bf16.mxu1 %v9624_v51 }
 0x4ef   : > { %3666 = vmatmul.mubr.bf16.gmra.mxu1 %v5855_v30 }
 0x4f0   : > { %3675 = vmatprep.mubr.bf16.mxu1 %v9624_v51 }
 0x4f7   : > { %3676 = vmatmul.mubr.bf16.gmra.mxu1 %v5856_v38 }
 0x4f8   : > { %3685 = vmatprep.mubr.bf16.mxu1 %v9624_v51 }
 0x4ff   : > { %3686 = vmatmul.mubr.bf16.gmra.mxu1 %v5857_v9 }
 0x500   : > { %3695 = vmatprep.mubr.bf16.mxu1 %v9624_v51 }
 0x507   : > { %3696 = vmatmul.mubr.bf16.gmra.mxu1 %v5858_v7 }
 0x508   : > { %3705 = vmatprep.mubr.bf16.mxu1 %v9624_v51 }
 0x50f   : > { %3706 = vmatmul.mubr.bf16.gmra.mxu1 %v5859_v61 }
 0x510   : > { %3715 = vmatprep.mubr.bf16.mxu1 %v9624_v51 }
 0x517   : > { %3716 = vmatmul.mubr.bf16.gmra.mxu1 %v5860_v6 }
 0x518   : > { %3725 = vmatprep.mubr.bf16.mxu1 %v9624_v51 }
 0x51f   : > { %3726 = vmatmul.mubr.bf16.gmra.mxu1 %v5861_v42 }
 0x520   : > { %3735 = vmatprep.mubr.bf16.mxu1 %v9624_v51 }
 0x527   : > { %3736 = vmatmul.mubr.bf16.gmra.mxu1 %v5862_v44 }
 0x528   : > { %3745 = vmatprep.mubr.bf16.mxu1 %v9624_v51 }
 0x52f   : > { %3746 = vmatmul.mubr.bf16.gmra.mxu1 %v5863_v12 }
 0x530   : > { %3755 = vmatprep.mubr.bf16.mxu1 %v9624_v51 }
 0x537   : > { %3756 = vmatmul.mubr.bf16.gmra.mxu1 %v5864_v29 }
 0x538   : > { %3765 = vmatprep.mubr.bf16.mxu1 %v9624_v51 }
 0x53f   : > { %3766 = vmatmul.mubr.bf16.gmra.mxu1 %v5865_v45 }
 0x540   : > { %3775 = vmatprep.mubr.bf16.mxu1 %v9624_v51 }
 0x547   : > { %3776 = vmatmul.mubr.bf16.gmra.mxu1 %v5866_v60 }
 0x548   : > { %3785 = vmatprep.mubr.bf16.mxu1 %v9624_v51 }
 0x54f   : > { %3786 = vmatmul.mubr.bf16.gmra.mxu1 %v5867_v14 }
 0x550   : > { %3795 = vmatprep.mubr.bf16.mxu1 %v9624_v51 }
 0x551   : > { %v8225_v20 = vpop.f32.mrf.mxu1  ;;  %v8227_v13 = vpop.f32.mrf.mxu0 }
 0x552   : > { %v3158_v41 = vrot.slane %v8225_v20, 7  ;;  %v3186_v40 = vrot.slane %v8227_v13, 7  ;;  %v3162_v5 = vrot.slane %v8225_v20, 6  ;;  %v3190_v47 = vrot.slane %v8227_v13, 6 }
 0x553   : > { %v3166_v58 = vrot.slane %v8225_v20, 5  ;;  %v3194_v33 = vrot.slane %v8227_v13, 5  ;;  %v8243_v25 = vpop.f32.mrf.mxu1  ;;  %v8245_v34 = vpop.f32.mrf.mxu0 }
 0x554   : > { %3187 = vrot.lane.b32.xlu1 %v3186_v40, %s5998_s28  ;;  %3159 = vrot.lane.b32.xlu0 %v3158_v41, %s5998_s28  ;;  %v3173_v35 = vrot.slane %v8243_v25, 3  ;;  %v3201_v57 = vrot.slane %v8245_v34, 3  ;;  %v8321_v41 = vpop.permute.xlu1 %4431 }
 0x555   : > { %9751 = vst [vmem:[#allocation20_spill] sm:$0xff] %v8321_v41 }
 0x557   : > { %3796 = vmatmul.mubr.bf16.gmra.mxu1 %v5868_v32 }
 0x558   : > { %3191 = vrot.lane.b32.xlu1 %v3190_v47, %s6001_s19  ;;  %3163 = vrot.lane.b32.xlu0 %v3162_v5, %s6001_s19  ;;  %v8326_v47 = vpop.permute.xlu1 %4426 }
 0x559   : > { %3805 = vmatprep.mubr.bf16.mxu1 %v9624_v51  ;;  %9752 = vst [vmem:[#allocation9_spill] sm:$0xff] %v8326_v47 }
 0x55c   : > { %3195 = vrot.lane.b32.xlu1 %v3194_v33, %s5999_s29  ;;  %3167 = vrot.lane.b32.xlu0 %v3166_v58, %s5999_s29 }
 0x55f   : > { %3806 = vmatmul.mubr.bf16.gmra.mxu1 %v5869_v48 }
 0x560   : > { %3202 = vrot.lane.b32.xlu1 %v3201_v57, %s5998_s28  ;;  %3174 = vrot.lane.b32.xlu0 %v3173_v35, %s5998_s28 }
 0x561   : > { %3815 = vmatprep.mubr.bf16.mxu1 %v9624_v51 }
 0x562   : > { %v8264_v11 = vpop.f32.mrf.mxu1 }
 0x563   : > { %9737 = vst [vmem:[#allocation19_spill] sm:$0xff] %v8264_v11 }
 0x564   : > { %v8266_v36 = vpop.f32.mrf.mxu1 }
 0x565   : > { %9738 = vst [vmem:[#allocation21_spill] sm:$0xff] %v8266_v36 }
 0x567   : > { %3816 = vmatmul.mubr.bf16.gmra.mxu1 %v5870_v62 }
 0x568   : > { %3825 = vmatprep.mubr.bf16.mxu1 %v9624_v51 }
 0x56f   : > { %3826 = vmatmul.mubr.bf16.gmra.mxu1 %v5871_v15 }
 0x574   : > { %v8268_v49 = vpop.f32.mrf.mxu1 }
 0x575   : > { %9739 = vst [vmem:[#allocation22_spill] sm:$0xff] %v8268_v49 }
 0x576   : > { %v8270_v17 = vpop.f32.mrf.mxu1 }
 0x577   : > { %9740 = vst [vmem:[#allocation23_spill] sm:$0xff] %v8270_v17 }
 0x586   : > { %v8272_v16 = vpop.f32.mrf.mxu1 }
 0x587   : > { %9741 = vst [vmem:[#allocation14_spill] sm:$0xff] %v8272_v16 }
 0x588   : > { %v8274_v52 = vpop.f32.mrf.mxu1 }
 0x589   : > { %9742 = vst [vmem:[#allocation6_spill] sm:$0xff] %v8274_v52 }
 0x5a7   : > { %v3657_v23 = vpop.f32.mrf.mxu1 }
 0x5a8   : > { %3860 = vrot.lane.b32.xlu1 %v3657_v23, %s6002_s15 }
 0x5a9   : > { %v3659_v24 = vpop.f32.mrf.mxu1 }
 0x5ab   : > { %v3661_v53 = vpop.f32.mrf.mxu1 }
 0x5ac   : > { %3862 = vrot.lane.b32.xlu1 %v3659_v24, %s6002_s15 }
 0x5ad   : > { %v3663_v56 = vpop.f32.mrf.mxu1 }
 0x5af   : > { %v3667_v39 = vpop.f32.mrf.mxu1 }
 0x5b0   : > { %3864 = vrot.lane.b32.xlu1 %v3661_v53, %s6002_s15 }
 0x5b1   : > { %v3669_v21 = vpop.f32.mrf.mxu1 }
 0x5b3   : > { %v3671_v10 = vpop.f32.mrf.mxu1 }
 0x5b4   : > { %3866 = vrot.lane.b32.xlu1 %v3663_v56, %s6002_s15 }
 0x5b5   : > { %v3673_v8 = vpop.f32.mrf.mxu1 }
 0x5b7   : > { %v3677_v18 = vpop.f32.mrf.mxu1 }
 0x5b8   : > { %3868 = vrot.lane.b32.xlu1 %v3667_v39, %s6002_s15 }
 0x5b9   : > { %v3679_v37 = vpop.f32.mrf.mxu1 }
 0x5ba   : > { %3878 = vrot.lane.b32.xlu0 %v3679_v37, %s6002_s15 }
 0x5bb   : > { %v3681_v46 = vpop.f32.mrf.mxu1 }
 0x5bc   : > { %3870 = vrot.lane.b32.xlu1 %v3669_v21, %s6002_s15 }
 0x5bd   : > { %v3683_v19 = vpop.f32.mrf.mxu1 }
 0x5be   : > { %3882 = vrot.lane.b32.xlu0 %v3683_v19, %s6002_s15 }
 0x5bf   : > { %v3687_v63 = vpop.f32.mrf.mxu1 }
 0x5c0   : > { %3872 = vrot.lane.b32.xlu1 %v3671_v10, %s6002_s15 }
 0x5c1   : > { %v3689_v59 = vpop.f32.mrf.mxu1 }
 0x5c2   : > { %3886 = vrot.lane.b32.xlu0 %v3689_v59, %s6002_s15 }
 0x5c3   : > { %v3691_v3 = vpop.f32.mrf.mxu1 }
 0x5c4   : > { %3874 = vrot.lane.b32.xlu1 %v3673_v8, %s6002_s15 }
 0x5c5   : > { %v3693_v43 = vpop.f32.mrf.mxu1 }
 0x5c6   : > { %3890 = vrot.lane.b32.xlu0 %v3693_v43, %s6002_s15  ;;  %v8330_v35 = vpop.permute.xlu1 %3187 }
 0x5c7   : > { %v3697_v28 = vpop.f32.mrf.mxu1 }
 0x5c8   : > { %3876 = vrot.lane.b32.xlu1 %v3677_v18, %s6002_s15 }
 0x5c9   : > { %v3699_v55 = vpop.f32.mrf.mxu1 }
 0x5ca   : > { %3892 = vrot.lane.b32.xlu0 %v3697_v28, %s6002_s15  ;;  %v8336_v23 = vpop.permute.xlu1 %3191 }
 0x5cb   : > { %v3701_v1 = vpop.f32.mrf.mxu1 }
 0x5cc   : > { %3880 = vrot.lane.b32.xlu1 %v3681_v46, %s6002_s15 }
 0x5cd   : > { %v3703_v22 = vpop.f32.mrf.mxu1 }
 0x5ce   : > { %v8340_v39 = vpop.permute.xlu1 %3195 }
 0x5cf   : > { %v3707_v0 = vpop.f32.mrf.mxu1 }
 0x5d0   : > { %3884 = vrot.lane.b32.xlu1 %v3687_v63, %s6002_s15 }
 0x5d1   : > { %v3709_v4 = vpop.f32.mrf.mxu1 }
 0x5d2   : > { %v8344_v18 = vpop.permute.xlu1 %3202 }
 0x5d3   : > { %v3711_v27 = vpop.f32.mrf.mxu1 }
 0x5d4   : > { %3888 = vrot.lane.b32.xlu1 %v3691_v3, %s6002_s15 }
 0x5d5   : > { %v3713_v26 = vpop.f32.mrf.mxu1 }
 0x5d7   : > { %v3717_v54 = vpop.f32.mrf.mxu1 }
 0x5d8   : > { %3894 = vrot.lane.b32.xlu1 %v3699_v55, %s6002_s15  ;;  %v8351_v55 = vpop.permute.xlu0 %4436 }
 0x5d9   : > { %v3719_v2 = vpop.f32.mrf.mxu1  ;;  %9753 = vst [vmem:[#allocation11_spill] sm:$0xff] %v8351_v55 }
 0x5da   : > { %4080 = vrot.lane.b32.xlu0 %v3719_v2, %s5994_s24 }
 0x5db   : > { %v3721_v31 = vpop.f32.mrf.mxu1 }
 0x5dc   : > { %3896 = vrot.lane.b32.xlu1 %v3701_v1, %s6002_s15 }
 0x5dd   : > { %v3723_v50 = vpop.f32.mrf.mxu1 }
 0x5de   : > { %4084 = vrot.lane.b32.xlu0 %v3723_v50, %s5994_s24 }
 0x5df   : > { %v3727_v30 = vpop.f32.mrf.mxu1 }
 0x5e0   : > { %3898 = vrot.lane.b32.xlu1 %v3703_v22, %s6002_s15 }
 0x5e1   : > { %v3729_v38 = vpop.f32.mrf.mxu1 }
 0x5e2   : > { %4088 = vrot.lane.b32.xlu0 %v3729_v38, %s5994_s24 }
 0x5e3   : > { %v3731_v9 = vpop.f32.mrf.mxu1 }
 0x5e4   : > { %3900 = vrot.lane.b32.xlu1 %v3707_v0, %s6002_s15 }
 0x5e5   : > { %v3733_v7 = vpop.f32.mrf.mxu1 }
 0x5e6   : > { %4092 = vrot.lane.b32.xlu0 %v3733_v7, %s5994_s24 }
 0x5e7   : > { %v8301_v61 = vpop.f32.mrf.mxu1 }
 0x5e8   : > { %9743 = vst [vmem:[#allocation25_spill] sm:$0xff] %v8301_v61  ;;  %3902 = vrot.lane.b32.xlu1 %v3709_v4, %s6002_s15  ;;  %v8356_v4 = vpop.permute.xlu0 %4421 }
 0x5e9   : > { %v8304_v6 = vpop.f32.mrf.mxu1  ;;  %9754 = vst [vmem:[#allocation24_spill] sm:$0xff] %v8356_v4 }
 0x5ea   : > { %9744 = vst [vmem:[#allocation32_spill] sm:$0xff] %v8304_v6 }
 0x5eb   : > { %v8306_v42 = vpop.f32.mrf.mxu1 }
 0x5ec   : > { %9745 = vst [vmem:[#allocation16_spill] sm:$0xff] %v8306_v42  ;;  %3904 = vrot.lane.b32.xlu1 %v3711_v27, %s6002_s15  ;;  %v8361_v50 = vpop.permute.xlu0 %3159 }
 0x5ed   : > { %v8309_v44 = vpop.f32.mrf.mxu1 }
 0x5ee   : > { %9746 = vst [vmem:[#allocation7_spill] sm:$0xff] %v8309_v44 }
 0x5ef   : > { %v8311_v12 = vpop.f32.mrf.mxu1 }
 0x5f0   : > { %9747 = vst [vmem:[#allocation4_spill] sm:$0xff] %v8311_v12  ;;  %3906 = vrot.lane.b32.xlu1 %v3713_v26, %s6002_s15 }
 0x5f1   : > { %v8314_v29 = vpop.f32.mrf.mxu1 }
 0x5f2   : > { %9748 = vst [vmem:[#allocation33_spill] sm:$0xff] %v8314_v29 }
 0x5f3   : > { %v8316_v45 = vpop.f32.mrf.mxu1 }
 0x5f4   : > { %9749 = vst [vmem:[#allocation18_spill] sm:$0xff] %v8316_v45  ;;  %4078 = vrot.lane.b32.xlu1 %v3717_v54, %s5994_s24 }
 0x5f5   : > { %v8319_v60 = vpop.f32.mrf.mxu1 }
 0x5f6   : > { %9750 = vst [vmem:[#allocation8_spill] sm:$0xff] %v8319_v60 }
 0x5f7   : > { %v3757_v14 = vpop.f32.mrf.mxu1 }
 0x5f8   : > { %4082 = vrot.lane.b32.xlu1 %v3721_v31, %s5994_s24 }
 0x5f9   : > { %v3759_v40 = vpop.f32.mrf.mxu1 }
 0x5fb   : > { %v3761_v32 = vpop.f32.mrf.mxu1 }
 0x5fc   : > { %4086 = vrot.lane.b32.xlu1 %v3727_v30, %s5994_s24  ;;  %4146 = vrot.lane.b32.xlu0 %v3761_v32, %s5996_s26 }
 0x5fd   : > { %v3763_v5 = vpop.f32.mrf.mxu1 }
 0x5ff   : > { %v3767_v58 = vpop.f32.mrf.mxu1 }
 0x600   : > { %4090 = vrot.lane.b32.xlu1 %v3731_v9, %s5994_s24  ;;  %4148 = vrot.lane.b32.xlu0 %v3763_v5, %s5996_s26 }
 0x601   : > { %v3769_v33 = vpop.f32.mrf.mxu1 }
 0x603   : > { %v3771_v48 = vpop.f32.mrf.mxu1 }
 0x604   : > { %4142 = vrot.lane.b32.xlu1 %v3757_v14, %s5996_s26  ;;  %4154 = vrot.lane.b32.xlu0 %v3771_v48, %s5996_s26 }
 0x605   : > { %v3773_v57 = vpop.f32.mrf.mxu1 }
 0x607   : > { %v3777_v62 = vpop.f32.mrf.mxu1 }
 0x608   : > { %4144 = vrot.lane.b32.xlu1 %v3759_v40, %s5996_s26  ;;  %4156 = vrot.lane.b32.xlu0 %v3773_v57, %s5996_s26  ;;  %v8368_v40 = vpop.permute.xlu0 %3163 }
 0x609   : > { %v3779_v15 = vpop.f32.mrf.mxu1 }
 0x60b   : > { %v3781_v24 = vpop.f32.mrf.mxu1 }
 0x60c   : > { %4150 = vrot.lane.b32.xlu1 %v3767_v58, %s5996_s26  ;;  %v8373_v48 = vpop.permute.xlu0 %3167 }
 0x60d   : > { %v3783_v53 = vpop.f32.mrf.mxu1 }
 0x60e   : > { %4220 = vrot.lane.b32.xlu0 %v3783_v53, %s5995_s25 }
 0x60f   : > { %v3787_v56 = vpop.f32.mrf.mxu1 }
 0x610   : > { %4152 = vrot.lane.b32.xlu1 %v3769_v33, %s5996_s26  ;;  %v8382_v53 = vpop.permute.xlu0 %3174 }
 0x611   : > { %v3789_v21 = vpop.f32.mrf.mxu1 }
 0x613   : > { %v3791_v10 = vpop.f32.mrf.mxu1 }
 0x614   : > { %4214 = vrot.lane.b32.xlu1 %v3777_v62, %s5995_s25 }
 0x615   : > { %v3793_v8 = vpop.f32.mrf.mxu1 }
 0x617   : > { %v3797_v37 = vpop.f32.mrf.mxu1 }
 0x618   : > { %4216 = vrot.lane.b32.xlu1 %v3779_v15, %s5995_s25  ;;  %4230 = vrot.lane.b32.xlu0 %v3797_v37, %s5995_s25 }
 0x619   : > { %v3799_v46 = vpop.f32.mrf.mxu1 }
 0x61a   : > { %v3861_v19 = vpop.permute.xlu1 %3860 }
 0x61b   : > { %v3801_v63 = vpop.f32.mrf.mxu1  ;;  %v3937_v7 = vsel %vm9648_vm11, 0.0, %v3861_v19 }
 0x61c   : > { %4218 = vrot.lane.b32.xlu1 %v3781_v24, %s5995_s25  ;;  %4232 = vrot.lane.b32.xlu0 %v3799_v46, %s5995_s25 }
 0x61d   : > { %v3803_v59 = vpop.f32.mrf.mxu1 }
 0x61e   : > { %v3863_v3 = vpop.permute.xlu1 %3862 }
 0x61f   : > { %v3909_v43 = vsel %vm9648_vm11, %v3861_v19, %v3863_v3  ;;  %v3807_v28 = vpop.f32.mrf.mxu1 }
 0x620   : > { %4222 = vrot.lane.b32.xlu1 %v3787_v56, %s5995_s25  ;;  %3955 = vrot.lane.b32.xlu0 %v3909_v43, %s5994_s24  ;;  %v3181_v43 = vrot.slane %v8243_v25, 1 }
 0x621   : > { %v3809_v1 = vpop.f32.mrf.mxu1 }
 0x622   : > { %v3865_v22 = vpop.permute.xlu1 %3864 }
 0x623   : > { %v3811_v0 = vpop.f32.mrf.mxu1  ;;  %v3938_v15 = vsel %vm9648_vm11, 0.0, %v3865_v22 }
 0x624   : > { %4224 = vrot.lane.b32.xlu1 %v3789_v21, %s5995_s25 }
 0x625   : > { %v3813_v54 = vpop.f32.mrf.mxu1 }
 0x626   : > { %v3867_v27 = vpop.permute.xlu1 %3866 }
 0x627   : > { %v3910_v26 = vsel %vm9648_vm11, %v3865_v22, %v3867_v27  ;;  %v3817_v2 = vpop.f32.mrf.mxu1  ;;  %v3234_v22 = vrot.slane %v8264_v11, 7 }
 0x628   : > { %4226 = vrot.lane.b32.xlu1 %v3791_v10, %s5995_s25  ;;  %3959 = vrot.lane.b32.xlu0 %v3910_v26, %s5994_s24 }
 0x629   : > { %v3819_v30 = vpop.f32.mrf.mxu1 }
 0x62a   : > { %v3869_v31 = vpop.permute.xlu1 %3868 }
 0x62b   : > { %v3821_v14 = vpop.f32.mrf.mxu1  ;;  %v3939_v19 = vsel %vm9648_vm11, 0.0, %v3869_v31 }
 0x62c   : > { %4228 = vrot.lane.b32.xlu1 %v3793_v8, %s5995_s25  ;;  %v8388_v10 = vpop.permute.xlu0 %3878 }
 0x62d   : > { %v3823_v5 = vpop.f32.mrf.mxu1 }
 0x62e   : > { %v3871_v38 = vpop.permute.xlu1 %3870 }
 0x62f   : > { %v3911_v9 = vsel %vm9648_vm11, %v3869_v31, %v3871_v38  ;;  %v3827_v57 = vpop.f32.mrf.mxu1 }
 0x630   : > { %3953 = vrot.lane.b32.xlu1 %v3937_v7, %s5994_s24  ;;  %3963 = vrot.lane.b32.xlu0 %v3911_v9, %s5994_s24 }
 0x631   : > { %v3829_v24 = vpop.f32.mrf.mxu1 }
 0x632   : > { %v3873_v32 = vpop.permute.xlu1 %3872 }
 0x633   : > { %v3831_v21 = vpop.f32.mrf.mxu1  ;;  %v3940_v26 = vsel %vm9648_vm11, 0.0, %v3873_v32 }
 0x634   : > { %4234 = vrot.lane.b32.xlu1 %v3801_v63, %s5995_s25  ;;  %4244 = vrot.lane.b32.xlu0 %v3813_v54, %s5995_s25  ;;  %v8397_v63 = vpop.permute.xlu0 %3882 }
 0x635   : > { %v3833_v37 = vpop.f32.mrf.mxu1 }
 0x636   : > { %v3875_v58 = vpop.permute.xlu1 %3874 }
 0x637   : > { %v3912_v33 = vsel %vm9648_vm11, %v3873_v32, %v3875_v58 }
 0x638   : > { %4236 = vrot.lane.b32.xlu1 %v3803_v59, %s5995_s25  ;;  %3967 = vrot.lane.b32.xlu0 %v3912_v33, %s5994_s24  ;;  %v3177_v59 = vrot.slane %v8243_v25, 2 }
 0x63a   : > { %v8377_v62 = vpop.permute.xlu1 %3876 }
 0x63c   : > { %3957 = vrot.lane.b32.xlu1 %v3938_v15, %s5994_s24  ;;  %4250 = vrot.lane.b32.xlu0 %v3821_v14, %s5995_s25 }
 0x63e   : > { %v8384_v56 = vpop.permute.xlu1 %3880 }
 0x640   : > { %4238 = vrot.lane.b32.xlu1 %v3807_v28, %s5995_s25  ;;  %4252 = vrot.lane.b32.xlu0 %v3823_v5, %s5995_s25  ;;  %v8405_v28 = vpop.permute.xlu0 %3886 }
 0x642   : > { %v8390_v8 = vpop.permute.xlu1 %3884 }
 0x644   : > { %4240 = vrot.lane.b32.xlu1 %v3809_v1, %s5995_s25  ;;  %4258 = vrot.lane.b32.xlu0 %v3831_v21, %s5995_s25  ;;  %v8411_v54 = vpop.permute.xlu0 %3890  ;;  %v8435_v21 = vpop.f32.mrf.mxu0 }
 0x645   : > { %9755 = vst [vmem:[#allocation26_spill] sm:$0xff] %v8435_v21 }
 0x646   : > { %v8394_v46 = vpop.permute.xlu1 %3888 }
 0x648   : > { %3961 = vrot.lane.b32.xlu1 %v3939_v19, %s5994_s24  ;;  %4260 = vrot.lane.b32.xlu0 %v3833_v37, %s5995_s25  ;;  %v3893_v38 = vpop.permute.xlu0 %3892  ;;  %v3262_v37 = vrot.slane %v8435_v21, 7 }
 0x64a   : > { %v3895_v3 = vpop.permute.xlu1 %3894 }
 0x64c   : > { %4242 = vrot.lane.b32.xlu1 %v3811_v0, %s5995_s25  ;;  %3178 = vrot.lane.b32.xlu0 %v3177_v59, %s6001_s19  ;;  %v8419_v7 = vpop.permute.xlu0 %4080 }
 0x64e   : > { %v3897_v1 = vpop.permute.xlu1 %3896 }
 0x64f   : > { %v3946_v31 = vsel %vm9648_vm11, 0.0, %v3897_v1 }
 0x650   : > { %4246 = vrot.lane.b32.xlu1 %v3817_v2, %s5995_s25  ;;  %3182 = vrot.lane.b32.xlu0 %v3181_v43, %s5999_s29  ;;  %v8427_v5 = vpop.permute.xlu0 %4084 }
 0x652   : > { %v3899_v27 = vpop.permute.xlu1 %3898 }
 0x653   : > { %v3918_v9 = vsel %vm9648_vm11, %v3897_v1, %v3899_v27  ;;  %v3945_v1 = vsel %vm9648_vm11, 0.0, %v3893_v38 }
 0x654   : > { %3965 = vrot.lane.b32.xlu1 %v3940_v26, %s5994_s24  ;;  %3235 = vrot.lane.b32.xlu0 %v3234_v22, %s5998_s28  ;;  %v3917_v26 = vsel %vm9648_vm11, %v3893_v38, %v3895_v3 }
 0x656   : > { %v3901_v0 = vpop.permute.xlu1 %3900 }
 0x658   : > { %4248 = vrot.lane.b32.xlu1 %v3819_v30, %s5995_s25  ;;  %4021 = vrot.lane.b32.xlu0 %v3946_v31, %s5996_s26  ;;  %v3205_v30 = vrot.slane %v8245_v34, 2 }
 0x65a   : > { %v3903_v2 = vpop.permute.xlu1 %3902 }
 0x65c   : > { %4254 = vrot.lane.b32.xlu1 %v3827_v57, %s5995_s25  ;;  %4023 = vrot.lane.b32.xlu0 %v3918_v9, %s5996_s26  ;;  %v3209_v57 = vrot.slane %v8245_v34, 1  ;;  %v3947_v9 = vsel %vm9648_vm11, 0.0, %v3901_v0 }
 0x65e   : > { %v3905_v14 = vpop.permute.xlu1 %3904 }
 0x65f   : > { %v3948_v32 = vsel %vm9648_vm11, 0.0, %v3905_v14 }
 0x660   : > { %4256 = vrot.lane.b32.xlu1 %v3829_v24, %s5995_s25  ;;  %4029 = vrot.lane.b32.xlu0 %v3948_v32, %s5996_s26  ;;  %v8437_v24 = vpop.permute.xlu0 %4088 }
 0x662   : > { %v3907_v58 = vpop.permute.xlu1 %3906 }
 0x663   : > { %v3920_v33 = vsel %vm9648_vm11, %v3905_v14, %v3907_v58 }
 0x664   : > { %3206 = vrot.lane.b32.xlu1 %v3205_v30, %s6001_s19  ;;  %4031 = vrot.lane.b32.xlu0 %v3920_v33, %s5996_s26  ;;  %v8444_v59 = vpop.permute.xlu0 %4092  ;;  %v3919_v30 = vsel %vm9648_vm11, %v3901_v0, %v3903_v2 }
 0x666   : > { %v8433_v15 = vpop.permute.xlu1 %4078 }
 0x668   : > { %3210 = vrot.lane.b32.xlu1 %v3209_v57, %s5999_s29 }
 0x66a   : > { %v8441_v19 = vpop.permute.xlu1 %4082 }
 0x66c   : > { %3263 = vrot.lane.b32.xlu1 %v3262_v37, %s5998_s28 }
 0x66e   : > { %v8446_v43 = vpop.permute.xlu1 %4086  ;;  %v8450_v22 = vpop.permute.xlu0 %4146 }
 0x670   : > { %4017 = vrot.lane.b32.xlu1 %v3945_v1, %s5996_s26 }
 0x672   : > { %v8452_v27 = vpop.permute.xlu1 %4090  ;;  %v8459_v14 = vpop.permute.xlu0 %4148 }
 0x674   : > { %4019 = vrot.lane.b32.xlu1 %v3917_v26, %s5996_s26 }
 0x676   : > { %v8456_v31 = vpop.permute.xlu1 %4142  ;;  %v8466_v58 = vpop.permute.xlu0 %4154 }
 0x678   : > { %4025 = vrot.lane.b32.xlu1 %v3947_v9, %s5996_s26 }
 0x67a   : > { %v8462_v32 = vpop.permute.xlu1 %4144  ;;  %v8472_v38 = vpop.permute.xlu0 %4156 }
 0x67c   : > { %4027 = vrot.lane.b32.xlu1 %v3919_v30, %s5996_s26 }
 0x67e   : > { %v8468_v33 = vpop.permute.xlu1 %4150 }
 0x680   : > { %v4221_v37 = vpop.permute.xlu0 %4220 }
 0x681   : > { %v4292_v51 = vsel %vm9647_vm12, %v4221_v37, 0.0 }
 0x682   : > { %v8470_v3 = vpop.permute.xlu1 %4152 }
 0x686   : > { %v4215_v57 = vpop.permute.xlu1 %4214 }
 0x68a   : > { %v4217_v1 = vpop.permute.xlu1 %4216  ;;  %v8478_v0 = vpop.permute.xlu0 %4230 }
 0x68b   : > { %v4291_v26 = vsel %vm9647_vm12, %v4217_v1, 0.0  ;;  %v4263_v9 = vsel %vm9647_vm12, %v4215_v57, %v4217_v1 }
 0x68c   : > { %4309 = vrot.lane.b32.xlu1 %v4291_v26, %s5994_s24  ;;  %4307 = vrot.lane.b32.xlu0 %v4263_v9, %s5994_s24 }
 0x68e   : > { %v4219_v2 = vpop.permute.xlu1 %4218  ;;  %v8484_v4 = vpop.permute.xlu0 %4232 }
 0x68f   : > { %v4264_v30 = vsel %vm9647_vm12, %v4219_v2, %v4221_v37 }
 0x690   : > { %4313 = vrot.lane.b32.xlu1 %v4292_v51, %s5994_s24  ;;  %4311 = vrot.lane.b32.xlu0 %v4264_v30, %s5994_s24 }
 0x692   : > { %v4223_v47 = vpop.permute.xlu1 %4222  ;;  %v8490_v26 = vpop.permute.xlu0 %3955 }
 0x696   : > { %v4225_v41 = vpop.permute.xlu1 %4224 }
 0x697   : > { %v4293_v57 = vsel %vm9647_vm12, %v4225_v41, 0.0  ;;  %v4265_v1 = vsel %vm9647_vm12, %v4223_v47, %v4225_v41 }
 0x698   : > { %4317 = vrot.lane.b32.xlu0 %v4293_v57, %s5994_s24  ;;  %4315 = vrot.lane.b32.xlu1 %v4265_v1, %s5994_s24 }
 0x69a   : > { %v4227_v9 = vpop.permute.xlu1 %4226  ;;  %v8492_v37 = vpop.permute.xlu0 %3959 }
 0x69e   : > { %v4229_v51 = vpop.permute.xlu1 %4228 }
 0x69f   : > { %v4294_v2 = vsel %vm9647_vm12, %v4229_v51, 0.0  ;;  %v4266_v30 = vsel %vm9647_vm12, %v4227_v9, %v4229_v51 }
 0x6a0   : > { %4321 = vrot.lane.b32.xlu0 %v4294_v2, %s5994_s24  ;;  %4319 = vrot.lane.b32.xlu1 %v4266_v30, %s5994_s24 }
 0x6a2   : > { %v8498_v55 = vpop.permute.xlu0 %3963  ;;  %v8500_v41 = vpop.permute.xlu1 %3953 }
 0x6a6   : > { %v8502_v47 = vpop.permute.xlu0 %4244  ;;  %v8504_v57 = vpop.permute.xlu1 %4234 }
 0x6a7   : > { %9756 = vst [vmem:[#allocation27_spill] sm:$0xff] %v8504_v57 }
 0x6aa   : > { %v8506_v1 = vpop.permute.xlu0 %3967  ;;  %v8508_v12 = vpop.permute.xlu1 %4236 }
 0x6ab   : > { %9757 = vst [vmem:[#allocation28_spill] sm:$0xff] %v8508_v12 }
 0x6ae   : > { %v4251_v61 = vpop.permute.xlu0 %4250  ;;  %v8510_v45 = vpop.permute.xlu1 %3957 }
 0x6b2   : > { %v4253_v9 = vpop.permute.xlu0 %4252  ;;  %v8512_v51 = vpop.permute.xlu1 %4238 }
 0x6b3   : > { %9758 = vst [vmem:[#allocation29_spill] sm:$0xff] %v8512_v51  ;;  %v4300_v2 = vsel %vm9647_vm12, %v4253_v9, 0.0  ;;  %v4272_v30 = vsel %vm9647_vm12, %v4251_v61, %v4253_v9  ;;  %v3266_v61 = vrot.slane %v8435_v21, 6 }
 0x6b4   : > { %4373 = vrot.lane.b32.xlu1 %v4300_v2, %s5996_s26  ;;  %v3270_v2 = vrot.slane %v8435_v21, 5 }
 0x6b6   : > { %v4259_v44 = vpop.permute.xlu0 %4258  ;;  %v8517_v29 = vpop.permute.xlu1 %4240 }
 0x6b7   : > { %9759 = vst [vmem:[#allocation30_spill] sm:$0xff] %v8517_v29  ;;  %v8533_v29 = vpop.f32.mrf.mxu0 }
 0x6b8   : > { %4371 = vrot.lane.b32.xlu1 %v4272_v30, %s5996_s26  ;;  %9761 = vst [vmem:[#allocation5_spill] sm:$0xff] %v8533_v29 }
 0x6ba   : > { %v4261_v57 = vpop.permute.xlu0 %4260  ;;  %v8520_v60 = vpop.permute.xlu1 %3961 }
 0x6bb   : > { %v4302_v6 = vsel %vm9647_vm12, %v4261_v57, 0.0  ;;  %v4274_v51 = vsel %vm9647_vm12, %v4259_v44, %v4261_v57 }
 0x6bc   : > { %4381 = vrot.lane.b32.xlu1 %v4302_v6, %s5996_s26  ;;  %v3277_v6 = vrot.slane %v8533_v29, 3 }
 0x6be   : > { %v8525_v12 = vpop.permute.xlu1 %4242 }
 0x6bf   : > { %9760 = vst [vmem:[#allocation31_spill] sm:$0xff] %v8525_v12  ;;  %v3179_v12 = vpop.permute.xlu0 %3178 }
 0x6c0   : > { %4379 = vrot.lane.b32.xlu1 %v4274_v51, %s5996_s26  ;;  %v3281_v51 = vrot.slane %v8533_v29, 2 }
 0x6c2   : > { %v4247_v9 = vpop.permute.xlu1 %4246 }
 0x6c4   : > { %3267 = vrot.lane.b32.xlu1 %v3266_v61, %s6001_s19 }
 0x6c6   : > { %v8531_v30 = vpop.permute.xlu1 %3965 }
 0x6c8   : > { %3271 = vrot.lane.b32.xlu1 %v3270_v2, %s5999_s29  ;;  %v3213_v2 = vsel %vm2455_vm9, %v8225_v20, %v8361_v50 }
 0x6ca   : > { %v4249_v44 = vpop.permute.xlu1 %4248 }
 0x6cb   : > { %v4299_v57 = vsel %vm9647_vm12, %v4249_v44, 0.0  ;;  %v4271_v21 = vsel %vm9647_vm12, %v4247_v9, %v4249_v44  ;;  %v3226_v9 = vsel %vm2455_vm9, %v8227_v13, %v8330_v35  ;;  %v3199_v13 = vrot.slane %v8245_v34, 4 }
 0x6cc   : > { %3278 = vrot.lane.b32.xlu1 %v3277_v6, %s5998_s28  ;;  %4369 = vrot.lane.b32.xlu0 %v4299_v57, %s5996_s26  ;;  %v3285_v6 = vrot.slane %v8533_v29, 1  ;;  %v3215_v57 = vsel %vm3214_vm13, %v3213_v2, %v8368_v40  ;;  %v3227_v20 = vsel %vm3214_vm13, %v3226_v9, %v8336_v23  ;;  %v3183_v40 = vpop.permute.xlu0 %3182 }
 0x6cd   : > { %v3217_v44 = vsel %vm3216_vm14, %v3215_v57, %v8373_v48  ;;  %v3228_v50 = vsel %vm3216_vm14, %v3227_v20, %v8340_v39  ;;  %v3303_v39 = vld [vmem:[%s9561_s5] sm:$0xff]  ;;  %v3242_v20 = vrot.slane %v8264_v11, 5 }
 0x6ce   : > { %v4255_v61 = vpop.permute.xlu1 %4254 }
 0x6d0   : > { %3282 = vrot.lane.b32.xlu1 %v3281_v51, %s6001_s19  ;;  %4367 = vrot.lane.b32.xlu0 %v4271_v21, %s5996_s26  ;;  %v3171_v51 = vrot.slane %v8243_v25, 4  ;;  %v8565_v25 = vpop.f32.mrf.mxu0 }
 0x6d1   : > { %9762 = vst [vmem:[#allocation10_spill] sm:$0xff] %v8565_v25 }
 0x6d2   : > { %v4257_v42 = vpop.permute.xlu1 %4256  ;;  %v3219_v35 = vsel %vm3218_vm15, %v3217_v44, %v3171_v51 }
 0x6d3   : > { %v4301_v21 = vsel %vm9647_vm12, %v4257_v42, 0.0  ;;  %v3221_v23 = vsel %vm3220_vm0, %v3219_v35, %v8382_v53  ;;  %v4273_v2 = vsel %vm9647_vm12, %v4255_v61, %v4257_v42  ;;  %v3304_v42 = vld [vmem:[%s9561_s5 + $0x8] sm:$0xff]  ;;  %v3346_v61 = vrot.slane %v8565_v25, 7  ;;  %v8598_v35 = vpop.f32.mrf.mxu0 }
 0x6d4   : > { %3286 = vrot.lane.b32.xlu1 %v3285_v6, %s5999_s29  ;;  %4377 = vrot.lane.b32.xlu0 %v4301_v21, %s5996_s26  ;;  %v3229_v6 = vsel %vm3218_vm15, %v3228_v50, %v3199_v13  ;;  %v3223_v57 = vsel %vm3222_vm1, %v3221_v23, %v3179_v12  ;;  %v3238_v12 = vrot.slane %v8264_v11, 6  ;;  %v3350_v50 = vrot.slane %v8565_v25, 6  ;;  %9765 = vst [vmem:[#allocation15_spill] sm:$0xff] %v8598_v35  ;;  %v9769_v13 = vld [vmem:[#allocation2_spill] sm:$0xff] }
 0x6d5   : > { %v3230_v34 = vsel %vm3220_vm0, %v3229_v6, %v8344_v18  ;;  %v3225_v53 = vsel %vm3224_vm2, %v3223_v57, %v3183_v40  ;;  %v3249_v40 = vrot.slane %v8266_v36, 3  ;;  %v3253_v23 = vrot.slane %v8266_v36, 2 }
 0x6d6   : > { %v3207_v48 = vpop.permute.xlu1 %3206  ;;  %v8588_v18 = vadd.f32 %v3303_v39, %v3225_v53  ;;  %v3257_v6 = vrot.slane %v8266_v36, 1  ;;  %v3365_v57 = vrot.slane %v8598_v35, 2  ;;  %v3317_v39 = vrot.slane %v8268_v49, 7 }
 0x6d7   : > { %v3231_v9 = vsel %vm3222_vm1, %v3230_v34, %v3207_v48  ;;  %v3357_v48 = vrot.slane %v8598_v35, 4  ;;  %v8614_v34 = vpop.f32.mrf.mxu0  ;;  %vm9652_vm4 = vcmp.ne.s32.totalorder %v9769_v13, 0  ;;  %vm9650_vm7 = vcmp.ne.s32.totalorder %v9769_v13, 15 }
 0x6d8   : > { %3343 = vrot.lane.b32.xlu1 %v8565_v25, %s5998_s28  ;;  %4375 = vrot.lane.b32.xlu0 %v4273_v2, %s5996_s26  ;;  %9763 = vst [vmem:[#allocation12_spill] sm:$0xff] %v8588_v18  ;;  %v3361_v2 = vrot.slane %v8598_v35, 3  ;;  %9766 = vst [vmem:[#allocation17_spill] sm:$0xff] %v8614_v34  ;;  %v3418_v53 = vrot.slane %v8614_v34, 7  ;;  %v4096_v35 = vsel %vm9649_vm6, %v8446_v43, %v8437_v24 }
 0x6d9   : > { %v4161_v25 = vsel %vm9646_vm10, %v8466_v58, %v8472_v38  ;;  %v3972_v58 = vsel %vm9649_vm6, %v8531_v30, %v8506_v1  ;;  %v3983_v1 = vsel %vm9649_vm6, 0.0, %v8520_v60 }
 0x6da   : > { %v3211_v44 = vpop.permute.xlu1 %3210 }
 0x6db   : > { %v3232_v21 = vsel %vm3224_vm2, %v3231_v9, %v3211_v44  ;;  %v3328_v44 = vrot.slane %v8270_v17, 4 }
 0x6dc   : > { %v8590_v51 = vadd.f32 %v3304_v42, %v3232_v21  ;;  %3347 = vrot.lane.b32.xlu1 %v3346_v61, %s6001_s19  ;;  %3239 = vrot.lane.b32.xlu0 %v3238_v12, %s6001_s19  ;;  %v3321_v42 = vrot.slane %v8268_v49, 6  ;;  %v3422_v12 = vrot.slane %v8614_v34, 6  ;;  %v8626_v61 = vpop.f32.mrf.mxu0 }
 0x6dd   : > { %9767 = vst [vmem:[#allocation34_spill] sm:$0xff] %v8626_v61  ;;  %v3429_v21 = vrot.slane %v8626_v61, 4 }
 0x6de   : > { %9764 = vst [vmem:[#allocation13_spill] sm:$0xff] %v8590_v51  ;;  %v8628_v9 = vpop.permute.xlu1 %3263  ;;  %v3971_v51 = vsel %vm9649_vm6, %v8520_v60, %v8498_v55 }
 0x6df   : > { %v3994_v60 = vsel %vm9652_vm4, %v3971_v51, 0.0 }
 0x6e0   : > { %3351 = vrot.lane.b32.xlu1 %v3350_v50, %s5999_s29  ;;  %3243 = vrot.lane.b32.xlu0 %v3242_v20, %s5999_s29  ;;  %v3332_v20 = vrot.slane %v8270_v17, 3  ;;  %v3433_v50 = vrot.slane %v8626_v61, 3 }
 0x6e4   : > { %3358 = vrot.lane.b32.xlu1 %v3357_v48, %s5998_s28  ;;  %3250 = vrot.lane.b32.xlu0 %v3249_v40, %s5998_s28  ;;  %v8638_v40 = vpop.permute.xlu1 %4017  ;;  %v3336_v48 = vrot.slane %v8270_v17, 2  ;;  %v8719_v17 = vsel %vm9648_vm11, 0.0, %v8394_v46 }
 0x6e8   : > { %3362 = vrot.lane.b32.xlu1 %v3361_v2, %s6001_s19  ;;  %3254 = vrot.lane.b32.xlu0 %v3253_v23, %s6001_s19  ;;  %v3437_v23 = vrot.slane %v8626_v61, 2  ;;  %v8644_v2 = vpop.permute.xlu1 %4019  ;;  %v8686_v61 = vsel %vm9648_vm11, 0.0, %v8377_v62 }
 0x6e9   : > { %v4034_v51 = vsel %vm9646_vm10, %v8638_v40, %v8644_v2 }
 0x6ec   : > { %3366 = vrot.lane.b32.xlu1 %v3365_v57, %s5999_s29  ;;  %3258 = vrot.lane.b32.xlu0 %v3257_v6, %s5999_s29  ;;  %v3389_v6 = vrot.slane %v8272_v16, 7  ;;  %v8651_v57 = vpop.permute.xlu1 %4025 }
 0x6f0   : > { %3415 = vrot.lane.b32.xlu1 %v8614_v34, %s5998_s28  ;;  %3314 = vrot.lane.b32.xlu0 %v8268_v49, %s5998_s28  ;;  %v8699_v34 = vsel %vm9648_vm11, %v8390_v8, %v8405_v28  ;;  %v4107_v28 = vsel %vm9649_vm6, 0.0, %v8441_v19 }
 0x6f4   : > { %3419 = vrot.lane.b32.xlu1 %v3418_v53, %s6001_s19  ;;  %3318 = vrot.lane.b32.xlu0 %v3317_v39, %s6001_s19  ;;  %v3393_v39 = vrot.slane %v8272_v16, 6  ;;  %v8655_v53 = vpop.permute.xlu0 %3235 }
 0x6f8   : > { %3423 = vrot.lane.b32.xlu1 %v3422_v12, %s5999_s29  ;;  %3322 = vrot.lane.b32.xlu0 %v3321_v42, %s5999_s29  ;;  %v8657_v42 = vpop.permute.xlu1 %4027  ;;  %v3400_v12 = vrot.slane %v8274_v52, 4 }
 0x6fc   : > { %3430 = vrot.lane.b32.xlu1 %v3429_v21, %s5998_s28  ;;  %3329 = vrot.lane.b32.xlu0 %v3328_v44, %s5998_s28  ;;  %v8661_v44 = vpop.permute.xlu0 %4021 }
 0x6fe   : > { %v8663_v21 = vpop.permute.xlu1 %4309 }
 0x700   : > { %3434 = vrot.lane.b32.xlu1 %v3433_v50, %s6001_s19  ;;  %3333 = vrot.lane.b32.xlu0 %v3332_v20, %s6001_s19  ;;  %v3404_v20 = vrot.slane %v8274_v52, 3  ;;  %v3408_v50 = vrot.slane %v8274_v52, 2  ;;  %v3942_v52 = vsel %vm9648_vm11, 0.0, %v8384_v56 }
 0x704   : > { %3438 = vrot.lane.b32.xlu1 %v3437_v23, %s5999_s29  ;;  %3337 = vrot.lane.b32.xlu0 %v3336_v48, %s5999_s29  ;;  %v8669_v48 = vpop.permute.xlu0 %4023  ;;  %v8671_v23 = vpop.permute.xlu1 %4313 }
 0x708   : > { %3386 = vrot.lane.b32.xlu0 %v8272_v16, %s5998_s28  ;;  %v8707_v16 = vsel %vm9648_vm11, 0.0, %v8390_v8  ;;  %v4095_v8 = vsel %vm9649_vm6, %v8441_v19, %v8427_v5  ;;  %v4159_v5 = vsel %vm9646_vm10, %v8450_v22, %v8459_v14 }
 0x709   : > { %v8758_v22 = vsel %vm9652_vm4, %v4095_v8, 0.0 }
 0x70c   : > { %3390 = vrot.lane.b32.xlu0 %v3389_v6, %s6001_s19  ;;  %v8674_v6 = vpop.permute.xlu1 %4315 }
 0x710   : > { %3394 = vrot.lane.b32.xlu0 %v3393_v39, %s5999_s29  ;;  %v9768_v39 = vld [vmem:[#allocation3_spill] sm:$0xff] }
 0x711   : > { %vm9653_vm3 = vcmp.ne.s32.totalorder %v9768_v39, 0  ;;  %vm9651_vm5 = vcmp.ne.s32.totalorder %v9768_v39, 15 }
 0x712   : > { %v8747_v19 = vsel %vm9653_vm3, %v4107_v28, 0.0  ;;  %v8766_v28 = vsel %vm9652_vm4, %v4096_v35, 0.0  ;;  %v3982_v35 = vsel %vm9649_vm6, 0.0, %v8510_v45 }
 0x714   : > { %3401 = vrot.lane.b32.xlu0 %v3400_v12, %s5998_s28  ;;  %v8679_v12 = vpop.permute.xlu0 %4029 }
 0x718   : > { %3405 = vrot.lane.b32.xlu0 %v3404_v20, %s6001_s19  ;;  %v3913_v20 = vsel %vm9648_vm11, %v8377_v62, %v8388_v10  ;;  %v4106_v62 = vsel %vm9649_vm6, 0.0, %v8433_v15  ;;  %v8703_v10 = vpop.permute.xlu1 %4319 }
 0x71c   : > { %3409 = vrot.lane.b32.xlu0 %v3408_v50, %s5999_s29  ;;  %v8692_v50 = vsel %vm9648_vm11, %v8384_v56, %v8397_v63  ;;  %v3916_v63 = vsel %vm9648_vm11, %v8394_v46, %v8411_v54  ;;  %v4094_v56 = vsel %vm9649_vm6, %v8433_v15, %v8419_v7  ;;  %v4108_v54 = vsel %vm9649_vm6, 0.0, %v8446_v43  ;;  %s6005_s29 = smov 111  }
 0x71d   : > { %v8731_v7 = vsel %vm9653_vm3, %v4106_v62, 0.0  ;;  %v4097_v46 = vsel %vm9649_vm6, %v8452_v27, %v8444_v59  ;;  %v4109_v15 = vsel %vm9649_vm6, 0.0, %v8452_v27  ;;  %v8743_v24 = vsel %vm9652_vm4, %v4094_v56, 0.0  ;;  %v4032_v27 = vpop.permute.xlu0 %4031 }
 0x71e   : > { %v4171_v43 = vsel %vm9646_vm10, %v8459_v14, 0.0  ;;  %v3969_v59 = vsel %vm9649_vm6, %v8500_v41, %v8490_v26  ;;  %v8762_v56 = vsel %vm9653_vm3, %v4108_v54, 0.0  ;;  %v4158_v14 = vsel %vm9646_vm10, %v8456_v31, %v8462_v32 }
 0x71f   : > { %v8773_v26 = vsel %vm9653_vm3, %v4109_v15, 0.0  ;;  %v8777_v8 = vsel %vm9652_vm4, %v4097_v46, 0.0  ;;  %v8781_v54 = vsel %vm9651_vm5, %v4159_v5, 0.0  ;;  %v8787_v49 = vsel %vm9650_vm7, %v4171_v43, 0.0 }
 0x720   : > { %v4170_v31 = vsel %vm9646_vm10, %v8462_v32, 0.0  ;;  %v3981_v15 = vsel %vm9649_vm6, 0.0, %v8500_v41  ;;  %v3990_v46 = vsel %vm9652_vm4, %v3969_v59, 0.0  ;;  %v8797_v5 = vsel %vm9651_vm5, %v4158_v14, 0.0 }
 0x721   : > { %v4173_v43 = vsel %vm9646_vm10, %v8472_v38, 0.0  ;;  %v3970_v32 = vsel %vm9649_vm6, %v8510_v45, %v8492_v37  ;;  %v8807_v18 = vpop.permute.xlu0 %4307  ;;  %v4160_v59 = vsel %vm9646_vm10, %v8468_v33, %v8470_v3  ;;  %v3991_v14 = vsel %vm9653_vm3, %v3982_v35, 0.0 }
 0x722   : > { %v4035_v38 = vsel %vm9646_vm10, %v8661_v44, %v8669_v48  ;;  %v3989_v45 = vsel %vm9653_vm3, %v3981_v15, 0.0  ;;  %v4006_v37 = vadd.f32 %v3990_v46, %v3913_v20  ;;  %v4046_v33 = vsel %vm9646_vm10, %v8644_v2, 0.0 }
 0x723   : > { %v3992_v35 = vsel %vm9652_vm4, %v3970_v32, 0.0  ;;  %v3984_v44 = vsel %vm9649_vm6, 0.0, %v8531_v30  ;;  %v4049_v36 = vsel %vm9646_vm10, %v4032_v27, 0.0  ;;  %v4007_v15 = vadd.f32 %v3991_v14, %v3942_v52 }
 0x724   : > { %v3996_v20 = vsel %vm9652_vm4, %v3972_v58, 0.0  ;;  %v4056_v55 = vsel %vm9651_vm5, %v4035_v38, 0.0  ;;  %v4048_v46 = vsel %vm9646_vm10, %v8657_v42, 0.0  ;;  %v4047_v30 = vsel %vm9646_vm10, %v8669_v48, 0.0 }
 0x725   : > { %v4037_v52 = vsel %vm9646_vm10, %v8679_v12, %v4032_v27  ;;  %v4055_v32 = vsel %vm9650_vm7, %v4046_v33, 0.0  ;;  %v3993_v14 = vsel %vm9653_vm3, %v3983_v1, 0.0  ;;  %v3995_v58 = vsel %vm9653_vm3, %v3984_v44, 0.0  ;;  %v8861_v48 = vpop.permute.xlu0 %4311 }
 0x726   : > { %v8754_v62 = vpop.permute.xlu1 %4373  ;;  %v4061_v38 = vsel %vm9650_vm7, %v4049_v36, 0.0  ;;  %v4012_v11 = vadd.f32 %v3996_v20, %v3916_v63  ;;  %v4064_v12 = vadd.f32 %v4056_v55, %v4007_v15  ;;  %v4036_v27 = vsel %vm9646_vm10, %v8651_v57, %v8657_v42 }
 0x727   : > { %v4059_v33 = vsel %vm9650_vm7, %v4048_v46, 0.0  ;;  %v4010_v1 = vadd.f32 %v3994_v60, %v8699_v34  ;;  %v4057_v36 = vsel %vm9650_vm7, %v4047_v30, 0.0  ;;  %v4060_v44 = vsel %vm9651_vm5, %v4037_v52, 0.0 }
 0x728   : > { %v4063_v40 = vadd.f32 %v4055_v32, %v4006_v37  ;;  %v4008_v63 = vadd.f32 %v3992_v35, %v8692_v50  ;;  %v4011_v15 = vadd.f32 %v3995_v58, %v8719_v17  ;;  %v4069_v20 = vadd.f32 %v4061_v38, %v4012_v11  ;;  %v9770_v38 = vld [vmem:[#allocation16_spill] sm:$0xff] }
 0x729   : > { %v4054_v57 = vsel %vm9651_vm5, %v4034_v51, 0.0  ;;  %v4172_v34 = vsel %vm9646_vm10, %v8470_v3, 0.0  ;;  %v4005_v42 = vadd.f32 %v3989_v45, %v8686_v61  ;;  %v4058_v55 = vsel %vm9651_vm5, %v4036_v27, 0.0  ;;  %v4318_v37 = vpop.permute.xlu0 %4317 }
 0x72a   : > { %v8809_v41 = vpop.permute.xlu1 %4371  ;;  %v4067_v46 = vadd.f32 %v4059_v33, %v4010_v1  ;;  %v4009_v60 = vadd.f32 %v3993_v14, %v8707_v16  ;;  %v4065_v30 = vadd.f32 %v4057_v36, %v4008_v63  ;;  %v4120_v50 = vadd.f32 %v8747_v19, %v4064_v12  ;;  %v9771_v12 = vld [vmem:[#allocation28_spill] sm:$0xff]  ;;  %v9773_v1 = vld [vmem:[#allocation30_spill] sm:$0xff]  ;;  %v9774_v36 = vld [vmem:[#allocation29_spill] sm:$0xff] }
 0x72b   : > { %v4068_v17 = vadd.f32 %v4060_v44, %v4011_v15  ;;  %v4175_v11 = vsel %vm9650_vm7, %v4170_v31, 0.0  ;;  %v4180_v35 = vsel %vm9651_vm5, %v4161_v25, 0.0  ;;  %v4062_v3 = vadd.f32 %v4054_v57, %v4005_v42  ;;  %v9772_v33 = vld [vmem:[#allocation32_spill] sm:$0xff]  ;;  %v9776_v15 = vld [vmem:[#allocation31_spill] sm:$0xff] }
 0x72c   : > { %v4119_v61 = vadd.f32 %v8743_v24, %v4063_v40  ;;  %v4181_v52 = vsel %vm9650_vm7, %v4173_v43, 0.0  ;;  %v4178_v16 = vsel %vm9651_vm5, %v4160_v59, 0.0  ;;  %v4125_v19 = vadd.f32 %v8777_v8, %v4069_v20  ;;  %v9775_v44 = vld [vmem:[#allocation8_spill] sm:$0xff] }
 0x72d   : > { %v4066_v32 = vadd.f32 %v4058_v55, %v4009_v60  ;;  %v4179_v31 = vsel %vm9650_vm7, %v4172_v34, 0.0  ;;  %v8903_v25 = vsel %vm9647_vm12, %v8478_v0, %v8484_v4  ;;  %v4295_v24 = vsel %vm9647_vm12, %v8484_v4, 0.0  ;;  %v4322_v43 = vpop.permute.xlu0 %4321 }
 0x72e   : > { %v8842_v29 = vpop.permute.xlu1 %4381  ;;  %v4123_v14 = vadd.f32 %v8766_v28, %v4067_v46  ;;  %v4298_v59 = vsel %vm9647_vm12, %v8502_v47, 0.0  ;;  %v4121_v8 = vadd.f32 %v8758_v22, %v4065_v30  ;;  %v4124_v58 = vadd.f32 %v8773_v26, %v4068_v17  ;;  %v9778_v46 = vld [vmem:[#allocation7_spill] sm:$0xff]  ;;  %v9779_v30 = vld [vmem:[#allocation18_spill] sm:$0xff]  ;;  %v9780_v17 = vld [vmem:[#allocation25_spill] sm:$0xff] }
 0x72f   : > { %v4128_v51 = vadd.f32 %v4120_v50, %v9770_v38  ;;  %v8915_v27 = vsel %vm9647_vm12, %v9771_v12, 0.0  ;;  %v4118_v0 = vadd.f32 %v8731_v7, %v4062_v3  ;;  %v4127_v4 = vadd.f32 %v4119_v61, %v9772_v33 }
 0x730   : > { %v4323_v28 = vsel %vm9649_vm6, %v8807_v18, %v8663_v21  ;;  %v8925_v22 = vsel %vm9647_vm12, %v9774_v36, %v9773_v1  ;;  %v4122_v26 = vadd.f32 %v8762_v56, %v4066_v32  ;;  %v4133_v40 = vadd.f32 %v4125_v19, %v9775_v44  ;;  %v9777_v21 = vld [vmem:[#allocation33_spill] sm:$0xff]  ;;  %v9781_v32 = vld [vmem:[#allocation4_spill] sm:$0xff] }
 0x731   : > { %v4326_v63 = vsel %vm9649_vm6, %v8703_v10, %v4322_v43  ;;  %v4297_v7 = vsel %vm9647_vm12, %v9773_v1, 0.0  ;;  %v4270_v20 = vsel %vm9647_vm12, %v9776_v15, %v8502_v47  ;;  %v4131_v57 = vadd.f32 %v4123_v14, %v9777_v21 }
 0x732   : > { %v8873_v2 = vpop.permute.xlu1 %4379  ;;  %v4325_v34 = vsel %vm9649_vm6, %v8674_v6, %v4318_v37  ;;  %v4340_v56 = vsel %vm9652_vm4, %v4323_v28, 0.0  ;;  %v4184_v55 = vadd.f32 %v8781_v54, %v4128_v51  ;;  %v4129_v60 = vadd.f32 %v4121_v8, %v9778_v46 }
 0x733   : > { %v4132_v50 = vadd.f32 %v4124_v58, %v9779_v30  ;;  %v4126_v3 = vadd.f32 %v4118_v0, %v9780_v17  ;;  %v4335_v47 = vsel %vm9649_vm6, 0.0, %v8807_v18  ;;  %v4183_v61 = vadd.f32 %v4175_v11, %v4127_v4 }
 0x734   : > { %v4346_v37 = vsel %vm9652_vm4, %v4326_v63, 0.0  ;;  %v4130_v14 = vadd.f32 %v4122_v26, %v9781_v32  ;;  %v4344_v43 = vsel %vm9652_vm4, %v4325_v34, 0.0  ;;  %v4189_v54 = vadd.f32 %v4181_v52, %v4133_v40 }
 0x735   : > { %v4338_v8 = vsel %vm9649_vm6, 0.0, %v8703_v10  ;;  %v4348_v58 = vadd.f32 %v4340_v56, %v4183_v61  ;;  %v4324_v38 = vsel %vm9649_vm6, %v8861_v48, %v8671_v23  ;;  %v4187_v18 = vadd.f32 %v4179_v31, %v4131_v57 }
 0x736   : > { %v8891_v45 = vpop.permute.xlu1 %3267  ;;  %v4337_v11 = vsel %vm9649_vm6, 0.0, %v8674_v6  ;;  %v4339_v51 = vsel %vm9653_vm3, %v4335_v47, 0.0  ;;  %v4185_v0 = vadd.f32 %v8787_v49, %v4129_v60  ;;  %v4354_v33 = vadd.f32 %v4346_v37, %v4189_v54 }
 0x737   : > { %v4398_v52 = vsel %vm9646_vm10, %v8842_v29, 0.0  ;;  %v4182_v10 = vadd.f32 %v8797_v5, %v4126_v3  ;;  %v4336_v4 = vsel %vm9649_vm6, 0.0, %v8861_v48  ;;  %v4352_v28 = vadd.f32 %v4344_v43, %v4187_v18  ;;  %v9782_v43 = vld [vmem:[#allocation11_spill] sm:$0xff] }
 0x738   : > { %v4345_v23 = vsel %vm9653_vm3, %v4338_v8, 0.0  ;;  %v4342_v1 = vsel %vm9652_vm4, %v4324_v38, 0.0  ;;  %v4186_v49 = vadd.f32 %v4178_v16, %v4130_v14  ;;  %v4343_v36 = vsel %vm9653_vm3, %v4337_v11, 0.0 }
 0x739   : > { %v4188_v26 = vadd.f32 %v4180_v35, %v4132_v50  ;;  %v4347_v44 = vadd.f32 %v4339_v51, %v4182_v10  ;;  %v4406_v5 = vsel %vm9650_vm7, %v4398_v52, 0.0  ;;  %v4356_v48 = vadd.f32 %v4348_v58, %v4295_v24  ;;  %v9783_v58 = vld [vmem:[#allocation20_spill] sm:$0xff] }
 0x73a   : > { %v8939_v42 = vpop.permute.xlu1 %3271  ;;  %v4341_v63 = vsel %vm9653_vm3, %v4336_v4, 0.0  ;;  %v4362_v21 = vadd.f32 %v4354_v33, %v4298_v59  ;;  %v4386_v16 = vsel %vm9646_vm10, %v8873_v2, %v8842_v29  ;;  %v4350_v57 = vadd.f32 %v4342_v1, %v4185_v0  ;;  %v9785_v52 = vld [vmem:[#allocation24_spill] sm:$0xff]  ;;  %v9786_v1 = vld [vmem:[#allocation9_spill] sm:$0xff] }
 0x73b   : > { %v4353_v15 = vadd.f32 %v4345_v23, %v4188_v26  ;;  %v4351_v34 = vadd.f32 %v4343_v36, %v4186_v49  ;;  %v4396_v35 = vsel %vm9646_vm10, %v8754_v62, 0.0  ;;  %v4360_v46 = vadd.f32 %v4352_v28, %v4297_v7 }
 0x73c   : > { %v4414_v60 = vadd.f32 %v4406_v5, %v4362_v21  ;;  %v4349_v59 = vadd.f32 %v4341_v63, %v4184_v55  ;;  %v4405_v17 = vsel %vm9651_vm5, %v4386_v16, 0.0  ;;  %v4355_v29 = vadd.f32 %v4347_v44, %v8903_v25  ;;  %v9787_v63 = vld [vmem:[#allocation26_spill] sm:$0xff] }
 0x73d   : > { %v4402_v7 = vsel %vm9650_vm7, %v4396_v35, 0.0  ;;  %v4384_v47 = vsel %vm9646_vm10, %v8809_v41, %v8754_v62  ;;  %v4361_v61 = vadd.f32 %v4353_v15, %v4270_v20  ;;  %v4358_v55 = vadd.f32 %v4350_v57, %v8915_v27  ;;  %v9784_v62 = vld [vmem:[#allocation27_spill] sm:$0xff] }
 0x73e   : > { %v4370_v19 = vpop.permute.xlu0 %4369  ;;  %v8971_v31 = vpop.permute.xlu1 %3278  ;;  %v4359_v14 = vadd.f32 %v4351_v34, %v8925_v22  ;;  %v4446_v54 = vadd.f32 %v9782_v43, %v4414_v60  ;;  %v4268_v41 = vsel %vm9647_vm12, %v9784_v62, %v9771_v12  ;;  %v4401_v27 = vsel %vm9651_vm5, %v4384_v47, 0.0  ;;  %v9788_v34 = vld [vmem:[#allocation19_spill] sm:$0xff] }
 0x73f   : > { %v4395_v40 = vsel %vm9646_vm10, %v4370_v19, 0.0  ;;  %v4413_v8 = vadd.f32 %v4405_v17, %v4361_v61  ;;  %v4410_v20 = vadd.f32 %v4402_v7, %v4358_v55  ;;  %v4357_v51 = vadd.f32 %v4349_v59, %v4268_v41  ;;  %v9795_v41 = vld [vmem:[#allocation10_spill] sm:$0xff] }
 0x740   : > { %v4400_v24 = vsel %vm9650_vm7, %v4395_v40, 0.0  ;;  %v3296_v15 = vsel %vm2455_vm9, %v9787_v63, %v8628_v9  ;;  %v3289_v35 = vsel %vm2455_vm9, %v9788_v34, %v8655_v53  ;;  %v9790_v9 = vld [vmem:[#allocation21_spill] sm:$0xff] }
 0x741   : > { %v4409_v23 = vadd.f32 %v4401_v27, %v4357_v51  ;;  %v4442_v49 = vadd.f32 %v9786_v1, %v4410_v20  ;;  %v3297_v16 = vsel %vm3214_vm13, %v3296_v15, %v8891_v45  ;;  %v3341_v20 = vrot.slane %v9795_v41, 1  ;;  %v9800_v41 = vld [vmem:[#allocation17_spill] sm:$0xff] }
 0x742   : > { %v4368_v6 = vpop.permute.xlu0 %4367  ;;  %v3283_v2 = vpop.permute.xlu1 %3282 }
 0x743   : > { %v4383_v30 = vsel %vm9646_vm10, %v4368_v6, %v4370_v19  ;;  %v4408_v19 = vadd.f32 %v4400_v24, %v4356_v48  ;;  %v4445_v6 = vadd.f32 %v9782_v43, %v4413_v8  ;;  %v4441_v48 = vadd.f32 %v9786_v1, %v4409_v23 }
 0x744   : > { %v4399_v32 = vsel %vm9651_vm5, %v4383_v30, 0.0 }
 0x745   : > { %v4407_v22 = vadd.f32 %v4399_v32, %v4355_v29  ;;  %v4440_v10 = vadd.f32 %v9785_v52, %v4408_v19  ;;  %v9791_v29 = vld [vmem:[#allocation13_spill] sm:$0xff]  ;;  %v3305_v32 = vld [vmem:[%s9561_s5 + $0x10] sm:$0xff] }
 0x746   : > { %v4378_v56 = vpop.permute.xlu0 %4377  ;;  %v3287_v4 = vpop.permute.xlu1 %3286 }
 0x747   : > { %v4397_v50 = vsel %vm9646_vm10, %v4378_v56, 0.0  ;;  %v4439_v36 = vadd.f32 %v9785_v52, %v4407_v22  ;;  %v4450_v5 = vpack.c.bf16 %v4442_v49, %v4440_v10 }
 0x748   : > { %v4404_v3 = vsel %vm9650_vm7, %v4397_v50, 0.0  ;;  %v3247_v50 = vrot.slane %v9790_v9, 4 }
 0x749   : > { %v4412_v37 = vadd.f32 %v4404_v3, %v4360_v46  ;;  %v4449_v21 = vpack.c.bf16 %v4441_v48, %v4439_v36  ;;  %v9789_v46 = vld [vmem:[#allocation5_spill] sm:$0xff]  ;;  %v9792_v3 = vld [vmem:[#allocation12_spill] sm:$0xff] }
 0x74a   : > { %v4376_v25 = vpop.permute.xlu0 %4375  ;;  %v3344_v40 = vpop.permute.xlu1 %3343  ;;  %v3275_v60 = vrot.slane %v9789_v46, 4  ;;  %v9793_v7 = vpack.c.bf16 %v9791_v29, %v9792_v3 }
 0x74b   : > { %v4444_v38 = vadd.f32 %v9783_v58, %v4412_v37  ;;  %v4385_v18 = vsel %vm9646_vm10, %v4376_v25, %v4378_v56  ;;  %v3298_v56 = vsel %vm3216_vm14, %v3297_v16, %v8939_v42  ;;  %v9794_v42 = vmov 0   ;;  %v3306_v37 = vld [vmem:[%s9561_s5 + $0x18] sm:$0xff] }
 0x74c   : > { %v4403_v11 = vsel %vm9651_vm5, %v4385_v18, 0.0  ;;  %v3299_v59 = vsel %vm3218_vm15, %v3298_v56, %v3275_v60  ;;  %v3376_v22 = vsel %vm2455_vm9, %v3341_v20, %v3344_v40  ;;  %v3456_v40 = vld [vmem:[%s9562_s6 + $0x8] sm:$0xff]  ;;  %v3413_v20 = vrot.slane %v9800_v41, 1  ;;  %v4856_v41 = vld [vmem:[%s9566_s10 + $0x50] sm:$0xff] }
 0x74d   : > { %v4411_v0 = vadd.f32 %v4403_v11, %v4359_v14  ;;  %v4452_v33 = vpack.c.bf16 %v4446_v54, %v4444_v38  ;;  %v3300_v53 = vsel %vm3220_vm0, %v3299_v59, %v8971_v31  ;;  %v9796_v11 = vld [vmem:[#allocation22_spill] sm:$0xff] }
 0x74e   : > { %v3240_v28 = vpop.permute.xlu0 %3239  ;;  %v3348_v45 = vpop.permute.xlu1 %3347  ;;  %v3301_v47 = vsel %vm3222_vm1, %v3300_v53, %v3283_v2  ;;  %v3312_v51 = vrot.slane %v9796_v11, 1 }
 0x74f   : > { %v4443_v12 = vadd.f32 %v9783_v58, %v4411_v0  ;;  %4471 = vmatprep.subr.bf16.mxu0 %v4452_v33  ;;  %v3290_v24 = vsel %vm3214_vm13, %v3289_v35, %v3240_v28  ;;  %v3302_v55 = vsel %vm3224_vm2, %v3301_v47, %v3287_v4  ;;  %v3377_v0 = vsel %vm3214_vm13, %v3376_v22, %v3348_v45  ;;  %v9797_v4 = vld [vmem:[#allocation15_spill] sm:$0xff] }
 0x750   : > { %v3310_v2 = vadd.f32 %v3306_v37, %v3302_v55  ;;  %v3355_v28 = vrot.slane %v9797_v4, 5 }
 0x751   : > { %v4451_v26 = vpack.c.bf16 %v4445_v6, %v4443_v12  ;;  %v9798_v12 = vld [vmem:[#allocation23_spill] sm:$0xff] }
 0x752   : > { %v3244_v44 = vpop.permute.xlu0 %3243  ;;  %v3352_v43 = vpop.permute.xlu1 %3351  ;;  %v3326_v1 = vrot.slane %v9798_v12, 5 }
 0x753   : > { %4472 = vmatpush1.bf16.msra.mxu0 %v4451_v26  ;;  %v3291_v30 = vsel %vm3216_vm14, %v3290_v24, %v3244_v44  ;;  %v3378_v52 = vsel %vm3216_vm14, %v3377_v0, %v3352_v43  ;;  %v9799_v43 = vld [vmem:[#allocation14_spill] sm:$0xff] }
 0x754   : > { %4473 = vmatprep.subr.bf16.mxu0 %v4450_v5  ;;  %v3292_v61 = vsel %vm3218_vm15, %v3291_v30, %v3247_v50  ;;  %v3379_v49 = vsel %vm3218_vm15, %v3378_v52, %v3355_v28 }
 0x756   : > { %v3251_v57 = vpop.permute.xlu0 %3250  ;;  %v3359_v38 = vpop.permute.xlu1 %3358 }
 0x757   : > { %4474 = vmatpush1.bf16.msra.mxu0 %v4449_v21  ;;  %v3293_v19 = vsel %vm3220_vm0, %v3292_v61, %v3251_v57  ;;  %v3380_v44 = vsel %vm3220_vm0, %v3379_v49, %v3359_v38  ;;  %v3455_v21 = vld [vmem:[%s9562_s6] sm:$0xff] }
 0x75a   : > { %v3255_v17 = vpop.permute.xlu0 %3254  ;;  %5480 = vmatmul.mubr.msk.bf16.vlgmr.msra.gmra.mxu0 %vm2445_vm8, %v9793_v7  ;;  %v3363_v27 = vpop.permute.xlu1 %3362 }
 0x75b   : > { %4501 = vmatprep.mubr.bf16.mxu0 %v9794_v42  ;;  %v3294_v31 = vsel %vm3222_vm1, %v3293_v19, %v3255_v17  ;;  %v3381_v5 = vsel %vm3222_vm1, %v3380_v44, %v3363_v27 }
 0x75e   : > { %v3259_v25 = vpop.permute.xlu0 %3258  ;;  %v3367_v36 = vpop.permute.xlu1 %3366 }
 0x75f   : > { %v3295_v14 = vsel %vm3224_vm2, %v3294_v31, %v3259_v25  ;;  %v3382_v63 = vsel %vm3224_vm2, %v3381_v5, %v3367_v36 }
 0x760   : > { %v3309_v54 = vadd.f32 %v3305_v32, %v3295_v14  ;;  %v9081_v35 = vadd.f32 %v3456_v40, %v3382_v63 }
 0x762   : > { %v4448_v8 = vpack.c.bf16 %v3310_v2, %v3309_v54  ;;  %v3315_v58 = vpop.permute.xlu0 %3314  ;;  %v3416_v24 = vpop.permute.xlu1 %3415  ;;  %v3384_v54 = vrot.slane %v9799_v43, 1  ;;  %v4849_v43 = vld [vmem:[%s9566_s10 + $0x18] sm:$0xff] }
 0x763   : > { %v3369_v10 = vsel %vm2455_vm9, %v3312_v51, %v3315_v58 }
 0x764   : > { %5481 = vmatmul.mubr.msk.bf16.gmra.mxu0 %vm2445_vm8, %v4448_v8 }
 0x765   : > { %4580 = vmatprep.mubr.bf16.mxu0 %v9794_v42 }
 0x766   : > { %v3319_v18 = vpop.permute.xlu0 %3318  ;;  %v3420_v59 = vpop.permute.xlu1 %3419 }
 0x767   : > { %v3370_v23 = vsel %vm3214_vm13, %v3369_v10, %v3319_v18 }
 0x76a   : > { %v3323_v62 = vpop.permute.xlu0 %3322  ;;  %v3424_v3 = vpop.permute.xlu1 %3423 }
 0x76b   : > { %v3371_v6 = vsel %vm3216_vm14, %v3370_v23, %v3323_v62 }
 0x76c   : > { %v3372_v48 = vsel %vm3218_vm15, %v3371_v6, %v3326_v1  ;;  %v3448_v6 = vsel %vm2455_vm9, %v3413_v20, %v3416_v24  ;;  %v9801_v1 = vld [vmem:[#allocation6_spill] sm:$0xff]  ;;  %v3457_v24 = vld [vmem:[%s9562_s6 + $0x10] sm:$0xff]  ;;  %v4857_v20 = vld [vmem:[%s9566_s10 + $0x58] sm:$0xff] }
 0x76d   : > { %v3398_v49 = vrot.slane %v9801_v1, 5  ;;  %v3449_v36 = vsel %vm3214_vm13, %v3448_v6, %v3420_v59 }
 0x76e   : > { %v3330_v33 = vpop.permute.xlu0 %3329  ;;  %v3431_v32 = vpop.permute.xlu1 %3430  ;;  %v3450_v44 = vsel %vm3216_vm14, %v3449_v36, %v3424_v3 }
 0x76f   : > { %v3373_v15 = vsel %vm3220_vm0, %v3372_v48, %v3330_v33  ;;  %v9802_v48 = vld [vmem:[#allocation34_spill] sm:$0xff] }
 0x770   : > { %v3427_v40 = vrot.slane %v9802_v48, 5 }
 0x772   : > { %v3334_v26 = vpop.permute.xlu0 %3333  ;;  %v3435_v10 = vpop.permute.xlu1 %3434 }
 0x773   : > { %v3374_v16 = vsel %vm3222_vm1, %v3373_v15, %v3334_v26 }
 0x776   : > { %v3338_v57 = vpop.permute.xlu0 %3337 }
 0x777   : > { %v3375_v34 = vsel %vm3224_vm2, %v3374_v16, %v3338_v57  ;;  %v3451_v16 = vsel %vm3218_vm15, %v3450_v44, %v3427_v40  ;;  %v3439_v57 = vpop.permute.xlu1 %3438 }
 0x778   : > { %v9083_v56 = vadd.f32 %v3455_v21, %v3375_v34 }
 0x77a   : > { %v4536_v46 = vpack.c.bf16 %v9081_v35, %v9083_v56  ;;  %v3387_v60 = vpop.permute.xlu0 %3386 }
 0x77b   : > { %v3441_v0 = vsel %vm2455_vm9, %v3384_v54, %v3387_v60  ;;  %v3452_v60 = vsel %vm3220_vm0, %v3451_v16, %v3431_v32  ;;  %v4850_v54 = vld [vmem:[%s9566_s10 + $0x20] sm:$0xff]  ;;  %vm9805_vm9 = vcmp.ne.s32.totalorder %v9769_v13, 0 }
 0x77e   : > { %v3391_v9 = vpop.permute.xlu0 %3390 }
 0x77f   : > { %v3442_v4 = vsel %vm3214_vm13, %v3441_v0, %v3391_v9  ;;  %v3453_v9 = vsel %vm3222_vm1, %v3452_v60, %v3435_v10  ;;  %v9803_v0 = vlaneseq  ;;  %vm9807_vm13 = vcmp.ne.s32.totalorder %v9769_v13, 15 }
 0x780   : > { %v3454_v59 = vsel %vm3224_vm2, %v3453_v9, %v3439_v57 }
 0x782   : > { %v3395_v17 = vpop.permute.xlu0 %3394 }
 0x783   : > { %v3443_v12 = vsel %vm3216_vm14, %v3442_v4, %v3395_v17 }
 0x784   : > { %v3444_v63 = vsel %vm3218_vm15, %v3443_v12, %v3398_v49 }
 0x786   : > { %v3402_v47 = vpop.permute.xlu0 %3401 }
 0x787   : > { %v3445_v21 = vsel %vm3220_vm0, %v3444_v63, %v3402_v47  ;;  %vm9808_vm0 = vcmask 7168  }
 0x78a   : > { %v3406_v27 = vpop.permute.xlu0 %3405 }
 0x78b   : > { %v3446_v34 = vsel %vm3222_vm1, %v3445_v21, %v3406_v27  ;;  %v4858_v27 = vld [vmem:[%s9566_s10 + $0x60] sm:$0xff] }
 0x78e   : > { %v3410_v15 = vpop.permute.xlu0 %3409 }
 0x81a   : > { %v4493_v30 = vpop.f32.mrf.mxu0 }
 0x81b   : > { %v4520_v11 = vmul.f32 0.2, %v4493_v30  ;;  %vm4512_vm3 = vcmp.ge.f32.partialorder %v4493_v30, 0.0 }
 0x81c   : > { %v4495_v50 = vpop.f32.mrf.mxu0 }
 0x81d   : > { %v4521_v14 = vmul.f32 0.2, %v4495_v50  ;;  %vm4513_vm5 = vcmp.ge.f32.partialorder %v4495_v50, 0.0  ;;  %v4528_v26 = vsel %vm4512_vm3, %v4493_v30, %v4520_v11  ;;  %v3447_v30 = vsel %vm3224_vm2, %v3446_v34, %v3410_v15  ;;  %v4859_v11 = vld [vmem:[%s9566_s10 + $0x68] sm:$0xff]  ;;  %vm9809_vm2 = vmmov %vm9808_vm0 }
 0x81e   : > { %v4497_v45 = vpop.f32.mrf.mxu0  ;;  %vm9810_vm3 = vmmov %vm9808_vm0 }
 0x81f   : > { %v4522_v8 = vmul.f32 0.2, %v4497_v45  ;;  %vm4514_vm4 = vcmp.ge.f32.partialorder %v4497_v45, 0.0  ;;  %v4529_v33 = vsel %vm4513_vm5, %v4495_v50, %v4521_v14  ;;  %v3458_v50 = vld [vmem:[%s9562_s6 + $0x18] sm:$0xff]  ;;  %v4847_v14 = vld [vmem:[%s9566_s10 + $0x8] sm:$0xff]  ;;  %vm9811_vm5 = vmmov %vm9808_vm0 }
 0x820   : > { %v4499_v29 = vpop.f32.mrf.mxu0  ;;  %v3462_v17 = vadd.f32 %v3458_v50, %v3454_v59 }
 0x821   : > { %v4523_v61 = vmul.f32 0.2, %v4499_v29  ;;  %vm4515_vm12 = vcmp.ge.f32.partialorder %v4499_v29, 0.0  ;;  %v4530_v28 = vsel %vm4514_vm4, %v4497_v45, %v4522_v8  ;;  %v3461_v45 = vadd.f32 %v3457_v24, %v3447_v30  ;;  %v4851_v8 = vld [vmem:[%s9566_s10 + $0x28] sm:$0xff] }
 0x822   : > { %v4538_v5 = vpack.c.bf16 %v4530_v28, %v4528_v26  ;;  %vm4673_vm4 = vcmask 121856  }
 0x823   : > { %v4531_v38 = vsel %vm4515_vm12, %v4499_v29, %v4523_v61  ;;  %v4537_v29 = vpack.c.bf16 %v3462_v17, %v3461_v45  ;;  %vm9806_vm12 = vcmp.ne.s32.totalorder %v9768_v39, 15 }
 0x824   : > { %v4503_v7 = vpop.f32.mrf.mxu0  ;;  %v4539_v23 = vpack.c.bf16 %v4531_v38, %v4529_v33  ;;  %v4853_v38 = vld [vmem:[%s9566_s10 + $0x38] sm:$0xff]  ;;  %v4633_v33 = vshrl.u32 %v9803_v0, 7  ;;  %vm4685_vm14 = vmpackc.low %vm9807_vm13, %vm9806_vm12  ;;  %vm4617_vm12 = vcmask 138240  }
 0x825   : > { %v4524_v31 = vmul.f32 0.2, %v4503_v7  ;;  %vm4516_vm6 = vcmp.ge.f32.partialorder %v4503_v7, 0.0  ;;  %v4686_v49 = vsel %vm4685_vm14, 65537, %v9794_v42  ;;  %vm9815_vm14 = vcmask 916480  }
 0x826   : > { %v4505_v53 = vpop.f32.mrf.mxu0  ;;  %v4638_v10 = vsub.s32 4, %v4633_v33 }
 0x827   : > { %v4525_v55 = vmul.f32 0.2, %v4505_v53  ;;  %vm4517_vm11 = vcmp.ge.f32.partialorder %v4505_v53, 0.0  ;;  %v4532_v51 = vsel %vm4516_vm6, %v4503_v7, %v4524_v31  ;;  %v5874_v31 = vld [vmem:[%s9565_s9 + $0x4] ss:$12 sps:$4 sm:$0xff]   ;;  %vm9804_vm6 = vcmp.ne.s32.totalorder %v9768_v39, 0 }
 0x828   : > { %v4507_v37 = vpop.f32.mrf.mxu0 }
 0x829   : > { %vm4518_vm10 = vcmp.ge.f32.partialorder %v4507_v37, 0.0  ;;  %v4526_v19 = vmul.f32 0.2, %v4507_v37  ;;  %v4533_v18 = vsel %vm4517_vm11, %v4505_v53, %v4525_v55  ;;  %vm4630_vm11 = vmpackc.low %vm9805_vm9, %vm9804_vm6  ;;  %vm9812_vm6 = vcmask 130048  }
 0x82a   : > { %v4509_v25 = vpop.f32.mrf.mxu0  ;;  %v4631_v4 = vsel %vm4630_vm11, 65537, %v9794_v42  ;;  %vm5512_vm9 = vmneg %vm9812_vm6 }
 0x82b   : > { %vm4519_vm7 = vcmp.ge.f32.partialorder %v4509_v25, 0.0  ;;  %v4527_v2 = vmul.f32 0.2, %v4509_v25  ;;  %v4534_v58 = vsel %vm4518_vm10, %v4507_v37, %v4526_v19  ;;  %vm9813_vm11 = vmmov %vm9812_vm6 }
 0x82c   : > { %v4540_v52 = vpack.c.bf16 %v4534_v58, %v4532_v51  ;;  %v4852_v58 = vld [vmem:[%s9566_s10 + $0x30] sm:$0xff]  ;;  %vm9814_vm13 = vmmov %vm9812_vm6 }
 0x82d   : > { %v4535_v62 = vsel %vm4519_vm7, %v4509_v25, %v4527_v2  ;;  %v4846_v25 = vld [vmem:[%s9566_s10] sm:$0xff]  ;;  %v4848_v2 = vld [vmem:[%s9566_s10 + $0x10] sm:$0xff] }
 0x82e   : > { %v4541_v22 = vpack.c.bf16 %v4535_v62, %v4533_v18  ;;  %v4854_v18 = vld [vmem:[%s9566_s10 + $0x40] sm:$0xff]  ;;  %v4855_v62 = vld [vmem:[%s9566_s10 + $0x48] sm:$0xff]  ;;  %v4860_v51 = vld [vmem:[%s9566_s10 + $0x70] sm:$0xff] }
 0x830   : > { %4560 = vmatprep.subr.bf16.mxu0 %v4541_v22  ;;  %v4861_v22 = vld [vmem:[%s9566_s10 + $0x78] sm:$0xff] }
 0x831   : > { %4561 = vmatpush1.bf16.msra.mxu0 %v4540_v52  ;;  %v4634_v52 = vsub.s32 0, %v4633_v33 }
 0x832   : > { %4562 = vmatprep.subr.bf16.mxu0 %v4539_v23  ;;  %v9236_v23 = vrot.slane %v4631_v4, %v4638_v10 }
 0x833   : > { %v9234_v28 = vrot.slane %v4631_v4, %v4634_v52  ;;  %v9252_v39 = vrot.slane %v4686_v49, %v4634_v52 }
 0x834   : > { %vm4641_vm1 = vcmp.ne.s16.totalorder %v9236_v23, 0 }
 0x835   : > { %4563 = vmatpush1.bf16.msra.mxu0 %v4538_v5  ;;  %vm4640_vm15 = vcmp.ne.s16.totalorder %v9234_v28, 0  ;;  %v9254_v5 = vrot.slane %v4686_v49, %v4638_v10  ;;  %vm4695_vm7 = vcmp.ne.s16.totalorder %v9252_v39, 0  ;;  %v5881_v39 = vld [vmem:[%s9565_s9 + $0x4c] ss:$12 sps:$4 sm:$0xff]  }
 0x837   : > { %vm4696_vm10 = vcmp.ne.s16.totalorder %v9254_v5, 0  ;;  %v5883_v5 = vld [vmem:[%s9565_s9 + $0x48] ss:$12 sps:$4 sm:$0xff]  }
 0x838   : > { %5482 = vmatmul.mubr.msk.bf16.vlgmr.msra.gmra.mxu0 %vm2445_vm8, %v4536_v46 }
 0x839   : > { %4590 = vmatprep.mubr.bf16.mxu0 %v9794_v42 }
 0x840   : > { %5483 = vmatmul.mubr.msk.bf16.gmra.mxu0 %vm2445_vm8, %v4537_v29 }
 0x841   : > { %5118 = vmatprep.mubr.bf16.mxu0 %v5874_v31 }
 0x8f8   : > { %v4582_v3 = vpop.f32.mrf.mxu0 }
 0x8fa   : > { %v4584_v7 = vpop.f32.mrf.mxu0 }
 0x8fc   : > { %v4586_v53 = vpop.f32.mrf.mxu0 }
 0x8fd   : > { %v9123_v19 = vpack.c.bf16 %v4586_v53, %v4582_v3 }
 0x8fe   : > { %v4588_v47 = vpop.f32.mrf.mxu0 }
 0x8ff   : > { %v9127_v32 = vpack.c.bf16 %v4588_v47, %v4584_v7 }
 0x900   : > { %v4592_v35 = vpop.f32.mrf.mxu0 }
 0x902   : > { %v4594_v56 = vpop.f32.mrf.mxu0 }
 0x904   : > { %v4596_v46 = vpop.f32.mrf.mxu0 }
 0x905   : > { %v9117_v61 = vpack.c.bf16 %v4596_v46, %v4592_v35 }
 0x906   : > { %v4598_v37 = vpop.f32.mrf.mxu0 }
 0x907   : > { %v9119_v55 = vpack.c.bf16 %v4598_v37, %v4594_v56  ;;  %4705 = vrot.lane.b32.xlu0 %v9117_v61, %s5994_s24 }
 0x909   : > { %4707 = vrot.lane.b32.xlu1 %v9119_v55, %s5994_s24 }
 0x90b   : > { %4701 = vrot.lane.b32.xlu0 %v9123_v19, %s5994_s24 }
 0x90d   : > { %4703 = vrot.lane.b32.xlu1 %v9127_v32, %s5994_s24  ;;  %s6003_s24 = smov 17  }
 0x90f   : > { %4669 = vrot.lane.b32.xlu0 %v9117_v61, %s5993_s23 }
 0x911   : > { %4671 = vrot.lane.b32.xlu1 %v9119_v55, %s5993_s23 }
 0x913   : > { %4665 = vrot.lane.b32.xlu0 %v9123_v19, %s5993_s23 }
 0x915   : > { %4667 = vrot.lane.b32.xlu1 %v9127_v32, %s5993_s23  ;;  %s6004_s23 = smov 113  }
 0x917   : > { %4650 = vrot.lane.b32.xlu0 %v9117_v61, %s6002_s15 }
 0x919   : > { %4652 = vrot.lane.b32.xlu1 %v9119_v55, %s6002_s15 }
 0x91b   : > { %4646 = vrot.lane.b32.xlu0 %v9123_v19, %s6002_s15 }
 0x91d   : > { %4648 = vrot.lane.b32.xlu1 %v9127_v32, %s6002_s15 }
 0x91f   : > { %4613 = vrot.lane.b32.xlu0 %v9117_v61, %s6003_s24 }
 0x921   : > { %4615 = vrot.lane.b32.xlu1 %v9119_v55, %s6003_s24 }
 0x923   : > { %4609 = vrot.lane.b32.xlu0 %v9123_v19, %s6003_s24 }
 0x925   : > { %4611 = vrot.lane.b32.xlu1 %v9127_v32, %s6003_s24 }
 0x927   : > { %4775 = vrot.lane.b32.xlu0 %v9117_v61, %s5995_s25 }
 0x929   : > { %4777 = vrot.lane.b32.xlu1 %v9119_v55, %s5995_s25 }
 0x92b   : > { %4771 = vrot.lane.b32.xlu0 %v9123_v19, %s5995_s25 }
 0x92d   : > { %4773 = vrot.lane.b32.xlu1 %v9127_v32, %s5995_s25  ;;  %s9823_s25 = sshll.u32 %s9825_s18, 8 }
 0x92e   : > { %s9462_s30 = scalar_lea.vmem %s9567_s11, %s9823_s25 }
 0x92f   : > { %4751 = vrot.lane.b32.xlu0 %v9117_v61, %s6004_s23 }
 0x931   : > { %4753 = vrot.lane.b32.xlu1 %v9119_v55, %s6004_s23 }
 0x933   : > { %4747 = vrot.lane.b32.xlu0 %v9123_v19, %s6004_s23 }
 0x935   : > { %4749 = vrot.lane.b32.xlu1 %v9127_v32, %s6004_s23 }
 0x937   : > { %4728 = vrot.lane.b32.xlu0 %v9117_v61, %s5996_s26 }
 0x939   : > { %4730 = vrot.lane.b32.xlu1 %v9119_v55, %s5996_s26 }
 0x93b   : > { %4724 = vrot.lane.b32.xlu0 %v9123_v19, %s5996_s26 }
 0x93d   : > { %4726 = vrot.lane.b32.xlu1 %v9127_v32, %s5996_s26 }
 0x93f   : > { %4794 = vrot.lane.b32.xlu0 %v9117_v61, %s6005_s29 }
 0x941   : > { %4796 = vrot.lane.b32.xlu1 %v9119_v55, %s6005_s29 }
 0x943   : > { %4790 = vrot.lane.b32.xlu0 %v9123_v19, %s6005_s29 }
 0x945   : > { %4792 = vrot.lane.b32.xlu1 %v9127_v32, %s6005_s29 }
 0x947   : > { %4864 = vperm.xlu0 %5853, %v4846_v25  }
 0x949   : > { %4869 = vperm.xlu1 %5852, %v4847_v14  }
 0x94b   : > { %4874 = vperm.xlu0 %5853, %v4848_v2  }
 0x94d   : > { %4879 = vperm.xlu1 %5852, %v4849_v43  }
 0x94f   : > { %4884 = vperm.xlu0 %5853, %v4850_v54  }
 0x951   : > { %4889 = vperm.xlu1 %5852, %v4851_v8  }
 0x953   : > { %4894 = vperm.xlu0 %5853, %v4852_v58  }
 0x955   : > { %4899 = vperm.xlu1 %5852, %v4853_v38  }
 0x957   : > { %4904 = vperm.xlu0 %5853, %v4854_v18  }
 0x959   : > { %4909 = vperm.xlu1 %5852, %v4855_v62  }
 0x95b   : > { %4914 = vperm.xlu0 %5853, %v4856_v41  }
 0x95d   : > { %4919 = vperm.xlu1 %5852, %v4857_v20  }
 0x95f   : > { %4924 = vperm.xlu0 %5853, %v4858_v27  }
 0x961   : > { %4929 = vperm.xlu1 %5852, %v4859_v11  }
 0x963   : > { %4934 = vperm.xlu0 %5853, %v4860_v51  }
 0x965   : > { %4939 = vperm.xlu1 %5852, %v4861_v22  }
 0x979   : > { %v4706_v6 = vpop.permute.xlu0 %4705 }
 0x97a   : > { %v4718_v12 = vsel %vm9808_vm0, 0, %v4706_v6  ;;  %vm9816_vm0 = vmmov %vm9815_vm14 }
 0x97b   : > { %v4708_v1 = vpop.permute.xlu1 %4707  ;;  %v4722_v26 = vsel %vm4640_vm15, %v4718_v12, 0 }
 0x97c   : > { %v4711_v36 = vsel %vm9809_vm2, %v4706_v6, %v4708_v1  ;;  %vm9817_vm2 = vmmov %vm9816_vm0 }
 0x97d   : > { %v4702_v44 = vpop.permute.xlu0 %4701  ;;  %5508 = vmatprep.subr.msk.bf16.mxu0 %vm4641_vm1, %v4711_v36 }
 0x97e   : > { %v4715_v13 = vsel %vm9810_vm3, 0, %v4702_v44  ;;  %5087 = vmatpush1.bf16.msra.mxu0 %v4722_v26  ;;  %vm9818_vm3 = vmmov %vm9816_vm0 }
 0x97f   : > { %v4704_v48 = vpop.permute.xlu1 %4703  ;;  %v4720_v63 = vsel %vm4640_vm15, %v4715_v13, 0 }
 0x980   : > { %v4710_v40 = vsel %vm9811_vm5, %v4702_v44, %v4704_v48  ;;  %vm9819_vm5 = vcmask 1039360   ;;  %v5872_v48 = vld [vmem:[%s9565_s9] ss:$12 sps:$4 sm:$0xff]  }
 0x981   : > { %v4670_v15 = vpop.permute.xlu0 %4669  ;;  %5509 = vmatprep.subr.msk.bf16.mxu0 %vm4641_vm1, %v4710_v40  ;;  %vm9820_vm6 = vmmov %vm9819_vm5 }
 0x982   : > { %v4683_v21 = vsel %vm4673_vm4, 0, %v4670_v15  ;;  %5089 = vmatpush1.bf16.msra.mxu0 %v4720_v63 }
 0x983   : > { %v4672_v16 = vpop.permute.xlu1 %4671  ;;  %v4699_v34 = vsel %vm4695_vm7, %v4683_v21, 0 }
 0x984   : > { %v4675_v57 = vsel %vm4673_vm4, %v4670_v15, %v4672_v16  ;;  %v5875_v15 = vld [vmem:[%s9565_s9 + $0x1c] ss:$12 sps:$4 sm:$0xff]  }
 0x985   : > { %v4666_v60 = vpop.permute.xlu0 %4665  ;;  %5510 = vmatprep.subr.msk.bf16.mxu0 %vm4696_vm10, %v4675_v57  ;;  %v5877_v57 = vld [vmem:[%s9565_s9 + $0x18] ss:$12 sps:$4 sm:$0xff]  }
 0x986   : > { %v4680_v24 = vsel %vm4673_vm4, 0, %v4666_v60  ;;  %5091 = vmatpush1.bf16.msra.mxu0 %v4699_v34  ;;  %v5878_v34 = vld [vmem:[%s9565_s9 + $0x34] ss:$12 sps:$4 sm:$0xff]  }
 0x987   : > { %v4668_v30 = vpop.permute.xlu1 %4667  ;;  %v4697_v50 = vsel %vm4695_vm7, %v4680_v24, 0  ;;  %v5884_v24 = vld [vmem:[%s9565_s9 + $0x64] ss:$12 sps:$4 sm:$0xff]  }
 0x988   : > { %v4674_v9 = vsel %vm4673_vm4, %v4666_v60, %v4668_v30  ;;  %vm4755_vm4 = vcmask 924672   ;;  %v5880_v60 = vld [vmem:[%s9565_s9 + $0x30] ss:$12 sps:$4 sm:$0xff]   ;;  %v5886_v30 = vld [vmem:[%s9565_s9 + $0x60] ss:$12 sps:$4 sm:$0xff]  }
 0x989   : > { %v4651_v59 = vpop.permute.xlu0 %4650  ;;  %5511 = vmatprep.subr.msk.bf16.mxu0 %vm4696_vm10, %v4674_v9  ;;  %v5887_v9 = vld [vmem:[%s9565_s9 + $0x7c] ss:$12 sps:$4 sm:$0xff]  }
 0x98a   : > { %5093 = vmatpush1.bf16.msra.mxu0 %v4697_v50  ;;  %v5889_v50 = vld [vmem:[%s9565_s9 + $0x78] ss:$12 sps:$4 sm:$0xff]  }
 0x98b   : > { %v4653_v45 = vpop.permute.xlu1 %4652 }
 0x98c   : > { %v4656_v17 = vsel %vm9813_vm11, %v4651_v59, %v4653_v45  ;;  %v5892_v45 = vld [vmem:[%s9565_s9 + $0x90] ss:$12 sps:$4 sm:$0xff]  }
 0x98d   : > { %v4647_v29 = vpop.permute.xlu0 %4646  ;;  %5094 = vmatprep.subr.bf16.mxu0 %v4656_v17  ;;  %v5893_v17 = vld [vmem:[%s9565_s9 + $0xac] ss:$12 sps:$4 sm:$0xff]  }
 0x98e   : > { %5513 = vmatpush1.bf16.msk.msra.mxu0 %vm5512_vm9, %v4651_v59  ;;  %v5890_v59 = vld [vmem:[%s9565_s9 + $0x94] ss:$12 sps:$4 sm:$0xff]  }
 0x98f   : > { %v4649_v3 = vpop.permute.xlu1 %4648 }
 0x990   : > { %v4655_v7 = vsel %vm9814_vm13, %v4647_v29, %v4649_v3  ;;  %v5896_v3 = vld [vmem:[%s9565_s9 + $0x8] ss:$12 sps:$4 sm:$0xff]  }
 0x991   : > { %v4614_v53 = vpop.permute.xlu0 %4613  ;;  %5096 = vmatprep.subr.bf16.mxu0 %v4655_v7  ;;  %v5897_v7 = vld [vmem:[%s9565_s9 + $0x20] ss:$12 sps:$4 sm:$0xff]  }
 0x992   : > { %v4628_v47 = vsel %vm4617_vm12, 0, %v4614_v53  ;;  %5515 = vmatpush1.bf16.msk.msra.mxu0 %vm5512_vm9, %v4647_v29  ;;  %vm9822_vm9 = vmmov %vm9819_vm5  ;;  %v5895_v29 = vld [vmem:[%s9565_s9 + $0xa8] ss:$12 sps:$4 sm:$0xff]  }
 0x993   : > { %v4616_v35 = vpop.permute.xlu1 %4615  ;;  %v4644_v46 = vsel %vm4640_vm15, %v4628_v47, 0  ;;  %v5899_v47 = vld [vmem:[%s9565_s9 + $0x50] ss:$12 sps:$4 sm:$0xff]  }
 0x994   : > { %v4619_v56 = vsel %vm4617_vm12, %v4614_v53, %v4616_v35  ;;  %v5898_v53 = vld [vmem:[%s9565_s9 + $0x38] ss:$12 sps:$4 sm:$0xff]   ;;  %v5900_v35 = vld [vmem:[%s9565_s9 + $0x68] ss:$12 sps:$4 sm:$0xff]  }
 0x995   : > { %v4610_v37 = vpop.permute.xlu0 %4609  ;;  %5516 = vmatprep.subr.msk.bf16.mxu0 %vm4641_vm1, %v4619_v56  ;;  %v5901_v56 = vld [vmem:[%s9565_s9 + $0x80] ss:$12 sps:$4 sm:$0xff]  }
 0x996   : > { %v4625_v31 = vsel %vm4617_vm12, 0, %v4610_v37  ;;  %5099 = vmatpush1.bf16.msra.mxu0 %v4644_v46  ;;  %v5902_v46 = vld [vmem:[%s9565_s9 + $0x98] ss:$12 sps:$4 sm:$0xff]  }
 0x997   : > { %v4612_v25 = vpop.permute.xlu1 %4611  ;;  %v4642_v2 = vsel %vm4640_vm15, %v4625_v31, 0 }
 0x998   : > { %v4618_v14 = vsel %vm4617_vm12, %v4610_v37, %v4612_v25  ;;  %v5903_v37 = vld [vmem:[%s9565_s9 + $0xb0] ss:$12 sps:$4 sm:$0xff]  }
 0x999   : > { %v4776_v43 = vpop.permute.xlu0 %4775  ;;  %5517 = vmatprep.subr.msk.bf16.mxu0 %vm4641_vm1, %v4618_v14 }
 0x99a   : > { %5101 = vmatpush1.bf16.msra.mxu0 %v4642_v2 }
 0x99b   : > { %v4778_v54 = vpop.permute.xlu1 %4777 }
 0x99c   : > { %v4781_v8 = vsel %vm9815_vm14, %v4776_v43, %v4778_v54  ;;  %5518 = vmatprep.subr.msk.bf16.mxu0 %vm9816_vm0, %v4778_v54 }
 0x99d   : > { %v4772_v58 = vpop.permute.xlu0 %4771 }
 0x99e   : > { %5103 = vmatpush2.bf16.msra.mxu0 %v4781_v8 }
 0x99f   : > { %v4774_v38 = vpop.permute.xlu1 %4773 }
 0x9a0   : > { %v4780_v18 = vsel %vm9817_vm2, %v4772_v58, %v4774_v38  ;;  %5519 = vmatprep.subr.msk.bf16.mxu0 %vm9818_vm3, %v4774_v38 }
 0x9a1   : > { %v4752_v62 = vpop.permute.xlu0 %4751 }
 0x9a2   : > { %5105 = vmatpush2.bf16.msra.mxu0 %v4780_v18 }
 0x9a3   : > { %v4754_v41 = vpop.permute.xlu1 %4753 }
 0x9a4   : > { %v4757_v20 = vsel %vm4755_vm4, %v4752_v62, %v4754_v41  ;;  %v4765_v27 = vsel %vm4755_vm4, %v4754_v41, 0 }
 0x9a5   : > { %v4769_v11 = vsel %vm4640_vm15, %v4757_v20, 0  ;;  %v4748_v51 = vpop.permute.xlu0 %4747  ;;  %5520 = vmatprep.subr.msk.bf16.mxu0 %vm4641_vm1, %v4765_v27 }
 0x9a6   : > { %5107 = vmatpush2.bf16.msra.mxu0 %v4769_v11 }
 0x9a7   : > { %v4750_v22 = vpop.permute.xlu1 %4749 }
 0x9a8   : > { %v4756_v0 = vsel %vm4755_vm4, %v4748_v51, %v4750_v22  ;;  %v4762_v33 = vsel %vm4755_vm4, %v4750_v22, 0 }
 0x9a9   : > { %v4767_v52 = vsel %vm4640_vm15, %v4756_v0, 0  ;;  %v4729_v10 = vpop.permute.xlu0 %4728  ;;  %5521 = vmatprep.subr.msk.bf16.mxu0 %vm4641_vm1, %v4762_v33  ;;  %vm9821_vm15 = vmmov %vm9819_vm5  ;;  %vm4798_vm1 = vcmask 908288  }
 0x9aa   : > { %5109 = vmatpush2.bf16.msra.mxu0 %v4767_v52 }
 0x9ab   : > { %v4731_v4 = vpop.permute.xlu1 %4730 }
 0x9ac   : > { %v4734_v6 = vsel %vm9819_vm5, %v4729_v10, %v4731_v4  ;;  %v4741_v12 = vsel %vm9820_vm6, %v4731_v4, 0 }
 0x9ad   : > { %v4745_v1 = vsel %vm4695_vm7, %v4734_v6, 0  ;;  %5522 = vmatprep.subr.msk.bf16.mxu0 %vm4696_vm10, %v4741_v12  ;;  %v4725_v49 = vpop.permute.xlu0 %4724 }
 0x9ae   : > { %5111 = vmatpush2.bf16.msra.mxu0 %v4745_v1 }
 0x9af   : > { %v4727_v28 = vpop.permute.xlu1 %4726 }
 0x9b0   : > { %v4733_v36 = vsel %vm9821_vm15, %v4725_v49, %v4727_v28  ;;  %v4738_v23 = vsel %vm9822_vm9, %v4727_v28, 0 }
 0x9b1   : > { %v4743_v26 = vsel %vm4695_vm7, %v4733_v36, 0  ;;  %5523 = vmatprep.subr.msk.bf16.mxu0 %vm4696_vm10, %v4738_v23  ;;  %v4795_v13 = vpop.permute.xlu0 %4794 }
 0x9b2   : > { %5113 = vmatpush2.bf16.msra.mxu0 %v4743_v26 }
 0x9b3   : > { %5114 = vmatprep.subr.bf16.mxu0 %v9119_v55  ;;  %v4797_v44 = vpop.permute.xlu1 %4796 }
 0x9b4   : > { %v4800_v40 = vsel %vm4798_vm1, %v4795_v13, %v4797_v44  ;;  %v4808_v63 = vsel %vm4798_vm1, %v4797_v44, 0 }
 0x9b6   : > { %5115 = vmatpush2.bf16.msra.mxu0 %v9117_v61  ;;  %v4812_v61 = vsel %vm4695_vm7, %v4800_v40, 0 }
 0x9b7   : > { %5116 = vmatprep.subr.bf16.mxu0 %v9127_v32  ;;  %v4793_v55 = vpop.permute.xlu1 %4792  ;;  %v4791_v32 = vpop.permute.xlu0 %4790 }
 0x9b8   : > { %v4799_v21 = vsel %vm4798_vm1, %v4791_v32, %v4793_v55  ;;  %v4805_v16 = vsel %vm4798_vm1, %v4793_v55, 0 }
 0x9ba   : > { %5117 = vmatpush2.bf16.msra.mxu0 %v9123_v19  ;;  %v4810_v19 = vsel %vm4695_vm7, %v4799_v21, 0  ;;  %v5953_v21 = vld [vmem:[%s6088_s22] sm:$0xff] }
 0x9bb   : > { %5524 = vmatprep.subr.msk.bf16.mxu0 %vm4696_vm10, %v4808_v63 }
 0x9bd   : > { %5119 = vmatmul.mubr.bf16.vlgmr.msra.gmra.mxu0 %v5872_v48 }
 0x9be   : > { %5212 = vmatpush1.bf16.msra.mxu0 %v4812_v61  ;;  %5128 = vmatprep.mubr.bf16.mxu0 %v5875_v15 }
 0x9bf   : > { %5525 = vmatprep.subr.msk.bf16.mxu0 %vm4696_vm10, %v4805_v16 }
 0x9c2   : > { %5214 = vmatpush1.bf16.msra.mxu0 %v4810_v19  ;;  %v4865_v44 = vpop.permute.xlu0 %4864 }
 0x9c4   : > { %v4870_v55 = vpop.permute.xlu1 %4869 }
 0x9c5   : > { %5129 = vmatmul.mubr.bf16.gmra.mxu0 %v5877_v57 }
 0x9c6   : > { %5138 = vmatprep.mubr.bf16.mxu0 %v5878_v34 }
 0x9cd   : > { %5139 = vmatmul.mubr.bf16.gmra.mxu0 %v5880_v60  ;;  %v5954_v60 = vld [vmem:[%s6088_s22 + $0x8] sm:$0xff] }
 0x9ce   : > { %5148 = vmatprep.mubr.bf16.mxu0 %v5881_v39 }
 0x9d5   : > { %5149 = vmatmul.mubr.bf16.gmra.mxu0 %v5883_v5 }
 0x9d6   : > { %5158 = vmatprep.mubr.bf16.mxu0 %v5884_v24  ;;  %v4875_v24 = vpop.permute.xlu0 %4874 }
 0x9dd   : > { %5159 = vmatmul.mubr.bf16.gmra.mxu0 %v5886_v30 }
 0x9de   : > { %5168 = vmatprep.mubr.bf16.mxu0 %v5887_v9 }
 0x9e5   : > { %5169 = vmatmul.mubr.bf16.gmra.mxu0 %v5889_v50  ;;  %v5955_v50 = vld [vmem:[%s6088_s22 + $0x10] sm:$0xff] }
 0x9e6   : > { %5178 = vmatprep.mubr.bf16.mxu0 %v5890_v59 }
 0x9ed   : > { %5179 = vmatmul.mubr.bf16.gmra.mxu0 %v5892_v45 }
 0x9ee   : > { %5188 = vmatprep.mubr.bf16.mxu0 %v5893_v17 }
 0x9f5   : > { %5189 = vmatmul.mubr.bf16.gmra.mxu0 %v5895_v29 }
 0x9f6   : > { %5231 = vmatprep.mubr.bf16.mxu0 %v9794_v42 }
 0x9fd   : > { %5526 = vmatmul.mubr.msk.bf16.vlgmr.msra.gmra.mxu0 %vm2445_vm8, %v5896_v3  ;;  %v5956_v3 = vld [vmem:[%s6088_s22 + $0x18] sm:$0xff] }
 0x9fe   : > { %5241 = vmatprep.mubr.bf16.mxu0 %v9794_v42 }
 0xa05   : > { %5527 = vmatmul.mubr.msk.bf16.gmra.mxu0 %vm2445_vm8, %v5897_v7 }
 0xa06   : > { %5251 = vmatprep.mubr.bf16.mxu0 %v9794_v42 }
 0xa0d   : > { %5528 = vmatmul.mubr.msk.bf16.gmra.mxu0 %vm2445_vm8, %v5898_v53 }
 0xa0e   : > { %5261 = vmatprep.mubr.bf16.mxu0 %v9794_v42 }
 0xa15   : > { %5529 = vmatmul.mubr.msk.bf16.gmra.mxu0 %vm2445_vm8, %v5899_v47  ;;  %v4880_v47 = vpop.permute.xlu1 %4879 }
 0xa16   : > { %5271 = vmatprep.mubr.bf16.mxu0 %v9794_v42 }
 0xa1d   : > { %5530 = vmatmul.mubr.msk.bf16.gmra.mxu0 %vm2445_vm8, %v5900_v35 }
 0xa1e   : > { %5281 = vmatprep.mubr.bf16.mxu0 %v9794_v42 }
 0xa25   : > { %5531 = vmatmul.mubr.msk.bf16.gmra.mxu0 %vm2445_vm8, %v5901_v56 }
 0xa26   : > { %5291 = vmatprep.mubr.bf16.mxu0 %v9794_v42 }
 0xa2d   : > { %5532 = vmatmul.mubr.msk.bf16.gmra.mxu0 %vm2445_vm8, %v5902_v46  ;;  %v5957_v46 = vld [vmem:[%s6088_s22 + $0x20] sm:$0xff] }
 0xa2e   : > { %5301 = vmatprep.mubr.bf16.mxu0 %v9794_v42 }
 0xa35   : > { %5533 = vmatmul.mubr.msk.bf16.gmra.mxu0 %vm2445_vm8, %v5903_v37 }
 0xa7d   : > { %v5120_v31 = vpop.f32.mrf.mxu0 }
 0xa7e   : > { %v5121_v48 = vadd.f32 %v5120_v31, %v4865_v44 }
 0xa7f   : > { %v5122_v25 = vpop.f32.mrf.mxu0 }
 0xa80   : > { %v5123_v63 = vadd.f32 %v5122_v25, %v4865_v44  ;;  %v4885_v44 = vpop.permute.xlu0 %4884 }
 0xa81   : > { %v5124_v14 = vpop.f32.mrf.mxu0 }
 0xa82   : > { %v5125_v32 = vadd.f32 %v5124_v14, %v4870_v55 }
 0xa83   : > { %v5126_v2 = vpop.f32.mrf.mxu0 }
 0xa84   : > { %v5127_v34 = vadd.f32 %v5126_v2, %v4870_v55  ;;  %v5958_v2 = vld [vmem:[%s6088_s22 + $0x28] sm:$0xff] }
 0xa85   : > { %v5130_v43 = vpop.f32.mrf.mxu0 }
 0xa86   : > { %v5131_v9 = vadd.f32 %v5130_v43, %v4875_v24 }
 0xa87   : > { %v5132_v54 = vpop.f32.mrf.mxu0 }
 0xa88   : > { %v5133_v29 = vadd.f32 %v5132_v54, %v4875_v24 }
 0xa89   : > { %v5134_v8 = vpop.f32.mrf.mxu0 }
 0xa8a   : > { %v5135_v56 = vadd.f32 %v5134_v8, %v4880_v47  ;;  %v5959_v8 = vld [vmem:[%s6088_s22 + $0x30] sm:$0xff] }
 0xa8b   : > { %v9407_v58 = vpop.f32.mrf.mxu0 }
 0xa8c   : > { %v5137_v14 = vadd.f32 %v9407_v58, %v4880_v47  ;;  %v5960_v58 = vld [vmem:[%s6088_s22 + $0x38] sm:$0xff] }
 0xa8d   : > { %v9409_v38 = vpop.f32.mrf.mxu0 }
 0xa8f   : > { %v9411_v18 = vpop.f32.mrf.mxu0 }
 0xa91   : > { %v9413_v42 = vpop.f32.mrf.mxu0 }
 0xa93   : > { %v9415_v62 = vpop.f32.mrf.mxu0 }
 0xa95   : > { %v9417_v41 = vpop.f32.mrf.mxu0 }
 0xa97   : > { %v9419_v20 = vpop.f32.mrf.mxu0 }
 0xa99   : > { %v9421_v27 = vpop.f32.mrf.mxu0 }
 0xa9b   : > { %v9423_v11 = vpop.f32.mrf.mxu0 }
 0xa9d   : > { %v9425_v51 = vpop.f32.mrf.mxu0 }
 0xa9f   : > { %v9427_v22 = vpop.f32.mrf.mxu0 }
 0xaa1   : > { %v9429_v0 = vpop.f32.mrf.mxu0 }
 0xaa3   : > { %v9431_v33 = vpop.f32.mrf.mxu0 }
 0xaa5   : > { %v9433_v52 = vpop.f32.mrf.mxu0 }
 0xaa7   : > { %v9435_v10 = vpop.f32.mrf.mxu0 }
 0xaa9   : > { %v9437_v4 = vpop.f32.mrf.mxu0 }
 0xaab   : > { %v9439_v6 = vpop.f32.mrf.mxu0 }
 0xaad   : > { %v9441_v12 = vpop.f32.mrf.mxu0 }
 0xaaf   : > { %v9443_v1 = vpop.f32.mrf.mxu0 }
 0xab1   : > { %v9445_v49 = vpop.f32.mrf.mxu0 }
 0xab3   : > { %v9447_v28 = vpop.f32.mrf.mxu0 }
 0xab5   : > { %v9449_v36 = vpop.f32.mrf.mxu0 }
 0xab7   : > { %v9451_v23 = vpop.f32.mrf.mxu0 }
 0xab9   : > { %v9453_v26 = vpop.f32.mrf.mxu0 }
 0xabb   : > { %v9455_v13 = vpop.f32.mrf.mxu0 }
 0xabd   : > { %v5233_v40 = vpop.f32.mrf.mxu0 }
 0xabe   : > { %v5234_v15 = vadd.f32 %v5233_v40, %v5121_v48  ;;  %v5141_v40 = vadd.f32 %v9409_v38, %v4885_v44  ;;  %v5961_v38 = vld [vmem:[%s6088_s22 + $0x40] sm:$0xff] }
 0xabf   : > { %v5235_v61 = vpop.f32.mrf.mxu0 }
 0xac0   : > { %v5312_v16 = vadd.f32 %v5953_v21, %v5234_v15  ;;  %v5236_v19 = vadd.f32 %v5235_v61, %v5123_v63  ;;  %v5143_v61 = vadd.f32 %v9411_v18, %v4885_v44  ;;  %v5962_v18 = vld [vmem:[%s6088_s22 + $0x48] sm:$0xff] }
 0xac1   : > { %v5237_v57 = vpop.f32.mrf.mxu0 }
 0xac2   : > { %5344 = vst [vmem:[%s9462_s30] sm:$0xff] %v5312_v16  ;;  %v5313_v39 = vadd.f32 %v5954_v60, %v5236_v19  ;;  %v5238_v5 = vadd.f32 %v5237_v57, %v5125_v32  ;;  %v4890_v16 = vpop.permute.xlu1 %4889 }
 0xac3   : > { %v5239_v30 = vpop.f32.mrf.mxu0  ;;  %v5145_v57 = vadd.f32 %v9413_v42, %v4890_v16  ;;  %v5963_v42 = vld [vmem:[%s6088_s22 + $0x50] sm:$0xff] }
 0xac4   : > { %5345 = vst [vmem:[%s9462_s30 + $0x8] sm:$0xff] %v5313_v39  ;;  %v5314_v59 = vadd.f32 %v5955_v50, %v5238_v5  ;;  %v5240_v45 = vadd.f32 %v5239_v30, %v5127_v34  ;;  %v5147_v5 = vadd.f32 %v9415_v62, %v4890_v16  ;;  %v5964_v62 = vld [vmem:[%s6088_s22 + $0x58] sm:$0xff] }
 0xac5   : > { %v5243_v17 = vpop.f32.mrf.mxu0 }
 0xac6   : > { %5346 = vst [vmem:[%s9462_s30 + $0x10] sm:$0xff] %v5314_v59  ;;  %v5315_v7 = vadd.f32 %v5956_v3, %v5240_v45  ;;  %v5244_v53 = vadd.f32 %v5243_v17, %v5131_v9  ;;  %v4895_v9 = vpop.permute.xlu0 %4894  ;;  %v4900_v47 = vpop.permute.xlu1 %4899 }
 0xac7   : > { %v5245_v35 = vpop.f32.mrf.mxu0  ;;  %v5151_v59 = vadd.f32 %v9417_v41, %v4895_v9  ;;  %v5153_v3 = vadd.f32 %v9419_v20, %v4895_v9  ;;  %v5965_v41 = vld [vmem:[%s6088_s22 + $0x60] sm:$0xff]  ;;  %v5966_v20 = vld [vmem:[%s6088_s22 + $0x68] sm:$0xff] }
 0xac8   : > { %5347 = vst [vmem:[%s9462_s30 + $0x18] sm:$0xff] %v5315_v7  ;;  %v5316_v37 = vadd.f32 %v5957_v46, %v5244_v53  ;;  %v5246_v31 = vadd.f32 %v5245_v35, %v5133_v29 }
 0xac9   : > { %v5247_v25 = vpop.f32.mrf.mxu0 }
 0xaca   : > { %5348 = vst [vmem:[%s9462_s30 + $0x20] sm:$0xff] %v5316_v37  ;;  %v5317_v43 = vadd.f32 %v5958_v2, %v5246_v31  ;;  %v5248_v54 = vadd.f32 %v5247_v25, %v5135_v56  ;;  %v5155_v56 = vadd.f32 %v9421_v27, %v4900_v47  ;;  %v5157_v25 = vadd.f32 %v9423_v11, %v4900_v47  ;;  %v5967_v27 = vld [vmem:[%s6088_s22 + $0x70] sm:$0xff]  ;;  %v5968_v11 = vld [vmem:[%s6088_s22 + $0x78] sm:$0xff] }
 0xacb   : > { %v5249_v48 = vpop.f32.mrf.mxu0 }
 0xacc   : > { %5349 = vst [vmem:[%s9462_s30 + $0x28] sm:$0xff] %v5317_v43  ;;  %v5318_v63 = vadd.f32 %v5959_v8, %v5248_v54  ;;  %v5250_v15 = vadd.f32 %v5249_v48, %v5137_v14  ;;  %v4905_v43 = vpop.permute.xlu0 %4904 }
 0xacd   : > { %v5253_v55 = vpop.f32.mrf.mxu0  ;;  %v5161_v44 = vadd.f32 %v9425_v51, %v4905_v43  ;;  %v5969_v51 = vld [vmem:[%s6088_s22 + $0x80] sm:$0xff] }
 0xace   : > { %5350 = vst [vmem:[%s9462_s30 + $0x30] sm:$0xff] %v5318_v63  ;;  %v5319_v32 = vadd.f32 %v5960_v58, %v5250_v15  ;;  %v5254_v21 = vadd.f32 %v5253_v55, %v5141_v40  ;;  %v5163_v63 = vadd.f32 %v9427_v22, %v4905_v43  ;;  %v5970_v22 = vld [vmem:[%s6088_s22 + $0x88] sm:$0xff] }
 0xacf   : > { %v5255_v19 = vpop.f32.mrf.mxu0 }
 0xad0   : > { %5351 = vst [vmem:[%s9462_s30 + $0x38] sm:$0xff] %v5319_v32  ;;  %v5320_v34 = vadd.f32 %v5961_v38, %v5254_v21  ;;  %v5256_v60 = vadd.f32 %v5255_v19, %v5143_v61  ;;  %v4910_v61 = vpop.permute.xlu1 %4909 }
 0xad1   : > { %v5257_v39 = vpop.f32.mrf.mxu0  ;;  %v5165_v32 = vadd.f32 %v9429_v0, %v4910_v61  ;;  %v5971_v0 = vld [vmem:[%s6088_s22 + $0x90] sm:$0xff] }
 0xad2   : > { %5352 = vst [vmem:[%s9462_s30 + $0x40] sm:$0xff] %v5320_v34  ;;  %v5321_v24 = vadd.f32 %v5962_v18, %v5256_v60  ;;  %v5258_v30 = vadd.f32 %v5257_v39, %v5145_v57  ;;  %v5167_v57 = vadd.f32 %v9431_v33, %v4910_v61  ;;  %v4915_v60 = vpop.permute.xlu0 %4914  ;;  %v5972_v33 = vld [vmem:[%s6088_s22 + $0x98] sm:$0xff] }
 0xad3   : > { %v5259_v50 = vpop.f32.mrf.mxu0  ;;  %v5173_v9 = vadd.f32 %v9435_v10, %v4915_v60  ;;  %v5974_v10 = vld [vmem:[%s6088_s22 + $0xa8] sm:$0xff] }
 0xad4   : > { %5353 = vst [vmem:[%s9462_s30 + $0x48] sm:$0xff] %v5321_v24  ;;  %v5322_v45 = vadd.f32 %v5963_v42, %v5258_v30  ;;  %v5260_v17 = vadd.f32 %v5259_v50, %v5147_v5  ;;  %v5171_v5 = vadd.f32 %v9433_v52, %v4915_v60  ;;  %v4920_v42 = vpop.permute.xlu1 %4919  ;;  %v5973_v52 = vld [vmem:[%s6088_s22 + $0xa0] sm:$0xff] }
 0xad5   : > { %v5263_v29 = vpop.f32.mrf.mxu0 }
 0xad6   : > { %5354 = vst [vmem:[%s9462_s30 + $0x50] sm:$0xff] %v5322_v45  ;;  %v5323_v7 = vadd.f32 %v5964_v62, %v5260_v17  ;;  %v5264_v53 = vadd.f32 %v5263_v29, %v5151_v59  ;;  %v5175_v17 = vadd.f32 %v9437_v4, %v4920_v42  ;;  %v5975_v4 = vld [vmem:[%s6088_s22 + $0xb0] sm:$0xff] }
 0xad7   : > { %v5265_v35 = vpop.f32.mrf.mxu0 }
 0xad8   : > { %5355 = vst [vmem:[%s9462_s30 + $0x58] sm:$0xff] %v5323_v7  ;;  %v5324_v46 = vadd.f32 %v5965_v41, %v5264_v53  ;;  %v5266_v37 = vadd.f32 %v5265_v35, %v5153_v3  ;;  %v5177_v7 = vadd.f32 %v9439_v6, %v4920_v42  ;;  %v4925_v35 = vpop.permute.xlu0 %4924  ;;  %v5976_v6 = vld [vmem:[%s6088_s22 + $0xb8] sm:$0xff] }
 0xad9   : > { %v5267_v31 = vpop.f32.mrf.mxu0  ;;  %v5181_v41 = vadd.f32 %v9441_v12, %v4925_v35  ;;  %v5977_v12 = vld [vmem:[%s6088_s22 + $0xc0] sm:$0xff] }
 0xada   : > { %5356 = vst [vmem:[%s9462_s30 + $0x60] sm:$0xff] %v5324_v46  ;;  %v5325_v14 = vadd.f32 %v5966_v20, %v5266_v37  ;;  %v5268_v2 = vadd.f32 %v5267_v31, %v5155_v56 }
 0xadb   : > { %v5269_v54 = vpop.f32.mrf.mxu0 }
 0xadc   : > { %5357 = vst [vmem:[%s9462_s30 + $0x68] sm:$0xff] %v5325_v14  ;;  %v5326_v48 = vadd.f32 %v5967_v27, %v5268_v2  ;;  %v5270_v40 = vadd.f32 %v5269_v54, %v5157_v25  ;;  %v5183_v25 = vadd.f32 %v9443_v1, %v4925_v35  ;;  %v4930_v2 = vpop.permute.xlu1 %4929  ;;  %v5978_v1 = vld [vmem:[%s6088_s22 + $0xc8] sm:$0xff] }
 0xadd   : > { %v5273_v8 = vpop.f32.mrf.mxu0  ;;  %v5185_v54 = vadd.f32 %v9445_v49, %v4930_v2  ;;  %v5979_v49 = vld [vmem:[%s6088_s22 + $0xd0] sm:$0xff] }
 0xade   : > { %5358 = vst [vmem:[%s9462_s30 + $0x70] sm:$0xff] %v5326_v48  ;;  %v5327_v15 = vadd.f32 %v5968_v11, %v5270_v40  ;;  %v5274_v55 = vadd.f32 %v5273_v8, %v5161_v44  ;;  %v5187_v40 = vadd.f32 %v9447_v28, %v4930_v2  ;;  %v4935_v11 = vpop.permute.xlu0 %4934  ;;  %v5980_v28 = vld [vmem:[%s6088_s22 + $0xd8] sm:$0xff] }
 0xadf   : > { %v5275_v58 = vpop.f32.mrf.mxu0 }
 0xae0   : > { %5359 = vst [vmem:[%s9462_s30 + $0x78] sm:$0xff] %v5327_v15  ;;  %v5328_v21 = vadd.f32 %v5969_v51, %v5274_v55  ;;  %v5276_v16 = vadd.f32 %v5275_v58, %v5163_v63  ;;  %v5191_v55 = vadd.f32 %v9449_v36, %v4935_v11  ;;  %v5193_v51 = vadd.f32 %v9451_v23, %v4935_v11  ;;  %v5981_v36 = vld [vmem:[%s6088_s22 + $0xe0] sm:$0xff] }
 0xae1   : > { %v5277_v19 = vpop.f32.mrf.mxu0 }
 0xae2   : > { %5360 = vst [vmem:[%s9462_s30 + $0x80] sm:$0xff] %v5328_v21  ;;  %v5329_v38 = vadd.f32 %v5970_v22, %v5276_v16  ;;  %v5278_v34 = vadd.f32 %v5277_v19, %v5165_v32  ;;  %v4940_v19 = vpop.permute.xlu1 %4939 }
 0xae3   : > { %v5279_v39 = vpop.f32.mrf.mxu0  ;;  %v5195_v22 = vadd.f32 %v9453_v26, %v4940_v19  ;;  %v5197_v23 = vadd.f32 %v9455_v13, %v4940_v19  ;;  %v5984_v26 = vld [vmem:[%s6088_s22 + $0xf8] sm:$0xff] }
 0xae4   : > { %5361 = vst [vmem:[%s9462_s30 + $0x88] sm:$0xff] %v5329_v38  ;;  %v5330_v18 = vadd.f32 %v5971_v0, %v5278_v34  ;;  %v5280_v24 = vadd.f32 %v5279_v39, %v5167_v57  ;;  %v5982_v39 = vld [vmem:[%s6088_s22 + $0xe8] sm:$0xff] }
 0xae5   : > { %v5283_v30 = vpop.f32.mrf.mxu0 }
 0xae6   : > { %5362 = vst [vmem:[%s9462_s30 + $0x90] sm:$0xff] %v5330_v18  ;;  %v5331_v50 = vadd.f32 %v5972_v33, %v5280_v24  ;;  %v5284_v59 = vadd.f32 %v5283_v30, %v5171_v5  ;;  %v5983_v24 = vld [vmem:[%s6088_s22 + $0xf0] sm:$0xff] }
 0xae7   : > { %v5285_v45 = vpop.f32.mrf.mxu0 }
 0xae8   : > { %5363 = vst [vmem:[%s9462_s30 + $0x98] sm:$0xff] %v5331_v50  ;;  %v5332_v29 = vadd.f32 %v5973_v52, %v5284_v59  ;;  %v5286_v3 = vadd.f32 %v5285_v45, %v5173_v9 }
 0xae9   : > { %v5287_v62 = vpop.f32.mrf.mxu0 }
 0xaea   : > { %5364 = vst [vmem:[%s9462_s30 + $0xa0] sm:$0xff] %v5332_v29  ;;  %v5333_v53 = vadd.f32 %v5974_v10, %v5286_v3  ;;  %v5288_v47 = vadd.f32 %v5287_v62, %v5175_v17 }
 0xaeb   : > { %v5289_v56 = vpop.f32.mrf.mxu0 }
 0xaec   : > { %5365 = vst [vmem:[%s9462_s30 + $0xa8] sm:$0xff] %v5333_v53  ;;  %v5334_v46 = vadd.f32 %v5975_v4, %v5288_v47  ;;  %v5290_v37 = vadd.f32 %v5289_v56, %v5177_v7 }
 0xaed   : > { %v5293_v31 = vpop.f32.mrf.mxu0 }
 0xaee   : > { %5366 = vst [vmem:[%s9462_s30 + $0xb0] sm:$0xff] %v5334_v46  ;;  %v5335_v20 = vadd.f32 %v5976_v6, %v5290_v37  ;;  %v5294_v14 = vadd.f32 %v5293_v31, %v5181_v41 }
 0xaef   : > { %v5295_v43 = vpop.f32.mrf.mxu0 }
 0xaf0   : > { %5367 = vst [vmem:[%s9462_s30 + $0xb8] sm:$0xff] %v5335_v20  ;;  %v5336_v44 = vadd.f32 %v5977_v12, %v5294_v14  ;;  %v5296_v27 = vadd.f32 %v5295_v43, %v5183_v25 }
 0xaf1   : > { %v5297_v48 = vpop.f32.mrf.mxu0 }
 0xaf2   : > { %5368 = vst [vmem:[%s9462_s30 + $0xc0] sm:$0xff] %v5336_v44  ;;  %v5337_v8 = vadd.f32 %v5978_v1, %v5296_v27  ;;  %v5298_v63 = vadd.f32 %v5297_v48, %v5185_v54 }
 0xaf3   : > { %v5299_v15 = vpop.f32.mrf.mxu0 }
 0xaf4   : > { %5369 = vst [vmem:[%s9462_s30 + $0xc8] sm:$0xff] %v5337_v8  ;;  %v5338_v61 = vadd.f32 %v5979_v49, %v5298_v63  ;;  %v5300_v58 = vadd.f32 %v5299_v15, %v5187_v40 }
 0xaf5   : > { %v5303_v32 = vpop.f32.mrf.mxu0 }
 0xaf6   : > { %5370 = vst [vmem:[%s9462_s30 + $0xd0] sm:$0xff] %v5338_v61  ;;  %v5339_v21 = vadd.f32 %v5980_v28, %v5300_v58  ;;  %v5304_v16 = vadd.f32 %v5303_v32, %v5191_v55 }
 0xaf7   : > { %v5305_v57 = vpop.f32.mrf.mxu0 }
 0xaf8   : > { %5371 = vst [vmem:[%s9462_s30 + $0xd8] sm:$0xff] %v5339_v21  ;;  %v5340_v38 = vadd.f32 %v5981_v36, %v5304_v16  ;;  %v5306_v34 = vadd.f32 %v5305_v57, %v5193_v51 }
 0xaf9   : > { %v5307_v60 = vpop.f32.mrf.mxu0 }
 0xafa   : > { %5372 = vst [vmem:[%s9462_s30 + $0xe0] sm:$0xff] %v5340_v38  ;;  %v5341_v5 = vadd.f32 %v5982_v39, %v5306_v34  ;;  %v5308_v0 = vadd.f32 %v5307_v60, %v5195_v22 }
 0xafb   : > { %v5309_v18 = vpop.f32.mrf.mxu0 }
 0xafc   : > { %5373 = vst [vmem:[%s9462_s30 + $0xe8] sm:$0xff] %v5341_v5  ;;  %v5342_v30 = vadd.f32 %v5983_v24, %v5308_v0  ;;  %v5310_v9 = vadd.f32 %v5309_v18, %v5197_v23 }
 0xafe   : > { %5374 = vst [vmem:[%s9462_s30 + $0xf0] sm:$0xff] %v5342_v30  ;;  %v5343_v33 = vadd.f32 %v5984_v26, %v5310_v9 }
 0xb00   : > { %5375 = vst [vmem:[%s9462_s30 + $0xf8] sm:$0xff] %v5343_v33 }
 0xb01 PF: > { %s21_s17 = sadd.s32 1, %s5991_s17  }
 0xb02   : > { %p18_p4 = scmp.ge.s32.totalorder %s21_s17, 4  }
 0xb04   :  { %20 = sbr.rel (!%p18_p4) target bundleno = 1 (0x1), region = 97 }

</bundles_post_ra>
